<compile_context>
chip_gen: v5e
topology: v5e:2x2
jax: 0.10.0
libtpu: 0.0.40
codegen_flags: <defaults>
</compile_context>

<pallas_src>
import math

import jax
import jax.numpy as jnp
from jax.experimental import pallas as pl
from jax.experimental.pallas import tpu as pltpu


# ---------------------------------------------------------------------------
# Pallas kernel: fused im2col + conv-as-shifted-dots, weights resident in VMEM
# ---------------------------------------------------------------------------
def _fused_conv_kernel(K, stride, th, wo):
    def kernel(x_ref, w_ref, b_ref, o_ref):
        # x_ref: (rows_in, Wp, Cin)  input row slab (auto-pipelined by BlockSpec)
        # w_ref: (K, K, Cin, Cout)   resident weights (constant index_map -> no re-DMA)
        # b_ref: (1, Cout)           resident bias (f32)
        # o_ref: (th, Wo, Cout)      output row tile, NHWC
        cin = x_ref.shape[-1]
        cout = o_ref.shape[-1]
        acc = jnp.zeros((th * wo, cout), jnp.float32)
        for kh in range(K):                     # static K*K unroll of shifted-window dots
            for kw in range(K):
                if stride == 1:
                    lhs = x_ref[pl.ds(kh, th), pl.ds(kw, wo), :]
                else:
                    lhs = x_ref[pl.ds(kh, th, stride), pl.ds(kw, wo, stride), :]
                acc = acc + jnp.dot(lhs.reshape(th * wo, cin), w_ref[kh, kw],
                                    preferred_element_type=jnp.float32)
        acc = acc + b_ref[...].astype(jnp.float32)
        o_ref[...] = acc.reshape(th, wo, cout).astype(o_ref.dtype)

    return kernel


def _vmem_budget_bytes():
    cap = 128 * 1024 * 1024
    try:
        cap = int(getattr(pltpu.get_tpu_info(), "vmem_capacity_bytes", cap))
    except Exception:
        pass
    # Stay under default scoped-VMEM limits (16 MiB v5e, 32 MiB v6e/v7x; 64 MiB phys v7x).
    return min(cap // 8, 12 * 1024 * 1024)


def _choose_row_tile(ho, wp, cin, wo, cout, K, stride, itemsize, w_bytes, batch):
    """Pick output rows per grid step: biggest divisor of Ho that fits the VMEM budget."""
    budget = _vmem_budget_bytes()
    divisors = sorted((d for d in range(1, ho + 1) if ho % d == 0), reverse=True)

    def fits(th):
        rows_in = (th - 1) * stride + K
        live = 2 * (rows_in * wp * cin + th * wo * cout) * itemsize  # double-buffered io
        return live + w_bytes <= budget

    th = 1
    for d in divisors:
        if fits(d):
            th = d
            break
    # Keep >= 2 parallel grid tiles so the second v7x TensorCore is not idle.
    if batch * (ho // th) < 2:
        for d in divisors:
            if d < th and fits(d):
                th = d
                break
    return th


def _conv2d_nhwc(x_nhwc, weight, bias, *, stride, compute_dtype=None):
    """VALID conv of an NHWC input with an OIHW weight via the fused Pallas kernel (NHWC out)."""
    B, Hp, Wp, Cin = x_nhwc.shape
    Cout, _, K, _ = weight.shape
    ho = (Hp - K) // stride + 1
    wo = (Wp - K) // stride + 1
    out_dtype = x_nhwc.dtype
    cdt = jnp.dtype(compute_dtype) if compute_dtype is not None else x_nhwc.dtype

    w_k = jnp.transpose(weight, (2, 3, 1, 0)).astype(cdt)        # (K, K, Cin, Cout)
    b2d = bias.reshape(1, Cout).astype(jnp.float32)
    x_nhwc = x_nhwc.astype(cdt)

    itemsize = jnp.dtype(cdt).itemsize
    w_bytes = w_k.size * itemsize + b2d.size * 4
    th = _choose_row_tile(ho, Wp, Cin, wo, Cout, K, stride, itemsize, w_bytes, B)
    n_tiles = ho // th
    rows_in = (th - 1) * stride + K

    if n_tiles == 1:
        slabs = x_nhwc[:, :rows_in]                               # (B, rows_in, Wp, Cin)
    else:
        # Overlapping row slabs (halo of K - stride rows); ~(rows_in/(th*stride))x the input,
        # vs. K*K x for a full im2col materialization.
        slabs = jnp.stack([x_nhwc[:, t * th * stride: t * th * stride + rows_in]
                           for t in range(n_tiles)], axis=1)
        slabs = slabs.reshape(B * n_tiles, rows_in, Wp, Cin)

    kernel = _fused_conv_kernel(K, stride, th, wo)
    out = pl.pallas_call(
        kernel,
        out_shape=jax.ShapeDtypeStruct((B, ho, wo, Cout), out_dtype),
        grid_spec=pltpu.PrefetchScalarGridSpec(
            num_scalar_prefetch=0,
            grid=(B, n_tiles),
            in_specs=[
                pl.BlockSpec((None, rows_in, Wp, Cin),
                             lambda b, t: (b * n_tiles + t, 0, 0, 0)),        # row slab
                pl.BlockSpec((K, K, Cin, Cout), lambda b, t: (0, 0, 0, 0)),   # resident W
                pl.BlockSpec((1, Cout), lambda b, t: (0, 0)),                 # resident bias
            ],
            out_specs=pl.BlockSpec((None, th, wo, Cout), lambda b, t: (b, t, 0, 0)),
        ),
        compiler_params=pltpu.CompilerParams(
            dimension_semantics=("parallel", "parallel")),
    )(slabs, w_k, b2d)
    return out


# ---------------------------------------------------------------------------
# Wrapper-side layout plumbing (upsample as dense matmuls, reflection pad)
# ---------------------------------------------------------------------------
def _interp_matrix(in_size, out_size, dtype):
    # torch.nn.Upsample(mode='bilinear', align_corners=False) source coordinates:
    # src = (dst + 0.5) * (in / out) - 0.5, clamped to [0, in-1].
    scale = in_size / out_size
    c = (jnp.arange(out_size, dtype=jnp.float32) + 0.5) * scale - 0.5
    c = jnp.clip(c, 0.0, in_size - 1)
    lo = jnp.floor(c).astype(jnp.int32)
    hi = jnp.minimum(lo + 1, in_size - 1)
    frac = c - lo.astype(jnp.float32)
    m = ((1.0 - frac)[:, None] * jax.nn.one_hot(lo, in_size, dtype=jnp.float32)
         + frac[:, None] * jax.nn.one_hot(hi, in_size, dtype=jnp.float32))
    return m.astype(dtype)


def _bilinear_upsample_nchw(x, scale):
    """Bilinear upsample expressed as two dense interpolation matmuls (no gathers)."""
    B, C, H, W = x.shape
    H2, W2 = int(math.floor(H * scale)), int(math.floor(W * scale))
    mh = _interp_matrix(H, H2, x.dtype)          # (H2, H)
    mw = _interp_matrix(W, W2, x.dtype)          # (W2, W)
    x = jnp.einsum('oh,bchw->bcow', mh, x)       # interpolate rows
    x = jnp.einsum('bchw,ow->bcho', x, mw)       # interpolate cols
    return x


def upsample_conv_layer_forward(x, weight, bias, *, stride, upsample=None,
                                compute_dtype=None):
    """Pallas-backed UpsampleConvLayer.forward.  x: NCHW, weight: OIHW, bias: (Cout,).

    compute_dtype: optionally jnp.bfloat16 for the MXU on v6e/v7x (accumulation and the
    bias epilogue stay f32); default keeps the input dtype (f32) for tight accuracy.
    """
    K = weight.shape[-1]
    if upsample:
        x = _bilinear_upsample_nchw(x, upsample)
    x = jnp.transpose(x, (0, 2, 3, 1))            # NCHW -> NHWC (kernel-friendly layout)
    pad = K // 2
    if pad:
        # TODO(synk): reflection pad is pure reindexing; kept as an XLA op.
        x = jnp.pad(x, ((0, 0), (pad, pad), (pad, pad), (0, 0)), mode="reflect")
    out_nhwc = _conv2d_nhwc(x, weight, bias, stride=stride, compute_dtype=compute_dtype)
    # TODO(synk): a real pipeline would keep NHWC end-to-end; this transpose only exists to
    # match the PyTorch module's NCHW output contract.
    return jnp.transpose(out_nhwc, (0, 3, 1, 2))


# ---------------------------------------------------------------------------
# Pure-JAX reference (mirrors the PyTorch module)
# ---------------------------------------------------------------------------
def _reference_forward(x, weight, bias, *, stride, upsample=None):
    if upsample:
        x = _bilinear_upsample_nchw(x, upsample)
    pad = weight.shape[-1] // 2
    if pad:
        x = jnp.pad(x, ((0, 0), (0, 0), (pad, pad), (pad, pad)), mode="reflect")
    out = jax.lax.conv_general_dilated(
        x, weight, window_strides=(stride, stride), padding="VALID",
        dimension_numbers=("NCHW", "OIHW", "NCHW"),
        precision=jax.lax.Precision.HIGHEST)
    return out + bias[None, :, None, None]


if __name__ == "__main__":
    key = jax.random.PRNGKey(0)
    k_x, k_w, k_b = jax.random.split(key, 3)

    # UpsampleConvLayer(in=4, out=8, kernel=3, stride=1, upsample=2) at small shapes
    B, C_in, H, W = 2, 4, 16, 16
    C_out, K, stride, upsample = 8, 3, 1, 2

    x = jax.random.normal(k_x, (B, C_in, H, W), dtype=jnp.float32)
    fan_in = C_in * K * K
    bound = 1.0 / (fan_in ** 0.5)
    weight = jax.random.uniform(k_w, (C_out, C_in, K, K), jnp.float32, -bound, bound)
    bias = jax.random.uniform(k_b, (C_out,), jnp.float32, -bound, bound)

    out = upsample_conv_layer_forward(x, weight, bias, stride=stride, upsample=upsample)
    out = jax.block_until_ready(out)

    ref = _reference_forward(x, weight, bias, stride=stride, upsample=upsample)
    assert out.shape == (B, C_out, H * upsample, W * upsample), out.shape
    assert out.dtype == x.dtype
    err = float(jnp.max(jnp.abs(out - ref)))
    assert jnp.allclose(out, ref, atol=5e-3, rtol=5e-3), f"max abs err = {err}"

    print("KERNEL_OK")
</pallas_src>

<mosaic_0001>
module attributes {stable_mosaic.version = 11 : i64} {
  func.func @kernel(%arg0: i32, %arg1: i32, %arg2: memref<1x34x34x4xf32, #tpu.memory_space<vmem>>, %arg3: memref<3x3x4x8xf32, #tpu.memory_space<vmem>>, %arg4: memref<1x8xf32, #tpu.memory_space<vmem>>, %arg5: memref<1x32x32x8xf32, #tpu.memory_space<vmem>>) attributes {dimension_semantics = [#tpu.dimension_semantics<parallel>, #tpu.dimension_semantics<parallel>], iteration_bounds = array<i64: 2, 1>, scalar_prefetch = 0 : i64, scratch_operands = 0 : i64, tpu.core_type = #tpu.core_type<tc>, window_params = [{transform_indices = @transform_0, window_bounds = array<i64: 1, 34, 34, 4>}, {pipeline_mode = #tpu.pipeline_mode<synchronous>, transform_indices = @transform_1, window_bounds = array<i64: 3, 3, 4, 8>}, {pipeline_mode = #tpu.pipeline_mode<synchronous>, transform_indices = @transform_2, window_bounds = array<i64: 1, 8>}, {transform_indices = @transform_3, window_bounds = array<i64: 1, 32, 32, 8>}]} {
    %cst = arith.constant 0.000000e+00 : f32
    %0 = vector.broadcast %cst : f32 to vector<1024x8xf32>
    %c0 = arith.constant 0 : index
    %c0_0 = arith.constant 0 : index
    %c0_1 = arith.constant 0 : index
    %c0_2 = arith.constant 0 : index
    %1 = vector.load %arg2[%c0, %c0_0, %c0_1, %c0_2] : memref<1x34x34x4xf32, #tpu.memory_space<vmem>>, vector<1x32x32x4xf32>
    %2 = vector.shape_cast %1 : vector<1x32x32x4xf32> to vector<32x32x4xf32>
    %3 = vector.shape_cast %2 : vector<32x32x4xf32> to vector<1024x4xf32>
    %c0_3 = arith.constant 0 : index
    %c0_4 = arith.constant 0 : index
    %c0_5 = arith.constant 0 : index
    %c0_6 = arith.constant 0 : index
    %4 = vector.load %arg3[%c0_3, %c0_4, %c0_5, %c0_6] : memref<3x3x4x8xf32, #tpu.memory_space<vmem>>, vector<1x1x4x8xf32>
    %5 = vector.shape_cast %4 : vector<1x1x4x8xf32> to vector<4x8xf32>
    %cst_7 = arith.constant dense<0.000000e+00> : vector<1024x8xf32>
    %6 = tpu.matmul %3, %5, %cst_7 {dimension_numbers = #tpu.dot_dimension_numbers<[1], [0], [0], [1], [0, 0, 1, 1], [], []>} : vector<1024x4xf32>, vector<4x8xf32>, vector<1024x8xf32> -> vector<1024x8xf32>
    %7 = arith.addf %0, %6 : vector<1024x8xf32>
    %c0_8 = arith.constant 0 : index
    %c0_9 = arith.constant 0 : index
    %c1 = arith.constant 1 : index
    %c0_10 = arith.constant 0 : index
    %8 = vector.load %arg2[%c0_8, %c0_9, %c1, %c0_10] : memref<1x34x34x4xf32, #tpu.memory_space<vmem>>, vector<1x32x32x4xf32>
    %9 = vector.shape_cast %8 : vector<1x32x32x4xf32> to vector<32x32x4xf32>
    %10 = vector.shape_cast %9 : vector<32x32x4xf32> to vector<1024x4xf32>
    %c0_11 = arith.constant 0 : index
    %c1_12 = arith.constant 1 : index
    %c0_13 = arith.constant 0 : index
    %c0_14 = arith.constant 0 : index
    %11 = vector.load %arg3[%c0_11, %c1_12, %c0_13, %c0_14] : memref<3x3x4x8xf32, #tpu.memory_space<vmem>>, vector<1x1x4x8xf32>
    %12 = vector.shape_cast %11 : vector<1x1x4x8xf32> to vector<4x8xf32>
    %cst_15 = arith.constant dense<0.000000e+00> : vector<1024x8xf32>
    %13 = tpu.matmul %10, %12, %cst_15 {dimension_numbers = #tpu.dot_dimension_numbers<[1], [0], [0], [1], [0, 0, 1, 1], [], []>} : vector<1024x4xf32>, vector<4x8xf32>, vector<1024x8xf32> -> vector<1024x8xf32>
    %14 = arith.addf %7, %13 : vector<1024x8xf32>
    %c0_16 = arith.constant 0 : index
    %c0_17 = arith.constant 0 : index
    %c2 = arith.constant 2 : index
    %c0_18 = arith.constant 0 : index
    %15 = vector.load %arg2[%c0_16, %c0_17, %c2, %c0_18] : memref<1x34x34x4xf32, #tpu.memory_space<vmem>>, vector<1x32x32x4xf32>
    %16 = vector.shape_cast %15 : vector<1x32x32x4xf32> to vector<32x32x4xf32>
    %17 = vector.shape_cast %16 : vector<32x32x4xf32> to vector<1024x4xf32>
    %c0_19 = arith.constant 0 : index
    %c2_20 = arith.constant 2 : index
    %c0_21 = arith.constant 0 : index
    %c0_22 = arith.constant 0 : index
    %18 = vector.load %arg3[%c0_19, %c2_20, %c0_21, %c0_22] : memref<3x3x4x8xf32, #tpu.memory_space<vmem>>, vector<1x1x4x8xf32>
    %19 = vector.shape_cast %18 : vector<1x1x4x8xf32> to vector<4x8xf32>
    %cst_23 = arith.constant dense<0.000000e+00> : vector<1024x8xf32>
    %20 = tpu.matmul %17, %19, %cst_23 {dimension_numbers = #tpu.dot_dimension_numbers<[1], [0], [0], [1], [0, 0, 1, 1], [], []>} : vector<1024x4xf32>, vector<4x8xf32>, vector<1024x8xf32> -> vector<1024x8xf32>
    %21 = arith.addf %14, %20 : vector<1024x8xf32>
    %c0_24 = arith.constant 0 : index
    %c1_25 = arith.constant 1 : index
    %c0_26 = arith.constant 0 : index
    %c0_27 = arith.constant 0 : index
    %22 = vector.load %arg2[%c0_24, %c1_25, %c0_26, %c0_27] : memref<1x34x34x4xf32, #tpu.memory_space<vmem>>, vector<1x32x32x4xf32>
    %23 = vector.shape_cast %22 : vector<1x32x32x4xf32> to vector<32x32x4xf32>
    %24 = vector.shape_cast %23 : vector<32x32x4xf32> to vector<1024x4xf32>
    %c1_28 = arith.constant 1 : index
    %c0_29 = arith.constant 0 : index
    %c0_30 = arith.constant 0 : index
    %c0_31 = arith.constant 0 : index
    %25 = vector.load %arg3[%c1_28, %c0_29, %c0_30, %c0_31] : memref<3x3x4x8xf32, #tpu.memory_space<vmem>>, vector<1x1x4x8xf32>
    %26 = vector.shape_cast %25 : vector<1x1x4x8xf32> to vector<4x8xf32>
    %cst_32 = arith.constant dense<0.000000e+00> : vector<1024x8xf32>
    %27 = tpu.matmul %24, %26, %cst_32 {dimension_numbers = #tpu.dot_dimension_numbers<[1], [0], [0], [1], [0, 0, 1, 1], [], []>} : vector<1024x4xf32>, vector<4x8xf32>, vector<1024x8xf32> -> vector<1024x8xf32>
    %28 = arith.addf %21, %27 : vector<1024x8xf32>
    %c0_33 = arith.constant 0 : index
    %c1_34 = arith.constant 1 : index
    %c1_35 = arith.constant 1 : index
    %c0_36 = arith.constant 0 : index
    %29 = vector.load %arg2[%c0_33, %c1_34, %c1_35, %c0_36] : memref<1x34x34x4xf32, #tpu.memory_space<vmem>>, vector<1x32x32x4xf32>
    %30 = vector.shape_cast %29 : vector<1x32x32x4xf32> to vector<32x32x4xf32>
    %31 = vector.shape_cast %30 : vector<32x32x4xf32> to vector<1024x4xf32>
    %c1_37 = arith.constant 1 : index
    %c1_38 = arith.constant 1 : index
    %c0_39 = arith.constant 0 : index
    %c0_40 = arith.constant 0 : index
    %32 = vector.load %arg3[%c1_37, %c1_38, %c0_39, %c0_40] : memref<3x3x4x8xf32, #tpu.memory_space<vmem>>, vector<1x1x4x8xf32>
    %33 = vector.shape_cast %32 : vector<1x1x4x8xf32> to vector<4x8xf32>
    %cst_41 = arith.constant dense<0.000000e+00> : vector<1024x8xf32>
    %34 = tpu.matmul %31, %33, %cst_41 {dimension_numbers = #tpu.dot_dimension_numbers<[1], [0], [0], [1], [0, 0, 1, 1], [], []>} : vector<1024x4xf32>, vector<4x8xf32>, vector<1024x8xf32> -> vector<1024x8xf32>
    %35 = arith.addf %28, %34 : vector<1024x8xf32>
    %c0_42 = arith.constant 0 : index
    %c1_43 = arith.constant 1 : index
    %c2_44 = arith.constant 2 : index
    %c0_45 = arith.constant 0 : index
    %36 = vector.load %arg2[%c0_42, %c1_43, %c2_44, %c0_45] : memref<1x34x34x4xf32, #tpu.memory_space<vmem>>, vector<1x32x32x4xf32>
    %37 = vector.shape_cast %36 : vector<1x32x32x4xf32> to vector<32x32x4xf32>
    %38 = vector.shape_cast %37 : vector<32x32x4xf32> to vector<1024x4xf32>
    %c1_46 = arith.constant 1 : index
    %c2_47 = arith.constant 2 : index
    %c0_48 = arith.constant 0 : index
    %c0_49 = arith.constant 0 : index
    %39 = vector.load %arg3[%c1_46, %c2_47, %c0_48, %c0_49] : memref<3x3x4x8xf32, #tpu.memory_space<vmem>>, vector<1x1x4x8xf32>
    %40 = vector.shape_cast %39 : vector<1x1x4x8xf32> to vector<4x8xf32>
    %cst_50 = arith.constant dense<0.000000e+00> : vector<1024x8xf32>
    %41 = tpu.matmul %38, %40, %cst_50 {dimension_numbers = #tpu.dot_dimension_numbers<[1], [0], [0], [1], [0, 0, 1, 1], [], []>} : vector<1024x4xf32>, vector<4x8xf32>, vector<1024x8xf32> -> vector<1024x8xf32>
    %42 = arith.addf %35, %41 : vector<1024x8xf32>
    %c0_51 = arith.constant 0 : index
    %c2_52 = arith.constant 2 : index
    %c0_53 = arith.constant 0 : index
    %c0_54 = arith.constant 0 : index
    %43 = vector.load %arg2[%c0_51, %c2_52, %c0_53, %c0_54] : memref<1x34x34x4xf32, #tpu.memory_space<vmem>>, vector<1x32x32x4xf32>
    %44 = vector.shape_cast %43 : vector<1x32x32x4xf32> to vector<32x32x4xf32>
    %45 = vector.shape_cast %44 : vector<32x32x4xf32> to vector<1024x4xf32>
    %c2_55 = arith.constant 2 : index
    %c0_56 = arith.constant 0 : index
    %c0_57 = arith.constant 0 : index
    %c0_58 = arith.constant 0 : index
    %46 = vector.load %arg3[%c2_55, %c0_56, %c0_57, %c0_58] : memref<3x3x4x8xf32, #tpu.memory_space<vmem>>, vector<1x1x4x8xf32>
    %47 = vector.shape_cast %46 : vector<1x1x4x8xf32> to vector<4x8xf32>
    %cst_59 = arith.constant dense<0.000000e+00> : vector<1024x8xf32>
    %48 = tpu.matmul %45, %47, %cst_59 {dimension_numbers = #tpu.dot_dimension_numbers<[1], [0], [0], [1], [0, 0, 1, 1], [], []>} : vector<1024x4xf32>, vector<4x8xf32>, vector<1024x8xf32> -> vector<1024x8xf32>
    %49 = arith.addf %42, %48 : vector<1024x8xf32>
    %c0_60 = arith.constant 0 : index
    %c2_61 = arith.constant 2 : index
    %c1_62 = arith.constant 1 : index
    %c0_63 = arith.constant 0 : index
    %50 = vector.load %arg2[%c0_60, %c2_61, %c1_62, %c0_63] : memref<1x34x34x4xf32, #tpu.memory_space<vmem>>, vector<1x32x32x4xf32>
    %51 = vector.shape_cast %50 : vector<1x32x32x4xf32> to vector<32x32x4xf32>
    %52 = vector.shape_cast %51 : vector<32x32x4xf32> to vector<1024x4xf32>
    %c2_64 = arith.constant 2 : index
    %c1_65 = arith.constant 1 : index
    %c0_66 = arith.constant 0 : index
    %c0_67 = arith.constant 0 : index
    %53 = vector.load %arg3[%c2_64, %c1_65, %c0_66, %c0_67] : memref<3x3x4x8xf32, #tpu.memory_space<vmem>>, vector<1x1x4x8xf32>
    %54 = vector.shape_cast %53 : vector<1x1x4x8xf32> to vector<4x8xf32>
    %cst_68 = arith.constant dense<0.000000e+00> : vector<1024x8xf32>
    %55 = tpu.matmul %52, %54, %cst_68 {dimension_numbers = #tpu.dot_dimension_numbers<[1], [0], [0], [1], [0, 0, 1, 1], [], []>} : vector<1024x4xf32>, vector<4x8xf32>, vector<1024x8xf32> -> vector<1024x8xf32>
    %56 = arith.addf %49, %55 : vector<1024x8xf32>
    %c0_69 = arith.constant 0 : index
    %c2_70 = arith.constant 2 : index
    %c2_71 = arith.constant 2 : index
    %c0_72 = arith.constant 0 : index
    %57 = vector.load %arg2[%c0_69, %c2_70, %c2_71, %c0_72] : memref<1x34x34x4xf32, #tpu.memory_space<vmem>>, vector<1x32x32x4xf32>
    %58 = vector.shape_cast %57 : vector<1x32x32x4xf32> to vector<32x32x4xf32>
    %59 = vector.shape_cast %58 : vector<32x32x4xf32> to vector<1024x4xf32>
    %c2_73 = arith.constant 2 : index
    %c2_74 = arith.constant 2 : index
    %c0_75 = arith.constant 0 : index
    %c0_76 = arith.constant 0 : index
    %60 = vector.load %arg3[%c2_73, %c2_74, %c0_75, %c0_76] : memref<3x3x4x8xf32, #tpu.memory_space<vmem>>, vector<1x1x4x8xf32>
    %61 = vector.shape_cast %60 : vector<1x1x4x8xf32> to vector<4x8xf32>
    %cst_77 = arith.constant dense<0.000000e+00> : vector<1024x8xf32>
    %62 = tpu.matmul %59, %61, %cst_77 {dimension_numbers = #tpu.dot_dimension_numbers<[1], [0], [0], [1], [0, 0, 1, 1], [], []>} : vector<1024x4xf32>, vector<4x8xf32>, vector<1024x8xf32> -> vector<1024x8xf32>
    %63 = arith.addf %56, %62 : vector<1024x8xf32>
    %c0_78 = arith.constant 0 : index
    %c0_79 = arith.constant 0 : index
    %64 = vector.load %arg4[%c0_78, %c0_79] : memref<1x8xf32, #tpu.memory_space<vmem>>, vector<1x8xf32>
    %65 = vector.broadcast %64 : vector<1x8xf32> to vector<1024x8xf32>
    %66 = arith.addf %63, %65 : vector<1024x8xf32>
    %67 = vector.shape_cast %66 : vector<1024x8xf32> to vector<32x32x8xf32>
    %c0_80 = arith.constant 0 : index
    %c0_81 = arith.constant 0 : index
    %c0_82 = arith.constant 0 : index
    %c0_83 = arith.constant 0 : index
    %68 = vector.load %arg5[%c0_80, %c0_81, %c0_82, %c0_83] : memref<1x32x32x8xf32, #tpu.memory_space<vmem>>, vector<1x32x32x8xf32>
    %69 = vector.shape_cast %68 : vector<1x32x32x8xf32> to vector<32x32x8xf32>
    %70 = vector.shape_cast %67 : vector<32x32x8xf32> to vector<1x32x32x8xf32>
    tpu.vector_store %arg5[%c0_80, %c0_81, %c0_82, %c0_83], %70 {strides = array<i32>} : memref<1x32x32x8xf32, #tpu.memory_space<vmem>>, vector<1x32x32x8xf32>,
    return
  }
  func.func @transform_0(%arg0: i32, %arg1: i32) -> (i32, i32, i32, i32) {
    %c1_i32 = arith.constant 1 : i32
    %0 = arith.muli %arg0, %c1_i32 : i32
    %1 = arith.addi %0, %arg1 : i32
    %c0_i32 = arith.constant 0 : i32
    %c0_i32_0 = arith.constant 0 : i32
    %c0_i32_1 = arith.constant 0 : i32
    %c0_i32_2 = arith.constant 0 : i32
    return %1, %c0_i32, %c0_i32_0, %c0_i32_1 : i32, i32, i32, i32
  }
  func.func @transform_1(%arg0: i32, %arg1: i32) -> (i32, i32, i32, i32) {
    %c0_i32 = arith.constant 0 : i32
    %c0_i32_0 = arith.constant 0 : i32
    %c0_i32_1 = arith.constant 0 : i32
    %c0_i32_2 = arith.constant 0 : i32
    %c0_i32_3 = arith.constant 0 : i32
    return %c0_i32, %c0_i32_0, %c0_i32_1, %c0_i32_2 : i32, i32, i32, i32
  }
  func.func @transform_2(%arg0: i32, %arg1: i32) -> (i32, i32) {
    %c0_i32 = arith.constant 0 : i32
    %c0_i32_0 = arith.constant 0 : i32
    %c0_i32_1 = arith.constant 0 : i32
    return %c0_i32, %c0_i32_0 : i32, i32
  }
  func.func @transform_3(%arg0: i32, %arg1: i32) -> (i32, i32, i32, i32) {
    %c0_i32 = arith.constant 0 : i32
    %c0_i32_0 = arith.constant 0 : i32
    %c0_i32_1 = arith.constant 0 : i32
    return %arg0, %arg1, %c0_i32, %c0_i32_0 : i32, i32, i32, i32
  }
}

</mosaic_0001>

<bundles_post_ra>
// kernel: tpu_custom_call.1
= control target key start
LH: loop header
LB: loop body
LE: loop exit
PB: predicated region body
PF: predicated region fallthrough
CT: control target
= control target key end

     0   :  { %s11736_s12 = smov 0   ;;  %s11738_s13 = smov 0   ;;  %s15972_s0 = inlined_call_operand.vmem [shape: f32[2,34,34,4], index: 0, kind: input, shape index: {}]   ;;  %s15973_s1 = inlined_call_operand.vmem [shape: f32[3,3,4,8], index: 1, kind: input, shape index: {}]   ;;  %s15974_s2 = inlined_call_operand.vmem [shape: f32[1,8], index: 2, kind: input, shape index: {}]   ;;  %s15975_s3 = inlined_call_operand.vmem [shape: f32[2,32,32,8], index: 3, kind: output, shape index: {}]  }
   0x1   :  { %s11740_s14 = smov 0  }
   0x2 LB: > { %s25_s15 = sadd.s32 1, %s11710_s13  ;;  %p9716_p0 = scmp.ge.s32.totalorder %s11714_s14, 1  ;;  %s11714_s14 = sphi %s11740_s14, %s13_s14   ;;  %s11710_s13 = sphi %s11738_s13, %s16329_s13   ;;  %s11706_s12 = sphi %s11736_s12, %s16328_s12  }
   0x3   : > { %p27_p1 = scmp.ge.s32.totalorder %s25_s15, 2  ;;  %p155_p2 = scmp.lt.s32.totalorder %s11714_s14, 3 }
   0x5   : > { %s16331_s15 = smov (%p27_p1, %s25_s15), 0  ;;  %p156_p3 = pnand %p9716_p0, %p155_p2 }
   0x7   : > { %159 = sbr.rel (%p156_p3) target bundleno = 2457 (0x999), region = 32 }
   0xc   : > { %v9720_v0 = vld [vmem:[%s15973_s1 + $0x4] sm:$0xf]  ;;  %vm847_vm0 = vcmask 1043456   ;;  %p186_p4 = scmp.lt.s32.totalorder %s11706_s12, 1  ;;  %v9979_v1 = vld [vmem:[%s15973_s1 + $0x8] sm:$0xf] }
   0xd   : > { %11660 = vmatpush.msk.msra.mxu1 %vm847_vm0, %v9720_v0  ;;  %11661 = vmatpush.msk.msra.mxu2 %vm847_vm0, %v9720_v0  ;;  %v10237_v2 = vld [vmem:[%s15973_s1 + $0xc] sm:$0xf]  ;;  %v331_v3 = vld [vmem:[%s15973_s1] sm:$0xf]  ;;  %v10495_v4 = vld [vmem:[%s15973_s1 + $0x10] sm:$0xf] }
   0xe   : > { %s16333_s12 = smov (!%p186_p4, %s11706_s12), 1  ;;  %11662 = vmatpush.msk.msra.mxu3 %vm847_vm0, %v9720_v0  ;;  %9721 = vmatpush.msk.msra.mxu0 %vm847_vm0, %v9720_v0  ;;  %vm462_vm1 = vcmask 31744   ;;  %vm9496_vm2 = vcmask 64512  }
   0xf   : > { %9980 = vmatpush.msk.msrb.mxu2 %vm847_vm0, %v9979_v1  ;;  %9850 = vmatpush.msk.msrb.mxu1 %vm847_vm0, %v331_v3  ;;  %s11663_s26 = smul.u32 1360, %s16333_s12  ;;  %s11659_s11 = sshll.u32 %s16333_s12, 10 }
  0x10   : > { %10238 = vmatpush.msk.msrb.mxu3 %vm847_vm0, %v10237_v2  ;;  %10496 = vmatpush.msk.msrb.mxu0 %vm847_vm0, %v10495_v4  ;;  %s14234_s12 = scalar_lea.vmem %s15975_s3, %s11659_s11 }
  0x11   : > { %s11783_s29 = scalar_lea.vmem %s15972_s0, %s11663_s26 }
  0x12   : > { %v364_v5 = vld [vmem:[%s11783_s29 + $0x141] sm:$0xff]  ;;  %v365_v9 = vld [vmem:[%s11783_s29 + $0x149] sm:$0xff]  ;;  %v366_v13 = vld [vmem:[%s11783_s29 + $0x151] sm:$0xff] }
  0x13   : > { %v396_v6 = vld [vmem:[%s11783_s29 + $0x281] sm:$0xff]  ;;  %9754 = vmatmul.msk.f32.vlgmr.msra.gmra.mxu1 %vm462_vm1, %v364_v5  ;;  %v397_v10 = vld [vmem:[%s11783_s29 + $0x289] sm:$0xff]  ;;  %v398_v14 = vld [vmem:[%s11783_s29 + $0x291] sm:$0xff] }
  0x14   : > { %v428_v7 = vld [vmem:[%s11783_s29 + $0x3c1] sm:$0xff]  ;;  %9786 = vmatmul.msk.f32.vlgmr.msra.gmra.mxu2 %vm462_vm1, %v396_v6  ;;  %v429_v11 = vld [vmem:[%s11783_s29 + $0x3c9] sm:$0xff]  ;;  %v430_v15 = vld [vmem:[%s11783_s29 + $0x3d1] sm:$0xff] }
  0x15   : > { %v332_v8 = vld [vmem:[%s11783_s29 + $0x1] sm:$0xff]  ;;  %9818 = vmatmul.msk.f32.vlgmr.msra.gmra.mxu3 %vm462_vm1, %v428_v7  ;;  %v333_v12 = vld [vmem:[%s11783_s29 + $0x9] sm:$0xff]  ;;  %v334_v16 = vld [vmem:[%s11783_s29 + $0x11] sm:$0xff] }
  0x16   : > { %9722 = vmatmul.msk.f32.vlgmr.msra.gmra.mxu0 %vm462_vm1, %v332_v8  ;;  %v367_v17 = vld [vmem:[%s11783_s29 + $0x159] sm:$0xff]  ;;  %v368_v21 = vld [vmem:[%s11783_s29 + $0x169] sm:$0xff]  ;;  %v369_v25 = vld [vmem:[%s11783_s29 + $0x171] sm:$0xff] }
  0x17   : > { %v399_v18 = vld [vmem:[%s11783_s29 + $0x299] sm:$0xff]  ;;  %v400_v22 = vld [vmem:[%s11783_s29 + $0x2a9] sm:$0xff]  ;;  %v401_v26 = vld [vmem:[%s11783_s29 + $0x2b1] sm:$0xff] }
  0x18   : > { %v431_v19 = vld [vmem:[%s11783_s29 + $0x3d9] sm:$0xff]  ;;  %v432_v23 = vld [vmem:[%s11783_s29 + $0x3e9] sm:$0xff]  ;;  %v433_v27 = vld [vmem:[%s11783_s29 + $0x3f1] sm:$0xff] }
  0x19   : > { %v335_v20 = vld [vmem:[%s11783_s29 + $0x19] sm:$0xff]  ;;  %v11821_v24 = vld [vmem:[%s11783_s29 + $0x29] sm:$0xff]  ;;  %v11832_v28 = vld [vmem:[%s11783_s29 + $0x31] sm:$0xff] }
  0x1a   : > { %v370_v29 = vld [vmem:[%s11783_s29 + $0x179] sm:$0xff]  ;;  %v371_v33 = vld [vmem:[%s11783_s29 + $0x181] sm:$0xff]  ;;  %v372_v37 = vld [vmem:[%s11783_s29 + $0x191] sm:$0xff] }
  0x1b   : > { %9755 = vmatmul.msk.f32.gmra.mxu1 %vm462_vm1, %v365_v9  ;;  %v402_v30 = vld [vmem:[%s11783_s29 + $0x2b9] sm:$0xff]  ;;  %v403_v34 = vld [vmem:[%s11783_s29 + $0x2c1] sm:$0xff]  ;;  %v404_v38 = vld [vmem:[%s11783_s29 + $0x2d1] sm:$0xff] }
  0x1c   : > { %9787 = vmatmul.msk.f32.gmra.mxu2 %vm462_vm1, %v397_v10  ;;  %v434_v31 = vld [vmem:[%s11783_s29 + $0x3f9] sm:$0xff]  ;;  %v435_v35 = vld [vmem:[%s11783_s29 + $0x401] sm:$0xff]  ;;  %v436_v39 = vld [vmem:[%s11783_s29 + $0x411] sm:$0xff] }
  0x1d   : > { %9819 = vmatmul.msk.f32.gmra.mxu3 %vm462_vm1, %v429_v11  ;;  %v11843_v32 = vld [vmem:[%s11783_s29 + $0x39] sm:$0xff]  ;;  %v11854_v36 = vld [vmem:[%s11783_s29 + $0x41] sm:$0xff]  ;;  %v11865_v40 = vld [vmem:[%s11783_s29 + $0x51] sm:$0xff] }
  0x1e   : > { %9723 = vmatmul.msk.f32.gmra.mxu0 %vm462_vm1, %v333_v12  ;;  %v373_v41 = vld [vmem:[%s11783_s29 + $0x199] sm:$0xff]  ;;  %v374_v45 = vld [vmem:[%s11783_s29 + $0x1a1] sm:$0xff]  ;;  %v375_v49 = vld [vmem:[%s11783_s29 + $0x1a9] sm:$0xff] }
  0x1f   : > { %v405_v42 = vld [vmem:[%s11783_s29 + $0x2d9] sm:$0xff]  ;;  %v406_v46 = vld [vmem:[%s11783_s29 + $0x2e1] sm:$0xff]  ;;  %v407_v50 = vld [vmem:[%s11783_s29 + $0x2e9] sm:$0xff] }
  0x20   : > { %v437_v43 = vld [vmem:[%s11783_s29 + $0x419] sm:$0xff]  ;;  %v438_v47 = vld [vmem:[%s11783_s29 + $0x421] sm:$0xff]  ;;  %v439_v51 = vld [vmem:[%s11783_s29 + $0x429] sm:$0xff] }
  0x21   : > { %v11876_v44 = vld [vmem:[%s11783_s29 + $0x59] sm:$0xff]  ;;  %v11887_v48 = vld [vmem:[%s11783_s29 + $0x61] sm:$0xff]  ;;  %v11898_v52 = vld [vmem:[%s11783_s29 + $0x69] sm:$0xff] }
  0x22   : > { %v376_v53 = vld [vmem:[%s11783_s29 + $0x1b9] sm:$0xff]  ;;  %v377_v57 = vld [vmem:[%s11783_s29 + $0x1c1] sm:$0xff]  ;;  %v378_v61 = vld [vmem:[%s11783_s29 + $0x1c9] sm:$0xff] }
  0x23   : > { %9756 = vmatmul.msk.f32.gmra.mxu1 %vm462_vm1, %v366_v13  ;;  %v408_v54 = vld [vmem:[%s11783_s29 + $0x2f9] sm:$0xff]  ;;  %v409_v58 = vld [vmem:[%s11783_s29 + $0x301] sm:$0xff]  ;;  %v410_v62 = vld [vmem:[%s11783_s29 + $0x309] sm:$0xff] }
  0x24   : > { %9788 = vmatmul.msk.f32.gmra.mxu2 %vm462_vm1, %v398_v14  ;;  %v440_v55 = vld [vmem:[%s11783_s29 + $0x439] sm:$0xff]  ;;  %v441_v59 = vld [vmem:[%s11783_s29 + $0x441] sm:$0xff]  ;;  %v442_v63 = vld [vmem:[%s11783_s29 + $0x449] sm:$0xff] }
  0x25   : > { %9820 = vmatmul.msk.f32.gmra.mxu3 %vm462_vm1, %v430_v15  ;;  %v11909_v56 = vld [vmem:[%s11783_s29 + $0x79] sm:$0xff]  ;;  %v11920_v60 = vld [vmem:[%s11783_s29 + $0x81] sm:$0xff]  ;;  %v11931_v0 = vld [vmem:[%s11783_s29 + $0x89] sm:$0xff] }
  0x26   : > { %9724 = vmatmul.msk.f32.gmra.mxu0 %vm462_vm1, %v334_v16  ;;  %v379_v1 = vld [vmem:[%s11783_s29 + $0x1d1] sm:$0xff]  ;;  %v380_v6 = vld [vmem:[%s11783_s29 + $0x1e1] sm:$0xff]  ;;  %v381_v14 = vld [vmem:[%s11783_s29 + $0x1e9] sm:$0xff] }
  0x27   : > { %v411_v2 = vld [vmem:[%s11783_s29 + $0x311] sm:$0xff]  ;;  %v412_v7 = vld [vmem:[%s11783_s29 + $0x321] sm:$0xff]  ;;  %v413_v15 = vld [vmem:[%s11783_s29 + $0x329] sm:$0xff] }
  0x28   : > { %v443_v3 = vld [vmem:[%s11783_s29 + $0x451] sm:$0xff]  ;;  %v444_v8 = vld [vmem:[%s11783_s29 + $0x461] sm:$0xff]  ;;  %v445_v16 = vld [vmem:[%s11783_s29 + $0x469] sm:$0xff] }
  0x29   : > { %v11942_v4 = vld [vmem:[%s11783_s29 + $0x91] sm:$0xff]  ;;  %v11957_v10 = vld [vmem:[%s11783_s29 + $0xa1] sm:$0xff] }
  0x2b   : > { %9757 = vmatmul.msk.f32.gmra.mxu1 %vm462_vm1, %v367_v17 }
  0x2c   : > { %9789 = vmatmul.msk.f32.gmra.mxu2 %vm462_vm1, %v399_v18  ;;  %v11976_v18 = vld [vmem:[%s11783_s29 + $0xa9] sm:$0xff] }
  0x2d   : > { %9821 = vmatmul.msk.f32.gmra.mxu3 %vm462_vm1, %v431_v19 }
  0x2e   : > { %9725 = vmatmul.msk.f32.gmra.mxu0 %vm462_vm1, %v335_v20 }
  0x33   : > { %9758 = vmatmul.msk.f32.gmra.mxu1 %vm462_vm1, %v368_v21 }
  0x34   : > { %9790 = vmatmul.msk.f32.gmra.mxu2 %vm462_vm1, %v400_v22  ;;  %v382_v22 = vld [vmem:[%s11783_s29 + $0x1f1] sm:$0xff] }
  0x35   : > { %9822 = vmatmul.msk.f32.gmra.mxu3 %vm462_vm1, %v432_v23  ;;  %v414_v23 = vld [vmem:[%s11783_s29 + $0x331] sm:$0xff] }
  0x36   : > { %9726 = vmatmul.msk.f32.gmra.mxu0 %vm462_vm1, %v11821_v24 }
  0x3b   : > { %9759 = vmatmul.msk.f32.gmra.mxu1 %vm462_vm1, %v369_v25  ;;  %v446_v25 = vld [vmem:[%s11783_s29 + $0x471] sm:$0xff] }
  0x3c   : > { %9791 = vmatmul.msk.f32.gmra.mxu2 %vm462_vm1, %v401_v26 }
  0x3d   : > { %9823 = vmatmul.msk.f32.gmra.mxu3 %vm462_vm1, %v433_v27  ;;  %v11995_v27 = vld [vmem:[%s11783_s29 + $0xb1] sm:$0xff] }
  0x3e   : > { %9727 = vmatmul.msk.f32.gmra.mxu0 %vm462_vm1, %v11832_v28 }
  0x43   : > { %9760 = vmatmul.msk.f32.gmra.mxu1 %vm462_vm1, %v370_v29 }
  0x44   : > { %9792 = vmatmul.msk.f32.gmra.mxu2 %vm462_vm1, %v402_v30 }
  0x45   : > { %9824 = vmatmul.msk.f32.gmra.mxu3 %vm462_vm1, %v434_v31 }
  0x46   : > { %9728 = vmatmul.msk.f32.gmra.mxu0 %vm462_vm1, %v11843_v32 }
  0x4b   : > { %9761 = vmatmul.msk.f32.gmra.mxu1 %vm462_vm1, %v371_v33  ;;  %v383_v33 = vld [vmem:[%s11783_s29 + $0x1f9] sm:$0xff] }
  0x4c   : > { %9793 = vmatmul.msk.f32.gmra.mxu2 %vm462_vm1, %v403_v34  ;;  %v415_v34 = vld [vmem:[%s11783_s29 + $0x339] sm:$0xff] }
  0x4d   : > { %9825 = vmatmul.msk.f32.gmra.mxu3 %vm462_vm1, %v435_v35  ;;  %v447_v35 = vld [vmem:[%s11783_s29 + $0x479] sm:$0xff] }
  0x4e   : > { %9729 = vmatmul.msk.f32.gmra.mxu0 %vm462_vm1, %v11854_v36 }
  0x53   : > { %9762 = vmatmul.msk.f32.gmra.mxu1 %vm462_vm1, %v372_v37 }
  0x54   : > { %9794 = vmatmul.msk.f32.gmra.mxu2 %vm462_vm1, %v404_v38  ;;  %v12014_v38 = vld [vmem:[%s11783_s29 + $0xb9] sm:$0xff] }
  0x55   : > { %9826 = vmatmul.msk.f32.gmra.mxu3 %vm462_vm1, %v436_v39 }
  0x56   : > { %9730 = vmatmul.msk.f32.gmra.mxu0 %vm462_vm1, %v11865_v40 }
  0x5b   : > { %9763 = vmatmul.msk.f32.gmra.mxu1 %vm462_vm1, %v373_v41 }
  0x5c   : > { %9795 = vmatmul.msk.f32.gmra.mxu2 %vm462_vm1, %v405_v42 }
  0x5d   : > { %9827 = vmatmul.msk.f32.gmra.mxu3 %vm462_vm1, %v437_v43  ;;  %v384_v43 = vld [vmem:[%s11783_s29 + $0x209] sm:$0xff] }
  0x5e   : > { %9731 = vmatmul.msk.f32.gmra.mxu0 %vm462_vm1, %v11876_v44 }
  0x63   : > { %9764 = vmatmul.msk.f32.gmra.mxu1 %vm462_vm1, %v374_v45  ;;  %v416_v45 = vld [vmem:[%s11783_s29 + $0x349] sm:$0xff] }
  0x64   : > { %9796 = vmatmul.msk.f32.gmra.mxu2 %vm462_vm1, %v406_v46  ;;  %v448_v46 = vld [vmem:[%s11783_s29 + $0x489] sm:$0xff] }
  0x65   : > { %9828 = vmatmul.msk.f32.gmra.mxu3 %vm462_vm1, %v438_v47 }
  0x66   : > { %9732 = vmatmul.msk.f32.gmra.mxu0 %vm462_vm1, %v11887_v48 }
  0x6b   : > { %9765 = vmatmul.msk.f32.gmra.mxu1 %vm462_vm1, %v375_v49  ;;  %v12033_v49 = vld [vmem:[%s11783_s29 + $0xc9] sm:$0xff] }
  0x6c   : > { %9797 = vmatmul.msk.f32.gmra.mxu2 %vm462_vm1, %v407_v50 }
  0x6d   : > { %9829 = vmatmul.msk.f32.gmra.mxu3 %vm462_vm1, %v439_v51 }
  0x6e   : > { %9733 = vmatmul.msk.f32.gmra.mxu0 %vm462_vm1, %v11898_v52 }
  0x73   : > { %9766 = vmatmul.msk.f32.gmra.mxu1 %vm462_vm1, %v376_v53 }
  0x74   : > { %9798 = vmatmul.msk.f32.gmra.mxu2 %vm462_vm1, %v408_v54  ;;  %v385_v54 = vld [vmem:[%s11783_s29 + $0x211] sm:$0xff] }
  0x75   : > { %9830 = vmatmul.msk.f32.gmra.mxu3 %vm462_vm1, %v440_v55  ;;  %v417_v55 = vld [vmem:[%s11783_s29 + $0x351] sm:$0xff] }
  0x76   : > { %9734 = vmatmul.msk.f32.gmra.mxu0 %vm462_vm1, %v11909_v56 }
  0x7b   : > { %9767 = vmatmul.msk.f32.gmra.mxu1 %vm462_vm1, %v377_v57  ;;  %v449_v57 = vld [vmem:[%s11783_s29 + $0x491] sm:$0xff] }
  0x7c   : > { %9799 = vmatmul.msk.f32.gmra.mxu2 %vm462_vm1, %v409_v58 }
  0x7d   : > { %9831 = vmatmul.msk.f32.gmra.mxu3 %vm462_vm1, %v441_v59  ;;  %v12052_v59 = vld [vmem:[%s11783_s29 + $0xd1] sm:$0xff] }
  0x7e   : > { %9735 = vmatmul.msk.f32.gmra.mxu0 %vm462_vm1, %v11920_v60 }
  0x83   : > { %9768 = vmatmul.msk.f32.gmra.mxu1 %vm462_vm1, %v378_v61 }
  0x84   : > { %9800 = vmatmul.msk.f32.gmra.mxu2 %vm462_vm1, %v410_v62 }
  0x85   : > { %9832 = vmatmul.msk.f32.gmra.mxu3 %vm462_vm1, %v442_v63 }
  0x86   : > { %9736 = vmatmul.msk.f32.gmra.mxu0 %vm462_vm1, %v11931_v0 }
  0x8b   : > { %9769 = vmatmul.msk.f32.gmra.mxu1 %vm462_vm1, %v379_v1  ;;  %v386_v1 = vld [vmem:[%s11783_s29 + $0x219] sm:$0xff] }
  0x8c   : > { %9801 = vmatmul.msk.f32.gmra.mxu2 %vm462_vm1, %v411_v2  ;;  %v418_v2 = vld [vmem:[%s11783_s29 + $0x359] sm:$0xff] }
  0x8d   : > { %9833 = vmatmul.msk.f32.gmra.mxu3 %vm462_vm1, %v443_v3  ;;  %v450_v3 = vld [vmem:[%s11783_s29 + $0x499] sm:$0xff] }
  0x8e   : > { %9737 = vmatmul.msk.f32.gmra.mxu0 %vm462_vm1, %v11942_v4 }
  0x90   : > { %v11949_v5 = vpop.f32.mrf.mxu1 }
  0x93   : > { %v11954_v9 = vpop.f32.mrf.mxu0  ;;  %9770 = vmatmul.msk.f32.gmra.mxu1 %vm462_vm1, %v380_v6 }
  0x94   : > { %9802 = vmatmul.msk.f32.gmra.mxu2 %vm462_vm1, %v412_v7  ;;  %v12071_v7 = vld [vmem:[%s11783_s29 + $0xd9] sm:$0xff] }
  0x95   : > { %9834 = vmatmul.msk.f32.gmra.mxu3 %vm462_vm1, %v444_v8 }
  0x96   : > { %9738 = vmatmul.msk.f32.gmra.mxu0 %vm462_vm1, %v11957_v10 }
  0x97   : > { %v11964_v11 = vpop.f32.mrf.mxu2 }
  0x98   : > { %15976 = vst [vmem:[#allocation2_spill] sm:$0xff] %v11964_v11  ;;  %v11966_v12 = vpop.f32.mrf.mxu3  ;;  %v11968_v13 = vpop.f32.mrf.mxu1  ;;  %v395_v11 = vld [vmem:[%s11783_s29 + $0x271] sm:$0xff] }
  0x99   : > { %15977 = vst [vmem:[#allocation3_spill] sm:$0xff] %v11966_v12 }
  0x9b   : > { %v11973_v17 = vpop.f32.mrf.mxu0  ;;  %9771 = vmatmul.msk.f32.gmra.mxu1 %vm462_vm1, %v381_v14 }
  0x9c   : > { %9803 = vmatmul.msk.f32.gmra.mxu2 %vm462_vm1, %v413_v15 }
  0x9d   : > { %9835 = vmatmul.msk.f32.gmra.mxu3 %vm462_vm1, %v445_v16  ;;  %v387_v16 = vld [vmem:[%s11783_s29 + $0x221] sm:$0xff] }
  0x9e   : > { %9739 = vmatmul.msk.f32.gmra.mxu0 %vm462_vm1, %v11976_v18 }
  0x9f   : > { %v11983_v19 = vpop.f32.mrf.mxu2 }
  0xa0   : > { %15978 = vst [vmem:[#allocation4_spill] sm:$0xff] %v11983_v19  ;;  %v11985_v20 = vpop.f32.mrf.mxu3  ;;  %v11987_v21 = vpop.f32.mrf.mxu1  ;;  %v12239_v19 = vld [vmem:[%s11783_s29 + $0x129] sm:$0xff] }
  0xa1   : > { %15979 = vst [vmem:[#allocation5_spill] sm:$0xff] %v11985_v20  ;;  %v423_v20 = vld [vmem:[%s11783_s29 + $0x389] sm:$0xff] }
  0xa3   : > { %v11992_v26 = vpop.f32.mrf.mxu0  ;;  %9772 = vmatmul.msk.f32.gmra.mxu1 %vm462_vm1, %v382_v22  ;;  %v419_v22 = vld [vmem:[%s11783_s29 + $0x361] sm:$0xff] }
  0xa4   : > { %9804 = vmatmul.msk.f32.gmra.mxu2 %vm462_vm1, %v414_v23  ;;  %v451_v23 = vld [vmem:[%s11783_s29 + $0x4a1] sm:$0xff] }
  0xa5   : > { %9836 = vmatmul.msk.f32.gmra.mxu3 %vm462_vm1, %v446_v25 }
  0xa6   : > { %9740 = vmatmul.msk.f32.gmra.mxu0 %vm462_vm1, %v11995_v27 }
  0xa7   : > { %v12002_v29 = vpop.f32.mrf.mxu2 }
  0xa8   : > { %15980 = vst [vmem:[#allocation6_spill] sm:$0xff] %v12002_v29  ;;  %v12004_v30 = vpop.f32.mrf.mxu3  ;;  %v12006_v31 = vpop.f32.mrf.mxu1 }
  0xa9   : > { %15981 = vst [vmem:[#allocation7_spill] sm:$0xff] %v12004_v30  ;;  %v391_v30 = vld [vmem:[%s11783_s29 + $0x249] sm:$0xff] }
  0xaa   : > { %15982 = vst [vmem:[#allocation8_spill] sm:$0xff] %v12006_v31 }
  0xab   : > { %v12011_v37 = vpop.f32.mrf.mxu0  ;;  %9773 = vmatmul.msk.f32.gmra.mxu1 %vm462_vm1, %v383_v33  ;;  %v12090_v33 = vld [vmem:[%s11783_s29 + $0xe1] sm:$0xff] }
  0xac   : > { %9805 = vmatmul.msk.f32.gmra.mxu2 %vm462_vm1, %v415_v34 }
  0xad   : > { %9837 = vmatmul.msk.f32.gmra.mxu3 %vm462_vm1, %v447_v35 }
  0xae   : > { %9741 = vmatmul.msk.f32.gmra.mxu0 %vm462_vm1, %v12014_v38 }
  0xaf   : > { %v12021_v39 = vpop.f32.mrf.mxu2 }
  0xb0   : > { %15983 = vst [vmem:[#allocation9_spill] sm:$0xff] %v12021_v39  ;;  %v12023_v41 = vpop.f32.mrf.mxu3  ;;  %v12025_v42 = vpop.f32.mrf.mxu1  ;;  %v458_v39 = vld [vmem:[%s11783_s29 + $0x4e9] sm:$0xff] }
  0xb1   : > { %15984 = vst [vmem:[#allocation10_spill] sm:$0xff] %v12023_v41 }
  0xb2   : > { %15985 = vst [vmem:[#allocation11_spill] sm:$0xff] %v12025_v42  ;;  %v10126_v42 = vld [vmem:[%s11783_s29 + $0xd0] sm:$0xff] }
  0xb3   : > { %v12030_v47 = vpop.f32.mrf.mxu0  ;;  %9774 = vmatmul.msk.f32.gmra.mxu1 %vm462_vm1, %v384_v43 }
  0xb4   : > { %9806 = vmatmul.msk.f32.gmra.mxu2 %vm462_vm1, %v416_v45  ;;  %v388_v45 = vld [vmem:[%s11783_s29 + $0x231] sm:$0xff] }
  0xb5   : > { %9838 = vmatmul.msk.f32.gmra.mxu3 %vm462_vm1, %v448_v46  ;;  %v420_v46 = vld [vmem:[%s11783_s29 + $0x371] sm:$0xff] }
  0xb6   : > { %9742 = vmatmul.msk.f32.gmra.mxu0 %vm462_vm1, %v12033_v49 }
  0xb7   : > { %v12040_v50 = vpop.f32.mrf.mxu2 }
  0xb8   : > { %15986 = vst [vmem:[#allocation12_spill] sm:$0xff] %v12040_v50  ;;  %v12042_v51 = vpop.f32.mrf.mxu3  ;;  %v12044_v53 = vpop.f32.mrf.mxu1 }
  0xb9   : > { %15987 = vst [vmem:[#allocation13_spill] sm:$0xff] %v12042_v51 }
  0xba   : > { %15988 = vst [vmem:[#allocation14_spill] sm:$0xff] %v12044_v53 }
  0xbb   : > { %v12049_v58 = vpop.f32.mrf.mxu0  ;;  %9775 = vmatmul.msk.f32.gmra.mxu1 %vm462_vm1, %v385_v54  ;;  %v452_v54 = vld [vmem:[%s11783_s29 + $0x4b1] sm:$0xff] }
  0xbc   : > { %9807 = vmatmul.msk.f32.gmra.mxu2 %vm462_vm1, %v417_v55 }
  0xbd   : > { %9839 = vmatmul.msk.f32.gmra.mxu3 %vm462_vm1, %v449_v57  ;;  %v12109_v57 = vld [vmem:[%s11783_s29 + $0xf1] sm:$0xff] }
  0xbe   : > { %9743 = vmatmul.msk.f32.gmra.mxu0 %vm462_vm1, %v12052_v59 }
  0xbf   : > { %v12059_v61 = vpop.f32.mrf.mxu2 }
  0xc0   : > { %15989 = vst [vmem:[#allocation15_spill] sm:$0xff] %v12059_v61  ;;  %v12061_v62 = vpop.f32.mrf.mxu3  ;;  %v12063_v63 = vpop.f32.mrf.mxu1  ;;  %v425_v61 = vld [vmem:[%s11783_s29 + $0x3a1] sm:$0xff] }
  0xc1   : > { %15990 = vst [vmem:[#allocation16_spill] sm:$0xff] %v12061_v62  ;;  %v422_v62 = vld [vmem:[%s11783_s29 + $0x381] sm:$0xff] }
  0xc2   : > { %15991 = vst [vmem:[#allocation17_spill] sm:$0xff] %v12063_v63  ;;  %v2057_v63 = vld [vmem:[%s11783_s29 + $0xaa] sm:$0xff] }
  0xc3   : > { %v12068_v6 = vpop.f32.mrf.mxu0  ;;  %9776 = vmatmul.msk.f32.gmra.mxu1 %vm462_vm1, %v386_v1 }
  0xc4   : > { %9808 = vmatmul.msk.f32.gmra.mxu2 %vm462_vm1, %v418_v2 }
  0xc5   : > { %9840 = vmatmul.msk.f32.gmra.mxu3 %vm462_vm1, %v450_v3 }
  0xc6   : > { %9744 = vmatmul.msk.f32.gmra.mxu0 %vm462_vm1, %v12071_v7 }
  0xc7   : > { %v12078_v8 = vpop.f32.mrf.mxu2 }
  0xc8   : > { %15992 = vst [vmem:[#allocation18_spill] sm:$0xff] %v12078_v8  ;;  %v12080_v14 = vpop.f32.mrf.mxu3  ;;  %v12082_v15 = vpop.f32.mrf.mxu1 }
  0xc9   : > { %15993 = vst [vmem:[#allocation19_spill] sm:$0xff] %v12080_v14  ;;  %v390_v14 = vld [vmem:[%s11783_s29 + $0x241] sm:$0xff] }
  0xca   : > { %15994 = vst [vmem:[#allocation20_spill] sm:$0xff] %v12082_v15 }
  0xcb   : > { %v12087_v25 = vpop.f32.mrf.mxu0  ;;  %9777 = vmatmul.msk.f32.gmra.mxu1 %vm462_vm1, %v387_v16  ;;  %v389_v16 = vld [vmem:[%s11783_s29 + $0x239] sm:$0xff] }
  0xcc   : > { %9809 = vmatmul.msk.f32.gmra.mxu2 %vm462_vm1, %v419_v22  ;;  %v421_v22 = vld [vmem:[%s11783_s29 + $0x379] sm:$0xff] }
  0xcd   : > { %9841 = vmatmul.msk.f32.gmra.mxu3 %vm462_vm1, %v451_v23  ;;  %v453_v23 = vld [vmem:[%s11783_s29 + $0x4b9] sm:$0xff] }
  0xce   : > { %9745 = vmatmul.msk.f32.gmra.mxu0 %vm462_vm1, %v12090_v33 }
  0xcf   : > { %v12097_v34 = vpop.f32.mrf.mxu2 }
  0xd0   : > { %15995 = vst [vmem:[#allocation21_spill] sm:$0xff] %v12097_v34  ;;  %v12099_v35 = vpop.f32.mrf.mxu3  ;;  %v12101_v43 = vpop.f32.mrf.mxu1  ;;  %v456_v34 = vld [vmem:[%s11783_s29 + $0x4d9] sm:$0xff] }
  0xd1   : > { %15996 = vst [vmem:[#allocation22_spill] sm:$0xff] %v12099_v35 }
  0xd2   : > { %15997 = vst [vmem:[#allocation23_spill] sm:$0xff] %v12101_v43  ;;  %v10112_v43 = vld [vmem:[%s11783_s29 + $0x40] sm:$0xff] }
  0xd3   : > { %v12106_v55 = vpop.f32.mrf.mxu0  ;;  %9778 = vmatmul.msk.f32.gmra.mxu1 %vm462_vm1, %v388_v45 }
  0xd4   : > { %9810 = vmatmul.msk.f32.gmra.mxu2 %vm462_vm1, %v420_v46  ;;  %v12128_v46 = vld [vmem:[%s11783_s29 + $0xf9] sm:$0xff] }
  0xd5   : > { %9842 = vmatmul.msk.f32.gmra.mxu3 %vm462_vm1, %v452_v54 }
  0xd6   : > { %9746 = vmatmul.msk.f32.gmra.mxu0 %vm462_vm1, %v12109_v57 }
  0xd7   : > { %v12116_v1 = vpop.f32.mrf.mxu2 }
  0xd8   : > { %15998 = vst [vmem:[#allocation24_spill] sm:$0xff] %v12116_v1  ;;  %v12118_v2 = vpop.f32.mrf.mxu3  ;;  %v12120_v3 = vpop.f32.mrf.mxu1  ;;  %v424_v1 = vld [vmem:[%s11783_s29 + $0x399] sm:$0xff] }
  0xd9   : > { %15999 = vst [vmem:[#allocation25_spill] sm:$0xff] %v12118_v2 }
  0xda   : > { %16000 = vst [vmem:[#allocation26_spill] sm:$0xff] %v12120_v3  ;;  %v10111_v3 = vld [vmem:[%s11783_s29 + $0x38] sm:$0xff] }
  0xdb   : > { %v12125_v45 = vpop.f32.mrf.mxu0  ;;  %9779 = vmatmul.msk.f32.gmra.mxu1 %vm462_vm1, %v389_v16  ;;  %v454_v16 = vld [vmem:[%s11783_s29 + $0x4c1] sm:$0xff] }
  0xdc   : > { %9811 = vmatmul.msk.f32.gmra.mxu2 %vm462_vm1, %v421_v22  ;;  %v12147_v22 = vld [vmem:[%s11783_s29 + $0x101] sm:$0xff] }
  0xdd   : > { %9843 = vmatmul.msk.f32.gmra.mxu3 %vm462_vm1, %v453_v23 }
  0xde   : > { %9747 = vmatmul.msk.f32.gmra.mxu0 %vm462_vm1, %v12128_v46 }
  0xdf   : > { %v12135_v54 = vpop.f32.mrf.mxu2 }
  0xe0   : > { %16001 = vst [vmem:[#allocation27_spill] sm:$0xff] %v12135_v54  ;;  %v12137_v2 = vpop.f32.mrf.mxu3  ;;  %v12139_v35 = vpop.f32.mrf.mxu1  ;;  %v392_v54 = vld [vmem:[%s11783_s29 + $0x259] sm:$0xff] }
  0xe1   : > { %16002 = vst [vmem:[#allocation28_spill] sm:$0xff] %v12137_v2 }
  0xe2   : > { %16003 = vst [vmem:[#allocation29_spill] sm:$0xff] %v12139_v35  ;;  %v10110_v35 = vld [vmem:[%s11783_s29 + $0x30] sm:$0xff] }
  0xe3   : > { %v12144_v51 = vpop.f32.mrf.mxu0  ;;  %9780 = vmatmul.msk.f32.gmra.mxu1 %vm462_vm1, %v390_v14  ;;  %v455_v14 = vld [vmem:[%s11783_s29 + $0x4c9] sm:$0xff] }
  0xe4   : > { %9812 = vmatmul.msk.f32.gmra.mxu2 %vm462_vm1, %v422_v62  ;;  %v12166_v62 = vld [vmem:[%s11783_s29 + $0x109] sm:$0xff] }
  0xe5   : > { %9844 = vmatmul.msk.f32.gmra.mxu3 %vm462_vm1, %v454_v16 }
  0xe6   : > { %9748 = vmatmul.msk.f32.gmra.mxu0 %vm462_vm1, %v12147_v22 }
  0xe7   : > { %v12154_v23 = vpop.f32.mrf.mxu2 }
  0xe8   : > { %16004 = vst [vmem:[#allocation30_spill] sm:$0xff] %v12154_v23  ;;  %v12156_v2 = vpop.f32.mrf.mxu3  ;;  %v12158_v41 = vpop.f32.mrf.mxu1 }
  0xe9   : > { %16005 = vst [vmem:[#allocation31_spill] sm:$0xff] %v12156_v2 }
  0xea   : > { %16006 = vst [vmem:[#allocation32_spill] sm:$0xff] %v12158_v41  ;;  %v10109_v41 = vld [vmem:[%s11783_s29 + $0x28] sm:$0xff] }
  0xeb   : > { %v12163_v12 = vpop.f32.mrf.mxu0  ;;  %9781 = vmatmul.msk.f32.gmra.mxu1 %vm462_vm1, %v391_v30  ;;  %v12185_v30 = vld [vmem:[%s11783_s29 + $0x119] sm:$0xff] }
  0xec   : > { %9813 = vmatmul.msk.f32.gmra.mxu2 %vm462_vm1, %v423_v20  ;;  %v11011_v20 = vld [vmem:[%s15973_s1 + $0x18] sm:$0xf] }
  0xed   : > { %9845 = vmatmul.msk.f32.gmra.mxu3 %vm462_vm1, %v455_v14  ;;  %v11269_v14 = vld [vmem:[%s15973_s1 + $0x1c] sm:$0xf]  ;;  %11012 = vmatpush.msk.msra.mxu2 %vm847_vm0, %v11011_v20  ;;  %v457_v20 = vld [vmem:[%s11783_s29 + $0x4e1] sm:$0xff] }
  0xee   : > { %9749 = vmatmul.msk.f32.gmra.mxu0 %vm462_vm1, %v12166_v62  ;;  %11270 = vmatpush.msk.msra.mxu3 %vm847_vm0, %v11269_v14 }
  0xef   : > { %v12173_v16 = vpop.f32.mrf.mxu2 }
  0xf0   : > { %16007 = vst [vmem:[#allocation33_spill] sm:$0xff] %v12173_v16  ;;  %v12175_v2 = vpop.f32.mrf.mxu3  ;;  %v12177_v23 = vpop.f32.mrf.mxu1  ;;  %v393_v16 = vld [vmem:[%s11783_s29 + $0x261] sm:$0xff] }
  0xf1   : > { %16008 = vst [vmem:[#allocation34_spill] sm:$0xff] %v12175_v2 }
  0xf2   : > { %16009 = vst [vmem:[#allocation35_spill] sm:$0xff] %v12177_v23  ;;  %v2040_v23 = vld [vmem:[%s11783_s29 + $0x2] sm:$0xff] }
  0xf3   : > { %v12182_v8 = vpop.f32.mrf.mxu0  ;;  %9782 = vmatmul.msk.f32.gmra.mxu1 %vm462_vm1, %v392_v54 }
  0xf4   : > { %9814 = vmatmul.msk.f32.gmra.mxu2 %vm462_vm1, %v424_v1  ;;  %v10753_v1 = vld [vmem:[%s15973_s1 + $0x14] sm:$0xf] }
  0xf5   : > { %9846 = vmatmul.msk.f32.gmra.mxu3 %vm462_vm1, %v456_v34  ;;  %10754 = vmatpush.msk.msra.mxu1 %vm847_vm0, %v10753_v1  ;;  %v11527_v1 = vld [vmem:[%s15973_s1 + $0x20] sm:$0xf] }
  0xf6   : > { %9750 = vmatmul.msk.f32.gmra.mxu0 %vm462_vm1, %v12185_v30 }
  0xf7   : > { %v12200_v54 = vpop.f32.mrf.mxu2  ;;  %11528 = vmatpush.msk.msra.mxu0 %vm847_vm0, %v11527_v1 }
  0xf8   : > { %16010 = vst [vmem:[#allocation36_spill] sm:$0xff] %v12200_v54  ;;  %v12205_v2 = vpop.f32.mrf.mxu3  ;;  %v12208_v34 = vpop.f32.mrf.mxu1  ;;  %v12216_v54 = vld [vmem:[%s11783_s29 + $0x121] sm:$0xff] }
  0xf9   : > { %16011 = vst [vmem:[#allocation37_spill] sm:$0xff] %v12205_v2 }
  0xfa   : > { %16012 = vst [vmem:[#allocation38_spill] sm:$0xff] %v12208_v34  ;;  %v459_v34 = vld [vmem:[%s11783_s29 + $0x4f1] sm:$0xff] }
  0xfb   : > { %v12213_v14 = vpop.f32.mrf.mxu0  ;;  %9783 = vmatmul.msk.f32.gmra.mxu1 %vm462_vm1, %v393_v16 }
  0xfc   : > { %9815 = vmatmul.msk.f32.gmra.mxu2 %vm462_vm1, %v425_v61  ;;  %v394_v61 = vld [vmem:[%s11783_s29 + $0x269] sm:$0xff] }
  0xfd   : > { %9847 = vmatmul.msk.f32.gmra.mxu3 %vm462_vm1, %v457_v20  ;;  %v426_v20 = vld [vmem:[%s11783_s29 + $0x3a9] sm:$0xff] }
  0xfe   : > { %9751 = vmatmul.msk.f32.gmra.mxu0 %vm462_vm1, %v12216_v54 }
  0xff   : > { %v12227_v2 = vpop.f32.mrf.mxu2 }
 0x100   : > { %16013 = vst [vmem:[#allocation39_spill] sm:$0xff] %v12227_v2  ;;  %v12229_v50 = vpop.f32.mrf.mxu3  ;;  %v12231_v16 = vpop.f32.mrf.mxu1 }
 0x101   : > { %16014 = vst [vmem:[#allocation40_spill] sm:$0xff] %v12229_v50 }
 0x102   : > { %16015 = vst [vmem:[#allocation41_spill] sm:$0xff] %v12231_v16  ;;  %v427_v16 = vld [vmem:[%s11783_s29 + $0x3b1] sm:$0xff] }
 0x103   : > { %v12236_v29 = vpop.f32.mrf.mxu0  ;;  %9784 = vmatmul.msk.f32.gmra.mxu1 %vm462_vm1, %v394_v61 }
 0x104   : > { %9816 = vmatmul.msk.f32.gmra.mxu2 %vm462_vm1, %v426_v20  ;;  %v12258_v20 = vld [vmem:[%s11783_s29 + $0x131] sm:$0xff] }
 0x105   : > { %9848 = vmatmul.msk.f32.gmra.mxu3 %vm462_vm1, %v458_v39 }
 0x106   : > { %9752 = vmatmul.msk.f32.gmra.mxu0 %vm462_vm1, %v12239_v19 }
 0x107   : > { %v12246_v1 = vpop.f32.mrf.mxu2 }
 0x108   : > { %16016 = vst [vmem:[#allocation42_spill] sm:$0xff] %v12246_v1  ;;  %v12248_v50 = vpop.f32.mrf.mxu3  ;;  %v12250_v2 = vpop.f32.mrf.mxu1 }
 0x109   : > { %16017 = vst [vmem:[#allocation43_spill] sm:$0xff] %v12248_v50 }
 0x10a   : > { %16018 = vst [vmem:[#allocation44_spill] sm:$0xff] %v12250_v2  ;;  %v203_v2 = vld [vmem:[%s11783_s29] sm:$0xff] }
 0x10b   : > { %v12255_v61 = vpop.f32.mrf.mxu0  ;;  %9785 = vmatmul.msk.f32.gmra.mxu1 %vm462_vm1, %v395_v11 }
 0x10c   : > { %9817 = vmatmul.msk.f32.gmra.mxu2 %vm462_vm1, %v427_v16 }
 0x10d   : > { %9849 = vmatmul.msk.f32.gmra.mxu3 %vm462_vm1, %v459_v34 }
 0x10e   : > { %9753 = vmatmul.msk.f32.gmra.mxu0 %vm462_vm1, %v12258_v20 }
 0x10f   : > { %v12265_v39 = vpop.f32.mrf.mxu2 }
 0x110   : > { %16019 = vst [vmem:[#allocation45_spill] sm:$0xff] %v12265_v39  ;;  %v12267_v50 = vpop.f32.mrf.mxu3  ;;  %v12269_v1 = vpop.f32.mrf.mxu1  ;;  %v204_v39 = vld [vmem:[%s11783_s29 + $0x8] sm:$0xff] }
 0x111   : > { %16020 = vst [vmem:[#allocation46_spill] sm:$0xff] %v12267_v50 }
 0x112   : > { %16021 = vst [vmem:[#allocation47_spill] sm:$0xff] %v12269_v1  ;;  %v2041_v1 = vld [vmem:[%s11783_s29 + $0xa] sm:$0xff] }
 0x113   : > { %v12274_v11 = vpop.f32.mrf.mxu0  ;;  %9851 = vmatmul.msk.f32.vlgmr.msrb.gmra.mxu1 %vm462_vm1, %v203_v2 }
 0x114   : > { %9981 = vmatmul.msk.f32.vlgmr.msrb.gmra.mxu2 %vm462_vm1, %v2040_v23 }
 0x115   : > { %10239 = vmatmul.msk.f32.vlgmr.msrb.gmra.mxu3 %vm462_vm1, %v10109_v41 }
 0x116   : > { %10497 = vmatmul.msk.f32.vlgmr.msrb.gmra.mxu0 %vm462_vm1, %v11821_v24 }
 0x117   : > { %v12281_v34 = vpop.f32.mrf.mxu2 }
 0x118   : > { %16022 = vst [vmem:[#allocation48_spill] sm:$0xff] %v12281_v34  ;;  %v12283_v16 = vpop.f32.mrf.mxu3  ;;  %v12285_v50 = vpop.f32.mrf.mxu1  ;;  %v205_v34 = vld [vmem:[%s11783_s29 + $0x10] sm:$0xff] }
 0x119   : > { %16023 = vst [vmem:[#allocation49_spill] sm:$0xff] %v12283_v16 }
 0x11a   : > { %16024 = vst [vmem:[#allocation50_spill] sm:$0xff] %v12285_v50  ;;  %v2042_v50 = vld [vmem:[%s11783_s29 + $0x12] sm:$0xff] }
 0x11b   : > { %v12290_v2 = vpop.f32.mrf.mxu0  ;;  %9852 = vmatmul.msk.f32.gmra.mxu1 %vm462_vm1, %v204_v39 }
 0x11c   : > { %9982 = vmatmul.msk.f32.gmra.mxu2 %vm462_vm1, %v2041_v1 }
 0x11d   : > { %10240 = vmatmul.msk.f32.gmra.mxu3 %vm462_vm1, %v10110_v35 }
 0x11e   : > { %10498 = vmatmul.msk.f32.gmra.mxu0 %vm462_vm1, %v11832_v28 }
 0x11f   : > { %v12297_v24 = vpop.f32.mrf.mxu2 }
 0x120   : > { %16025 = vst [vmem:[#allocation51_spill] sm:$0xff] %v12297_v24  ;;  %v12299_v23 = vpop.f32.mrf.mxu3  ;;  %v12301_v16 = vpop.f32.mrf.mxu1  ;;  %v206_v24 = vld [vmem:[%s11783_s29 + $0x18] sm:$0xff] }
 0x121   : > { %16026 = vst [vmem:[#allocation52_spill] sm:$0xff] %v12299_v23 }
 0x122   : > { %16027 = vst [vmem:[#allocation53_spill] sm:$0xff] %v12301_v16  ;;  %v2043_v16 = vld [vmem:[%s11783_s29 + $0x1a] sm:$0xff] }
 0x123   : > { %v12306_v39 = vpop.f32.mrf.mxu0  ;;  %9853 = vmatmul.msk.f32.gmra.mxu1 %vm462_vm1, %v205_v34 }
 0x124   : > { %9983 = vmatmul.msk.f32.gmra.mxu2 %vm462_vm1, %v2042_v50 }
 0x125   : > { %10241 = vmatmul.msk.f32.gmra.mxu3 %vm462_vm1, %v10111_v3 }
 0x126   : > { %10499 = vmatmul.msk.f32.gmra.mxu0 %vm462_vm1, %v11843_v32 }
 0x127   : > { %v12313_v28 = vpop.f32.mrf.mxu2 }
 0x128   : > { %16028 = vst [vmem:[#allocation54_spill] sm:$0xff] %v12313_v28  ;;  %v12315_v1 = vpop.f32.mrf.mxu3  ;;  %v12317_v23 = vpop.f32.mrf.mxu1  ;;  %v10113_v28 = vld [vmem:[%s11783_s29 + $0x50] sm:$0xff] }
 0x129   : > { %16029 = vst [vmem:[#allocation55_spill] sm:$0xff] %v12315_v1  ;;  %v2044_v1 = vld [vmem:[%s11783_s29 + $0x2a] sm:$0xff] }
 0x12a   : > { %16030 = vst [vmem:[#allocation56_spill] sm:$0xff] %v12317_v23 }
 0x12b   : > { %v12322_v15 = vpop.f32.mrf.mxu0  ;;  %9854 = vmatmul.msk.f32.gmra.mxu1 %vm462_vm1, %v206_v24 }
 0x12c   : > { %9984 = vmatmul.msk.f32.gmra.mxu2 %vm462_vm1, %v2043_v16 }
 0x12d   : > { %10242 = vmatmul.msk.f32.gmra.mxu3 %vm462_vm1, %v10112_v43 }
 0x12e   : > { %10500 = vmatmul.msk.f32.gmra.mxu0 %vm462_vm1, %v11854_v36 }
 0x12f   : > { %v12329_v32 = vpop.f32.mrf.mxu2 }
 0x130   : > { %16031 = vst [vmem:[#allocation57_spill] sm:$0xff] %v12329_v32  ;;  %v12331_v50 = vpop.f32.mrf.mxu3  ;;  %v12333_v34 = vpop.f32.mrf.mxu1  ;;  %v10114_v32 = vld [vmem:[%s11783_s29 + $0x58] sm:$0xff] }
 0x131   : > { %16032 = vst [vmem:[#allocation58_spill] sm:$0xff] %v12331_v50  ;;  %v2045_v50 = vld [vmem:[%s11783_s29 + $0x32] sm:$0xff] }
 0x132   : > { %16033 = vst [vmem:[#allocation59_spill] sm:$0xff] %v12333_v34 }
 0x133   : > { %v12337_v23 = vpop.f32.mrf.mxu0  ;;  %9855 = vmatmul.msk.f32.gmra.mxu1 %vm462_vm1, %v10109_v41 }
 0x134   : > { %9985 = vmatmul.msk.f32.gmra.mxu2 %vm462_vm1, %v2044_v1 }
 0x135   : > { %10243 = vmatmul.msk.f32.gmra.mxu3 %vm462_vm1, %v10113_v28 }
 0x136   : > { %10501 = vmatmul.msk.f32.gmra.mxu0 %vm462_vm1, %v11865_v40 }
 0x137   : > { %v12344_v36 = vpop.f32.mrf.mxu2 }
 0x138   : > { %16034 = vst [vmem:[#allocation60_spill] sm:$0xff] %v12344_v36  ;;  %v12346_v16 = vpop.f32.mrf.mxu3  ;;  %v12348_v24 = vpop.f32.mrf.mxu1  ;;  %v10115_v36 = vld [vmem:[%s11783_s29 + $0x60] sm:$0xff] }
 0x139   : > { %16035 = vst [vmem:[#allocation61_spill] sm:$0xff] %v12346_v16  ;;  %v2046_v16 = vld [vmem:[%s11783_s29 + $0x3a] sm:$0xff] }
 0x13a   : > { %16036 = vst [vmem:[#allocation62_spill] sm:$0xff] %v12348_v24 }
 0x13b   : > { %v12352_v34 = vpop.f32.mrf.mxu0  ;;  %9856 = vmatmul.msk.f32.gmra.mxu1 %vm462_vm1, %v10110_v35 }
 0x13c   : > { %9986 = vmatmul.msk.f32.gmra.mxu2 %vm462_vm1, %v2045_v50 }
 0x13d   : > { %10244 = vmatmul.msk.f32.gmra.mxu3 %vm462_vm1, %v10114_v32 }
 0x13e   : > { %10502 = vmatmul.msk.f32.gmra.mxu0 %vm462_vm1, %v11876_v44 }
 0x13f   : > { %v12359_v40 = vpop.f32.mrf.mxu2 }
 0x140   : > { %16037 = vst [vmem:[#allocation63_spill] sm:$0xff] %v12359_v40  ;;  %v12361_v41 = vpop.f32.mrf.mxu3  ;;  %v12363_v1 = vpop.f32.mrf.mxu1  ;;  %v10116_v40 = vld [vmem:[%s11783_s29 + $0x68] sm:$0xff] }
 0x141   : > { %16038 = vst [vmem:[#allocation64_spill] sm:$0xff] %v12361_v41  ;;  %v2047_v41 = vld [vmem:[%s11783_s29 + $0x42] sm:$0xff] }
 0x142   : > { %16039 = vst [vmem:[#allocation65_spill] sm:$0xff] %v12363_v1 }
 0x143   : > { %v12367_v24 = vpop.f32.mrf.mxu0  ;;  %9857 = vmatmul.msk.f32.gmra.mxu1 %vm462_vm1, %v10111_v3 }
 0x144   : > { %9987 = vmatmul.msk.f32.gmra.mxu2 %vm462_vm1, %v2046_v16 }
 0x145   : > { %10245 = vmatmul.msk.f32.gmra.mxu3 %vm462_vm1, %v10115_v36 }
 0x146   : > { %10503 = vmatmul.msk.f32.gmra.mxu0 %vm462_vm1, %v11887_v48 }
 0x147   : > { %v12374_v44 = vpop.f32.mrf.mxu2 }
 0x148   : > { %16040 = vst [vmem:[#allocation66_spill] sm:$0xff] %v12374_v44  ;;  %v12376_v35 = vpop.f32.mrf.mxu3  ;;  %v12378_v50 = vpop.f32.mrf.mxu1  ;;  %v10117_v44 = vld [vmem:[%s11783_s29 + $0x78] sm:$0xff] }
 0x149   : > { %16041 = vst [vmem:[#allocation67_spill] sm:$0xff] %v12376_v35  ;;  %v2048_v35 = vld [vmem:[%s11783_s29 + $0x52] sm:$0xff] }
 0x14a   : > { %16042 = vst [vmem:[#allocation68_spill] sm:$0xff] %v12378_v50 }
 0x14b   : > { %v12382_v1 = vpop.f32.mrf.mxu0  ;;  %9858 = vmatmul.msk.f32.gmra.mxu1 %vm462_vm1, %v10112_v43 }
 0x14c   : > { %9988 = vmatmul.msk.f32.gmra.mxu2 %vm462_vm1, %v2047_v41 }
 0x14d   : > { %10246 = vmatmul.msk.f32.gmra.mxu3 %vm462_vm1, %v10116_v40 }
 0x14e   : > { %10504 = vmatmul.msk.f32.gmra.mxu0 %vm462_vm1, %v11898_v52 }
 0x14f   : > { %v12389_v48 = vpop.f32.mrf.mxu2 }
 0x150   : > { %16043 = vst [vmem:[#allocation69_spill] sm:$0xff] %v12389_v48  ;;  %v12391_v3 = vpop.f32.mrf.mxu3  ;;  %v12393_v16 = vpop.f32.mrf.mxu1  ;;  %v10118_v48 = vld [vmem:[%s11783_s29 + $0x80] sm:$0xff] }
 0x151   : > { %16044 = vst [vmem:[#allocation70_spill] sm:$0xff] %v12391_v3  ;;  %v2049_v3 = vld [vmem:[%s11783_s29 + $0x5a] sm:$0xff] }
 0x152   : > { %16045 = vst [vmem:[#allocation71_spill] sm:$0xff] %v12393_v16 }
 0x153   : > { %v12397_v50 = vpop.f32.mrf.mxu0  ;;  %9859 = vmatmul.msk.f32.gmra.mxu1 %vm462_vm1, %v10113_v28 }
 0x154   : > { %9989 = vmatmul.msk.f32.gmra.mxu2 %vm462_vm1, %v2048_v35 }
 0x155   : > { %10247 = vmatmul.msk.f32.gmra.mxu3 %vm462_vm1, %v10117_v44 }
 0x156   : > { %10505 = vmatmul.msk.f32.gmra.mxu0 %vm462_vm1, %v11909_v56 }
 0x157   : > { %v12404_v52 = vpop.f32.mrf.mxu2 }
 0x158   : > { %16046 = vst [vmem:[#allocation72_spill] sm:$0xff] %v12404_v52  ;;  %v12406_v43 = vpop.f32.mrf.mxu3  ;;  %v12408_v41 = vpop.f32.mrf.mxu1  ;;  %v10119_v52 = vld [vmem:[%s11783_s29 + $0x88] sm:$0xff] }
 0x159   : > { %16047 = vst [vmem:[#allocation73_spill] sm:$0xff] %v12406_v43  ;;  %v2050_v43 = vld [vmem:[%s11783_s29 + $0x62] sm:$0xff] }
 0x15a   : > { %16048 = vst [vmem:[#allocation74_spill] sm:$0xff] %v12408_v41 }
 0x15b   : > { %v12412_v16 = vpop.f32.mrf.mxu0  ;;  %9860 = vmatmul.msk.f32.gmra.mxu1 %vm462_vm1, %v10114_v32 }
 0x15c   : > { %9990 = vmatmul.msk.f32.gmra.mxu2 %vm462_vm1, %v2049_v3 }
 0x15d   : > { %10248 = vmatmul.msk.f32.gmra.mxu3 %vm462_vm1, %v10118_v48 }
 0x15e   : > { %10506 = vmatmul.msk.f32.gmra.mxu0 %vm462_vm1, %v11920_v60 }
 0x15f   : > { %v12419_v56 = vpop.f32.mrf.mxu2 }
 0x160   : > { %16049 = vst [vmem:[#allocation75_spill] sm:$0xff] %v12419_v56  ;;  %v12421_v28 = vpop.f32.mrf.mxu3  ;;  %v12423_v35 = vpop.f32.mrf.mxu1  ;;  %v10120_v56 = vld [vmem:[%s11783_s29 + $0x90] sm:$0xff] }
 0x161   : > { %16050 = vst [vmem:[#allocation76_spill] sm:$0xff] %v12421_v28  ;;  %v2051_v28 = vld [vmem:[%s11783_s29 + $0x6a] sm:$0xff] }
 0x162   : > { %16051 = vst [vmem:[#allocation77_spill] sm:$0xff] %v12423_v35 }
 0x163   : > { %v12427_v41 = vpop.f32.mrf.mxu0  ;;  %9861 = vmatmul.msk.f32.gmra.mxu1 %vm462_vm1, %v10115_v36 }
 0x164   : > { %9991 = vmatmul.msk.f32.gmra.mxu2 %vm462_vm1, %v2050_v43 }
 0x165   : > { %10249 = vmatmul.msk.f32.gmra.mxu3 %vm462_vm1, %v10119_v52 }
 0x166   : > { %10507 = vmatmul.msk.f32.gmra.mxu0 %vm462_vm1, %v11931_v0 }
 0x167   : > { %v12434_v60 = vpop.f32.mrf.mxu2 }
 0x168   : > { %16052 = vst [vmem:[#allocation78_spill] sm:$0xff] %v12434_v60  ;;  %v12436_v32 = vpop.f32.mrf.mxu3  ;;  %v12438_v3 = vpop.f32.mrf.mxu1  ;;  %v10121_v60 = vld [vmem:[%s11783_s29 + $0xa0] sm:$0xff] }
 0x169   : > { %16053 = vst [vmem:[#allocation79_spill] sm:$0xff] %v12436_v32  ;;  %v2052_v32 = vld [vmem:[%s11783_s29 + $0x7a] sm:$0xff] }
 0x16a   : > { %16054 = vst [vmem:[#allocation80_spill] sm:$0xff] %v12438_v3 }
 0x16b   : > { %v12442_v35 = vpop.f32.mrf.mxu0  ;;  %9862 = vmatmul.msk.f32.gmra.mxu1 %vm462_vm1, %v10116_v40 }
 0x16c   : > { %9992 = vmatmul.msk.f32.gmra.mxu2 %vm462_vm1, %v2051_v28 }
 0x16d   : > { %10250 = vmatmul.msk.f32.gmra.mxu3 %vm462_vm1, %v10120_v56 }
 0x16e   : > { %10508 = vmatmul.msk.f32.gmra.mxu0 %vm462_vm1, %v11942_v4 }
 0x16f   : > { %v12449_v0 = vpop.f32.mrf.mxu2 }
 0x170   : > { %16055 = vst [vmem:[#allocation81_spill] sm:$0xff] %v12449_v0  ;;  %v12451_v36 = vpop.f32.mrf.mxu3  ;;  %v12453_v43 = vpop.f32.mrf.mxu1  ;;  %v10122_v0 = vld [vmem:[%s11783_s29 + $0xa8] sm:$0xff] }
 0x171   : > { %16056 = vst [vmem:[#allocation82_spill] sm:$0xff] %v12451_v36  ;;  %v2053_v36 = vld [vmem:[%s11783_s29 + $0x82] sm:$0xff] }
 0x172   : > { %16057 = vst [vmem:[#allocation83_spill] sm:$0xff] %v12453_v43 }
 0x173   : > { %v12457_v3 = vpop.f32.mrf.mxu0  ;;  %9863 = vmatmul.msk.f32.gmra.mxu1 %vm462_vm1, %v10117_v44 }
 0x174   : > { %9993 = vmatmul.msk.f32.gmra.mxu2 %vm462_vm1, %v2052_v32 }
 0x175   : > { %10251 = vmatmul.msk.f32.gmra.mxu3 %vm462_vm1, %v10121_v60 }
 0x176   : > { %10509 = vmatmul.msk.f32.gmra.mxu0 %vm462_vm1, %v11957_v10 }
 0x177   : > { %v12464_v4 = vpop.f32.mrf.mxu2 }
 0x178   : > { %16058 = vst [vmem:[#allocation84_spill] sm:$0xff] %v12464_v4  ;;  %v12466_v40 = vpop.f32.mrf.mxu3  ;;  %v12468_v28 = vpop.f32.mrf.mxu1  ;;  %v10123_v4 = vld [vmem:[%s11783_s29 + $0xb0] sm:$0xff] }
 0x179   : > { %16059 = vst [vmem:[#allocation85_spill] sm:$0xff] %v12466_v40  ;;  %v2054_v40 = vld [vmem:[%s11783_s29 + $0x8a] sm:$0xff] }
 0x17a   : > { %16060 = vst [vmem:[#allocation86_spill] sm:$0xff] %v12468_v28 }
 0x17b   : > { %v12472_v43 = vpop.f32.mrf.mxu0  ;;  %9864 = vmatmul.msk.f32.gmra.mxu1 %vm462_vm1, %v10118_v48 }
 0x17c   : > { %9994 = vmatmul.msk.f32.gmra.mxu2 %vm462_vm1, %v2053_v36 }
 0x17d   : > { %10252 = vmatmul.msk.f32.gmra.mxu3 %vm462_vm1, %v10122_v0 }
 0x17e   : > { %10510 = vmatmul.msk.f32.gmra.mxu0 %vm462_vm1, %v11976_v18 }
 0x17f   : > { %v12479_v10 = vpop.f32.mrf.mxu2 }
 0x180   : > { %16061 = vst [vmem:[#allocation87_spill] sm:$0xff] %v12479_v10  ;;  %v12481_v44 = vpop.f32.mrf.mxu3  ;;  %v12483_v32 = vpop.f32.mrf.mxu1  ;;  %v10124_v10 = vld [vmem:[%s11783_s29 + $0xb8] sm:$0xff] }
 0x181   : > { %16062 = vst [vmem:[#allocation88_spill] sm:$0xff] %v12481_v44  ;;  %v2055_v44 = vld [vmem:[%s11783_s29 + $0x92] sm:$0xff] }
 0x182   : > { %16063 = vst [vmem:[#allocation89_spill] sm:$0xff] %v12483_v32 }
 0x183   : > { %v12487_v28 = vpop.f32.mrf.mxu0  ;;  %9865 = vmatmul.msk.f32.gmra.mxu1 %vm462_vm1, %v10119_v52 }
 0x184   : > { %9995 = vmatmul.msk.f32.gmra.mxu2 %vm462_vm1, %v2054_v40 }
 0x185   : > { %10253 = vmatmul.msk.f32.gmra.mxu3 %vm462_vm1, %v10123_v4 }
 0x186   : > { %10511 = vmatmul.msk.f32.gmra.mxu0 %vm462_vm1, %v11995_v27 }
 0x187   : > { %v12494_v18 = vpop.f32.mrf.mxu2 }
 0x188   : > { %16064 = vst [vmem:[#allocation90_spill] sm:$0xff] %v12494_v18  ;;  %v12496_v48 = vpop.f32.mrf.mxu3  ;;  %v12498_v36 = vpop.f32.mrf.mxu1  ;;  %v10125_v18 = vld [vmem:[%s11783_s29 + $0xc8] sm:$0xff] }
 0x189   : > { %16065 = vst [vmem:[#allocation91_spill] sm:$0xff] %v12496_v48  ;;  %v2056_v48 = vld [vmem:[%s11783_s29 + $0xa2] sm:$0xff] }
 0x18a   : > { %16066 = vst [vmem:[#allocation92_spill] sm:$0xff] %v12498_v36 }
 0x18b   : > { %v12502_v32 = vpop.f32.mrf.mxu0  ;;  %9866 = vmatmul.msk.f32.gmra.mxu1 %vm462_vm1, %v10120_v56 }
 0x18c   : > { %9996 = vmatmul.msk.f32.gmra.mxu2 %vm462_vm1, %v2055_v44 }
 0x18d   : > { %10254 = vmatmul.msk.f32.gmra.mxu3 %vm462_vm1, %v10124_v10 }
 0x18e   : > { %10512 = vmatmul.msk.f32.gmra.mxu0 %vm462_vm1, %v12014_v38 }
 0x18f   : > { %v12509_v27 = vpop.f32.mrf.mxu2 }
 0x190   : > { %16067 = vst [vmem:[#allocation93_spill] sm:$0xff] %v12509_v27  ;;  %v12511_v52 = vpop.f32.mrf.mxu3  ;;  %v1656_v40 = vpop.f32.mrf.mxu1 }
 0x191   : > { %16068 = vst [vmem:[#allocation94_spill] sm:$0xff] %v12511_v52  ;;  %v1657_v38 = vadd.f32 %v1656_v40, %v11954_v9 }
 0x193   : > { %v4667_v36 = vpop.f32.mrf.mxu0  ;;  %9867 = vmatmul.msk.f32.gmra.mxu1 %vm462_vm1, %v10121_v60 }
 0x194   : > { %9997 = vmatmul.msk.f32.gmra.mxu2 %vm462_vm1, %v2056_v48 }
 0x195   : > { %10255 = vmatmul.msk.f32.gmra.mxu3 %vm462_vm1, %v10125_v18 }
 0x196   : > { %10513 = vmatmul.msk.f32.gmra.mxu0 %vm462_vm1, %v12033_v49 }
 0x197   : > { %v2574_v56 = vpop.f32.mrf.mxu2 }
 0x198   : > { %v2958_v44 = vadd.f32 %v2574_v56, %v1657_v38  ;;  %v3621_v27 = vpop.f32.mrf.mxu3  ;;  %v1659_v52 = vpop.f32.mrf.mxu1  ;;  %v2058_v38 = vld [vmem:[%s11783_s29 + $0xb2] sm:$0xff] }
 0x199   : > { %v1660_v9 = vadd.f32 %v1659_v52, %v11973_v17 }
 0x19a   : > { %v4005_v53 = vadd.f32 %v3621_v27, %v2958_v44 }
 0x19b   : > { %v4670_v31 = vpop.f32.mrf.mxu0  ;;  %9868 = vmatmul.msk.f32.gmra.mxu1 %vm462_vm1, %v10122_v0 }
 0x19c   : > { %v12523_v60 = vadd.f32 %v4667_v36, %v4005_v53  ;;  %9998 = vmatmul.msk.f32.gmra.mxu2 %vm462_vm1, %v2057_v63  ;;  %v10127_v36 = vld [vmem:[%s11783_s29 + $0xd8] sm:$0xff] }
 0x19d   : > { %10256 = vmatmul.msk.f32.gmra.mxu3 %vm462_vm1, %v10126_v42 }
 0x19e   : > { %10514 = vmatmul.msk.f32.gmra.mxu0 %vm462_vm1, %v12052_v59 }
 0x19f   : > { %v2577_v49 = vpop.f32.mrf.mxu2 }
 0x1a0   : > { %v2959_v48 = vadd.f32 %v2577_v49, %v1660_v9  ;;  %v3624_v40 = vpop.f32.mrf.mxu3  ;;  %v1662_v27 = vpop.f32.mrf.mxu1  ;;  %v2059_v9 = vld [vmem:[%s11783_s29 + $0xba] sm:$0xff] }
 0x1a1   : > { %v1663_v17 = vadd.f32 %v1662_v27, %v11992_v26  ;;  %v10128_v49 = vld [vmem:[%s11783_s29 + $0xe0] sm:$0xff] }
 0x1a2   : > { %v4006_v53 = vadd.f32 %v3624_v40, %v2959_v48 }
 0x1a3   : > { %v4673_v56 = vpop.f32.mrf.mxu0  ;;  %9869 = vmatmul.msk.f32.gmra.mxu1 %vm462_vm1, %v10123_v4 }
 0x1a4   : > { %v12533_v0 = vadd.f32 %v4670_v31, %v4006_v53  ;;  %9999 = vmatmul.msk.f32.gmra.mxu2 %vm462_vm1, %v2058_v38  ;;  %v2060_v53 = vld [vmem:[%s11783_s29 + $0xca] sm:$0xff] }
 0x1a5   : > { %10257 = vmatmul.msk.f32.gmra.mxu3 %vm462_vm1, %v10127_v36 }
 0x1a6   : > { %10515 = vmatmul.msk.f32.gmra.mxu0 %vm462_vm1, %v12071_v7 }
 0x1a7   : > { %v2580_v59 = vpop.f32.mrf.mxu2 }
 0x1a8   : > { %v2960_v63 = vadd.f32 %v2580_v59, %v1663_v17  ;;  %v3627_v52 = vpop.f32.mrf.mxu3  ;;  %v1665_v44 = vpop.f32.mrf.mxu1  ;;  %v10129_v17 = vld [vmem:[%s11783_s29 + $0xf0] sm:$0xff] }
 0x1a9   : > { %v1666_v26 = vadd.f32 %v1665_v44, %v12011_v37 }
 0x1aa   : > { %v4007_v31 = vadd.f32 %v3627_v52, %v2960_v63 }
 0x1ab   : > { %v4676_v48 = vpop.f32.mrf.mxu0  ;;  %9870 = vmatmul.msk.f32.gmra.mxu1 %vm462_vm1, %v10124_v10 }
 0x1ac   : > { %v12543_v4 = vadd.f32 %v4673_v56, %v4007_v31  ;;  %10000 = vmatmul.msk.f32.gmra.mxu2 %vm462_vm1, %v2059_v9  ;;  %v2061_v9 = vld [vmem:[%s11783_s29 + $0xd2] sm:$0xff] }
 0x1ad   : > { %10258 = vmatmul.msk.f32.gmra.mxu3 %vm462_vm1, %v10128_v49 }
 0x1ae   : > { %10516 = vmatmul.msk.f32.gmra.mxu0 %vm462_vm1, %v12090_v33 }
 0x1af   : > { %v2583_v7 = vpop.f32.mrf.mxu2 }
 0x1b0   : > { %v2961_v40 = vadd.f32 %v2583_v7, %v1666_v26  ;;  %v3630_v27 = vpop.f32.mrf.mxu3  ;;  %v1668_v38 = vpop.f32.mrf.mxu1 }
 0x1b1   : > { %v1669_v37 = vadd.f32 %v1668_v38, %v12030_v47  ;;  %v2062_v38 = vld [vmem:[%s11783_s29 + $0xda] sm:$0xff] }
 0x1b2   : > { %v4008_v56 = vadd.f32 %v3630_v27, %v2961_v40 }
 0x1b3   : > { %v4679_v59 = vpop.f32.mrf.mxu0  ;;  %9871 = vmatmul.msk.f32.gmra.mxu1 %vm462_vm1, %v10125_v18 }
 0x1b4   : > { %v12553_v10 = vadd.f32 %v4676_v48, %v4008_v56  ;;  %10001 = vmatmul.msk.f32.gmra.mxu2 %vm462_vm1, %v2060_v53  ;;  %v10130_v48 = vld [vmem:[%s11783_s29 + $0xf8] sm:$0xff]  ;;  %v10131_v56 = vld [vmem:[%s11783_s29 + $0x100] sm:$0xff] }
 0x1b5   : > { %10259 = vmatmul.msk.f32.gmra.mxu3 %vm462_vm1, %v10129_v17 }
 0x1b6   : > { %10517 = vmatmul.msk.f32.gmra.mxu0 %vm462_vm1, %v12109_v57 }
 0x1b7   : > { %v2586_v33 = vpop.f32.mrf.mxu2 }
 0x1b8   : > { %v2962_v63 = vadd.f32 %v2586_v33, %v1669_v37  ;;  %v3633_v52 = vpop.f32.mrf.mxu3  ;;  %v1671_v44 = vpop.f32.mrf.mxu1 }
 0x1b9   : > { %v1672_v47 = vadd.f32 %v1671_v44, %v12049_v58 }
 0x1ba   : > { %v4009_v31 = vadd.f32 %v3633_v52, %v2962_v63  ;;  %v2063_v52 = vld [vmem:[%s11783_s29 + $0xe2] sm:$0xff] }
 0x1bb   : > { %v4682_v26 = vpop.f32.mrf.mxu0  ;;  %9872 = vmatmul.msk.f32.gmra.mxu1 %vm462_vm1, %v10126_v42 }
 0x1bc   : > { %v12563_v18 = vadd.f32 %v4679_v59, %v4009_v31  ;;  %10002 = vmatmul.msk.f32.gmra.mxu2 %vm462_vm1, %v2061_v9  ;;  %v10132_v9 = vld [vmem:[%s11783_s29 + $0x108] sm:$0xff] }
 0x1bd   : > { %10260 = vmatmul.msk.f32.gmra.mxu3 %vm462_vm1, %v10130_v48 }
 0x1be   : > { %10518 = vmatmul.msk.f32.gmra.mxu0 %vm462_vm1, %v12128_v46 }
 0x1bf   : > { %v2589_v57 = vpop.f32.mrf.mxu2 }
 0x1c0   : > { %v2963_v7 = vadd.f32 %v2589_v57, %v1672_v47  ;;  %v3636_v40 = vpop.f32.mrf.mxu3  ;;  %v1674_v27 = vpop.f32.mrf.mxu1 }
 0x1c1   : > { %v1675_v58 = vadd.f32 %v1674_v27, %v12068_v6  ;;  %v10133_v27 = vld [vmem:[%s11783_s29 + $0x118] sm:$0xff] }
 0x1c2   : > { %v4010_v53 = vadd.f32 %v3636_v40, %v2963_v7  ;;  %v2064_v7 = vld [vmem:[%s11783_s29 + $0xf2] sm:$0xff] }
 0x1c3   : > { %v4685_v59 = vpop.f32.mrf.mxu0  ;;  %9873 = vmatmul.msk.f32.gmra.mxu1 %vm462_vm1, %v10127_v36 }
 0x1c4   : > { %v12573_v42 = vadd.f32 %v4682_v26, %v4010_v53  ;;  %10003 = vmatmul.msk.f32.gmra.mxu2 %vm462_vm1, %v2062_v38 }
 0x1c5   : > { %10261 = vmatmul.msk.f32.gmra.mxu3 %vm462_vm1, %v10131_v56 }
 0x1c6   : > { %10519 = vmatmul.msk.f32.gmra.mxu0 %vm462_vm1, %v12147_v22 }
 0x1c7   : > { %v2592_v46 = vpop.f32.mrf.mxu2 }
 0x1c8   : > { %v2964_v37 = vadd.f32 %v2592_v46, %v1675_v58  ;;  %v3639_v33 = vpop.f32.mrf.mxu3  ;;  %v1677_v63 = vpop.f32.mrf.mxu1  ;;  %v2065_v46 = vld [vmem:[%s11783_s29 + $0xfa] sm:$0xff] }
 0x1c9   : > { %v1678_v6 = vadd.f32 %v1677_v63, %v12087_v25 }
 0x1ca   : > { %v4011_v44 = vadd.f32 %v3639_v33, %v2964_v37  ;;  %v10134_v33 = vld [vmem:[%s11783_s29 + $0x120] sm:$0xff] }
 0x1cb   : > { %v4688_v31 = vpop.f32.mrf.mxu0  ;;  %9874 = vmatmul.msk.f32.gmra.mxu1 %vm462_vm1, %v10128_v49 }
 0x1cc   : > { %v12583_v36 = vadd.f32 %v4685_v59, %v4011_v44  ;;  %10004 = vmatmul.msk.f32.gmra.mxu2 %vm462_vm1, %v2063_v52 }
 0x1cd   : > { %10262 = vmatmul.msk.f32.gmra.mxu3 %vm462_vm1, %v10132_v9 }
 0x1ce   : > { %10520 = vmatmul.msk.f32.gmra.mxu0 %vm462_vm1, %v12166_v62 }
 0x1cf   : > { %v2595_v22 = vpop.f32.mrf.mxu2 }
 0x1d0   : > { %v2965_v26 = vadd.f32 %v2595_v22, %v1678_v6  ;;  %v3642_v47 = vpop.f32.mrf.mxu3  ;;  %v1680_v57 = vpop.f32.mrf.mxu1  ;;  %v2066_v6 = vld [vmem:[%s11783_s29 + $0x102] sm:$0xff] }
 0x1d1   : > { %v1681_v25 = vadd.f32 %v1680_v57, %v12106_v55 }
 0x1d2   : > { %v4012_v40 = vadd.f32 %v3642_v47, %v2965_v26  ;;  %v10135_v26 = vld [vmem:[%s11783_s29 + $0x128] sm:$0xff] }
 0x1d3   : > { %v4691_v38 = vpop.f32.mrf.mxu0  ;;  %9875 = vmatmul.msk.f32.gmra.mxu1 %vm462_vm1, %v10129_v17 }
 0x1d4   : > { %v12593_v49 = vadd.f32 %v4688_v31, %v4012_v40  ;;  %10005 = vmatmul.msk.f32.gmra.mxu2 %vm462_vm1, %v2064_v7 }
 0x1d5   : > { %10263 = vmatmul.msk.f32.gmra.mxu3 %vm462_vm1, %v10133_v27 }
 0x1d6   : > { %10521 = vmatmul.msk.f32.gmra.mxu0 %vm462_vm1, %v12185_v30 }
 0x1d7   : > { %v2598_v62 = vpop.f32.mrf.mxu2 }
 0x1d8   : > { %v2966_v53 = vadd.f32 %v2598_v62, %v1681_v25  ;;  %v3645_v59 = vpop.f32.mrf.mxu3  ;;  %v1683_v58 = vpop.f32.mrf.mxu1  ;;  %v12623_v62 = vld [vmem:[%s11783_s29 + $0x130] sm:$0xff] }
 0x1d9   : > { %v1684_v55 = vadd.f32 %v1683_v58, %v12125_v45 }
 0x1da   : > { %v4013_v37 = vadd.f32 %v3645_v59, %v2966_v53 }
 0x1db   : > { %v4694_v63 = vpop.f32.mrf.mxu0  ;;  %9876 = vmatmul.msk.f32.gmra.mxu1 %vm462_vm1, %v10130_v48 }
 0x1dc   : > { %v12603_v17 = vadd.f32 %v4691_v38, %v4013_v37  ;;  %10006 = vmatmul.msk.f32.gmra.mxu2 %vm462_vm1, %v2065_v46  ;;  %v2067_v38 = vld [vmem:[%s11783_s29 + $0x10a] sm:$0xff]  ;;  %v2068_v37 = vld [vmem:[%s11783_s29 + $0x11a] sm:$0xff] }
 0x1dd   : > { %10264 = vmatmul.msk.f32.gmra.mxu3 %vm462_vm1, %v10134_v33 }
 0x1de   : > { %10522 = vmatmul.msk.f32.gmra.mxu0 %vm462_vm1, %v12216_v54 }
 0x1df   : > { %v2601_v30 = vpop.f32.mrf.mxu2 }
 0x1e0   : > { %v2967_v52 = vadd.f32 %v2601_v30, %v1684_v55  ;;  %v3648_v44 = vpop.f32.mrf.mxu3  ;;  %v1686_v31 = vpop.f32.mrf.mxu1  ;;  %v12636_v55 = vld [vmem:[%s11783_s29 + $0x140] sm:$0xff] }
 0x1e1   : > { %v1687_v45 = vadd.f32 %v1686_v31, %v12144_v51  ;;  %v10395_v30 = vld [vmem:[%s11783_s29 + $0x141] sm:$0xff] }
 0x1e2   : > { %v4014_v22 = vadd.f32 %v3648_v44, %v2967_v52 }
 0x1e3   : > { %v4697_v47 = vpop.f32.mrf.mxu0  ;;  %9877 = vmatmul.msk.f32.gmra.mxu1 %vm462_vm1, %v10131_v56 }
 0x1e4   : > { %v12613_v48 = vadd.f32 %v4694_v63, %v4014_v22  ;;  %10007 = vmatmul.msk.f32.gmra.mxu2 %vm462_vm1, %v2066_v6  ;;  %v2069_v22 = vld [vmem:[%s11783_s29 + $0x122] sm:$0xff] }
 0x1e5   : > { %10265 = vmatmul.msk.f32.gmra.mxu3 %vm462_vm1, %v10135_v26 }
 0x1e6   : > { %10523 = vmatmul.msk.f32.gmra.mxu0 %vm462_vm1, %v12239_v19 }
 0x1e7   : > { %v2604_v54 = vpop.f32.mrf.mxu2 }
 0x1e8   : > { %v2968_v57 = vadd.f32 %v2604_v54, %v1687_v45  ;;  %v3651_v7 = vpop.f32.mrf.mxu3  ;;  %v1689_v40 = vpop.f32.mrf.mxu1  ;;  %v12649_v45 = vld [vmem:[%s11783_s29 + $0x148] sm:$0xff] }
 0x1e9   : > { %v1690_v19 = vadd.f32 %v1689_v40, %v12163_v12  ;;  %v10396_v54 = vld [vmem:[%s11783_s29 + $0x149] sm:$0xff] }
 0x1ea   : > { %v4015_v25 = vadd.f32 %v3651_v7, %v2968_v57 }
 0x1eb   : > { %v4700_v56 = vpop.f32.mrf.mxu0  ;;  %9878 = vmatmul.msk.f32.gmra.mxu1 %vm462_vm1, %v10132_v9 }
 0x1ec   : > { %v12625_v53 = vadd.f32 %v4697_v47, %v4015_v25  ;;  %10008 = vmatmul.msk.f32.gmra.mxu2 %vm462_vm1, %v2067_v38 }
 0x1ed   : > { %10266 = vmatmul.msk.f32.gmra.mxu3 %vm462_vm1, %v12623_v62 }
 0x1ee   : > { %10524 = vmatmul.msk.f32.gmra.mxu0 %vm462_vm1, %v12258_v20 }
 0x1ef   : > { %v2607_v51 = vpop.f32.mrf.mxu2 }
 0x1f0   : > { %v2969_v59 = vadd.f32 %v2607_v51, %v1690_v19  ;;  %v3654_v58 = vpop.f32.mrf.mxu3  ;;  %v1692_v46 = vpop.f32.mrf.mxu1  ;;  %v12662_v51 = vld [vmem:[%s11783_s29 + $0x150] sm:$0xff] }
 0x1f1   : > { %v1693_v12 = vadd.f32 %v1692_v46, %v12182_v8 }
 0x1f2   : > { %v4016_v63 = vadd.f32 %v3654_v58, %v2969_v59  ;;  %v10397_v59 = vld [vmem:[%s11783_s29 + $0x151] sm:$0xff] }
 0x1f3   : > { %v4703_v9 = vpop.f32.mrf.mxu0  ;;  %9879 = vmatmul.msk.f32.gmra.mxu1 %vm462_vm1, %v10133_v27 }
 0x1f4   : > { %v12639_v52 = vadd.f32 %v4700_v56, %v4016_v63  ;;  %10009 = vmatmul.msk.f32.gmra.mxu2 %vm462_vm1, %v2068_v37  ;;  %v2070_v56 = vld [vmem:[%s11783_s29 + $0x12a] sm:$0xff] }
 0x1f5   : > { %10267 = vmatmul.msk.f32.gmra.mxu3 %vm462_vm1, %v12636_v55 }
 0x1f6   : > { %10525 = vmatmul.msk.f32.gmra.mxu0 %vm462_vm1, %v10395_v30  ;;  %v2071_v30 = vld [vmem:[%s11783_s29 + $0x132] sm:$0xff] }
 0x1f7   : > { %v2610_v20 = vpop.f32.mrf.mxu2 }
 0x1f8   : > { %v2970_v44 = vadd.f32 %v2610_v20, %v1693_v12  ;;  %v3657_v31 = vpop.f32.mrf.mxu3  ;;  %v1695_v6 = vpop.f32.mrf.mxu1  ;;  %v12675_v20 = vld [vmem:[%s11783_s29 + $0x158] sm:$0xff] }
 0x1f9   : > { %v1696_v8 = vadd.f32 %v1695_v6, %v12213_v14 }
 0x1fa   : > { %v4017_v47 = vadd.f32 %v3657_v31, %v2970_v44  ;;  %v10398_v44 = vld [vmem:[%s11783_s29 + $0x159] sm:$0xff] }
 0x1fb   : > { %v4706_v27 = vpop.f32.mrf.mxu0  ;;  %9880 = vmatmul.msk.f32.gmra.mxu1 %vm462_vm1, %v10134_v33 }
 0x1fc   : > { %v12652_v57 = vadd.f32 %v4703_v9, %v4017_v47  ;;  %10010 = vmatmul.msk.f32.gmra.mxu2 %vm462_vm1, %v2069_v22 }
 0x1fd   : > { %10268 = vmatmul.msk.f32.gmra.mxu3 %vm462_vm1, %v12649_v45 }
 0x1fe   : > { %10526 = vmatmul.msk.f32.gmra.mxu0 %vm462_vm1, %v10396_v54  ;;  %v2072_v54 = vld [vmem:[%s11783_s29 + $0x142] sm:$0xff] }
 0x1ff   : > { %v2613_v7 = vpop.f32.mrf.mxu2 }
 0x200   : > { %v2971_v40 = vadd.f32 %v2613_v7, %v1696_v8  ;;  %v3660_v38 = vpop.f32.mrf.mxu3  ;;  %v1698_v25 = vpop.f32.mrf.mxu1  ;;  %v12689_v7 = vld [vmem:[%s11783_s29 + $0x168] sm:$0xff] }
 0x201   : > { %v1699_v14 = vadd.f32 %v1698_v25, %v12236_v29 }
 0x202   : > { %v4018_v19 = vadd.f32 %v3660_v38, %v2971_v40  ;;  %v10399_v40 = vld [vmem:[%s11783_s29 + $0x169] sm:$0xff] }
 0x203   : > { %v4709_v33 = vpop.f32.mrf.mxu0  ;;  %9881 = vmatmul.msk.f32.gmra.mxu1 %vm462_vm1, %v10135_v26 }
 0x204   : > { %v12665_v58 = vadd.f32 %v4706_v27, %v4018_v19  ;;  %10011 = vmatmul.msk.f32.gmra.mxu2 %vm462_vm1, %v2070_v56 }
 0x205   : > { %10269 = vmatmul.msk.f32.gmra.mxu3 %vm462_vm1, %v12662_v51 }
 0x206   : > { %10527 = vmatmul.msk.f32.gmra.mxu0 %vm462_vm1, %v10397_v59  ;;  %v2073_v59 = vld [vmem:[%s11783_s29 + $0x14a] sm:$0xff] }
 0x207   : > { %v2616_v46 = vpop.f32.mrf.mxu2 }
 0x208   : > { %v2972_v37 = vadd.f32 %v2616_v46, %v1699_v14  ;;  %v3663_v63 = vpop.f32.mrf.mxu3  ;;  %v1701_v9 = vpop.f32.mrf.mxu1  ;;  %v12703_v46 = vld [vmem:[%s11783_s29 + $0x170] sm:$0xff] }
 0x209   : > { %v1702_v29 = vadd.f32 %v1701_v9, %v12255_v61 }
 0x20a   : > { %v4019_v12 = vadd.f32 %v3663_v63, %v2972_v37  ;;  %v10400_v37 = vld [vmem:[%s11783_s29 + $0x171] sm:$0xff] }
 0x20b   : > { %v4712_v26 = vpop.f32.mrf.mxu0  ;;  %9882 = vmatmul.msk.f32.gmra.mxu1 %vm462_vm1, %v12623_v62 }
 0x20c   : > { %v12678_v31 = vadd.f32 %v4709_v33, %v4019_v12  ;;  %10012 = vmatmul.msk.f32.gmra.mxu2 %vm462_vm1, %v2071_v30 }
 0x20d   : > { %10270 = vmatmul.msk.f32.gmra.mxu3 %vm462_vm1, %v12675_v20 }
 0x20e   : > { %10528 = vmatmul.msk.f32.gmra.mxu0 %vm462_vm1, %v10398_v44  ;;  %v2074_v44 = vld [vmem:[%s11783_s29 + $0x152] sm:$0xff] }
 0x20f   : > { %v2619_v6 = vpop.f32.mrf.mxu2 }
 0x210   : > { %v2973_v22 = vadd.f32 %v2619_v6, %v1702_v29  ;;  %v3666_v47 = vpop.f32.mrf.mxu3  ;;  %v1704_v27 = vpop.f32.mrf.mxu1  ;;  %v12717_v6 = vld [vmem:[%s11783_s29 + $0x178] sm:$0xff] }
 0x211   : > { %v1705_v61 = vadd.f32 %v1704_v27, %v12274_v11 }
 0x212   : > { %v4020_v8 = vadd.f32 %v3666_v47, %v2973_v22  ;;  %v10401_v22 = vld [vmem:[%s11783_s29 + $0x179] sm:$0xff] }
 0x213   : > { %v4715_v62 = vpop.f32.mrf.mxu0  ;;  %9883 = vmatmul.msk.f32.gmra.mxu1 %vm462_vm1, %v12636_v55 }
 0x214   : > { %v12692_v38 = vadd.f32 %v4712_v26, %v4020_v8  ;;  %10013 = vmatmul.msk.f32.gmra.mxu2 %vm462_vm1, %v2072_v54 }
 0x215   : > { %10271 = vmatmul.msk.f32.gmra.mxu3 %vm462_vm1, %v12689_v7 }
 0x216   : > { %10529 = vmatmul.msk.f32.gmra.mxu0 %vm462_vm1, %v10399_v40  ;;  %v2075_v40 = vld [vmem:[%s11783_s29 + $0x15a] sm:$0xff] }
 0x217   : > { %v2622_v25 = vpop.f32.mrf.mxu2 }
 0x218   : > { %v2974_v56 = vadd.f32 %v2622_v25, %v1705_v61  ;;  %v3669_v19 = vpop.f32.mrf.mxu3  ;;  %v1707_v33 = vpop.f32.mrf.mxu1  ;;  %v12731_v25 = vld [vmem:[%s11783_s29 + $0x180] sm:$0xff] }
 0x219   : > { %v1708_v11 = vadd.f32 %v1707_v33, %v12290_v2 }
 0x21a   : > { %v4021_v14 = vadd.f32 %v3669_v19, %v2974_v56  ;;  %v10402_v56 = vld [vmem:[%s11783_s29 + $0x181] sm:$0xff] }
 0x21b   : > { %v4718_v55 = vpop.f32.mrf.mxu0  ;;  %9884 = vmatmul.msk.f32.gmra.mxu1 %vm462_vm1, %v12649_v45 }
 0x21c   : > { %v12706_v63 = vadd.f32 %v4715_v62, %v4021_v14  ;;  %10014 = vmatmul.msk.f32.gmra.mxu2 %vm462_vm1, %v2073_v59 }
 0x21d   : > { %10272 = vmatmul.msk.f32.gmra.mxu3 %vm462_vm1, %v12703_v46 }
 0x21e   : > { %10530 = vmatmul.msk.f32.gmra.mxu0 %vm462_vm1, %v10400_v37  ;;  %v2076_v37 = vld [vmem:[%s11783_s29 + $0x16a] sm:$0xff] }
 0x21f   : > { %v2625_v9 = vpop.f32.mrf.mxu2 }
 0x220   : > { %v2975_v30 = vadd.f32 %v2625_v9, %v1708_v11  ;;  %v3672_v12 = vpop.f32.mrf.mxu3  ;;  %v1710_v26 = vpop.f32.mrf.mxu1  ;;  %v12745_v9 = vld [vmem:[%s11783_s29 + $0x190] sm:$0xff] }
 0x221   : > { %v1711_v2 = vadd.f32 %v1710_v26, %v12306_v39 }
 0x222   : > { %v4022_v29 = vadd.f32 %v3672_v12, %v2975_v30  ;;  %v10403_v30 = vld [vmem:[%s11783_s29 + $0x191] sm:$0xff] }
 0x223   : > { %v4721_v45 = vpop.f32.mrf.mxu0  ;;  %9885 = vmatmul.msk.f32.gmra.mxu1 %vm462_vm1, %v12662_v51 }
 0x224   : > { %v12720_v47 = vadd.f32 %v4718_v55, %v4022_v29  ;;  %10015 = vmatmul.msk.f32.gmra.mxu2 %vm462_vm1, %v2074_v44 }
 0x225   : > { %10273 = vmatmul.msk.f32.gmra.mxu3 %vm462_vm1, %v12717_v6 }
 0x226   : > { %10531 = vmatmul.msk.f32.gmra.mxu0 %vm462_vm1, %v10401_v22  ;;  %v2077_v22 = vld [vmem:[%s11783_s29 + $0x172] sm:$0xff] }
 0x227   : > { %v2628_v27 = vpop.f32.mrf.mxu2 }
 0x228   : > { %v2976_v54 = vadd.f32 %v2628_v27, %v1711_v2  ;;  %v3675_v8 = vpop.f32.mrf.mxu3  ;;  %v1713_v62 = vpop.f32.mrf.mxu1  ;;  %v12759_v27 = vld [vmem:[%s11783_s29 + $0x198] sm:$0xff] }
 0x229   : > { %v1714_v39 = vadd.f32 %v1713_v62, %v12322_v15 }
 0x22a   : > { %v4023_v61 = vadd.f32 %v3675_v8, %v2976_v54  ;;  %v10404_v54 = vld [vmem:[%s11783_s29 + $0x199] sm:$0xff] }
 0x22b   : > { %v4724_v51 = vpop.f32.mrf.mxu0  ;;  %9886 = vmatmul.msk.f32.gmra.mxu1 %vm462_vm1, %v12675_v20 }
 0x22c   : > { %v12734_v19 = vadd.f32 %v4721_v45, %v4023_v61  ;;  %10016 = vmatmul.msk.f32.gmra.mxu2 %vm462_vm1, %v2075_v40 }
 0x22d   : > { %10274 = vmatmul.msk.f32.gmra.mxu3 %vm462_vm1, %v12731_v25 }
 0x22e   : > { %10532 = vmatmul.msk.f32.gmra.mxu0 %vm462_vm1, %v10402_v56  ;;  %v2078_v56 = vld [vmem:[%s11783_s29 + $0x17a] sm:$0xff] }
 0x22f   : > { %v2631_v33 = vpop.f32.mrf.mxu2 }
 0x230   : > { %v2977_v59 = vadd.f32 %v2631_v33, %v1714_v39  ;;  %v3678_v14 = vpop.f32.mrf.mxu3  ;;  %v1716_v55 = vpop.f32.mrf.mxu1  ;;  %v12773_v33 = vld [vmem:[%s11783_s29 + $0x1a0] sm:$0xff] }
 0x231   : > { %v1717_v15 = vadd.f32 %v1716_v55, %v12337_v23 }
 0x232   : > { %v4024_v11 = vadd.f32 %v3678_v14, %v2977_v59  ;;  %v10405_v59 = vld [vmem:[%s11783_s29 + $0x1a1] sm:$0xff] }
 0x233   : > { %v4727_v20 = vpop.f32.mrf.mxu0  ;;  %9887 = vmatmul.msk.f32.gmra.mxu1 %vm462_vm1, %v12689_v7 }
 0x234   : > { %v12748_v12 = vadd.f32 %v4724_v51, %v4024_v11  ;;  %10017 = vmatmul.msk.f32.gmra.mxu2 %vm462_vm1, %v2076_v37 }
 0x235   : > { %10275 = vmatmul.msk.f32.gmra.mxu3 %vm462_vm1, %v12745_v9 }
 0x236   : > { %10533 = vmatmul.msk.f32.gmra.mxu0 %vm462_vm1, %v10403_v30  ;;  %v2079_v30 = vld [vmem:[%s11783_s29 + $0x182] sm:$0xff] }
 0x237   : > { %v2634_v26 = vpop.f32.mrf.mxu2 }
 0x238   : > { %v2978_v44 = vadd.f32 %v2634_v26, %v1717_v15  ;;  %v3681_v29 = vpop.f32.mrf.mxu3  ;;  %v1719_v45 = vpop.f32.mrf.mxu1  ;;  %v12787_v26 = vld [vmem:[%s11783_s29 + $0x1a8] sm:$0xff] }
 0x239   : > { %v1720_v23 = vadd.f32 %v1719_v45, %v12352_v34 }
 0x23a   : > { %v4025_v2 = vadd.f32 %v3681_v29, %v2978_v44  ;;  %v10406_v44 = vld [vmem:[%s11783_s29 + $0x1a9] sm:$0xff] }
 0x23b   : > { %v4730_v7 = vpop.f32.mrf.mxu0  ;;  %9888 = vmatmul.msk.f32.gmra.mxu1 %vm462_vm1, %v12703_v46 }
 0x23c   : > { %v12762_v8 = vadd.f32 %v4727_v20, %v4025_v2  ;;  %10018 = vmatmul.msk.f32.gmra.mxu2 %vm462_vm1, %v2077_v22 }
 0x23d   : > { %10276 = vmatmul.msk.f32.gmra.mxu3 %vm462_vm1, %v12759_v27 }
 0x23e   : > { %10534 = vmatmul.msk.f32.gmra.mxu0 %vm462_vm1, %v10404_v54  ;;  %v2080_v54 = vld [vmem:[%s11783_s29 + $0x192] sm:$0xff] }
 0x23f   : > { %v2637_v62 = vpop.f32.mrf.mxu2 }
 0x240   : > { %v2979_v40 = vadd.f32 %v2637_v62, %v1720_v23  ;;  %v3684_v61 = vpop.f32.mrf.mxu3  ;;  %v1722_v51 = vpop.f32.mrf.mxu1  ;;  %v12801_v62 = vld [vmem:[%s11783_s29 + $0x1b8] sm:$0xff] }
 0x241   : > { %v1723_v34 = vadd.f32 %v1722_v51, %v12367_v24 }
 0x242   : > { %v4026_v39 = vadd.f32 %v3684_v61, %v2979_v40  ;;  %v10407_v40 = vld [vmem:[%s11783_s29 + $0x1b9] sm:$0xff] }
 0x243   : > { %v4733_v46 = vpop.f32.mrf.mxu0  ;;  %9889 = vmatmul.msk.f32.gmra.mxu1 %vm462_vm1, %v12717_v6 }
 0x244   : > { %v12776_v14 = vadd.f32 %v4730_v7, %v4026_v39  ;;  %10019 = vmatmul.msk.f32.gmra.mxu2 %vm462_vm1, %v2078_v56 }
 0x245   : > { %10277 = vmatmul.msk.f32.gmra.mxu3 %vm462_vm1, %v12773_v33 }
 0x246   : > { %10535 = vmatmul.msk.f32.gmra.mxu0 %vm462_vm1, %v10405_v59  ;;  %v2081_v59 = vld [vmem:[%s11783_s29 + $0x19a] sm:$0xff] }
 0x247   : > { %v2640_v55 = vpop.f32.mrf.mxu2 }
 0x248   : > { %v2980_v37 = vadd.f32 %v2640_v55, %v1723_v34  ;;  %v3687_v11 = vpop.f32.mrf.mxu3  ;;  %v1725_v20 = vpop.f32.mrf.mxu1  ;;  %v12815_v55 = vld [vmem:[%s11783_s29 + $0x1c0] sm:$0xff] }
 0x249   : > { %v1726_v24 = vadd.f32 %v1725_v20, %v12382_v1 }
 0x24a   : > { %v4027_v15 = vadd.f32 %v3687_v11, %v2980_v37  ;;  %v10408_v37 = vld [vmem:[%s11783_s29 + $0x1c1] sm:$0xff] }
 0x24b   : > { %v4736_v6 = vpop.f32.mrf.mxu0  ;;  %9890 = vmatmul.msk.f32.gmra.mxu1 %vm462_vm1, %v12731_v25 }
 0x24c   : > { %v12790_v29 = vadd.f32 %v4733_v46, %v4027_v15  ;;  %10020 = vmatmul.msk.f32.gmra.mxu2 %vm462_vm1, %v2079_v30 }
 0x24d   : > { %10278 = vmatmul.msk.f32.gmra.mxu3 %vm462_vm1, %v12787_v26 }
 0x24e   : > { %10536 = vmatmul.msk.f32.gmra.mxu0 %vm462_vm1, %v10406_v44  ;;  %v2082_v44 = vld [vmem:[%s11783_s29 + $0x1a2] sm:$0xff] }
 0x24f   : > { %v2643_v45 = vpop.f32.mrf.mxu2 }
 0x250   : > { %v2981_v22 = vadd.f32 %v2643_v45, %v1726_v24  ;;  %v3690_v2 = vpop.f32.mrf.mxu3  ;;  %v1728_v7 = vpop.f32.mrf.mxu1  ;;  %v12829_v45 = vld [vmem:[%s11783_s29 + $0x1c8] sm:$0xff] }
 0x251   : > { %v1729_v1 = vadd.f32 %v1728_v7, %v12397_v50 }
 0x252   : > { %v4028_v23 = vadd.f32 %v3690_v2, %v2981_v22  ;;  %v10409_v22 = vld [vmem:[%s11783_s29 + $0x1c9] sm:$0xff] }
 0x253   : > { %v4739_v25 = vpop.f32.mrf.mxu0  ;;  %9891 = vmatmul.msk.f32.gmra.mxu1 %vm462_vm1, %v12745_v9 }
 0x254   : > { %v12804_v61 = vadd.f32 %v4736_v6, %v4028_v23  ;;  %10021 = vmatmul.msk.f32.gmra.mxu2 %vm462_vm1, %v2080_v54 }
 0x255   : > { %10279 = vmatmul.msk.f32.gmra.mxu3 %vm462_vm1, %v12801_v62 }
 0x256   : > { %10537 = vmatmul.msk.f32.gmra.mxu0 %vm462_vm1, %v10407_v40  ;;  %v2083_v40 = vld [vmem:[%s11783_s29 + $0x1aa] sm:$0xff] }
 0x257   : > { %v2646_v51 = vpop.f32.mrf.mxu2 }
 0x258   : > { %v2982_v56 = vadd.f32 %v2646_v51, %v1729_v1  ;;  %v3693_v39 = vpop.f32.mrf.mxu3  ;;  %v1731_v46 = vpop.f32.mrf.mxu1  ;;  %v12843_v51 = vld [vmem:[%s11783_s29 + $0x1d0] sm:$0xff] }
 0x259   : > { %v1732_v50 = vadd.f32 %v1731_v46, %v12412_v16 }
 0x25a   : > { %v4029_v34 = vadd.f32 %v3693_v39, %v2982_v56  ;;  %v10410_v56 = vld [vmem:[%s11783_s29 + $0x1d1] sm:$0xff] }
 0x25b   : > { %v4742_v9 = vpop.f32.mrf.mxu0  ;;  %9892 = vmatmul.msk.f32.gmra.mxu1 %vm462_vm1, %v12759_v27 }
 0x25c   : > { %v12818_v11 = vadd.f32 %v4739_v25, %v4029_v34  ;;  %10022 = vmatmul.msk.f32.gmra.mxu2 %vm462_vm1, %v2081_v59 }
 0x25d   : > { %10280 = vmatmul.msk.f32.gmra.mxu3 %vm462_vm1, %v12815_v55 }
 0x25e   : > { %10538 = vmatmul.msk.f32.gmra.mxu0 %vm462_vm1, %v10408_v37  ;;  %v2084_v37 = vld [vmem:[%s11783_s29 + $0x1ba] sm:$0xff] }
 0x25f   : > { %v2649_v20 = vpop.f32.mrf.mxu2 }
 0x260   : > { %v2983_v30 = vadd.f32 %v2649_v20, %v1732_v50  ;;  %v3696_v15 = vpop.f32.mrf.mxu3  ;;  %v1734_v6 = vpop.f32.mrf.mxu1  ;;  %v12857_v20 = vld [vmem:[%s11783_s29 + $0x1e0] sm:$0xff] }
 0x261   : > { %v1735_v16 = vadd.f32 %v1734_v6, %v12427_v41 }
 0x262   : > { %v4030_v24 = vadd.f32 %v3696_v15, %v2983_v30  ;;  %v10411_v30 = vld [vmem:[%s11783_s29 + $0x1e1] sm:$0xff] }
 0x263   : > { %v4745_v27 = vpop.f32.mrf.mxu0  ;;  %9893 = vmatmul.msk.f32.gmra.mxu1 %vm462_vm1, %v12773_v33 }
 0x264   : > { %v12832_v2 = vadd.f32 %v4742_v9, %v4030_v24  ;;  %10023 = vmatmul.msk.f32.gmra.mxu2 %vm462_vm1, %v2082_v44 }
 0x265   : > { %10281 = vmatmul.msk.f32.gmra.mxu3 %vm462_vm1, %v12829_v45 }
 0x266   : > { %10539 = vmatmul.msk.f32.gmra.mxu0 %vm462_vm1, %v10409_v22  ;;  %v2085_v22 = vld [vmem:[%s11783_s29 + $0x1c2] sm:$0xff] }
 0x267   : > { %v2652_v7 = vpop.f32.mrf.mxu2 }
 0x268   : > { %v2984_v54 = vadd.f32 %v2652_v7, %v1735_v16  ;;  %v3699_v23 = vpop.f32.mrf.mxu3  ;;  %v1737_v25 = vpop.f32.mrf.mxu1  ;;  %v12871_v7 = vld [vmem:[%s11783_s29 + $0x1e8] sm:$0xff] }
 0x269   : > { %v1738_v41 = vadd.f32 %v1737_v25, %v12442_v35 }
 0x26a   : > { %v4031_v1 = vadd.f32 %v3699_v23, %v2984_v54  ;;  %v10412_v54 = vld [vmem:[%s11783_s29 + $0x1e9] sm:$0xff] }
 0x26b   : > { %v4748_v33 = vpop.f32.mrf.mxu0  ;;  %9894 = vmatmul.msk.f32.gmra.mxu1 %vm462_vm1, %v12787_v26 }
 0x26c   : > { %v12846_v39 = vadd.f32 %v4745_v27, %v4031_v1  ;;  %10024 = vmatmul.msk.f32.gmra.mxu2 %vm462_vm1, %v2083_v40 }
 0x26d   : > { %10282 = vmatmul.msk.f32.gmra.mxu3 %vm462_vm1, %v12843_v51 }
 0x26e   : > { %10540 = vmatmul.msk.f32.gmra.mxu0 %vm462_vm1, %v10410_v56  ;;  %v2086_v56 = vld [vmem:[%s11783_s29 + $0x1ca] sm:$0xff] }
 0x26f   : > { %v2655_v46 = vpop.f32.mrf.mxu2 }
 0x270   : > { %v2985_v59 = vadd.f32 %v2655_v46, %v1738_v41  ;;  %v3702_v34 = vpop.f32.mrf.mxu3  ;;  %v1740_v9 = vpop.f32.mrf.mxu1  ;;  %v12885_v46 = vld [vmem:[%s11783_s29 + $0x1f0] sm:$0xff] }
 0x271   : > { %v1741_v35 = vadd.f32 %v1740_v9, %v12457_v3 }
 0x272   : > { %v4032_v50 = vadd.f32 %v3702_v34, %v2985_v59  ;;  %v10413_v59 = vld [vmem:[%s11783_s29 + $0x1f1] sm:$0xff] }
 0x273   : > { %v4751_v26 = vpop.f32.mrf.mxu0  ;;  %9895 = vmatmul.msk.f32.gmra.mxu1 %vm462_vm1, %v12801_v62 }
 0x274   : > { %v12860_v15 = vadd.f32 %v4748_v33, %v4032_v50  ;;  %10025 = vmatmul.msk.f32.gmra.mxu2 %vm462_vm1, %v2084_v37 }
 0x275   : > { %10283 = vmatmul.msk.f32.gmra.mxu3 %vm462_vm1, %v12857_v20 }
 0x276   : > { %10541 = vmatmul.msk.f32.gmra.mxu0 %vm462_vm1, %v10411_v30  ;;  %v2087_v30 = vld [vmem:[%s11783_s29 + $0x1d2] sm:$0xff] }
 0x277   : > { %v2658_v6 = vpop.f32.mrf.mxu2 }
 0x278   : > { %v2986_v44 = vadd.f32 %v2658_v6, %v1741_v35  ;;  %v3705_v24 = vpop.f32.mrf.mxu3  ;;  %v1743_v27 = vpop.f32.mrf.mxu1  ;;  %v12899_v6 = vld [vmem:[%s11783_s29 + $0x1f8] sm:$0xff] }
 0x279   : > { %v1744_v3 = vadd.f32 %v1743_v27, %v12472_v43 }
 0x27a   : > { %v4033_v16 = vadd.f32 %v3705_v24, %v2986_v44  ;;  %v10414_v44 = vld [vmem:[%s11783_s29 + $0x1f9] sm:$0xff] }
 0x27b   : > { %v4754_v62 = vpop.f32.mrf.mxu0  ;;  %9896 = vmatmul.msk.f32.gmra.mxu1 %vm462_vm1, %v12815_v55 }
 0x27c   : > { %v12874_v23 = vadd.f32 %v4751_v26, %v4033_v16  ;;  %10026 = vmatmul.msk.f32.gmra.mxu2 %vm462_vm1, %v2085_v22 }
 0x27d   : > { %10284 = vmatmul.msk.f32.gmra.mxu3 %vm462_vm1, %v12871_v7 }
 0x27e   : > { %10542 = vmatmul.msk.f32.gmra.mxu0 %vm462_vm1, %v10412_v54  ;;  %v2088_v54 = vld [vmem:[%s11783_s29 + $0x1e2] sm:$0xff] }
 0x27f   : > { %v2661_v25 = vpop.f32.mrf.mxu2 }
 0x280   : > { %v2987_v40 = vadd.f32 %v2661_v25, %v1744_v3  ;;  %v3708_v1 = vpop.f32.mrf.mxu3  ;;  %v1746_v33 = vpop.f32.mrf.mxu1  ;;  %v12913_v25 = vld [vmem:[%s11783_s29 + $0x208] sm:$0xff] }
 0x281   : > { %v1747_v43 = vadd.f32 %v1746_v33, %v12487_v28 }
 0x282   : > { %v4034_v41 = vadd.f32 %v3708_v1, %v2987_v40  ;;  %v10415_v40 = vld [vmem:[%s11783_s29 + $0x209] sm:$0xff] }
 0x283   : > { %v4757_v55 = vpop.f32.mrf.mxu0  ;;  %9897 = vmatmul.msk.f32.gmra.mxu1 %vm462_vm1, %v12829_v45 }
 0x284   : > { %v12888_v34 = vadd.f32 %v4754_v62, %v4034_v41  ;;  %10027 = vmatmul.msk.f32.gmra.mxu2 %vm462_vm1, %v2086_v56 }
 0x285   : > { %10285 = vmatmul.msk.f32.gmra.mxu3 %vm462_vm1, %v12885_v46 }
 0x286   : > { %10543 = vmatmul.msk.f32.gmra.mxu0 %vm462_vm1, %v10413_v59  ;;  %v2089_v59 = vld [vmem:[%s11783_s29 + $0x1ea] sm:$0xff] }
 0x287   : > { %v2664_v9 = vpop.f32.mrf.mxu2 }
 0x288   : > { %v2988_v37 = vadd.f32 %v2664_v9, %v1747_v43  ;;  %v3711_v50 = vpop.f32.mrf.mxu3  ;;  %v1749_v26 = vpop.f32.mrf.mxu1  ;;  %v12927_v9 = vld [vmem:[%s11783_s29 + $0x210] sm:$0xff] }
 0x289   : > { %v1750_v28 = vadd.f32 %v1749_v26, %v12502_v32 }
 0x28a   : > { %v4035_v35 = vadd.f32 %v3711_v50, %v2988_v37  ;;  %v10416_v37 = vld [vmem:[%s11783_s29 + $0x211] sm:$0xff] }
 0x28b   : > { %v4760_v45 = vpop.f32.mrf.mxu0  ;;  %9898 = vmatmul.msk.f32.gmra.mxu1 %vm462_vm1, %v12843_v51 }
 0x28c   : > { %v12902_v24 = vadd.f32 %v4757_v55, %v4035_v35  ;;  %10028 = vmatmul.msk.f32.gmra.mxu2 %vm462_vm1, %v2087_v30 }
 0x28d   : > { %10286 = vmatmul.msk.f32.gmra.mxu3 %vm462_vm1, %v12899_v6 }
 0x28e   : > { %10544 = vmatmul.msk.f32.gmra.mxu0 %vm462_vm1, %v10414_v44  ;;  %v2090_v44 = vld [vmem:[%s11783_s29 + $0x1f2] sm:$0xff] }
 0x28f   : > { %v2667_v27 = vpop.f32.mrf.mxu2 }
 0x290   : > { %v2989_v22 = vadd.f32 %v2667_v27, %v1750_v28  ;;  %v3714_v16 = vpop.f32.mrf.mxu3  ;;  %v1752_v62 = vpop.f32.mrf.mxu1  ;;  %v12941_v27 = vld [vmem:[%s11783_s29 + $0x218] sm:$0xff] }
 0x291   : > { %v1753_v32 = vadd.f32 %v1752_v62, %v11949_v5 }
 0x292   : > { %v4036_v3 = vadd.f32 %v3714_v16, %v2989_v22  ;;  %v10417_v22 = vld [vmem:[%s11783_s29 + $0x219] sm:$0xff] }
 0x293   : > { %v4763_v51 = vpop.f32.mrf.mxu0  ;;  %9899 = vmatmul.msk.f32.gmra.mxu1 %vm462_vm1, %v12857_v20 }
 0x294   : > { %v12916_v1 = vadd.f32 %v4760_v45, %v4036_v3  ;;  %10029 = vmatmul.msk.f32.gmra.mxu2 %vm462_vm1, %v2088_v54 }
 0x295   : > { %10287 = vmatmul.msk.f32.gmra.mxu3 %vm462_vm1, %v12913_v25 }
 0x296   : > { %10545 = vmatmul.msk.f32.gmra.mxu0 %vm462_vm1, %v10415_v40  ;;  %v2091_v40 = vld [vmem:[%s11783_s29 + $0x1fa] sm:$0xff] }
 0x297   : > { %v2670_v33 = vpop.f32.mrf.mxu2 }
 0x298   : > { %v2990_v56 = vadd.f32 %v2670_v33, %v1753_v32  ;;  %v3717_v41 = vpop.f32.mrf.mxu3  ;;  %v1755_v55 = vpop.f32.mrf.mxu1  ;;  %v12955_v33 = vld [vmem:[%s11783_s29 + $0x220] sm:$0xff] }
 0x299   : > { %v1756_v5 = vadd.f32 %v1755_v55, %v11968_v13 }
 0x29a   : > { %v4037_v43 = vadd.f32 %v3717_v41, %v2990_v56  ;;  %v10418_v56 = vld [vmem:[%s11783_s29 + $0x221] sm:$0xff] }
 0x29b   : > { %v4766_v20 = vpop.f32.mrf.mxu0  ;;  %9900 = vmatmul.msk.f32.gmra.mxu1 %vm462_vm1, %v12871_v7 }
 0x29c   : > { %v12930_v50 = vadd.f32 %v4763_v51, %v4037_v43  ;;  %10030 = vmatmul.msk.f32.gmra.mxu2 %vm462_vm1, %v2089_v59 }
 0x29d   : > { %10288 = vmatmul.msk.f32.gmra.mxu3 %vm462_vm1, %v12927_v9 }
 0x29e   : > { %10546 = vmatmul.msk.f32.gmra.mxu0 %vm462_vm1, %v10416_v37 }
 0x29f   : > { %v2673_v26 = vpop.f32.mrf.mxu2 }
 0x2a0   : > { %v2991_v30 = vadd.f32 %v2673_v26, %v1756_v5  ;;  %v3720_v35 = vpop.f32.mrf.mxu3  ;;  %v1758_v45 = vpop.f32.mrf.mxu1  ;;  %v2092_v5 = vld [vmem:[%s11783_s29 + $0x20a] sm:$0xff] }
 0x2a1   : > { %v1759_v13 = vadd.f32 %v1758_v45, %v11987_v21  ;;  %v16069_v21 = vld [vmem:[#allocation8_spill] sm:$0xff] }
 0x2a2   : > { %v4038_v28 = vadd.f32 %v3720_v35, %v2991_v30  ;;  %v12969_v30 = vld [vmem:[%s11783_s29 + $0x230] sm:$0xff] }
 0x2a3   : > { %v4769_v7 = vpop.f32.mrf.mxu0  ;;  %9901 = vmatmul.msk.f32.gmra.mxu1 %vm462_vm1, %v12885_v46  ;;  %v10419_v35 = vld [vmem:[%s11783_s29 + $0x231] sm:$0xff] }
 0x2a4   : > { %v12944_v16 = vadd.f32 %v4766_v20, %v4038_v28  ;;  %10031 = vmatmul.msk.f32.gmra.mxu2 %vm462_vm1, %v2090_v44  ;;  %v16070_v44 = vld [vmem:[#allocation11_spill] sm:$0xff] }
 0x2a5   : > { %10289 = vmatmul.msk.f32.gmra.mxu3 %vm462_vm1, %v12941_v27 }
 0x2a6   : > { %10547 = vmatmul.msk.f32.gmra.mxu0 %vm462_vm1, %v10417_v22 }
 0x2a7   : > { %v2676_v62 = vpop.f32.mrf.mxu2 }
 0x2a8   : > { %v2992_v54 = vadd.f32 %v2676_v62, %v1759_v13  ;;  %v3723_v3 = vpop.f32.mrf.mxu3  ;;  %v1761_v51 = vpop.f32.mrf.mxu1 }
 0x2a9   : > { %v1762_v55 = vadd.f32 %v1761_v51, %v16069_v21  ;;  %v12983_v51 = vld [vmem:[%s11783_s29 + $0x238] sm:$0xff] }
 0x2aa   : > { %v4039_v32 = vadd.f32 %v3723_v3, %v2992_v54  ;;  %v2093_v54 = vld [vmem:[%s11783_s29 + $0x212] sm:$0xff] }
 0x2ab   : > { %v4772_v46 = vpop.f32.mrf.mxu0  ;;  %9902 = vmatmul.msk.f32.gmra.mxu1 %vm462_vm1, %v12899_v6 }
 0x2ac   : > { %v12958_v41 = vadd.f32 %v4769_v7, %v4039_v32  ;;  %10032 = vmatmul.msk.f32.gmra.mxu2 %vm462_vm1, %v2091_v40  ;;  %v10420_v40 = vld [vmem:[%s11783_s29 + $0x239] sm:$0xff] }
 0x2ad   : > { %10290 = vmatmul.msk.f32.gmra.mxu3 %vm462_vm1, %v12955_v33 }
 0x2ae   : > { %10548 = vmatmul.msk.f32.gmra.mxu0 %vm462_vm1, %v10418_v56 }
 0x2af   : > { %v2679_v59 = vpop.f32.mrf.mxu2 }
 0x2b0   : > { %v2993_v43 = vadd.f32 %v2679_v59, %v1762_v55  ;;  %v3726_v20 = vpop.f32.mrf.mxu3  ;;  %v1764_v37 = vpop.f32.mrf.mxu1 }
 0x2b1   : > { %v1765_v28 = vadd.f32 %v1764_v37, %v16070_v44 }
 0x2b2   : > { %v4040_v26 = vadd.f32 %v3726_v20, %v2993_v43  ;;  %v2094_v20 = vld [vmem:[%s11783_s29 + $0x21a] sm:$0xff] }
 0x2b3   : > { %v4775_v6 = vpop.f32.mrf.mxu0  ;;  %9903 = vmatmul.msk.f32.gmra.mxu1 %vm462_vm1, %v12913_v25 }
 0x2b4   : > { %v12972_v45 = vadd.f32 %v4772_v46, %v4040_v26  ;;  %10033 = vmatmul.msk.f32.gmra.mxu2 %vm462_vm1, %v2092_v5  ;;  %v16071_v46 = vld [vmem:[#allocation14_spill] sm:$0xff] }
 0x2b5   : > { %10291 = vmatmul.msk.f32.gmra.mxu3 %vm462_vm1, %v12969_v30  ;;  %v12997_v5 = vld [vmem:[%s11783_s29 + $0x240] sm:$0xff] }
 0x2b6   : > { %10549 = vmatmul.msk.f32.gmra.mxu0 %vm462_vm1, %v10419_v35  ;;  %v10421_v26 = vld [vmem:[%s11783_s29 + $0x241] sm:$0xff]  ;;  %v16072_v35 = vld [vmem:[#allocation17_spill] sm:$0xff] }
 0x2b7   : > { %v2682_v7 = vpop.f32.mrf.mxu2 }
 0x2b8   : > { %v2994_v22 = vadd.f32 %v2682_v7, %v1765_v28  ;;  %v3729_v13 = vpop.f32.mrf.mxu3  ;;  %v1767_v62 = vpop.f32.mrf.mxu1 }
 0x2b9   : > { %v1768_v56 = vadd.f32 %v1767_v62, %v16071_v46  ;;  %v2095_v62 = vld [vmem:[%s11783_s29 + $0x222] sm:$0xff]  ;;  %v16073_v46 = vld [vmem:[#allocation20_spill] sm:$0xff] }
 0x2ba   : > { %v4041_v3 = vadd.f32 %v3729_v13, %v2994_v22 }
 0x2bb   : > { %v4778_v25 = vpop.f32.mrf.mxu0  ;;  %9904 = vmatmul.msk.f32.gmra.mxu1 %vm462_vm1, %v12927_v9 }
 0x2bc   : > { %v12986_v32 = vadd.f32 %v4775_v6, %v4041_v3  ;;  %10034 = vmatmul.msk.f32.gmra.mxu2 %vm462_vm1, %v2093_v54  ;;  %v13011_v3 = vld [vmem:[%s11783_s29 + $0x248] sm:$0xff] }
 0x2bd   : > { %10292 = vmatmul.msk.f32.gmra.mxu3 %vm462_vm1, %v12983_v51 }
 0x2be   : > { %10550 = vmatmul.msk.f32.gmra.mxu0 %vm462_vm1, %v10420_v40 }
 0x2bf   : > { %v2685_v21 = vpop.f32.mrf.mxu2 }
 0x2c0   : > { %v2995_v55 = vadd.f32 %v2685_v21, %v1768_v56  ;;  %v3732_v59 = vpop.f32.mrf.mxu3  ;;  %v1770_v43 = vpop.f32.mrf.mxu1 }
 0x2c1   : > { %v1771_v44 = vadd.f32 %v1770_v43, %v16072_v35 }
 0x2c2   : > { %v4042_v37 = vadd.f32 %v3732_v59, %v2995_v55 }
 0x2c3   : > { %v4781_v9 = vpop.f32.mrf.mxu0  ;;  %9905 = vmatmul.msk.f32.gmra.mxu1 %vm462_vm1, %v12941_v27 }
 0x2c4   : > { %v13000_v6 = vadd.f32 %v4778_v25, %v4042_v37  ;;  %10035 = vmatmul.msk.f32.gmra.mxu2 %vm462_vm1, %v2094_v20  ;;  %v10422_v25 = vld [vmem:[%s11783_s29 + $0x249] sm:$0xff]  ;;  %v2096_v20 = vld [vmem:[%s11783_s29 + $0x232] sm:$0xff] }
 0x2c5   : > { %10293 = vmatmul.msk.f32.gmra.mxu3 %vm462_vm1, %v12997_v5 }
 0x2c6   : > { %10551 = vmatmul.msk.f32.gmra.mxu0 %vm462_vm1, %v10421_v26  ;;  %v10423_v26 = vld [vmem:[%s11783_s29 + $0x259] sm:$0xff] }
 0x2c7   : > { %v2688_v28 = vpop.f32.mrf.mxu2 }
 0x2c8   : > { %v2996_v7 = vadd.f32 %v2688_v28, %v1771_v44  ;;  %v3735_v22 = vpop.f32.mrf.mxu3  ;;  %v1773_v13 = vpop.f32.mrf.mxu1  ;;  %v16074_v44 = vld [vmem:[#allocation23_spill] sm:$0xff] }
 0x2c9   : > { %v1774_v56 = vadd.f32 %v1773_v13, %v16073_v46  ;;  %v10424_v46 = vld [vmem:[%s11783_s29 + $0x261] sm:$0xff] }
 0x2ca   : > { %v4043_v54 = vadd.f32 %v3735_v22, %v2996_v7 }
 0x2cb   : > { %v4784_v27 = vpop.f32.mrf.mxu0  ;;  %9906 = vmatmul.msk.f32.gmra.mxu1 %vm462_vm1, %v12955_v33 }
 0x2cc   : > { %v13014_v40 = vadd.f32 %v4781_v9, %v4043_v54  ;;  %10036 = vmatmul.msk.f32.gmra.mxu2 %vm462_vm1, %v2095_v62  ;;  %v13025_v9 = vld [vmem:[%s11783_s29 + $0x258] sm:$0xff] }
 0x2cd   : > { %10294 = vmatmul.msk.f32.gmra.mxu3 %vm462_vm1, %v13011_v3  ;;  %v2097_v54 = vld [vmem:[%s11783_s29 + $0x23a] sm:$0xff] }
 0x2ce   : > { %10552 = vmatmul.msk.f32.gmra.mxu0 %vm462_vm1, %v10422_v25  ;;  %v13039_v25 = vld [vmem:[%s11783_s29 + $0x260] sm:$0xff] }
 0x2cf   : > { %v2691_v21 = vpop.f32.mrf.mxu2 }
 0x2d0   : > { %v2997_v55 = vadd.f32 %v2691_v21, %v1774_v56  ;;  %v3738_v59 = vpop.f32.mrf.mxu3  ;;  %v1776_v43 = vpop.f32.mrf.mxu1  ;;  %v16075_v21 = vld [vmem:[#allocation26_spill] sm:$0xff] }
 0x2d1   : > { %v1777_v28 = vadd.f32 %v1776_v43, %v16074_v44  ;;  %v13053_v44 = vld [vmem:[%s11783_s29 + $0x268] sm:$0xff] }
 0x2d2   : > { %v4044_v37 = vadd.f32 %v3738_v59, %v2997_v55 }
 0x2d3   : > { %v4787_v33 = vpop.f32.mrf.mxu0  ;;  %9907 = vmatmul.msk.f32.gmra.mxu1 %vm462_vm1, %v12969_v30 }
 0x2d4   : > { %v13028_v35 = vadd.f32 %v4784_v27, %v4044_v37  ;;  %10037 = vmatmul.msk.f32.gmra.mxu2 %vm462_vm1, %v2096_v20 }
 0x2d5   : > { %10295 = vmatmul.msk.f32.gmra.mxu3 %vm462_vm1, %v13025_v9 }
 0x2d6   : > { %10553 = vmatmul.msk.f32.gmra.mxu0 %vm462_vm1, %v10423_v26  ;;  %v2098_v26 = vld [vmem:[%s11783_s29 + $0x242] sm:$0xff] }
 0x2d7   : > { %v2694_v7 = vpop.f32.mrf.mxu2 }
 0x2d8   : > { %v2998_v22 = vadd.f32 %v2694_v7, %v1777_v28  ;;  %v3741_v13 = vpop.f32.mrf.mxu3  ;;  %v1779_v62 = vpop.f32.mrf.mxu1  ;;  %v10425_v28 = vld [vmem:[%s11783_s29 + $0x269] sm:$0xff] }
 0x2d9   : > { %v1780_v55 = vadd.f32 %v1779_v62, %v16075_v21  ;;  %v2099_v21 = vld [vmem:[%s11783_s29 + $0x24a] sm:$0xff] }
 0x2da   : > { %v4045_v27 = vadd.f32 %v3741_v13, %v2998_v22  ;;  %v16076_v22 = vld [vmem:[#allocation29_spill] sm:$0xff] }
 0x2db   : > { %v4790_v30 = vpop.f32.mrf.mxu0  ;;  %9908 = vmatmul.msk.f32.gmra.mxu1 %vm462_vm1, %v12983_v51 }
 0x2dc   : > { %v13042_v56 = vadd.f32 %v4787_v33, %v4045_v27  ;;  %10038 = vmatmul.msk.f32.gmra.mxu2 %vm462_vm1, %v2097_v54 }
 0x2dd   : > { %10296 = vmatmul.msk.f32.gmra.mxu3 %vm462_vm1, %v13039_v25 }
 0x2de   : > { %10554 = vmatmul.msk.f32.gmra.mxu0 %vm462_vm1, %v10424_v46 }
 0x2df   : > { %v2697_v59 = vpop.f32.mrf.mxu2 }
 0x2e0   : > { %v2999_v43 = vadd.f32 %v2697_v59, %v1780_v55  ;;  %v3744_v20 = vpop.f32.mrf.mxu3  ;;  %v1782_v37 = vpop.f32.mrf.mxu1  ;;  %v13067_v55 = vld [vmem:[%s11783_s29 + $0x270] sm:$0xff] }
 0x2e1   : > { %v1783_v13 = vadd.f32 %v1782_v37, %v16076_v22  ;;  %v10426_v59 = vld [vmem:[%s11783_s29 + $0x271] sm:$0xff] }
 0x2e2   : > { %v4046_v33 = vadd.f32 %v3744_v20, %v2999_v43  ;;  %v16077_v20 = vld [vmem:[#allocation32_spill] sm:$0xff] }
 0x2e3   : > { %v4793_v51 = vpop.f32.mrf.mxu0  ;;  %9909 = vmatmul.msk.f32.gmra.mxu1 %vm462_vm1, %v12997_v5 }
 0x2e4   : > { %v13056_v7 = vadd.f32 %v4790_v30, %v4046_v33  ;;  %10039 = vmatmul.msk.f32.gmra.mxu2 %vm462_vm1, %v2098_v26 }
 0x2e5   : > { %10297 = vmatmul.msk.f32.gmra.mxu3 %vm462_vm1, %v13053_v44 }
 0x2e6   : > { %10555 = vmatmul.msk.f32.gmra.mxu0 %vm462_vm1, %v10425_v28 }
 0x2e7   : > { %v2700_v62 = vpop.f32.mrf.mxu2 }
 0x2e8   : > { %v3000_v54 = vadd.f32 %v2700_v62, %v1783_v13  ;;  %v3747_v27 = vpop.f32.mrf.mxu3  ;;  %v1785_v46 = vpop.f32.mrf.mxu1  ;;  %v2100_v13 = vld [vmem:[%s11783_s29 + $0x25a] sm:$0xff] }
 0x2e9   : > { %v1786_v37 = vadd.f32 %v1785_v46, %v16077_v20  ;;  %v13081_v62 = vld [vmem:[%s11783_s29 + $0x280] sm:$0xff]  ;;  %v16078_v46 = vld [vmem:[#allocation35_spill] sm:$0xff] }
 0x2ea   : > { %v4047_v30 = vadd.f32 %v3747_v27, %v3000_v54  ;;  %v10427_v54 = vld [vmem:[%s11783_s29 + $0x281] sm:$0xff] }
 0x2eb   : > { %v4796_v5 = vpop.f32.mrf.mxu0  ;;  %9910 = vmatmul.msk.f32.gmra.mxu1 %vm462_vm1, %v13011_v3 }
 0x2ec   : > { %v13070_v43 = vadd.f32 %v4793_v51, %v4047_v30  ;;  %10040 = vmatmul.msk.f32.gmra.mxu2 %vm462_vm1, %v2099_v21 }
 0x2ed   : > { %10298 = vmatmul.msk.f32.gmra.mxu3 %vm462_vm1, %v13067_v55 }
 0x2ee   : > { %10556 = vmatmul.msk.f32.gmra.mxu0 %vm462_vm1, %v10426_v59 }
 0x2ef   : > { %v2703_v26 = vpop.f32.mrf.mxu2 }
 0x2f0   : > { %v3001_v33 = vadd.f32 %v2703_v26, %v1786_v37  ;;  %v3750_v28 = vpop.f32.mrf.mxu3  ;;  %v1788_v22 = vpop.f32.mrf.mxu1  ;;  %v2101_v26 = vld [vmem:[%s11783_s29 + $0x262] sm:$0xff] }
 0x2f1   : > { %v1789_v21 = vadd.f32 %v1788_v22, %v16078_v46  ;;  %v16080_v22 = vld [vmem:[#allocation38_spill] sm:$0xff] }
 0x2f2   : > { %v4048_v51 = vadd.f32 %v3750_v28, %v3001_v33  ;;  %v13095_v33 = vld [vmem:[%s11783_s29 + $0x288] sm:$0xff] }
 0x2f3   : > { %v4799_v3 = vpop.f32.mrf.mxu0  ;;  %9911 = vmatmul.msk.f32.gmra.mxu1 %vm462_vm1, %v13025_v9  ;;  %v10428_v28 = vld [vmem:[%s11783_s29 + $0x289] sm:$0xff] }
 0x2f4   : > { %v13084_v27 = vadd.f32 %v4796_v5, %v4048_v51  ;;  %10041 = vmatmul.msk.f32.gmra.mxu2 %vm462_vm1, %v2100_v13 }
 0x2f5   : > { %10299 = vmatmul.msk.f32.gmra.mxu3 %vm462_vm1, %v13081_v62 }
 0x2f6   : > { %10557 = vmatmul.msk.f32.gmra.mxu0 %vm462_vm1, %v10427_v54 }
 0x2f7   : > { %v2706_v30 = vpop.f32.mrf.mxu2 }
 0x2f8   : > { %v3002_v59 = vadd.f32 %v2706_v30, %v1789_v21  ;;  %v3753_v20 = vpop.f32.mrf.mxu3  ;;  %v1791_v37 = vpop.f32.mrf.mxu1 }
 0x2f9   : > { %v1792_v51 = vadd.f32 %v1791_v37, %v16080_v22  ;;  %v16082_v37 = vld [vmem:[#allocation41_spill] sm:$0xff] }
 0x2fa   : > { %v4049_v5 = vadd.f32 %v3753_v20, %v3002_v59  ;;  %v2102_v59 = vld [vmem:[%s11783_s29 + $0x26a] sm:$0xff] }
 0x2fb   : > { %v4802_v9 = vpop.f32.mrf.mxu0  ;;  %9912 = vmatmul.msk.f32.gmra.mxu1 %vm462_vm1, %v13039_v25  ;;  %v13109_v20 = vld [vmem:[%s11783_s29 + $0x290] sm:$0xff] }
 0x2fc   : > { %v13098_v13 = vadd.f32 %v4799_v3, %v4049_v5  ;;  %10042 = vmatmul.msk.f32.gmra.mxu2 %vm462_vm1, %v2101_v26  ;;  %v10429_v26 = vld [vmem:[%s11783_s29 + $0x291] sm:$0xff] }
 0x2fd   : > { %10300 = vmatmul.msk.f32.gmra.mxu3 %vm462_vm1, %v13095_v33 }
 0x2fe   : > { %16079 = vst [vmem:[#allocation8_spill] sm:$0xff] %v13098_v13  ;;  %10558 = vmatmul.msk.f32.gmra.mxu0 %vm462_vm1, %v10428_v28 }
 0x2ff   : > { %v2709_v54 = vpop.f32.mrf.mxu2 }
 0x300   : > { %v3003_v46 = vadd.f32 %v2709_v54, %v1792_v51  ;;  %v3756_v21 = vpop.f32.mrf.mxu3  ;;  %v1794_v30 = vpop.f32.mrf.mxu1 }
 0x301   : > { %v1795_v28 = vadd.f32 %v1794_v30, %v16082_v37  ;;  %v16084_v30 = vld [vmem:[#allocation44_spill] sm:$0xff] }
 0x302   : > { %v4050_v3 = vadd.f32 %v3756_v21, %v3003_v46  ;;  %v2103_v21 = vld [vmem:[%s11783_s29 + $0x272] sm:$0xff] }
 0x303   : > { %v4805_v25 = vpop.f32.mrf.mxu0  ;;  %9913 = vmatmul.msk.f32.gmra.mxu1 %vm462_vm1, %v13053_v44 }
 0x304   : > { %v13112_v5 = vadd.f32 %v4802_v9, %v4050_v3  ;;  %10043 = vmatmul.msk.f32.gmra.mxu2 %vm462_vm1, %v2102_v59  ;;  %v13123_v3 = vld [vmem:[%s11783_s29 + $0x298] sm:$0xff] }
 0x305   : > { %10301 = vmatmul.msk.f32.gmra.mxu3 %vm462_vm1, %v13109_v20  ;;  %v10430_v59 = vld [vmem:[%s11783_s29 + $0x299] sm:$0xff] }
 0x306   : > { %16081 = vst [vmem:[#allocation11_spill] sm:$0xff] %v13112_v5  ;;  %10559 = vmatmul.msk.f32.gmra.mxu0 %vm462_vm1, %v10429_v26 }
 0x307   : > { %v2712_v22 = vpop.f32.mrf.mxu2 }
 0x308   : > { %v3004_v51 = vadd.f32 %v2712_v22, %v1795_v28  ;;  %v3759_v54 = vpop.f32.mrf.mxu3  ;;  %v1797_v46 = vpop.f32.mrf.mxu1 }
 0x309   : > { %v1798_v26 = vadd.f32 %v1797_v46, %v16084_v30  ;;  %v16086_v46 = vld [vmem:[#allocation47_spill] sm:$0xff] }
 0x30a   : > { %v4051_v9 = vadd.f32 %v3759_v54, %v3004_v51  ;;  %v2104_v54 = vld [vmem:[%s11783_s29 + $0x282] sm:$0xff] }
 0x30b   : > { %v4808_v44 = vpop.f32.mrf.mxu0  ;;  %9914 = vmatmul.msk.f32.gmra.mxu1 %vm462_vm1, %v13067_v55 }
 0x30c   : > { %v13126_v5 = vadd.f32 %v4805_v25, %v4051_v9  ;;  %10044 = vmatmul.msk.f32.gmra.mxu2 %vm462_vm1, %v2103_v21  ;;  %v13137_v9 = vld [vmem:[%s11783_s29 + $0x2a8] sm:$0xff] }
 0x30d   : > { %10302 = vmatmul.msk.f32.gmra.mxu3 %vm462_vm1, %v13123_v3  ;;  %v10431_v21 = vld [vmem:[%s11783_s29 + $0x2a9] sm:$0xff] }
 0x30e   : > { %16083 = vst [vmem:[#allocation14_spill] sm:$0xff] %v13126_v5  ;;  %10560 = vmatmul.msk.f32.gmra.mxu0 %vm462_vm1, %v10430_v59 }
 0x30f   : > { %v2715_v37 = vpop.f32.mrf.mxu2 }
 0x310   : > { %v3005_v28 = vadd.f32 %v2715_v37, %v1798_v26  ;;  %v3762_v22 = vpop.f32.mrf.mxu3  ;;  %v1800_v51 = vpop.f32.mrf.mxu1 }
 0x311   : > { %v1801_v59 = vadd.f32 %v1800_v51, %v16086_v46  ;;  %v16088_v51 = vld [vmem:[#allocation50_spill] sm:$0xff] }
 0x312   : > { %v4052_v25 = vadd.f32 %v3762_v22, %v3005_v28  ;;  %v2105_v22 = vld [vmem:[%s11783_s29 + $0x28a] sm:$0xff] }
 0x313   : > { %v4811_v55 = vpop.f32.mrf.mxu0  ;;  %9915 = vmatmul.msk.f32.gmra.mxu1 %vm462_vm1, %v13081_v62 }
 0x314   : > { %v13140_v5 = vadd.f32 %v4808_v44, %v4052_v25  ;;  %10045 = vmatmul.msk.f32.gmra.mxu2 %vm462_vm1, %v2104_v54  ;;  %v13151_v25 = vld [vmem:[%s11783_s29 + $0x2b0] sm:$0xff] }
 0x315   : > { %10303 = vmatmul.msk.f32.gmra.mxu3 %vm462_vm1, %v13137_v9  ;;  %v10432_v54 = vld [vmem:[%s11783_s29 + $0x2b1] sm:$0xff] }
 0x316   : > { %16085 = vst [vmem:[#allocation17_spill] sm:$0xff] %v13140_v5  ;;  %10561 = vmatmul.msk.f32.gmra.mxu0 %vm462_vm1, %v10431_v21 }
 0x317   : > { %v2718_v30 = vpop.f32.mrf.mxu2 }
 0x318   : > { %v3006_v26 = vadd.f32 %v2718_v30, %v1801_v59  ;;  %v3765_v37 = vpop.f32.mrf.mxu3  ;;  %v1803_v28 = vpop.f32.mrf.mxu1 }
 0x319   : > { %v1804_v21 = vadd.f32 %v1803_v28, %v16088_v51  ;;  %v16090_v28 = vld [vmem:[#allocation53_spill] sm:$0xff] }
 0x31a   : > { %v4053_v44 = vadd.f32 %v3765_v37, %v3006_v26  ;;  %v2106_v37 = vld [vmem:[%s11783_s29 + $0x292] sm:$0xff] }
 0x31b   : > { %v4814_v62 = vpop.f32.mrf.mxu0  ;;  %9916 = vmatmul.msk.f32.gmra.mxu1 %vm462_vm1, %v13095_v33 }
 0x31c   : > { %v13154_v5 = vadd.f32 %v4811_v55, %v4053_v44  ;;  %10046 = vmatmul.msk.f32.gmra.mxu2 %vm462_vm1, %v2105_v22  ;;  %v13165_v44 = vld [vmem:[%s11783_s29 + $0x2b8] sm:$0xff] }
 0x31d   : > { %10304 = vmatmul.msk.f32.gmra.mxu3 %vm462_vm1, %v13151_v25  ;;  %v10433_v22 = vld [vmem:[%s11783_s29 + $0x2b9] sm:$0xff] }
 0x31e   : > { %16087 = vst [vmem:[#allocation20_spill] sm:$0xff] %v13154_v5  ;;  %10562 = vmatmul.msk.f32.gmra.mxu0 %vm462_vm1, %v10432_v54 }
 0x31f   : > { %v2721_v46 = vpop.f32.mrf.mxu2 }
 0x320   : > { %v3007_v59 = vadd.f32 %v2721_v46, %v1804_v21  ;;  %v3768_v30 = vpop.f32.mrf.mxu3  ;;  %v1806_v26 = vpop.f32.mrf.mxu1 }
 0x321   : > { %v1807_v54 = vadd.f32 %v1806_v26, %v16090_v28  ;;  %v16092_v26 = vld [vmem:[#allocation56_spill] sm:$0xff] }
 0x322   : > { %v4054_v55 = vadd.f32 %v3768_v30, %v3007_v59  ;;  %v2107_v30 = vld [vmem:[%s11783_s29 + $0x29a] sm:$0xff] }
 0x323   : > { %v4817_v33 = vpop.f32.mrf.mxu0  ;;  %9917 = vmatmul.msk.f32.gmra.mxu1 %vm462_vm1, %v13109_v20 }
 0x324   : > { %v13168_v5 = vadd.f32 %v4814_v62, %v4054_v55  ;;  %10047 = vmatmul.msk.f32.gmra.mxu2 %vm462_vm1, %v2106_v37  ;;  %v13179_v55 = vld [vmem:[%s11783_s29 + $0x2c0] sm:$0xff] }
 0x325   : > { %10305 = vmatmul.msk.f32.gmra.mxu3 %vm462_vm1, %v13165_v44  ;;  %v10434_v37 = vld [vmem:[%s11783_s29 + $0x2c1] sm:$0xff] }
 0x326   : > { %16089 = vst [vmem:[#allocation23_spill] sm:$0xff] %v13168_v5  ;;  %10563 = vmatmul.msk.f32.gmra.mxu0 %vm462_vm1, %v10433_v22 }
 0x327   : > { %v2724_v51 = vpop.f32.mrf.mxu2 }
 0x328   : > { %v3008_v21 = vadd.f32 %v2724_v51, %v1807_v54  ;;  %v3771_v46 = vpop.f32.mrf.mxu3  ;;  %v1809_v59 = vpop.f32.mrf.mxu1 }
 0x329   : > { %v1810_v22 = vadd.f32 %v1809_v59, %v16092_v26  ;;  %v16094_v59 = vld [vmem:[#allocation59_spill] sm:$0xff] }
 0x32a   : > { %v4055_v62 = vadd.f32 %v3771_v46, %v3008_v21  ;;  %v2108_v46 = vld [vmem:[%s11783_s29 + $0x2aa] sm:$0xff] }
 0x32b   : > { %v4820_v20 = vpop.f32.mrf.mxu0  ;;  %9918 = vmatmul.msk.f32.gmra.mxu1 %vm462_vm1, %v13123_v3 }
 0x32c   : > { %v13182_v5 = vadd.f32 %v4817_v33, %v4055_v62  ;;  %10048 = vmatmul.msk.f32.gmra.mxu2 %vm462_vm1, %v2107_v30  ;;  %v13193_v62 = vld [vmem:[%s11783_s29 + $0x2d0] sm:$0xff] }
 0x32d   : > { %10306 = vmatmul.msk.f32.gmra.mxu3 %vm462_vm1, %v13179_v55  ;;  %v10435_v30 = vld [vmem:[%s11783_s29 + $0x2d1] sm:$0xff] }
 0x32e   : > { %16091 = vst [vmem:[#allocation26_spill] sm:$0xff] %v13182_v5  ;;  %10564 = vmatmul.msk.f32.gmra.mxu0 %vm462_vm1, %v10434_v37 }
 0x32f   : > { %v2727_v28 = vpop.f32.mrf.mxu2 }
 0x330   : > { %v3009_v54 = vadd.f32 %v2727_v28, %v1810_v22  ;;  %v3774_v51 = vpop.f32.mrf.mxu3  ;;  %v1812_v21 = vpop.f32.mrf.mxu1 }
 0x331   : > { %v1813_v37 = vadd.f32 %v1812_v21, %v16094_v59  ;;  %v16096_v21 = vld [vmem:[#allocation62_spill] sm:$0xff] }
 0x332   : > { %v4056_v33 = vadd.f32 %v3774_v51, %v3009_v54  ;;  %v2109_v51 = vld [vmem:[%s11783_s29 + $0x2b2] sm:$0xff] }
 0x333   : > { %v4823_v3 = vpop.f32.mrf.mxu0  ;;  %9919 = vmatmul.msk.f32.gmra.mxu1 %vm462_vm1, %v13137_v9 }
 0x334   : > { %v13196_v5 = vadd.f32 %v4820_v20, %v4056_v33  ;;  %10049 = vmatmul.msk.f32.gmra.mxu2 %vm462_vm1, %v2108_v46  ;;  %v13207_v33 = vld [vmem:[%s11783_s29 + $0x2d8] sm:$0xff] }
 0x335   : > { %10307 = vmatmul.msk.f32.gmra.mxu3 %vm462_vm1, %v13193_v62  ;;  %v10436_v46 = vld [vmem:[%s11783_s29 + $0x2d9] sm:$0xff] }
 0x336   : > { %16093 = vst [vmem:[#allocation29_spill] sm:$0xff] %v13196_v5  ;;  %10565 = vmatmul.msk.f32.gmra.mxu0 %vm462_vm1, %v10435_v30 }
 0x337   : > { %v2730_v26 = vpop.f32.mrf.mxu2 }
 0x338   : > { %v3010_v22 = vadd.f32 %v2730_v26, %v1813_v37  ;;  %v3777_v28 = vpop.f32.mrf.mxu3  ;;  %v1815_v54 = vpop.f32.mrf.mxu1 }
 0x339   : > { %v1816_v30 = vadd.f32 %v1815_v54, %v16096_v21  ;;  %v16098_v54 = vld [vmem:[#allocation65_spill] sm:$0xff] }
 0x33a   : > { %v4057_v20 = vadd.f32 %v3777_v28, %v3010_v22  ;;  %v2110_v28 = vld [vmem:[%s11783_s29 + $0x2ba] sm:$0xff] }
 0x33b   : > { %v4826_v9 = vpop.f32.mrf.mxu0  ;;  %9920 = vmatmul.msk.f32.gmra.mxu1 %vm462_vm1, %v13151_v25 }
 0x33c   : > { %v13210_v5 = vadd.f32 %v4823_v3, %v4057_v20  ;;  %10050 = vmatmul.msk.f32.gmra.mxu2 %vm462_vm1, %v2109_v51  ;;  %v13221_v20 = vld [vmem:[%s11783_s29 + $0x2e0] sm:$0xff] }
 0x33d   : > { %10308 = vmatmul.msk.f32.gmra.mxu3 %vm462_vm1, %v13207_v33  ;;  %v10437_v51 = vld [vmem:[%s11783_s29 + $0x2e1] sm:$0xff] }
 0x33e   : > { %16095 = vst [vmem:[#allocation32_spill] sm:$0xff] %v13210_v5  ;;  %10566 = vmatmul.msk.f32.gmra.mxu0 %vm462_vm1, %v10436_v46 }
 0x33f   : > { %v2733_v59 = vpop.f32.mrf.mxu2 }
 0x340   : > { %v3011_v37 = vadd.f32 %v2733_v59, %v1816_v30  ;;  %v3780_v26 = vpop.f32.mrf.mxu3  ;;  %v1818_v22 = vpop.f32.mrf.mxu1 }
 0x341   : > { %v1819_v46 = vadd.f32 %v1818_v22, %v16098_v54  ;;  %v16100_v22 = vld [vmem:[#allocation68_spill] sm:$0xff] }
 0x342   : > { %v4058_v3 = vadd.f32 %v3780_v26, %v3011_v37  ;;  %v2111_v26 = vld [vmem:[%s11783_s29 + $0x2c2] sm:$0xff] }
 0x343   : > { %v4829_v25 = vpop.f32.mrf.mxu0  ;;  %9921 = vmatmul.msk.f32.gmra.mxu1 %vm462_vm1, %v13165_v44 }
 0x344   : > { %v13224_v5 = vadd.f32 %v4826_v9, %v4058_v3  ;;  %10051 = vmatmul.msk.f32.gmra.mxu2 %vm462_vm1, %v2110_v28  ;;  %v13235_v3 = vld [vmem:[%s11783_s29 + $0x2e8] sm:$0xff] }
 0x345   : > { %10309 = vmatmul.msk.f32.gmra.mxu3 %vm462_vm1, %v13221_v20  ;;  %v10438_v28 = vld [vmem:[%s11783_s29 + $0x2e9] sm:$0xff] }
 0x346   : > { %16097 = vst [vmem:[#allocation35_spill] sm:$0xff] %v13224_v5  ;;  %10567 = vmatmul.msk.f32.gmra.mxu0 %vm462_vm1, %v10437_v51 }
 0x347   : > { %v2736_v21 = vpop.f32.mrf.mxu2 }
 0x348   : > { %v3012_v30 = vadd.f32 %v2736_v21, %v1819_v46  ;;  %v3783_v59 = vpop.f32.mrf.mxu3  ;;  %v1821_v37 = vpop.f32.mrf.mxu1 }
 0x349   : > { %v1822_v51 = vadd.f32 %v1821_v37, %v16100_v22  ;;  %v16102_v37 = vld [vmem:[#allocation71_spill] sm:$0xff] }
 0x34a   : > { %v4059_v9 = vadd.f32 %v3783_v59, %v3012_v30  ;;  %v2112_v59 = vld [vmem:[%s11783_s29 + $0x2d2] sm:$0xff] }
 0x34b   : > { %v4832_v44 = vpop.f32.mrf.mxu0  ;;  %9922 = vmatmul.msk.f32.gmra.mxu1 %vm462_vm1, %v13179_v55 }
 0x34c   : > { %v13238_v5 = vadd.f32 %v4829_v25, %v4059_v9  ;;  %10052 = vmatmul.msk.f32.gmra.mxu2 %vm462_vm1, %v2111_v26  ;;  %v13249_v9 = vld [vmem:[%s11783_s29 + $0x2f8] sm:$0xff] }
 0x34d   : > { %10310 = vmatmul.msk.f32.gmra.mxu3 %vm462_vm1, %v13235_v3  ;;  %v10439_v26 = vld [vmem:[%s11783_s29 + $0x2f9] sm:$0xff] }
 0x34e   : > { %16099 = vst [vmem:[#allocation38_spill] sm:$0xff] %v13238_v5  ;;  %10568 = vmatmul.msk.f32.gmra.mxu0 %vm462_vm1, %v10438_v28 }
 0x34f   : > { %v2739_v54 = vpop.f32.mrf.mxu2 }
 0x350   : > { %v3013_v46 = vadd.f32 %v2739_v54, %v1822_v51  ;;  %v3786_v21 = vpop.f32.mrf.mxu3  ;;  %v1824_v30 = vpop.f32.mrf.mxu1 }
 0x351   : > { %v1825_v28 = vadd.f32 %v1824_v30, %v16102_v37  ;;  %v16104_v30 = vld [vmem:[#allocation74_spill] sm:$0xff] }
 0x352   : > { %v4060_v25 = vadd.f32 %v3786_v21, %v3013_v46  ;;  %v2113_v21 = vld [vmem:[%s11783_s29 + $0x2da] sm:$0xff] }
 0x353   : > { %v4835_v55 = vpop.f32.mrf.mxu0  ;;  %9923 = vmatmul.msk.f32.gmra.mxu1 %vm462_vm1, %v13193_v62 }
 0x354   : > { %v13252_v5 = vadd.f32 %v4832_v44, %v4060_v25  ;;  %10053 = vmatmul.msk.f32.gmra.mxu2 %vm462_vm1, %v2112_v59  ;;  %v13263_v25 = vld [vmem:[%s11783_s29 + $0x300] sm:$0xff] }
 0x355   : > { %10311 = vmatmul.msk.f32.gmra.mxu3 %vm462_vm1, %v13249_v9  ;;  %v10440_v59 = vld [vmem:[%s11783_s29 + $0x301] sm:$0xff] }
 0x356   : > { %16101 = vst [vmem:[#allocation41_spill] sm:$0xff] %v13252_v5  ;;  %10569 = vmatmul.msk.f32.gmra.mxu0 %vm462_vm1, %v10439_v26 }
 0x357   : > { %v2742_v22 = vpop.f32.mrf.mxu2 }
 0x358   : > { %v3014_v51 = vadd.f32 %v2742_v22, %v1825_v28  ;;  %v3789_v54 = vpop.f32.mrf.mxu3  ;;  %v1827_v46 = vpop.f32.mrf.mxu1 }
 0x359   : > { %v1828_v26 = vadd.f32 %v1827_v46, %v16104_v30  ;;  %v16106_v46 = vld [vmem:[#allocation77_spill] sm:$0xff] }
 0x35a   : > { %v4061_v44 = vadd.f32 %v3789_v54, %v3014_v51  ;;  %v2114_v54 = vld [vmem:[%s11783_s29 + $0x2e2] sm:$0xff] }
 0x35b   : > { %v4838_v62 = vpop.f32.mrf.mxu0  ;;  %9924 = vmatmul.msk.f32.gmra.mxu1 %vm462_vm1, %v13207_v33 }
 0x35c   : > { %v13266_v5 = vadd.f32 %v4835_v55, %v4061_v44  ;;  %10054 = vmatmul.msk.f32.gmra.mxu2 %vm462_vm1, %v2113_v21  ;;  %v13277_v44 = vld [vmem:[%s11783_s29 + $0x308] sm:$0xff] }
 0x35d   : > { %10312 = vmatmul.msk.f32.gmra.mxu3 %vm462_vm1, %v13263_v25  ;;  %v10441_v21 = vld [vmem:[%s11783_s29 + $0x309] sm:$0xff] }
 0x35e   : > { %16103 = vst [vmem:[#allocation44_spill] sm:$0xff] %v13266_v5  ;;  %10570 = vmatmul.msk.f32.gmra.mxu0 %vm462_vm1, %v10440_v59 }
 0x35f   : > { %v2745_v37 = vpop.f32.mrf.mxu2 }
 0x360   : > { %v3015_v28 = vadd.f32 %v2745_v37, %v1828_v26  ;;  %v3792_v22 = vpop.f32.mrf.mxu3  ;;  %v1830_v51 = vpop.f32.mrf.mxu1 }
 0x361   : > { %v1831_v59 = vadd.f32 %v1830_v51, %v16106_v46  ;;  %v16108_v51 = vld [vmem:[#allocation80_spill] sm:$0xff] }
 0x362   : > { %v4062_v55 = vadd.f32 %v3792_v22, %v3015_v28  ;;  %v2115_v22 = vld [vmem:[%s11783_s29 + $0x2ea] sm:$0xff] }
 0x363   : > { %v4841_v33 = vpop.f32.mrf.mxu0  ;;  %9925 = vmatmul.msk.f32.gmra.mxu1 %vm462_vm1, %v13221_v20 }
 0x364   : > { %v13280_v5 = vadd.f32 %v4838_v62, %v4062_v55  ;;  %10055 = vmatmul.msk.f32.gmra.mxu2 %vm462_vm1, %v2114_v54  ;;  %v13291_v55 = vld [vmem:[%s11783_s29 + $0x310] sm:$0xff] }
 0x365   : > { %10313 = vmatmul.msk.f32.gmra.mxu3 %vm462_vm1, %v13277_v44  ;;  %v10442_v54 = vld [vmem:[%s11783_s29 + $0x311] sm:$0xff] }
 0x366   : > { %16105 = vst [vmem:[#allocation47_spill] sm:$0xff] %v13280_v5  ;;  %10571 = vmatmul.msk.f32.gmra.mxu0 %vm462_vm1, %v10441_v21 }
 0x367   : > { %v2748_v30 = vpop.f32.mrf.mxu2 }
 0x368   : > { %v3016_v26 = vadd.f32 %v2748_v30, %v1831_v59  ;;  %v3795_v37 = vpop.f32.mrf.mxu3  ;;  %v1833_v28 = vpop.f32.mrf.mxu1 }
 0x369   : > { %v1834_v21 = vadd.f32 %v1833_v28, %v16108_v51  ;;  %v16110_v28 = vld [vmem:[#allocation83_spill] sm:$0xff] }
 0x36a   : > { %v4063_v62 = vadd.f32 %v3795_v37, %v3016_v26  ;;  %v2116_v37 = vld [vmem:[%s11783_s29 + $0x2fa] sm:$0xff] }
 0x36b   : > { %v4844_v20 = vpop.f32.mrf.mxu0  ;;  %9926 = vmatmul.msk.f32.gmra.mxu1 %vm462_vm1, %v13235_v3 }
 0x36c   : > { %v13294_v5 = vadd.f32 %v4841_v33, %v4063_v62  ;;  %10056 = vmatmul.msk.f32.gmra.mxu2 %vm462_vm1, %v2115_v22  ;;  %v13305_v62 = vld [vmem:[%s11783_s29 + $0x320] sm:$0xff] }
 0x36d   : > { %10314 = vmatmul.msk.f32.gmra.mxu3 %vm462_vm1, %v13291_v55  ;;  %v10443_v22 = vld [vmem:[%s11783_s29 + $0x321] sm:$0xff] }
 0x36e   : > { %16107 = vst [vmem:[#allocation50_spill] sm:$0xff] %v13294_v5  ;;  %10572 = vmatmul.msk.f32.gmra.mxu0 %vm462_vm1, %v10442_v54 }
 0x36f   : > { %v2751_v46 = vpop.f32.mrf.mxu2 }
 0x370   : > { %v3017_v59 = vadd.f32 %v2751_v46, %v1834_v21  ;;  %v3798_v30 = vpop.f32.mrf.mxu3  ;;  %v1836_v26 = vpop.f32.mrf.mxu1 }
 0x371   : > { %v1837_v54 = vadd.f32 %v1836_v26, %v16110_v28  ;;  %v16112_v26 = vld [vmem:[#allocation86_spill] sm:$0xff] }
 0x372   : > { %v4064_v33 = vadd.f32 %v3798_v30, %v3017_v59  ;;  %v2117_v30 = vld [vmem:[%s11783_s29 + $0x302] sm:$0xff] }
 0x373   : > { %v4847_v3 = vpop.f32.mrf.mxu0  ;;  %9927 = vmatmul.msk.f32.gmra.mxu1 %vm462_vm1, %v13249_v9 }
 0x374   : > { %v13308_v5 = vadd.f32 %v4844_v20, %v4064_v33  ;;  %10057 = vmatmul.msk.f32.gmra.mxu2 %vm462_vm1, %v2116_v37  ;;  %v13319_v33 = vld [vmem:[%s11783_s29 + $0x328] sm:$0xff] }
 0x375   : > { %10315 = vmatmul.msk.f32.gmra.mxu3 %vm462_vm1, %v13305_v62  ;;  %v10444_v37 = vld [vmem:[%s11783_s29 + $0x329] sm:$0xff] }
 0x376   : > { %16109 = vst [vmem:[#allocation53_spill] sm:$0xff] %v13308_v5  ;;  %10573 = vmatmul.msk.f32.gmra.mxu0 %vm462_vm1, %v10443_v22 }
 0x377   : > { %v2754_v51 = vpop.f32.mrf.mxu2 }
 0x378   : > { %v3018_v21 = vadd.f32 %v2754_v51, %v1837_v54  ;;  %v3801_v46 = vpop.f32.mrf.mxu3  ;;  %v1839_v59 = vpop.f32.mrf.mxu1 }
 0x379   : > { %v1840_v22 = vadd.f32 %v1839_v59, %v16112_v26  ;;  %v16114_v59 = vld [vmem:[#allocation89_spill] sm:$0xff] }
 0x37a   : > { %v4065_v20 = vadd.f32 %v3801_v46, %v3018_v21  ;;  %v2118_v46 = vld [vmem:[%s11783_s29 + $0x30a] sm:$0xff] }
 0x37b   : > { %v4850_v9 = vpop.f32.mrf.mxu0  ;;  %9928 = vmatmul.msk.f32.gmra.mxu1 %vm462_vm1, %v13263_v25 }
 0x37c   : > { %v13322_v5 = vadd.f32 %v4847_v3, %v4065_v20  ;;  %10058 = vmatmul.msk.f32.gmra.mxu2 %vm462_vm1, %v2117_v30  ;;  %v13333_v20 = vld [vmem:[%s11783_s29 + $0x330] sm:$0xff] }
 0x37d   : > { %10316 = vmatmul.msk.f32.gmra.mxu3 %vm462_vm1, %v13319_v33  ;;  %v10445_v30 = vld [vmem:[%s11783_s29 + $0x331] sm:$0xff] }
 0x37e   : > { %16111 = vst [vmem:[#allocation56_spill] sm:$0xff] %v13322_v5  ;;  %10574 = vmatmul.msk.f32.gmra.mxu0 %vm462_vm1, %v10444_v37 }
 0x37f   : > { %v2757_v28 = vpop.f32.mrf.mxu2 }
 0x380   : > { %v3019_v54 = vadd.f32 %v2757_v28, %v1840_v22  ;;  %v3804_v51 = vpop.f32.mrf.mxu3  ;;  %v1842_v21 = vpop.f32.mrf.mxu1 }
 0x381   : > { %v1843_v37 = vadd.f32 %v1842_v21, %v16114_v59  ;;  %v16116_v21 = vld [vmem:[#allocation92_spill] sm:$0xff] }
 0x382   : > { %v4066_v3 = vadd.f32 %v3804_v51, %v3019_v54  ;;  %v2119_v51 = vld [vmem:[%s11783_s29 + $0x312] sm:$0xff] }
 0x383   : > { %v4853_v25 = vpop.f32.mrf.mxu0  ;;  %9929 = vmatmul.msk.f32.gmra.mxu1 %vm462_vm1, %v13277_v44 }
 0x384   : > { %v13336_v5 = vadd.f32 %v4850_v9, %v4066_v3  ;;  %10059 = vmatmul.msk.f32.gmra.mxu2 %vm462_vm1, %v2118_v46  ;;  %v13347_v3 = vld [vmem:[%s11783_s29 + $0x338] sm:$0xff] }
 0x385   : > { %10317 = vmatmul.msk.f32.gmra.mxu3 %vm462_vm1, %v13333_v20  ;;  %v10446_v46 = vld [vmem:[%s11783_s29 + $0x339] sm:$0xff] }
 0x386   : > { %16113 = vst [vmem:[#allocation59_spill] sm:$0xff] %v13336_v5  ;;  %10575 = vmatmul.msk.f32.gmra.mxu0 %vm462_vm1, %v10445_v30 }
 0x387   : > { %v2760_v26 = vpop.f32.mrf.mxu2 }
 0x388   : > { %v3020_v22 = vadd.f32 %v2760_v26, %v1843_v37  ;;  %v3807_v28 = vpop.f32.mrf.mxu3  ;;  %v1845_v54 = vpop.f32.mrf.mxu1 }
 0x389   : > { %v1846_v30 = vadd.f32 %v1845_v54, %v16116_v21  ;;  %v16118_v54 = vld [vmem:[#allocation2_spill] sm:$0xff] }
 0x38a   : > { %v4067_v9 = vadd.f32 %v3807_v28, %v3020_v22  ;;  %v2120_v28 = vld [vmem:[%s11783_s29 + $0x322] sm:$0xff] }
 0x38b   : > { %v4856_v44 = vpop.f32.mrf.mxu0  ;;  %9930 = vmatmul.msk.f32.gmra.mxu1 %vm462_vm1, %v13291_v55 }
 0x38c   : > { %v13350_v5 = vadd.f32 %v4853_v25, %v4067_v9  ;;  %10060 = vmatmul.msk.f32.gmra.mxu2 %vm462_vm1, %v2119_v51  ;;  %v13361_v9 = vld [vmem:[%s11783_s29 + $0x348] sm:$0xff] }
 0x38d   : > { %10318 = vmatmul.msk.f32.gmra.mxu3 %vm462_vm1, %v13347_v3  ;;  %v10447_v51 = vld [vmem:[%s11783_s29 + $0x349] sm:$0xff] }
 0x38e   : > { %16115 = vst [vmem:[#allocation62_spill] sm:$0xff] %v13350_v5  ;;  %10576 = vmatmul.msk.f32.gmra.mxu0 %vm462_vm1, %v10446_v46 }
 0x38f   : > { %v2763_v59 = vpop.f32.mrf.mxu2 }
 0x390   : > { %v3021_v37 = vadd.f32 %v2763_v59, %v1846_v30  ;;  %v3810_v26 = vpop.f32.mrf.mxu3  ;;  %v1848_v22 = vpop.f32.mrf.mxu1 }
 0x391   : > { %v1849_v46 = vadd.f32 %v1848_v22, %v16118_v54  ;;  %v16120_v22 = vld [vmem:[#allocation4_spill] sm:$0xff] }
 0x392   : > { %v4068_v25 = vadd.f32 %v3810_v26, %v3021_v37  ;;  %v2121_v26 = vld [vmem:[%s11783_s29 + $0x32a] sm:$0xff] }
 0x393   : > { %v4859_v55 = vpop.f32.mrf.mxu0  ;;  %9931 = vmatmul.msk.f32.gmra.mxu1 %vm462_vm1, %v13305_v62 }
 0x394   : > { %v13364_v5 = vadd.f32 %v4856_v44, %v4068_v25  ;;  %10061 = vmatmul.msk.f32.gmra.mxu2 %vm462_vm1, %v2120_v28  ;;  %v13375_v25 = vld [vmem:[%s11783_s29 + $0x350] sm:$0xff] }
 0x395   : > { %10319 = vmatmul.msk.f32.gmra.mxu3 %vm462_vm1, %v13361_v9  ;;  %v10448_v28 = vld [vmem:[%s11783_s29 + $0x351] sm:$0xff] }
 0x396   : > { %16117 = vst [vmem:[#allocation65_spill] sm:$0xff] %v13364_v5  ;;  %10577 = vmatmul.msk.f32.gmra.mxu0 %vm462_vm1, %v10447_v51 }
 0x397   : > { %v2766_v21 = vpop.f32.mrf.mxu2 }
 0x398   : > { %v3022_v30 = vadd.f32 %v2766_v21, %v1849_v46  ;;  %v3813_v59 = vpop.f32.mrf.mxu3  ;;  %v1851_v37 = vpop.f32.mrf.mxu1 }
 0x399   : > { %v1852_v51 = vadd.f32 %v1851_v37, %v16120_v22  ;;  %v16122_v37 = vld [vmem:[#allocation6_spill] sm:$0xff] }
 0x39a   : > { %v4069_v44 = vadd.f32 %v3813_v59, %v3022_v30  ;;  %v2122_v59 = vld [vmem:[%s11783_s29 + $0x332] sm:$0xff] }
 0x39b   : > { %v4862_v62 = vpop.f32.mrf.mxu0  ;;  %9932 = vmatmul.msk.f32.gmra.mxu1 %vm462_vm1, %v13319_v33 }
 0x39c   : > { %v13378_v5 = vadd.f32 %v4859_v55, %v4069_v44  ;;  %10062 = vmatmul.msk.f32.gmra.mxu2 %vm462_vm1, %v2121_v26  ;;  %v13389_v44 = vld [vmem:[%s11783_s29 + $0x358] sm:$0xff] }
 0x39d   : > { %10320 = vmatmul.msk.f32.gmra.mxu3 %vm462_vm1, %v13375_v25  ;;  %v10449_v26 = vld [vmem:[%s11783_s29 + $0x359] sm:$0xff] }
 0x39e   : > { %16119 = vst [vmem:[#allocation68_spill] sm:$0xff] %v13378_v5  ;;  %10578 = vmatmul.msk.f32.gmra.mxu0 %vm462_vm1, %v10448_v28 }
 0x39f   : > { %v2769_v54 = vpop.f32.mrf.mxu2 }
 0x3a0   : > { %v3023_v46 = vadd.f32 %v2769_v54, %v1852_v51  ;;  %v3816_v21 = vpop.f32.mrf.mxu3  ;;  %v1854_v30 = vpop.f32.mrf.mxu1 }
 0x3a1   : > { %v1855_v28 = vadd.f32 %v1854_v30, %v16122_v37  ;;  %v16124_v30 = vld [vmem:[#allocation9_spill] sm:$0xff] }
 0x3a2   : > { %v4070_v55 = vadd.f32 %v3816_v21, %v3023_v46  ;;  %v2123_v21 = vld [vmem:[%s11783_s29 + $0x33a] sm:$0xff] }
 0x3a3   : > { %v4865_v33 = vpop.f32.mrf.mxu0  ;;  %9933 = vmatmul.msk.f32.gmra.mxu1 %vm462_vm1, %v13333_v20 }
 0x3a4   : > { %v13392_v5 = vadd.f32 %v4862_v62, %v4070_v55  ;;  %10063 = vmatmul.msk.f32.gmra.mxu2 %vm462_vm1, %v2122_v59  ;;  %v13403_v55 = vld [vmem:[%s11783_s29 + $0x360] sm:$0xff] }
 0x3a5   : > { %10321 = vmatmul.msk.f32.gmra.mxu3 %vm462_vm1, %v13389_v44  ;;  %v10450_v59 = vld [vmem:[%s11783_s29 + $0x361] sm:$0xff] }
 0x3a6   : > { %16121 = vst [vmem:[#allocation71_spill] sm:$0xff] %v13392_v5  ;;  %10579 = vmatmul.msk.f32.gmra.mxu0 %vm462_vm1, %v10449_v26 }
 0x3a7   : > { %v2772_v22 = vpop.f32.mrf.mxu2 }
 0x3a8   : > { %v3024_v51 = vadd.f32 %v2772_v22, %v1855_v28  ;;  %v3819_v54 = vpop.f32.mrf.mxu3  ;;  %v1857_v46 = vpop.f32.mrf.mxu1 }
 0x3a9   : > { %v1858_v26 = vadd.f32 %v1857_v46, %v16124_v30  ;;  %v16126_v46 = vld [vmem:[#allocation12_spill] sm:$0xff] }
 0x3aa   : > { %v4071_v62 = vadd.f32 %v3819_v54, %v3024_v51  ;;  %v2124_v54 = vld [vmem:[%s11783_s29 + $0x34a] sm:$0xff] }
 0x3ab   : > { %v4868_v20 = vpop.f32.mrf.mxu0  ;;  %9934 = vmatmul.msk.f32.gmra.mxu1 %vm462_vm1, %v13347_v3 }
 0x3ac   : > { %v13406_v5 = vadd.f32 %v4865_v33, %v4071_v62  ;;  %10064 = vmatmul.msk.f32.gmra.mxu2 %vm462_vm1, %v2123_v21  ;;  %v13417_v62 = vld [vmem:[%s11783_s29 + $0x370] sm:$0xff] }
 0x3ad   : > { %10322 = vmatmul.msk.f32.gmra.mxu3 %vm462_vm1, %v13403_v55  ;;  %v10451_v21 = vld [vmem:[%s11783_s29 + $0x371] sm:$0xff] }
 0x3ae   : > { %16123 = vst [vmem:[#allocation74_spill] sm:$0xff] %v13406_v5  ;;  %10580 = vmatmul.msk.f32.gmra.mxu0 %vm462_vm1, %v10450_v59 }
 0x3af   : > { %v2775_v37 = vpop.f32.mrf.mxu2 }
 0x3b0   : > { %v3025_v28 = vadd.f32 %v2775_v37, %v1858_v26  ;;  %v3822_v22 = vpop.f32.mrf.mxu3  ;;  %v1860_v51 = vpop.f32.mrf.mxu1 }
 0x3b1   : > { %v1861_v59 = vadd.f32 %v1860_v51, %v16126_v46  ;;  %v16128_v51 = vld [vmem:[#allocation15_spill] sm:$0xff] }
 0x3b2   : > { %v4072_v33 = vadd.f32 %v3822_v22, %v3025_v28  ;;  %v2125_v22 = vld [vmem:[%s11783_s29 + $0x352] sm:$0xff] }
 0x3b3   : > { %v4871_v3 = vpop.f32.mrf.mxu0  ;;  %9935 = vmatmul.msk.f32.gmra.mxu1 %vm462_vm1, %v13361_v9 }
 0x3b4   : > { %v13420_v5 = vadd.f32 %v4868_v20, %v4072_v33  ;;  %10065 = vmatmul.msk.f32.gmra.mxu2 %vm462_vm1, %v2124_v54  ;;  %v13431_v33 = vld [vmem:[%s11783_s29 + $0x378] sm:$0xff] }
 0x3b5   : > { %10323 = vmatmul.msk.f32.gmra.mxu3 %vm462_vm1, %v13417_v62  ;;  %v10452_v54 = vld [vmem:[%s11783_s29 + $0x379] sm:$0xff] }
 0x3b6   : > { %16125 = vst [vmem:[#allocation77_spill] sm:$0xff] %v13420_v5  ;;  %10581 = vmatmul.msk.f32.gmra.mxu0 %vm462_vm1, %v10451_v21 }
 0x3b7   : > { %v2778_v30 = vpop.f32.mrf.mxu2 }
 0x3b8   : > { %v3026_v26 = vadd.f32 %v2778_v30, %v1861_v59  ;;  %v3825_v37 = vpop.f32.mrf.mxu3  ;;  %v1863_v28 = vpop.f32.mrf.mxu1 }
 0x3b9   : > { %v1864_v21 = vadd.f32 %v1863_v28, %v16128_v51  ;;  %v16130_v28 = vld [vmem:[#allocation18_spill] sm:$0xff] }
 0x3ba   : > { %v4073_v20 = vadd.f32 %v3825_v37, %v3026_v26  ;;  %v2126_v37 = vld [vmem:[%s11783_s29 + $0x35a] sm:$0xff] }
 0x3bb   : > { %v4874_v9 = vpop.f32.mrf.mxu0  ;;  %9936 = vmatmul.msk.f32.gmra.mxu1 %vm462_vm1, %v13375_v25 }
 0x3bc   : > { %v13434_v5 = vadd.f32 %v4871_v3, %v4073_v20  ;;  %10066 = vmatmul.msk.f32.gmra.mxu2 %vm462_vm1, %v2125_v22  ;;  %v13445_v20 = vld [vmem:[%s11783_s29 + $0x380] sm:$0xff] }
 0x3bd   : > { %10324 = vmatmul.msk.f32.gmra.mxu3 %vm462_vm1, %v13431_v33  ;;  %v10453_v22 = vld [vmem:[%s11783_s29 + $0x381] sm:$0xff] }
 0x3be   : > { %16127 = vst [vmem:[#allocation80_spill] sm:$0xff] %v13434_v5  ;;  %10582 = vmatmul.msk.f32.gmra.mxu0 %vm462_vm1, %v10452_v54 }
 0x3bf   : > { %v2781_v46 = vpop.f32.mrf.mxu2 }
 0x3c0   : > { %v3027_v59 = vadd.f32 %v2781_v46, %v1864_v21  ;;  %v3828_v30 = vpop.f32.mrf.mxu3  ;;  %v1866_v26 = vpop.f32.mrf.mxu1 }
 0x3c1   : > { %v1867_v54 = vadd.f32 %v1866_v26, %v16130_v28  ;;  %v16132_v26 = vld [vmem:[#allocation21_spill] sm:$0xff] }
 0x3c2   : > { %v4074_v3 = vadd.f32 %v3828_v30, %v3027_v59  ;;  %v2127_v30 = vld [vmem:[%s11783_s29 + $0x362] sm:$0xff] }
 0x3c3   : > { %v4877_v25 = vpop.f32.mrf.mxu0  ;;  %9937 = vmatmul.msk.f32.gmra.mxu1 %vm462_vm1, %v13389_v44 }
 0x3c4   : > { %v13448_v5 = vadd.f32 %v4874_v9, %v4074_v3  ;;  %10067 = vmatmul.msk.f32.gmra.mxu2 %vm462_vm1, %v2126_v37  ;;  %v13459_v3 = vld [vmem:[%s11783_s29 + $0x388] sm:$0xff] }
 0x3c5   : > { %10325 = vmatmul.msk.f32.gmra.mxu3 %vm462_vm1, %v13445_v20  ;;  %v10454_v37 = vld [vmem:[%s11783_s29 + $0x389] sm:$0xff] }
 0x3c6   : > { %16129 = vst [vmem:[#allocation83_spill] sm:$0xff] %v13448_v5  ;;  %10583 = vmatmul.msk.f32.gmra.mxu0 %vm462_vm1, %v10453_v22 }
 0x3c7   : > { %v2784_v51 = vpop.f32.mrf.mxu2 }
 0x3c8   : > { %v3028_v21 = vadd.f32 %v2784_v51, %v1867_v54  ;;  %v3831_v46 = vpop.f32.mrf.mxu3  ;;  %v1869_v59 = vpop.f32.mrf.mxu1 }
 0x3c9   : > { %v1870_v22 = vadd.f32 %v1869_v59, %v16132_v26  ;;  %v16134_v59 = vld [vmem:[#allocation24_spill] sm:$0xff] }
 0x3ca   : > { %v4075_v9 = vadd.f32 %v3831_v46, %v3028_v21  ;;  %v2128_v46 = vld [vmem:[%s11783_s29 + $0x372] sm:$0xff] }
 0x3cb   : > { %v4880_v44 = vpop.f32.mrf.mxu0  ;;  %9938 = vmatmul.msk.f32.gmra.mxu1 %vm462_vm1, %v13403_v55 }
 0x3cc   : > { %v13462_v5 = vadd.f32 %v4877_v25, %v4075_v9  ;;  %10068 = vmatmul.msk.f32.gmra.mxu2 %vm462_vm1, %v2127_v30  ;;  %v13473_v9 = vld [vmem:[%s11783_s29 + $0x398] sm:$0xff] }
 0x3cd   : > { %10326 = vmatmul.msk.f32.gmra.mxu3 %vm462_vm1, %v13459_v3  ;;  %v10455_v30 = vld [vmem:[%s11783_s29 + $0x399] sm:$0xff] }
 0x3ce   : > { %16131 = vst [vmem:[#allocation86_spill] sm:$0xff] %v13462_v5  ;;  %10584 = vmatmul.msk.f32.gmra.mxu0 %vm462_vm1, %v10454_v37 }
 0x3cf   : > { %v2787_v28 = vpop.f32.mrf.mxu2 }
 0x3d0   : > { %v3029_v54 = vadd.f32 %v2787_v28, %v1870_v22  ;;  %v3834_v51 = vpop.f32.mrf.mxu3  ;;  %v1872_v21 = vpop.f32.mrf.mxu1 }
 0x3d1   : > { %v1873_v37 = vadd.f32 %v1872_v21, %v16134_v59  ;;  %v16136_v21 = vld [vmem:[#allocation27_spill] sm:$0xff] }
 0x3d2   : > { %v4076_v25 = vadd.f32 %v3834_v51, %v3029_v54  ;;  %v2129_v51 = vld [vmem:[%s11783_s29 + $0x37a] sm:$0xff] }
 0x3d3   : > { %v4883_v55 = vpop.f32.mrf.mxu0  ;;  %9939 = vmatmul.msk.f32.gmra.mxu1 %vm462_vm1, %v13417_v62 }
 0x3d4   : > { %v13476_v5 = vadd.f32 %v4880_v44, %v4076_v25  ;;  %10069 = vmatmul.msk.f32.gmra.mxu2 %vm462_vm1, %v2128_v46  ;;  %v13487_v25 = vld [vmem:[%s11783_s29 + $0x3a0] sm:$0xff] }
 0x3d5   : > { %10327 = vmatmul.msk.f32.gmra.mxu3 %vm462_vm1, %v13473_v9  ;;  %v10456_v46 = vld [vmem:[%s11783_s29 + $0x3a1] sm:$0xff] }
 0x3d6   : > { %16133 = vst [vmem:[#allocation89_spill] sm:$0xff] %v13476_v5  ;;  %10585 = vmatmul.msk.f32.gmra.mxu0 %vm462_vm1, %v10455_v30 }
 0x3d7   : > { %v2790_v26 = vpop.f32.mrf.mxu2 }
 0x3d8   : > { %v3030_v22 = vadd.f32 %v2790_v26, %v1873_v37  ;;  %v3837_v28 = vpop.f32.mrf.mxu3  ;;  %v1875_v54 = vpop.f32.mrf.mxu1 }
 0x3d9   : > { %v1876_v30 = vadd.f32 %v1875_v54, %v16136_v21  ;;  %v16138_v54 = vld [vmem:[#allocation30_spill] sm:$0xff] }
 0x3da   : > { %v4077_v44 = vadd.f32 %v3837_v28, %v3030_v22  ;;  %v2130_v28 = vld [vmem:[%s11783_s29 + $0x382] sm:$0xff] }
 0x3db   : > { %v4886_v62 = vpop.f32.mrf.mxu0  ;;  %9940 = vmatmul.msk.f32.gmra.mxu1 %vm462_vm1, %v13431_v33 }
 0x3dc   : > { %v13490_v5 = vadd.f32 %v4883_v55, %v4077_v44  ;;  %10070 = vmatmul.msk.f32.gmra.mxu2 %vm462_vm1, %v2129_v51  ;;  %v13501_v44 = vld [vmem:[%s11783_s29 + $0x3a8] sm:$0xff] }
 0x3dd   : > { %10328 = vmatmul.msk.f32.gmra.mxu3 %vm462_vm1, %v13487_v25  ;;  %v10457_v51 = vld [vmem:[%s11783_s29 + $0x3a9] sm:$0xff] }
 0x3de   : > { %16135 = vst [vmem:[#allocation92_spill] sm:$0xff] %v13490_v5  ;;  %10586 = vmatmul.msk.f32.gmra.mxu0 %vm462_vm1, %v10456_v46 }
 0x3df   : > { %v2793_v59 = vpop.f32.mrf.mxu2 }
 0x3e0   : > { %v3031_v37 = vadd.f32 %v2793_v59, %v1876_v30  ;;  %v3840_v26 = vpop.f32.mrf.mxu3  ;;  %v1878_v22 = vpop.f32.mrf.mxu1 }
 0x3e1   : > { %v1879_v46 = vadd.f32 %v1878_v22, %v16138_v54  ;;  %v16140_v22 = vld [vmem:[#allocation33_spill] sm:$0xff] }
 0x3e2   : > { %v4078_v55 = vadd.f32 %v3840_v26, %v3031_v37  ;;  %v2131_v26 = vld [vmem:[%s11783_s29 + $0x38a] sm:$0xff] }
 0x3e3   : > { %v4889_v33 = vpop.f32.mrf.mxu0  ;;  %9941 = vmatmul.msk.f32.gmra.mxu1 %vm462_vm1, %v13445_v20 }
 0x3e4   : > { %v13504_v5 = vadd.f32 %v4886_v62, %v4078_v55  ;;  %10071 = vmatmul.msk.f32.gmra.mxu2 %vm462_vm1, %v2130_v28  ;;  %v13515_v55 = vld [vmem:[%s11783_s29 + $0x3b0] sm:$0xff] }
 0x3e5   : > { %10329 = vmatmul.msk.f32.gmra.mxu3 %vm462_vm1, %v13501_v44  ;;  %v10458_v28 = vld [vmem:[%s11783_s29 + $0x3b1] sm:$0xff] }
 0x3e6   : > { %16137 = vst [vmem:[#allocation2_spill] sm:$0xff] %v13504_v5  ;;  %10587 = vmatmul.msk.f32.gmra.mxu0 %vm462_vm1, %v10457_v51 }
 0x3e7   : > { %v2796_v21 = vpop.f32.mrf.mxu2 }
 0x3e8   : > { %v3032_v30 = vadd.f32 %v2796_v21, %v1879_v46  ;;  %v3843_v59 = vpop.f32.mrf.mxu3  ;;  %v1881_v37 = vpop.f32.mrf.mxu1 }
 0x3e9   : > { %v1882_v51 = vadd.f32 %v1881_v37, %v16140_v22  ;;  %v16142_v37 = vld [vmem:[#allocation36_spill] sm:$0xff] }
 0x3ea   : > { %v4079_v62 = vadd.f32 %v3843_v59, %v3032_v30  ;;  %v2132_v59 = vld [vmem:[%s11783_s29 + $0x39a] sm:$0xff] }
 0x3eb   : > { %v4892_v20 = vpop.f32.mrf.mxu0  ;;  %9942 = vmatmul.msk.f32.gmra.mxu1 %vm462_vm1, %v13459_v3 }
 0x3ec   : > { %v13518_v5 = vadd.f32 %v4889_v33, %v4079_v62  ;;  %10072 = vmatmul.msk.f32.gmra.mxu2 %vm462_vm1, %v2131_v26  ;;  %v13529_v62 = vld [vmem:[%s11783_s29 + $0x3c0] sm:$0xff] }
 0x3ed   : > { %10330 = vmatmul.msk.f32.gmra.mxu3 %vm462_vm1, %v13515_v55  ;;  %v10459_v26 = vld [vmem:[%s11783_s29 + $0x3c1] sm:$0xff] }
 0x3ee   : > { %16139 = vst [vmem:[#allocation4_spill] sm:$0xff] %v13518_v5  ;;  %10588 = vmatmul.msk.f32.gmra.mxu0 %vm462_vm1, %v10458_v28 }
 0x3ef   : > { %v2799_v54 = vpop.f32.mrf.mxu2 }
 0x3f0   : > { %v3033_v46 = vadd.f32 %v2799_v54, %v1882_v51  ;;  %v3846_v21 = vpop.f32.mrf.mxu3  ;;  %v1884_v30 = vpop.f32.mrf.mxu1 }
 0x3f1   : > { %v1885_v28 = vadd.f32 %v1884_v30, %v16142_v37  ;;  %v16144_v30 = vld [vmem:[#allocation39_spill] sm:$0xff] }
 0x3f2   : > { %v4080_v33 = vadd.f32 %v3846_v21, %v3033_v46  ;;  %v2133_v21 = vld [vmem:[%s11783_s29 + $0x3a2] sm:$0xff] }
 0x3f3   : > { %v4895_v3 = vpop.f32.mrf.mxu0  ;;  %9943 = vmatmul.msk.f32.gmra.mxu1 %vm462_vm1, %v13473_v9 }
 0x3f4   : > { %v13532_v5 = vadd.f32 %v4892_v20, %v4080_v33  ;;  %10073 = vmatmul.msk.f32.gmra.mxu2 %vm462_vm1, %v2132_v59  ;;  %v13543_v33 = vld [vmem:[%s11783_s29 + $0x3c8] sm:$0xff] }
 0x3f5   : > { %10331 = vmatmul.msk.f32.gmra.mxu3 %vm462_vm1, %v13529_v62  ;;  %v10460_v59 = vld [vmem:[%s11783_s29 + $0x3c9] sm:$0xff] }
 0x3f6   : > { %16141 = vst [vmem:[#allocation6_spill] sm:$0xff] %v13532_v5  ;;  %10589 = vmatmul.msk.f32.gmra.mxu0 %vm462_vm1, %v10459_v26 }
 0x3f7   : > { %v2802_v22 = vpop.f32.mrf.mxu2 }
 0x3f8   : > { %v3034_v51 = vadd.f32 %v2802_v22, %v1885_v28  ;;  %v3849_v54 = vpop.f32.mrf.mxu3  ;;  %v1887_v46 = vpop.f32.mrf.mxu1 }
 0x3f9   : > { %v1888_v26 = vadd.f32 %v1887_v46, %v16144_v30  ;;  %v16146_v46 = vld [vmem:[#allocation42_spill] sm:$0xff] }
 0x3fa   : > { %v4081_v20 = vadd.f32 %v3849_v54, %v3034_v51  ;;  %v2134_v54 = vld [vmem:[%s11783_s29 + $0x3aa] sm:$0xff] }
 0x3fb   : > { %v4898_v9 = vpop.f32.mrf.mxu0  ;;  %9944 = vmatmul.msk.f32.gmra.mxu1 %vm462_vm1, %v13487_v25 }
 0x3fc   : > { %v13546_v5 = vadd.f32 %v4895_v3, %v4081_v20  ;;  %10074 = vmatmul.msk.f32.gmra.mxu2 %vm462_vm1, %v2133_v21  ;;  %v13557_v20 = vld [vmem:[%s11783_s29 + $0x3d0] sm:$0xff] }
 0x3fd   : > { %10332 = vmatmul.msk.f32.gmra.mxu3 %vm462_vm1, %v13543_v33  ;;  %v10461_v21 = vld [vmem:[%s11783_s29 + $0x3d1] sm:$0xff] }
 0x3fe   : > { %16143 = vst [vmem:[#allocation9_spill] sm:$0xff] %v13546_v5  ;;  %10590 = vmatmul.msk.f32.gmra.mxu0 %vm462_vm1, %v10460_v59 }
 0x3ff   : > { %v2805_v37 = vpop.f32.mrf.mxu2 }
 0x400   : > { %v3035_v28 = vadd.f32 %v2805_v37, %v1888_v26  ;;  %v3852_v22 = vpop.f32.mrf.mxu3  ;;  %v1890_v51 = vpop.f32.mrf.mxu1 }
 0x401   : > { %v1891_v59 = vadd.f32 %v1890_v51, %v16146_v46  ;;  %v16148_v51 = vld [vmem:[#allocation45_spill] sm:$0xff] }
 0x402   : > { %v4082_v3 = vadd.f32 %v3852_v22, %v3035_v28  ;;  %v2135_v22 = vld [vmem:[%s11783_s29 + $0x3b2] sm:$0xff] }
 0x403   : > { %v4901_v25 = vpop.f32.mrf.mxu0  ;;  %9945 = vmatmul.msk.f32.gmra.mxu1 %vm462_vm1, %v13501_v44 }
 0x404   : > { %v13560_v5 = vadd.f32 %v4898_v9, %v4082_v3  ;;  %10075 = vmatmul.msk.f32.gmra.mxu2 %vm462_vm1, %v2134_v54  ;;  %v13571_v3 = vld [vmem:[%s11783_s29 + $0x3d8] sm:$0xff] }
 0x405   : > { %10333 = vmatmul.msk.f32.gmra.mxu3 %vm462_vm1, %v13557_v20  ;;  %v10462_v54 = vld [vmem:[%s11783_s29 + $0x3d9] sm:$0xff] }
 0x406   : > { %16145 = vst [vmem:[#allocation12_spill] sm:$0xff] %v13560_v5  ;;  %10591 = vmatmul.msk.f32.gmra.mxu0 %vm462_vm1, %v10461_v21 }
 0x407   : > { %v2808_v30 = vpop.f32.mrf.mxu2 }
 0x408   : > { %v3036_v26 = vadd.f32 %v2808_v30, %v1891_v59  ;;  %v3855_v37 = vpop.f32.mrf.mxu3  ;;  %v1893_v28 = vpop.f32.mrf.mxu1 }
 0x409   : > { %v1894_v21 = vadd.f32 %v1893_v28, %v16148_v51  ;;  %v16150_v28 = vld [vmem:[#allocation48_spill] sm:$0xff] }
 0x40a   : > { %v4083_v9 = vadd.f32 %v3855_v37, %v3036_v26  ;;  %v2136_v37 = vld [vmem:[%s11783_s29 + $0x3c2] sm:$0xff] }
 0x40b   : > { %v4904_v44 = vpop.f32.mrf.mxu0  ;;  %9946 = vmatmul.msk.f32.gmra.mxu1 %vm462_vm1, %v13515_v55 }
 0x40c   : > { %v13574_v5 = vadd.f32 %v4901_v25, %v4083_v9  ;;  %10076 = vmatmul.msk.f32.gmra.mxu2 %vm462_vm1, %v2135_v22  ;;  %v13585_v9 = vld [vmem:[%s11783_s29 + $0x3e8] sm:$0xff] }
 0x40d   : > { %10334 = vmatmul.msk.f32.gmra.mxu3 %vm462_vm1, %v13571_v3  ;;  %v10463_v22 = vld [vmem:[%s11783_s29 + $0x3e9] sm:$0xff] }
 0x40e   : > { %16147 = vst [vmem:[#allocation15_spill] sm:$0xff] %v13574_v5  ;;  %10592 = vmatmul.msk.f32.gmra.mxu0 %vm462_vm1, %v10462_v54 }
 0x40f   : > { %v2811_v46 = vpop.f32.mrf.mxu2 }
 0x410   : > { %v3037_v59 = vadd.f32 %v2811_v46, %v1894_v21  ;;  %v3858_v30 = vpop.f32.mrf.mxu3  ;;  %v1896_v26 = vpop.f32.mrf.mxu1 }
 0x411   : > { %v1897_v54 = vadd.f32 %v1896_v26, %v16150_v28  ;;  %v16152_v26 = vld [vmem:[#allocation51_spill] sm:$0xff] }
 0x412   : > { %v4084_v25 = vadd.f32 %v3858_v30, %v3037_v59  ;;  %v2137_v30 = vld [vmem:[%s11783_s29 + $0x3ca] sm:$0xff] }
 0x413   : > { %v4907_v55 = vpop.f32.mrf.mxu0  ;;  %9947 = vmatmul.msk.f32.gmra.mxu1 %vm462_vm1, %v13529_v62 }
 0x414   : > { %v13588_v5 = vadd.f32 %v4904_v44, %v4084_v25  ;;  %10077 = vmatmul.msk.f32.gmra.mxu2 %vm462_vm1, %v2136_v37  ;;  %v13599_v25 = vld [vmem:[%s11783_s29 + $0x3f0] sm:$0xff] }
 0x415   : > { %10335 = vmatmul.msk.f32.gmra.mxu3 %vm462_vm1, %v13585_v9  ;;  %v10464_v37 = vld [vmem:[%s11783_s29 + $0x3f1] sm:$0xff] }
 0x416   : > { %16149 = vst [vmem:[#allocation18_spill] sm:$0xff] %v13588_v5  ;;  %10593 = vmatmul.msk.f32.gmra.mxu0 %vm462_vm1, %v10463_v22 }
 0x417   : > { %v2814_v51 = vpop.f32.mrf.mxu2 }
 0x418   : > { %v3038_v21 = vadd.f32 %v2814_v51, %v1897_v54  ;;  %v3861_v46 = vpop.f32.mrf.mxu3  ;;  %v1899_v59 = vpop.f32.mrf.mxu1 }
 0x419   : > { %v1900_v22 = vadd.f32 %v1899_v59, %v16152_v26  ;;  %v16154_v59 = vld [vmem:[#allocation54_spill] sm:$0xff] }
 0x41a   : > { %v4085_v44 = vadd.f32 %v3861_v46, %v3038_v21  ;;  %v2138_v46 = vld [vmem:[%s11783_s29 + $0x3d2] sm:$0xff] }
 0x41b   : > { %v4910_v62 = vpop.f32.mrf.mxu0  ;;  %9948 = vmatmul.msk.f32.gmra.mxu1 %vm462_vm1, %v13543_v33 }
 0x41c   : > { %v13602_v5 = vadd.f32 %v4907_v55, %v4085_v44  ;;  %10078 = vmatmul.msk.f32.gmra.mxu2 %vm462_vm1, %v2137_v30  ;;  %v13613_v44 = vld [vmem:[%s11783_s29 + $0x3f8] sm:$0xff] }
 0x41d   : > { %10336 = vmatmul.msk.f32.gmra.mxu3 %vm462_vm1, %v13599_v25  ;;  %v10465_v30 = vld [vmem:[%s11783_s29 + $0x3f9] sm:$0xff] }
 0x41e   : > { %16151 = vst [vmem:[#allocation21_spill] sm:$0xff] %v13602_v5  ;;  %10594 = vmatmul.msk.f32.gmra.mxu0 %vm462_vm1, %v10464_v37 }
 0x41f   : > { %v2817_v28 = vpop.f32.mrf.mxu2 }
 0x420   : > { %v3039_v54 = vadd.f32 %v2817_v28, %v1900_v22  ;;  %v3864_v51 = vpop.f32.mrf.mxu3  ;;  %v1902_v21 = vpop.f32.mrf.mxu1 }
 0x421   : > { %v1903_v37 = vadd.f32 %v1902_v21, %v16154_v59  ;;  %v16156_v21 = vld [vmem:[#allocation57_spill] sm:$0xff] }
 0x422   : > { %v4086_v55 = vadd.f32 %v3864_v51, %v3039_v54  ;;  %v2139_v51 = vld [vmem:[%s11783_s29 + $0x3da] sm:$0xff] }
 0x423   : > { %v4913_v33 = vpop.f32.mrf.mxu0  ;;  %9949 = vmatmul.msk.f32.gmra.mxu1 %vm462_vm1, %v13557_v20 }
 0x424   : > { %v13616_v5 = vadd.f32 %v4910_v62, %v4086_v55  ;;  %10079 = vmatmul.msk.f32.gmra.mxu2 %vm462_vm1, %v2138_v46  ;;  %v13627_v55 = vld [vmem:[%s11783_s29 + $0x400] sm:$0xff] }
 0x425   : > { %10337 = vmatmul.msk.f32.gmra.mxu3 %vm462_vm1, %v13613_v44  ;;  %v10466_v46 = vld [vmem:[%s11783_s29 + $0x401] sm:$0xff] }
 0x426   : > { %16153 = vst [vmem:[#allocation24_spill] sm:$0xff] %v13616_v5  ;;  %10595 = vmatmul.msk.f32.gmra.mxu0 %vm462_vm1, %v10465_v30 }
 0x427   : > { %v2820_v26 = vpop.f32.mrf.mxu2 }
 0x428   : > { %v3040_v22 = vadd.f32 %v2820_v26, %v1903_v37  ;;  %v3867_v28 = vpop.f32.mrf.mxu3  ;;  %v1905_v54 = vpop.f32.mrf.mxu1 }
 0x429   : > { %v1906_v30 = vadd.f32 %v1905_v54, %v16156_v21  ;;  %v16158_v54 = vld [vmem:[#allocation60_spill] sm:$0xff] }
 0x42a   : > { %v4087_v62 = vadd.f32 %v3867_v28, %v3040_v22  ;;  %v2140_v28 = vld [vmem:[%s11783_s29 + $0x3ea] sm:$0xff] }
 0x42b   : > { %v4916_v20 = vpop.f32.mrf.mxu0  ;;  %9950 = vmatmul.msk.f32.gmra.mxu1 %vm462_vm1, %v13571_v3 }
 0x42c   : > { %v13630_v5 = vadd.f32 %v4913_v33, %v4087_v62  ;;  %10080 = vmatmul.msk.f32.gmra.mxu2 %vm462_vm1, %v2139_v51  ;;  %v13641_v62 = vld [vmem:[%s11783_s29 + $0x410] sm:$0xff] }
 0x42d   : > { %10338 = vmatmul.msk.f32.gmra.mxu3 %vm462_vm1, %v13627_v55  ;;  %v10467_v51 = vld [vmem:[%s11783_s29 + $0x411] sm:$0xff] }
 0x42e   : > { %16155 = vst [vmem:[#allocation27_spill] sm:$0xff] %v13630_v5  ;;  %10596 = vmatmul.msk.f32.gmra.mxu0 %vm462_vm1, %v10466_v46 }
 0x42f   : > { %v2823_v59 = vpop.f32.mrf.mxu2 }
 0x430   : > { %v3041_v37 = vadd.f32 %v2823_v59, %v1906_v30  ;;  %v3870_v26 = vpop.f32.mrf.mxu3  ;;  %v1908_v22 = vpop.f32.mrf.mxu1 }
 0x431   : > { %v1909_v46 = vadd.f32 %v1908_v22, %v16158_v54  ;;  %v16160_v22 = vld [vmem:[#allocation63_spill] sm:$0xff] }
 0x432   : > { %v4088_v33 = vadd.f32 %v3870_v26, %v3041_v37  ;;  %v2141_v26 = vld [vmem:[%s11783_s29 + $0x3f2] sm:$0xff] }
 0x433   : > { %v4919_v3 = vpop.f32.mrf.mxu0  ;;  %9951 = vmatmul.msk.f32.gmra.mxu1 %vm462_vm1, %v13585_v9 }
 0x434   : > { %v13644_v5 = vadd.f32 %v4916_v20, %v4088_v33  ;;  %10081 = vmatmul.msk.f32.gmra.mxu2 %vm462_vm1, %v2140_v28  ;;  %v13655_v33 = vld [vmem:[%s11783_s29 + $0x418] sm:$0xff] }
 0x435   : > { %10339 = vmatmul.msk.f32.gmra.mxu3 %vm462_vm1, %v13641_v62  ;;  %v10468_v28 = vld [vmem:[%s11783_s29 + $0x419] sm:$0xff] }
 0x436   : > { %16157 = vst [vmem:[#allocation30_spill] sm:$0xff] %v13644_v5  ;;  %10597 = vmatmul.msk.f32.gmra.mxu0 %vm462_vm1, %v10467_v51 }
 0x437   : > { %v2826_v21 = vpop.f32.mrf.mxu2 }
 0x438   : > { %v3042_v30 = vadd.f32 %v2826_v21, %v1909_v46  ;;  %v3873_v59 = vpop.f32.mrf.mxu3  ;;  %v1911_v37 = vpop.f32.mrf.mxu1 }
 0x439   : > { %v1912_v51 = vadd.f32 %v1911_v37, %v16160_v22  ;;  %v16162_v37 = vld [vmem:[#allocation66_spill] sm:$0xff] }
 0x43a   : > { %v4089_v20 = vadd.f32 %v3873_v59, %v3042_v30  ;;  %v2142_v59 = vld [vmem:[%s11783_s29 + $0x3fa] sm:$0xff] }
 0x43b   : > { %v4922_v9 = vpop.f32.mrf.mxu0  ;;  %9952 = vmatmul.msk.f32.gmra.mxu1 %vm462_vm1, %v13599_v25 }
 0x43c   : > { %v13658_v5 = vadd.f32 %v4919_v3, %v4089_v20  ;;  %10082 = vmatmul.msk.f32.gmra.mxu2 %vm462_vm1, %v2141_v26  ;;  %v13669_v20 = vld [vmem:[%s11783_s29 + $0x420] sm:$0xff] }
 0x43d   : > { %10340 = vmatmul.msk.f32.gmra.mxu3 %vm462_vm1, %v13655_v33  ;;  %v10469_v26 = vld [vmem:[%s11783_s29 + $0x421] sm:$0xff] }
 0x43e   : > { %16159 = vst [vmem:[#allocation33_spill] sm:$0xff] %v13658_v5  ;;  %10598 = vmatmul.msk.f32.gmra.mxu0 %vm462_vm1, %v10468_v28 }
 0x43f   : > { %v2829_v54 = vpop.f32.mrf.mxu2 }
 0x440   : > { %v3043_v46 = vadd.f32 %v2829_v54, %v1912_v51  ;;  %v3876_v21 = vpop.f32.mrf.mxu3  ;;  %v1914_v30 = vpop.f32.mrf.mxu1 }
 0x441   : > { %v1915_v28 = vadd.f32 %v1914_v30, %v16162_v37  ;;  %v16164_v30 = vld [vmem:[#allocation69_spill] sm:$0xff] }
 0x442   : > { %v4090_v3 = vadd.f32 %v3876_v21, %v3043_v46  ;;  %v2143_v21 = vld [vmem:[%s11783_s29 + $0x402] sm:$0xff] }
 0x443   : > { %v4925_v25 = vpop.f32.mrf.mxu0  ;;  %9953 = vmatmul.msk.f32.gmra.mxu1 %vm462_vm1, %v13613_v44 }
 0x444   : > { %v13672_v5 = vadd.f32 %v4922_v9, %v4090_v3  ;;  %10083 = vmatmul.msk.f32.gmra.mxu2 %vm462_vm1, %v2142_v59  ;;  %v13683_v3 = vld [vmem:[%s11783_s29 + $0x428] sm:$0xff] }
 0x445   : > { %10341 = vmatmul.msk.f32.gmra.mxu3 %vm462_vm1, %v13669_v20  ;;  %v10470_v59 = vld [vmem:[%s11783_s29 + $0x429] sm:$0xff] }
 0x446   : > { %16161 = vst [vmem:[#allocation36_spill] sm:$0xff] %v13672_v5  ;;  %10599 = vmatmul.msk.f32.gmra.mxu0 %vm462_vm1, %v10469_v26 }
 0x447   : > { %v2832_v22 = vpop.f32.mrf.mxu2 }
 0x448   : > { %v3044_v51 = vadd.f32 %v2832_v22, %v1915_v28  ;;  %v3879_v54 = vpop.f32.mrf.mxu3  ;;  %v1917_v46 = vpop.f32.mrf.mxu1 }
 0x449   : > { %v1918_v26 = vadd.f32 %v1917_v46, %v16164_v30  ;;  %v16166_v46 = vld [vmem:[#allocation72_spill] sm:$0xff] }
 0x44a   : > { %v4091_v9 = vadd.f32 %v3879_v54, %v3044_v51  ;;  %v2144_v54 = vld [vmem:[%s11783_s29 + $0x412] sm:$0xff] }
 0x44b   : > { %v4928_v44 = vpop.f32.mrf.mxu0  ;;  %9954 = vmatmul.msk.f32.gmra.mxu1 %vm462_vm1, %v13627_v55 }
 0x44c   : > { %v13686_v5 = vadd.f32 %v4925_v25, %v4091_v9  ;;  %10084 = vmatmul.msk.f32.gmra.mxu2 %vm462_vm1, %v2143_v21  ;;  %v13697_v9 = vld [vmem:[%s11783_s29 + $0x438] sm:$0xff] }
 0x44d   : > { %10342 = vmatmul.msk.f32.gmra.mxu3 %vm462_vm1, %v13683_v3  ;;  %v10471_v21 = vld [vmem:[%s11783_s29 + $0x439] sm:$0xff] }
 0x44e   : > { %16163 = vst [vmem:[#allocation39_spill] sm:$0xff] %v13686_v5  ;;  %10600 = vmatmul.msk.f32.gmra.mxu0 %vm462_vm1, %v10470_v59 }
 0x44f   : > { %v2835_v37 = vpop.f32.mrf.mxu2 }
 0x450   : > { %v3045_v28 = vadd.f32 %v2835_v37, %v1918_v26  ;;  %v3882_v22 = vpop.f32.mrf.mxu3  ;;  %v1920_v51 = vpop.f32.mrf.mxu1 }
 0x451   : > { %v1921_v59 = vadd.f32 %v1920_v51, %v16166_v46  ;;  %v16168_v51 = vld [vmem:[#allocation75_spill] sm:$0xff] }
 0x452   : > { %v4092_v25 = vadd.f32 %v3882_v22, %v3045_v28  ;;  %v2145_v22 = vld [vmem:[%s11783_s29 + $0x41a] sm:$0xff] }
 0x453   : > { %v4931_v55 = vpop.f32.mrf.mxu0  ;;  %9955 = vmatmul.msk.f32.gmra.mxu1 %vm462_vm1, %v13641_v62 }
 0x454   : > { %v13700_v5 = vadd.f32 %v4928_v44, %v4092_v25  ;;  %10085 = vmatmul.msk.f32.gmra.mxu2 %vm462_vm1, %v2144_v54  ;;  %v13711_v25 = vld [vmem:[%s11783_s29 + $0x440] sm:$0xff] }
 0x455   : > { %10343 = vmatmul.msk.f32.gmra.mxu3 %vm462_vm1, %v13697_v9  ;;  %v10472_v54 = vld [vmem:[%s11783_s29 + $0x441] sm:$0xff] }
 0x456   : > { %16165 = vst [vmem:[#allocation42_spill] sm:$0xff] %v13700_v5  ;;  %10601 = vmatmul.msk.f32.gmra.mxu0 %vm462_vm1, %v10471_v21 }
 0x457   : > { %v2838_v30 = vpop.f32.mrf.mxu2 }
 0x458   : > { %v3046_v26 = vadd.f32 %v2838_v30, %v1921_v59  ;;  %v3885_v37 = vpop.f32.mrf.mxu3  ;;  %v1923_v28 = vpop.f32.mrf.mxu1 }
 0x459   : > { %v1924_v21 = vadd.f32 %v1923_v28, %v16168_v51  ;;  %v16170_v28 = vld [vmem:[#allocation78_spill] sm:$0xff] }
 0x45a   : > { %v4093_v44 = vadd.f32 %v3885_v37, %v3046_v26  ;;  %v2146_v37 = vld [vmem:[%s11783_s29 + $0x422] sm:$0xff] }
 0x45b   : > { %v4934_v62 = vpop.f32.mrf.mxu0  ;;  %9956 = vmatmul.msk.f32.gmra.mxu1 %vm462_vm1, %v13655_v33 }
 0x45c   : > { %v13714_v5 = vadd.f32 %v4931_v55, %v4093_v44  ;;  %10086 = vmatmul.msk.f32.gmra.mxu2 %vm462_vm1, %v2145_v22  ;;  %v13725_v44 = vld [vmem:[%s11783_s29 + $0x448] sm:$0xff] }
 0x45d   : > { %10344 = vmatmul.msk.f32.gmra.mxu3 %vm462_vm1, %v13711_v25  ;;  %v10473_v22 = vld [vmem:[%s11783_s29 + $0x449] sm:$0xff] }
 0x45e   : > { %16167 = vst [vmem:[#allocation45_spill] sm:$0xff] %v13714_v5  ;;  %10602 = vmatmul.msk.f32.gmra.mxu0 %vm462_vm1, %v10472_v54 }
 0x45f   : > { %v2841_v46 = vpop.f32.mrf.mxu2 }
 0x460   : > { %v3047_v59 = vadd.f32 %v2841_v46, %v1924_v21  ;;  %v3888_v30 = vpop.f32.mrf.mxu3  ;;  %v1926_v26 = vpop.f32.mrf.mxu1 }
 0x461   : > { %v1927_v54 = vadd.f32 %v1926_v26, %v16170_v28  ;;  %v16172_v26 = vld [vmem:[#allocation81_spill] sm:$0xff] }
 0x462   : > { %v4094_v55 = vadd.f32 %v3888_v30, %v3047_v59  ;;  %v2147_v30 = vld [vmem:[%s11783_s29 + $0x42a] sm:$0xff] }
 0x463   : > { %v4937_v33 = vpop.f32.mrf.mxu0  ;;  %9957 = vmatmul.msk.f32.gmra.mxu1 %vm462_vm1, %v13669_v20 }
 0x464   : > { %v13728_v5 = vadd.f32 %v4934_v62, %v4094_v55  ;;  %10087 = vmatmul.msk.f32.gmra.mxu2 %vm462_vm1, %v2146_v37  ;;  %v13739_v55 = vld [vmem:[%s11783_s29 + $0x450] sm:$0xff] }
 0x465   : > { %10345 = vmatmul.msk.f32.gmra.mxu3 %vm462_vm1, %v13725_v44  ;;  %v10474_v37 = vld [vmem:[%s11783_s29 + $0x451] sm:$0xff] }
 0x466   : > { %16169 = vst [vmem:[#allocation48_spill] sm:$0xff] %v13728_v5  ;;  %10603 = vmatmul.msk.f32.gmra.mxu0 %vm462_vm1, %v10473_v22 }
 0x467   : > { %v2844_v51 = vpop.f32.mrf.mxu2 }
 0x468   : > { %v3048_v21 = vadd.f32 %v2844_v51, %v1927_v54  ;;  %v3891_v46 = vpop.f32.mrf.mxu3  ;;  %v1929_v59 = vpop.f32.mrf.mxu1 }
 0x469   : > { %v1930_v22 = vadd.f32 %v1929_v59, %v16172_v26  ;;  %v16174_v59 = vld [vmem:[#allocation84_spill] sm:$0xff] }
 0x46a   : > { %v4095_v62 = vadd.f32 %v3891_v46, %v3048_v21  ;;  %v2148_v46 = vld [vmem:[%s11783_s29 + $0x43a] sm:$0xff] }
 0x46b   : > { %v4940_v20 = vpop.f32.mrf.mxu0  ;;  %9958 = vmatmul.msk.f32.gmra.mxu1 %vm462_vm1, %v13683_v3 }
 0x46c   : > { %v13742_v5 = vadd.f32 %v4937_v33, %v4095_v62  ;;  %10088 = vmatmul.msk.f32.gmra.mxu2 %vm462_vm1, %v2147_v30  ;;  %v13753_v62 = vld [vmem:[%s11783_s29 + $0x460] sm:$0xff] }
 0x46d   : > { %10346 = vmatmul.msk.f32.gmra.mxu3 %vm462_vm1, %v13739_v55  ;;  %v10475_v30 = vld [vmem:[%s11783_s29 + $0x461] sm:$0xff] }
 0x46e   : > { %16171 = vst [vmem:[#allocation51_spill] sm:$0xff] %v13742_v5  ;;  %10604 = vmatmul.msk.f32.gmra.mxu0 %vm462_vm1, %v10474_v37 }
 0x46f   : > { %v2847_v28 = vpop.f32.mrf.mxu2 }
 0x470   : > { %v3049_v54 = vadd.f32 %v2847_v28, %v1930_v22  ;;  %v3894_v51 = vpop.f32.mrf.mxu3  ;;  %v1932_v21 = vpop.f32.mrf.mxu1 }
 0x471   : > { %v1933_v37 = vadd.f32 %v1932_v21, %v16174_v59  ;;  %v16176_v21 = vld [vmem:[#allocation87_spill] sm:$0xff] }
 0x472   : > { %v4096_v33 = vadd.f32 %v3894_v51, %v3049_v54  ;;  %v2149_v51 = vld [vmem:[%s11783_s29 + $0x442] sm:$0xff] }
 0x473   : > { %v4943_v3 = vpop.f32.mrf.mxu0  ;;  %9959 = vmatmul.msk.f32.gmra.mxu1 %vm462_vm1, %v13697_v9 }
 0x474   : > { %v13756_v5 = vadd.f32 %v4940_v20, %v4096_v33  ;;  %10089 = vmatmul.msk.f32.gmra.mxu2 %vm462_vm1, %v2148_v46  ;;  %v13767_v33 = vld [vmem:[%s11783_s29 + $0x468] sm:$0xff] }
 0x475   : > { %10347 = vmatmul.msk.f32.gmra.mxu3 %vm462_vm1, %v13753_v62  ;;  %v10476_v46 = vld [vmem:[%s11783_s29 + $0x469] sm:$0xff] }
 0x476   : > { %16173 = vst [vmem:[#allocation54_spill] sm:$0xff] %v13756_v5  ;;  %10605 = vmatmul.msk.f32.gmra.mxu0 %vm462_vm1, %v10475_v30 }
 0x477   : > { %v2850_v26 = vpop.f32.mrf.mxu2 }
 0x478   : > { %v3050_v22 = vadd.f32 %v2850_v26, %v1933_v37  ;;  %v3897_v28 = vpop.f32.mrf.mxu3  ;;  %v1935_v54 = vpop.f32.mrf.mxu1 }
 0x479   : > { %v1936_v30 = vadd.f32 %v1935_v54, %v16176_v21  ;;  %v16178_v54 = vld [vmem:[#allocation90_spill] sm:$0xff] }
 0x47a   : > { %v4097_v20 = vadd.f32 %v3897_v28, %v3050_v22  ;;  %v2150_v28 = vld [vmem:[%s11783_s29 + $0x44a] sm:$0xff] }
 0x47b   : > { %v4946_v9 = vpop.f32.mrf.mxu0  ;;  %9960 = vmatmul.msk.f32.gmra.mxu1 %vm462_vm1, %v13711_v25 }
 0x47c   : > { %v13770_v5 = vadd.f32 %v4943_v3, %v4097_v20  ;;  %10090 = vmatmul.msk.f32.gmra.mxu2 %vm462_vm1, %v2149_v51  ;;  %v13781_v20 = vld [vmem:[%s11783_s29 + $0x470] sm:$0xff] }
 0x47d   : > { %10348 = vmatmul.msk.f32.gmra.mxu3 %vm462_vm1, %v13767_v33  ;;  %v10477_v51 = vld [vmem:[%s11783_s29 + $0x471] sm:$0xff] }
 0x47e   : > { %16175 = vst [vmem:[#allocation57_spill] sm:$0xff] %v13770_v5  ;;  %10606 = vmatmul.msk.f32.gmra.mxu0 %vm462_vm1, %v10476_v46 }
 0x47f   : > { %v2853_v59 = vpop.f32.mrf.mxu2 }
 0x480   : > { %v3051_v37 = vadd.f32 %v2853_v59, %v1936_v30  ;;  %v3900_v26 = vpop.f32.mrf.mxu3  ;;  %v1938_v22 = vpop.f32.mrf.mxu1 }
 0x481   : > { %v1939_v46 = vadd.f32 %v1938_v22, %v16178_v54  ;;  %v16180_v22 = vld [vmem:[#allocation93_spill] sm:$0xff] }
 0x482   : > { %v4098_v3 = vadd.f32 %v3900_v26, %v3051_v37  ;;  %v2151_v26 = vld [vmem:[%s11783_s29 + $0x452] sm:$0xff] }
 0x483   : > { %v4949_v25 = vpop.f32.mrf.mxu0  ;;  %9961 = vmatmul.msk.f32.gmra.mxu1 %vm462_vm1, %v13725_v44 }
 0x484   : > { %v13784_v5 = vadd.f32 %v4946_v9, %v4098_v3  ;;  %10091 = vmatmul.msk.f32.gmra.mxu2 %vm462_vm1, %v2150_v28  ;;  %v13795_v3 = vld [vmem:[%s11783_s29 + $0x478] sm:$0xff] }
 0x485   : > { %10349 = vmatmul.msk.f32.gmra.mxu3 %vm462_vm1, %v13781_v20  ;;  %v10478_v28 = vld [vmem:[%s11783_s29 + $0x479] sm:$0xff] }
 0x486   : > { %16177 = vst [vmem:[#allocation60_spill] sm:$0xff] %v13784_v5  ;;  %10607 = vmatmul.msk.f32.gmra.mxu0 %vm462_vm1, %v10477_v51 }
 0x487   : > { %v2856_v21 = vpop.f32.mrf.mxu2 }
 0x488   : > { %v3052_v30 = vadd.f32 %v2856_v21, %v1939_v46  ;;  %v3903_v59 = vpop.f32.mrf.mxu3  ;;  %v1941_v37 = vpop.f32.mrf.mxu1 }
 0x489   : > { %v1942_v51 = vadd.f32 %v1941_v37, %v16180_v22  ;;  %v16182_v37 = vld [vmem:[#allocation3_spill] sm:$0xff] }
 0x48a   : > { %v4099_v9 = vadd.f32 %v3903_v59, %v3052_v30  ;;  %v2152_v59 = vld [vmem:[%s11783_s29 + $0x462] sm:$0xff] }
 0x48b   : > { %v4952_v44 = vpop.f32.mrf.mxu0  ;;  %9962 = vmatmul.msk.f32.gmra.mxu1 %vm462_vm1, %v13739_v55 }
 0x48c   : > { %v13798_v5 = vadd.f32 %v4949_v25, %v4099_v9  ;;  %10092 = vmatmul.msk.f32.gmra.mxu2 %vm462_vm1, %v2151_v26  ;;  %v13809_v9 = vld [vmem:[%s11783_s29 + $0x488] sm:$0xff] }
 0x48d   : > { %10350 = vmatmul.msk.f32.gmra.mxu3 %vm462_vm1, %v13795_v3  ;;  %v10479_v26 = vld [vmem:[%s11783_s29 + $0x489] sm:$0xff] }
 0x48e   : > { %16179 = vst [vmem:[#allocation63_spill] sm:$0xff] %v13798_v5  ;;  %10608 = vmatmul.msk.f32.gmra.mxu0 %vm462_vm1, %v10478_v28 }
 0x48f   : > { %v2859_v54 = vpop.f32.mrf.mxu2 }
 0x490   : > { %v3053_v46 = vadd.f32 %v2859_v54, %v1942_v51  ;;  %v3906_v21 = vpop.f32.mrf.mxu3  ;;  %v1944_v30 = vpop.f32.mrf.mxu1 }
 0x491   : > { %v1945_v28 = vadd.f32 %v1944_v30, %v16182_v37  ;;  %v16184_v30 = vld [vmem:[#allocation5_spill] sm:$0xff] }
 0x492   : > { %v4100_v25 = vadd.f32 %v3906_v21, %v3053_v46  ;;  %v2153_v21 = vld [vmem:[%s11783_s29 + $0x46a] sm:$0xff] }
 0x493   : > { %v4955_v55 = vpop.f32.mrf.mxu0  ;;  %9963 = vmatmul.msk.f32.gmra.mxu1 %vm462_vm1, %v13753_v62 }
 0x494   : > { %v13812_v5 = vadd.f32 %v4952_v44, %v4100_v25  ;;  %10093 = vmatmul.msk.f32.gmra.mxu2 %vm462_vm1, %v2152_v59  ;;  %v13823_v25 = vld [vmem:[%s11783_s29 + $0x490] sm:$0xff] }
 0x495   : > { %10351 = vmatmul.msk.f32.gmra.mxu3 %vm462_vm1, %v13809_v9  ;;  %v10480_v59 = vld [vmem:[%s11783_s29 + $0x491] sm:$0xff] }
 0x496   : > { %16181 = vst [vmem:[#allocation66_spill] sm:$0xff] %v13812_v5  ;;  %10609 = vmatmul.msk.f32.gmra.mxu0 %vm462_vm1, %v10479_v26 }
 0x497   : > { %v2862_v22 = vpop.f32.mrf.mxu2 }
 0x498   : > { %v3054_v51 = vadd.f32 %v2862_v22, %v1945_v28  ;;  %v3909_v54 = vpop.f32.mrf.mxu3  ;;  %v1947_v46 = vpop.f32.mrf.mxu1 }
 0x499   : > { %v1948_v26 = vadd.f32 %v1947_v46, %v16184_v30  ;;  %v16186_v46 = vld [vmem:[#allocation7_spill] sm:$0xff] }
 0x49a   : > { %v4101_v44 = vadd.f32 %v3909_v54, %v3054_v51  ;;  %v2154_v54 = vld [vmem:[%s11783_s29 + $0x472] sm:$0xff] }
 0x49b   : > { %v4958_v62 = vpop.f32.mrf.mxu0  ;;  %9964 = vmatmul.msk.f32.gmra.mxu1 %vm462_vm1, %v13767_v33 }
 0x49c   : > { %v13826_v5 = vadd.f32 %v4955_v55, %v4101_v44  ;;  %10094 = vmatmul.msk.f32.gmra.mxu2 %vm462_vm1, %v2153_v21  ;;  %v13837_v44 = vld [vmem:[%s11783_s29 + $0x498] sm:$0xff] }
 0x49d   : > { %10352 = vmatmul.msk.f32.gmra.mxu3 %vm462_vm1, %v13823_v25  ;;  %v10481_v21 = vld [vmem:[%s11783_s29 + $0x499] sm:$0xff] }
 0x49e   : > { %16183 = vst [vmem:[#allocation69_spill] sm:$0xff] %v13826_v5  ;;  %10610 = vmatmul.msk.f32.gmra.mxu0 %vm462_vm1, %v10480_v59 }
 0x49f   : > { %v2865_v37 = vpop.f32.mrf.mxu2 }
 0x4a0   : > { %v3055_v28 = vadd.f32 %v2865_v37, %v1948_v26  ;;  %v3912_v22 = vpop.f32.mrf.mxu3  ;;  %v1950_v51 = vpop.f32.mrf.mxu1 }
 0x4a1   : > { %v1951_v59 = vadd.f32 %v1950_v51, %v16186_v46  ;;  %v16188_v51 = vld [vmem:[#allocation10_spill] sm:$0xff] }
 0x4a2   : > { %v4102_v55 = vadd.f32 %v3912_v22, %v3055_v28  ;;  %v2155_v22 = vld [vmem:[%s11783_s29 + $0x47a] sm:$0xff] }
 0x4a3   : > { %v4961_v33 = vpop.f32.mrf.mxu0  ;;  %9965 = vmatmul.msk.f32.gmra.mxu1 %vm462_vm1, %v13781_v20 }
 0x4a4   : > { %v13840_v5 = vadd.f32 %v4958_v62, %v4102_v55  ;;  %10095 = vmatmul.msk.f32.gmra.mxu2 %vm462_vm1, %v2154_v54  ;;  %v13851_v55 = vld [vmem:[%s11783_s29 + $0x4a0] sm:$0xff] }
 0x4a5   : > { %10353 = vmatmul.msk.f32.gmra.mxu3 %vm462_vm1, %v13837_v44  ;;  %v10482_v54 = vld [vmem:[%s11783_s29 + $0x4a1] sm:$0xff] }
 0x4a6   : > { %16185 = vst [vmem:[#allocation72_spill] sm:$0xff] %v13840_v5  ;;  %10611 = vmatmul.msk.f32.gmra.mxu0 %vm462_vm1, %v10481_v21 }
 0x4a7   : > { %v2868_v30 = vpop.f32.mrf.mxu2 }
 0x4a8   : > { %v3056_v26 = vadd.f32 %v2868_v30, %v1951_v59  ;;  %v3915_v37 = vpop.f32.mrf.mxu3  ;;  %v1953_v28 = vpop.f32.mrf.mxu1 }
 0x4a9   : > { %v1954_v21 = vadd.f32 %v1953_v28, %v16188_v51  ;;  %v16190_v28 = vld [vmem:[#allocation13_spill] sm:$0xff] }
 0x4aa   : > { %v4103_v62 = vadd.f32 %v3915_v37, %v3056_v26  ;;  %v2156_v37 = vld [vmem:[%s11783_s29 + $0x48a] sm:$0xff] }
 0x4ab   : > { %v4964_v20 = vpop.f32.mrf.mxu0  ;;  %9966 = vmatmul.msk.f32.gmra.mxu1 %vm462_vm1, %v13795_v3 }
 0x4ac   : > { %v13854_v5 = vadd.f32 %v4961_v33, %v4103_v62  ;;  %10096 = vmatmul.msk.f32.gmra.mxu2 %vm462_vm1, %v2155_v22  ;;  %v13865_v62 = vld [vmem:[%s11783_s29 + $0x4b0] sm:$0xff] }
 0x4ad   : > { %10354 = vmatmul.msk.f32.gmra.mxu3 %vm462_vm1, %v13851_v55  ;;  %v10483_v22 = vld [vmem:[%s11783_s29 + $0x4b1] sm:$0xff] }
 0x4ae   : > { %16187 = vst [vmem:[#allocation75_spill] sm:$0xff] %v13854_v5  ;;  %10612 = vmatmul.msk.f32.gmra.mxu0 %vm462_vm1, %v10482_v54 }
 0x4af   : > { %v2871_v46 = vpop.f32.mrf.mxu2 }
 0x4b0   : > { %v3057_v59 = vadd.f32 %v2871_v46, %v1954_v21  ;;  %v3918_v30 = vpop.f32.mrf.mxu3  ;;  %v1956_v26 = vpop.f32.mrf.mxu1 }
 0x4b1   : > { %v1957_v54 = vadd.f32 %v1956_v26, %v16190_v28  ;;  %v16192_v26 = vld [vmem:[#allocation16_spill] sm:$0xff] }
 0x4b2   : > { %v4104_v33 = vadd.f32 %v3918_v30, %v3057_v59  ;;  %v2157_v30 = vld [vmem:[%s11783_s29 + $0x492] sm:$0xff] }
 0x4b3   : > { %v4967_v3 = vpop.f32.mrf.mxu0  ;;  %9967 = vmatmul.msk.f32.gmra.mxu1 %vm462_vm1, %v13809_v9 }
 0x4b4   : > { %v13868_v5 = vadd.f32 %v4964_v20, %v4104_v33  ;;  %10097 = vmatmul.msk.f32.gmra.mxu2 %vm462_vm1, %v2156_v37  ;;  %v13879_v33 = vld [vmem:[%s11783_s29 + $0x4b8] sm:$0xff] }
 0x4b5   : > { %10355 = vmatmul.msk.f32.gmra.mxu3 %vm462_vm1, %v13865_v62  ;;  %v10484_v37 = vld [vmem:[%s11783_s29 + $0x4b9] sm:$0xff] }
 0x4b6   : > { %16189 = vst [vmem:[#allocation78_spill] sm:$0xff] %v13868_v5  ;;  %10613 = vmatmul.msk.f32.gmra.mxu0 %vm462_vm1, %v10483_v22 }
 0x4b7   : > { %v2874_v51 = vpop.f32.mrf.mxu2 }
 0x4b8   : > { %v3058_v21 = vadd.f32 %v2874_v51, %v1957_v54  ;;  %v3921_v46 = vpop.f32.mrf.mxu3  ;;  %v1959_v59 = vpop.f32.mrf.mxu1 }
 0x4b9   : > { %v1960_v22 = vadd.f32 %v1959_v59, %v16192_v26  ;;  %v16194_v59 = vld [vmem:[#allocation19_spill] sm:$0xff] }
 0x4ba   : > { %v4105_v20 = vadd.f32 %v3921_v46, %v3058_v21  ;;  %v2158_v46 = vld [vmem:[%s11783_s29 + $0x49a] sm:$0xff] }
 0x4bb   : > { %v4970_v9 = vpop.f32.mrf.mxu0  ;;  %9968 = vmatmul.msk.f32.gmra.mxu1 %vm462_vm1, %v13823_v25 }
 0x4bc   : > { %v13882_v5 = vadd.f32 %v4967_v3, %v4105_v20  ;;  %10098 = vmatmul.msk.f32.gmra.mxu2 %vm462_vm1, %v2157_v30  ;;  %v13893_v20 = vld [vmem:[%s11783_s29 + $0x4c0] sm:$0xff] }
 0x4bd   : > { %10356 = vmatmul.msk.f32.gmra.mxu3 %vm462_vm1, %v13879_v33  ;;  %v10485_v30 = vld [vmem:[%s11783_s29 + $0x4c1] sm:$0xff] }
 0x4be   : > { %16191 = vst [vmem:[#allocation81_spill] sm:$0xff] %v13882_v5  ;;  %10614 = vmatmul.msk.f32.gmra.mxu0 %vm462_vm1, %v10484_v37 }
 0x4bf   : > { %v2877_v28 = vpop.f32.mrf.mxu2 }
 0x4c0   : > { %v3059_v54 = vadd.f32 %v2877_v28, %v1960_v22  ;;  %v3924_v51 = vpop.f32.mrf.mxu3  ;;  %v1962_v21 = vpop.f32.mrf.mxu1 }
 0x4c1   : > { %v1963_v37 = vadd.f32 %v1962_v21, %v16194_v59  ;;  %v16196_v21 = vld [vmem:[#allocation22_spill] sm:$0xff] }
 0x4c2   : > { %v4106_v3 = vadd.f32 %v3924_v51, %v3059_v54  ;;  %v2159_v51 = vld [vmem:[%s11783_s29 + $0x4a2] sm:$0xff] }
 0x4c3   : > { %v4973_v25 = vpop.f32.mrf.mxu0  ;;  %9969 = vmatmul.msk.f32.gmra.mxu1 %vm462_vm1, %v13837_v44 }
 0x4c4   : > { %v13896_v5 = vadd.f32 %v4970_v9, %v4106_v3  ;;  %10099 = vmatmul.msk.f32.gmra.mxu2 %vm462_vm1, %v2158_v46  ;;  %v13907_v3 = vld [vmem:[%s11783_s29 + $0x4c8] sm:$0xff] }
 0x4c5   : > { %10357 = vmatmul.msk.f32.gmra.mxu3 %vm462_vm1, %v13893_v20  ;;  %v10486_v46 = vld [vmem:[%s11783_s29 + $0x4c9] sm:$0xff] }
 0x4c6   : > { %16193 = vst [vmem:[#allocation84_spill] sm:$0xff] %v13896_v5  ;;  %10615 = vmatmul.msk.f32.gmra.mxu0 %vm462_vm1, %v10485_v30 }
 0x4c7   : > { %v2880_v26 = vpop.f32.mrf.mxu2 }
 0x4c8   : > { %v3060_v22 = vadd.f32 %v2880_v26, %v1963_v37  ;;  %v3927_v28 = vpop.f32.mrf.mxu3  ;;  %v1965_v54 = vpop.f32.mrf.mxu1 }
 0x4c9   : > { %v1966_v30 = vadd.f32 %v1965_v54, %v16196_v21  ;;  %v16198_v54 = vld [vmem:[#allocation25_spill] sm:$0xff] }
 0x4ca   : > { %v4107_v9 = vadd.f32 %v3927_v28, %v3060_v22  ;;  %v2160_v28 = vld [vmem:[%s11783_s29 + $0x4b2] sm:$0xff] }
 0x4cb   : > { %v4976_v44 = vpop.f32.mrf.mxu0  ;;  %9970 = vmatmul.msk.f32.gmra.mxu1 %vm462_vm1, %v13851_v55 }
 0x4cc   : > { %v13910_v5 = vadd.f32 %v4973_v25, %v4107_v9  ;;  %10100 = vmatmul.msk.f32.gmra.mxu2 %vm462_vm1, %v2159_v51  ;;  %v13921_v9 = vld [vmem:[%s11783_s29 + $0x4d8] sm:$0xff] }
 0x4cd   : > { %10358 = vmatmul.msk.f32.gmra.mxu3 %vm462_vm1, %v13907_v3  ;;  %v10487_v51 = vld [vmem:[%s11783_s29 + $0x4d9] sm:$0xff] }
 0x4ce   : > { %16195 = vst [vmem:[#allocation87_spill] sm:$0xff] %v13910_v5  ;;  %10616 = vmatmul.msk.f32.gmra.mxu0 %vm462_vm1, %v10486_v46 }
 0x4cf   : > { %v2883_v59 = vpop.f32.mrf.mxu2 }
 0x4d0   : > { %v3061_v37 = vadd.f32 %v2883_v59, %v1966_v30  ;;  %v3930_v26 = vpop.f32.mrf.mxu3  ;;  %v1968_v22 = vpop.f32.mrf.mxu1 }
 0x4d1   : > { %v1969_v46 = vadd.f32 %v1968_v22, %v16198_v54  ;;  %v16200_v22 = vld [vmem:[#allocation28_spill] sm:$0xff] }
 0x4d2   : > { %v4108_v25 = vadd.f32 %v3930_v26, %v3061_v37  ;;  %v2161_v26 = vld [vmem:[%s11783_s29 + $0x4ba] sm:$0xff] }
 0x4d3   : > { %v4979_v55 = vpop.f32.mrf.mxu0  ;;  %9971 = vmatmul.msk.f32.gmra.mxu1 %vm462_vm1, %v13865_v62 }
 0x4d4   : > { %v13924_v5 = vadd.f32 %v4976_v44, %v4108_v25  ;;  %10101 = vmatmul.msk.f32.gmra.mxu2 %vm462_vm1, %v2160_v28  ;;  %v13935_v25 = vld [vmem:[%s11783_s29 + $0x4e0] sm:$0xff] }
 0x4d5   : > { %10359 = vmatmul.msk.f32.gmra.mxu3 %vm462_vm1, %v13921_v9  ;;  %v10488_v28 = vld [vmem:[%s11783_s29 + $0x4e1] sm:$0xff] }
 0x4d6   : > { %16197 = vst [vmem:[#allocation90_spill] sm:$0xff] %v13924_v5  ;;  %10617 = vmatmul.msk.f32.gmra.mxu0 %vm462_vm1, %v10487_v51 }
 0x4d7   : > { %v2886_v21 = vpop.f32.mrf.mxu2 }
 0x4d8   : > { %v3062_v30 = vadd.f32 %v2886_v21, %v1969_v46  ;;  %v3933_v59 = vpop.f32.mrf.mxu3  ;;  %v1971_v37 = vpop.f32.mrf.mxu1 }
 0x4d9   : > { %v1972_v51 = vadd.f32 %v1971_v37, %v16200_v22  ;;  %v16202_v37 = vld [vmem:[#allocation31_spill] sm:$0xff] }
 0x4da   : > { %v4109_v44 = vadd.f32 %v3933_v59, %v3062_v30  ;;  %v2162_v59 = vld [vmem:[%s11783_s29 + $0x4c2] sm:$0xff] }
 0x4db   : > { %v4982_v62 = vpop.f32.mrf.mxu0  ;;  %9972 = vmatmul.msk.f32.gmra.mxu1 %vm462_vm1, %v13879_v33 }
 0x4dc   : > { %v13938_v5 = vadd.f32 %v4979_v55, %v4109_v44  ;;  %10102 = vmatmul.msk.f32.gmra.mxu2 %vm462_vm1, %v2161_v26  ;;  %v13949_v44 = vld [vmem:[%s11783_s29 + $0x4e8] sm:$0xff] }
 0x4dd   : > { %10360 = vmatmul.msk.f32.gmra.mxu3 %vm462_vm1, %v13935_v25  ;;  %v10489_v26 = vld [vmem:[%s11783_s29 + $0x4e9] sm:$0xff] }
 0x4de   : > { %16199 = vst [vmem:[#allocation93_spill] sm:$0xff] %v13938_v5  ;;  %10618 = vmatmul.msk.f32.gmra.mxu0 %vm462_vm1, %v10488_v28 }
 0x4df   : > { %v2889_v54 = vpop.f32.mrf.mxu2 }
 0x4e0   : > { %v3063_v46 = vadd.f32 %v2889_v54, %v1972_v51  ;;  %v3936_v21 = vpop.f32.mrf.mxu3  ;;  %v1974_v30 = vpop.f32.mrf.mxu1 }
 0x4e1   : > { %v1975_v28 = vadd.f32 %v1974_v30, %v16202_v37  ;;  %v16204_v30 = vld [vmem:[#allocation34_spill] sm:$0xff] }
 0x4e2   : > { %v4110_v55 = vadd.f32 %v3936_v21, %v3063_v46  ;;  %v2163_v21 = vld [vmem:[%s11783_s29 + $0x4ca] sm:$0xff] }
 0x4e3   : > { %v4985_v33 = vpop.f32.mrf.mxu0  ;;  %9973 = vmatmul.msk.f32.gmra.mxu1 %vm462_vm1, %v13893_v20 }
 0x4e4   : > { %v13952_v5 = vadd.f32 %v4982_v62, %v4110_v55  ;;  %10103 = vmatmul.msk.f32.gmra.mxu2 %vm462_vm1, %v2162_v59  ;;  %v13963_v55 = vld [vmem:[%s11783_s29 + $0x4f0] sm:$0xff] }
 0x4e5   : > { %10361 = vmatmul.msk.f32.gmra.mxu3 %vm462_vm1, %v13949_v44  ;;  %v10490_v59 = vld [vmem:[%s11783_s29 + $0x4f1] sm:$0xff] }
 0x4e6   : > { %16201 = vst [vmem:[#allocation3_spill] sm:$0xff] %v13952_v5  ;;  %10619 = vmatmul.msk.f32.gmra.mxu0 %vm462_vm1, %v10489_v26 }
 0x4e7   : > { %v2892_v22 = vpop.f32.mrf.mxu2 }
 0x4e8   : > { %v3064_v51 = vadd.f32 %v2892_v22, %v1975_v28  ;;  %v3939_v54 = vpop.f32.mrf.mxu3  ;;  %v1977_v46 = vpop.f32.mrf.mxu1 }
 0x4e9   : > { %v1978_v26 = vadd.f32 %v1977_v46, %v16204_v30  ;;  %v16206_v46 = vld [vmem:[#allocation37_spill] sm:$0xff] }
 0x4ea   : > { %v4111_v62 = vadd.f32 %v3939_v54, %v3064_v51  ;;  %v2164_v54 = vld [vmem:[%s11783_s29 + $0x4da] sm:$0xff] }
 0x4eb   : > { %v4988_v20 = vpop.f32.mrf.mxu0  ;;  %9974 = vmatmul.msk.f32.gmra.mxu1 %vm462_vm1, %v13907_v3  ;;  %v10491_v3 = vld [vmem:[%s11783_s29 + $0x501] sm:$0xff] }
 0x4ec   : > { %v13966_v5 = vadd.f32 %v4985_v33, %v4111_v62  ;;  %10104 = vmatmul.msk.f32.gmra.mxu2 %vm462_vm1, %v2163_v21  ;;  %v10233_v62 = vld [vmem:[%s11783_s29 + $0x500] sm:$0xff] }
 0x4ed   : > { %10362 = vmatmul.msk.f32.gmra.mxu3 %vm462_vm1, %v13963_v55 }
 0x4ee   : > { %16203 = vst [vmem:[#allocation5_spill] sm:$0xff] %v13966_v5  ;;  %10620 = vmatmul.msk.f32.gmra.mxu0 %vm462_vm1, %v10490_v59 }
 0x4ef   : > { %v2895_v37 = vpop.f32.mrf.mxu2 }
 0x4f0   : > { %v3065_v28 = vadd.f32 %v2895_v37, %v1978_v26  ;;  %v3942_v22 = vpop.f32.mrf.mxu3  ;;  %v1980_v51 = vpop.f32.mrf.mxu1 }
 0x4f1   : > { %v1981_v59 = vadd.f32 %v1980_v51, %v16206_v46  ;;  %v16208_v51 = vld [vmem:[#allocation40_spill] sm:$0xff] }
 0x4f2   : > { %v4112_v33 = vadd.f32 %v3942_v22, %v3065_v28  ;;  %v2165_v22 = vld [vmem:[%s11783_s29 + $0x4e2] sm:$0xff] }
 0x4f3   : > { %v4991_v5 = vpop.f32.mrf.mxu0  ;;  %9975 = vmatmul.msk.f32.gmra.mxu1 %vm462_vm1, %v13921_v9  ;;  %v10492_v9 = vld [vmem:[%s11783_s29 + $0x509] sm:$0xff] }
 0x4f4   : > { %v13978_v21 = vadd.f32 %v4988_v20, %v4112_v33  ;;  %10105 = vmatmul.msk.f32.gmra.mxu2 %vm462_vm1, %v2164_v54  ;;  %v10234_v20 = vld [vmem:[%s11783_s29 + $0x508] sm:$0xff] }
 0x4f5   : > { %10363 = vmatmul.msk.f32.gmra.mxu3 %vm462_vm1, %v10233_v62 }
 0x4f6   : > { %16205 = vst [vmem:[#allocation7_spill] sm:$0xff] %v13978_v21  ;;  %10621 = vmatmul.msk.f32.gmra.mxu0 %vm462_vm1, %v10491_v3 }
 0x4f7   : > { %v2898_v30 = vpop.f32.mrf.mxu2 }
 0x4f8   : > { %v3066_v26 = vadd.f32 %v2898_v30, %v1981_v59  ;;  %v3945_v37 = vpop.f32.mrf.mxu3  ;;  %v1983_v28 = vpop.f32.mrf.mxu1  ;;  %v2166_v30 = vld [vmem:[%s11783_s29 + $0x4ea] sm:$0xff] }
 0x4f9   : > { %v1984_v54 = vadd.f32 %v1983_v28, %v16208_v51  ;;  %v16210_v28 = vld [vmem:[#allocation43_spill] sm:$0xff] }
 0x4fa   : > { %v4113_v13 = vadd.f32 %v3945_v37, %v3066_v26 }
 0x4fb   : > { %v4994_v33 = vpop.f32.mrf.mxu0  ;;  %9976 = vmatmul.msk.f32.gmra.mxu1 %vm462_vm1, %v13935_v25  ;;  %v10493_v25 = vld [vmem:[%s11783_s29 + $0x511] sm:$0xff] }
 0x4fc   : > { %v13989_v21 = vadd.f32 %v4991_v5, %v4113_v13  ;;  %10106 = vmatmul.msk.f32.gmra.mxu2 %vm462_vm1, %v2165_v22  ;;  %v10235_v13 = vld [vmem:[%s11783_s29 + $0x510] sm:$0xff] }
 0x4fd   : > { %10364 = vmatmul.msk.f32.gmra.mxu3 %vm462_vm1, %v10234_v20 }
 0x4fe   : > { %16207 = vst [vmem:[#allocation10_spill] sm:$0xff] %v13989_v21  ;;  %10622 = vmatmul.msk.f32.gmra.mxu0 %vm462_vm1, %v10492_v9 }
 0x4ff   : > { %v2901_v62 = vpop.f32.mrf.mxu2 }
 0x500   : > { %v3067_v3 = vadd.f32 %v2901_v62, %v1984_v54  ;;  %v3948_v46 = vpop.f32.mrf.mxu3  ;;  %v1986_v59 = vpop.f32.mrf.mxu1  ;;  %v2167_v62 = vld [vmem:[%s11783_s29 + $0x4f2] sm:$0xff] }
 0x501   : > { %v1987_v22 = vadd.f32 %v1986_v59, %v16210_v28  ;;  %v16212_v59 = vld [vmem:[#allocation46_spill] sm:$0xff] }
 0x502   : > { %v4114_v26 = vadd.f32 %v3948_v46, %v3067_v3  ;;  %v10236_v3 = vld [vmem:[%s11783_s29 + $0x518] sm:$0xff] }
 0x503   : > { %v4997_v5 = vpop.f32.mrf.mxu0  ;;  %9977 = vmatmul.msk.f32.gmra.mxu1 %vm462_vm1, %v13949_v44  ;;  %v10494_v44 = vld [vmem:[%s11783_s29 + $0x519] sm:$0xff] }
 0x504   : > { %v14000_v37 = vadd.f32 %v4994_v33, %v4114_v26  ;;  %10107 = vmatmul.msk.f32.gmra.mxu2 %vm462_vm1, %v2166_v30 }
 0x505   : > { %10365 = vmatmul.msk.f32.gmra.mxu3 %vm462_vm1, %v10235_v13 }
 0x506   : > { %16209 = vst [vmem:[#allocation13_spill] sm:$0xff] %v14000_v37  ;;  %10623 = vmatmul.msk.f32.gmra.mxu0 %vm462_vm1, %v10493_v25  ;;  %v10886_v37 = vld [vmem:[%s11783_s29 + $0x68] sm:$0xff] }
 0x507   : > { %v2904_v20 = vpop.f32.mrf.mxu2 }
 0x508   : > { %v3068_v9 = vadd.f32 %v2904_v20, %v1987_v22  ;;  %v3951_v51 = vpop.f32.mrf.mxu3  ;;  %v1989_v54 = vpop.f32.mrf.mxu1  ;;  %v10625_v20 = vld [vmem:[%s11783_s29 + $0x2a] sm:$0xff] }
 0x509   : > { %v1990_v26 = vadd.f32 %v1989_v54, %v16212_v59  ;;  %v16214_v54 = vld [vmem:[#allocation49_spill] sm:$0xff] }
 0x50a   : > { %v4115_v33 = vadd.f32 %v3951_v51, %v3068_v9  ;;  %v10883_v9 = vld [vmem:[%s11783_s29 + $0x50] sm:$0xff] }
 0x50b   : > { %v5000_v46 = vpop.f32.mrf.mxu0  ;;  %9978 = vmatmul.msk.f32.gmra.mxu1 %vm462_vm1, %v13963_v55  ;;  %v11141_v51 = vld [vmem:[%s11783_s29 + $0x51] sm:$0xff] }
 0x50c   : > { %v14011_v30 = vadd.f32 %v4997_v5, %v4115_v33  ;;  %10108 = vmatmul.msk.f32.gmra.mxu2 %vm462_vm1, %v2167_v62  ;;  %v14023_v33 = vld [vmem:[%s11783_s29 + $0x52] sm:$0xff] }
 0x50d   : > { %10366 = vmatmul.msk.f32.gmra.mxu3 %vm462_vm1, %v10236_v3 }
 0x50e   : > { %16211 = vst [vmem:[#allocation16_spill] sm:$0xff] %v14011_v30  ;;  %10624 = vmatmul.msk.f32.gmra.mxu0 %vm462_vm1, %v10494_v44  ;;  %v10885_v30 = vld [vmem:[%s11783_s29 + $0x60] sm:$0xff] }
 0x50f   : > { %v2907_v13 = vpop.f32.mrf.mxu2 }
 0x510   : > { %v3069_v25 = vadd.f32 %v2907_v13, %v1990_v26  ;;  %v3954_v28 = vpop.f32.mrf.mxu3  ;;  %v1992_v22 = vpop.f32.mrf.mxu1 }
 0x511   : > { %v1993_v3 = vadd.f32 %v1992_v22, %v16214_v54  ;;  %v16216_v22 = vld [vmem:[#allocation52_spill] sm:$0xff] }
 0x512   : > { %v4116_v5 = vadd.f32 %v3954_v28, %v3069_v25  ;;  %v10626_v25 = vld [vmem:[%s11783_s29 + $0x32] sm:$0xff] }
 0x513   : > { %v5003_v55 = vpop.f32.mrf.mxu0  ;;  %10755 = vmatmul.msk.f32.vlgmr.msra.gmra.mxu1 %vm462_vm1, %v10625_v20  ;;  %v10884_v28 = vld [vmem:[%s11783_s29 + $0x58] sm:$0xff] }
 0x514   : > { %v14025_v62 = vadd.f32 %v5000_v46, %v4116_v5  ;;  %11013 = vmatmul.msk.f32.vlgmr.msra.gmra.mxu2 %vm462_vm1, %v10883_v9  ;;  %v11142_v5 = vld [vmem:[%s11783_s29 + $0x59] sm:$0xff] }
 0x515   : > { %11271 = vmatmul.msk.f32.vlgmr.msra.gmra.mxu3 %vm462_vm1, %v11141_v51  ;;  %v14037_v9 = vld [vmem:[%s11783_s29 + $0x5a] sm:$0xff] }
 0x516   : > { %16213 = vst [vmem:[#allocation19_spill] sm:$0xff] %v14025_v62  ;;  %11529 = vmatmul.msk.f32.vlgmr.msra.gmra.mxu0 %vm462_vm1, %v14023_v33  ;;  %v10627_v62 = vld [vmem:[%s11783_s29 + $0x3a] sm:$0xff] }
 0x517   : > { %v2910_v44 = vpop.f32.mrf.mxu2 }
 0x518   : > { %v3070_v59 = vadd.f32 %v2910_v44, %v1993_v3  ;;  %v3957_v26 = vpop.f32.mrf.mxu3  ;;  %v1995_v13 = vpop.f32.mrf.mxu1 }
 0x519   : > { %v1996_v54 = vadd.f32 %v1995_v13, %v16216_v22  ;;  %v16218_v13 = vld [vmem:[#allocation55_spill] sm:$0xff] }
 0x51a   : > { %v4117_v46 = vadd.f32 %v3957_v26, %v3070_v59 }
 0x51b   : > { %v5006_v20 = vpop.f32.mrf.mxu0  ;;  %10756 = vmatmul.msk.f32.gmra.mxu1 %vm462_vm1, %v10626_v25 }
 0x51c   : > { %v14039_v51 = vadd.f32 %v5003_v55, %v4117_v46  ;;  %11014 = vmatmul.msk.f32.gmra.mxu2 %vm462_vm1, %v10884_v28  ;;  %v11143_v46 = vld [vmem:[%s11783_s29 + $0x61] sm:$0xff] }
 0x51d   : > { %11272 = vmatmul.msk.f32.gmra.mxu3 %vm462_vm1, %v11142_v5  ;;  %v14051_v28 = vld [vmem:[%s11783_s29 + $0x62] sm:$0xff] }
 0x51e   : > { %16215 = vst [vmem:[#allocation22_spill] sm:$0xff] %v14039_v51  ;;  %11530 = vmatmul.msk.f32.gmra.mxu0 %vm462_vm1, %v14037_v9  ;;  %v10628_v51 = vld [vmem:[%s11783_s29 + $0x42] sm:$0xff] }
 0x51f   : > { %v2913_v3 = vpop.f32.mrf.mxu2 }
 0x520   : > { %v3071_v44 = vadd.f32 %v2913_v3, %v1996_v54  ;;  %v3960_v59 = vpop.f32.mrf.mxu3  ;;  %v1998_v26 = vpop.f32.mrf.mxu1 }
 0x521   : > { %v1999_v22 = vadd.f32 %v1998_v26, %v16218_v13  ;;  %v16220_v26 = vld [vmem:[#allocation58_spill] sm:$0xff] }
 0x522   : > { %v4118_v55 = vadd.f32 %v3960_v59, %v3071_v44 }
 0x523   : > { %v5009_v25 = vpop.f32.mrf.mxu0  ;;  %10757 = vmatmul.msk.f32.gmra.mxu1 %vm462_vm1, %v10627_v62 }
 0x524   : > { %v14053_v5 = vadd.f32 %v5006_v20, %v4118_v55  ;;  %11015 = vmatmul.msk.f32.gmra.mxu2 %vm462_vm1, %v10885_v30  ;;  %v11144_v55 = vld [vmem:[%s11783_s29 + $0x69] sm:$0xff] }
 0x525   : > { %11273 = vmatmul.msk.f32.gmra.mxu3 %vm462_vm1, %v11143_v46  ;;  %v11402_v30 = vld [vmem:[%s11783_s29 + $0x6a] sm:$0xff] }
 0x526   : > { %16217 = vst [vmem:[#allocation25_spill] sm:$0xff] %v14053_v5  ;;  %11531 = vmatmul.msk.f32.gmra.mxu0 %vm462_vm1, %v14051_v28 }
 0x527   : > { %v2916_v54 = vpop.f32.mrf.mxu2 }
 0x528   : > { %v3072_v3 = vadd.f32 %v2916_v54, %v1999_v22  ;;  %v3963_v44 = vpop.f32.mrf.mxu3  ;;  %v2001_v59 = vpop.f32.mrf.mxu1 }
 0x529   : > { %v2002_v46 = vadd.f32 %v2001_v59, %v16220_v26 }
 0x52a   : > { %v4119_v20 = vadd.f32 %v3963_v44, %v3072_v3  ;;  %v10887_v44 = vld [vmem:[%s11783_s29 + $0x78] sm:$0xff] }
 0x52b   : > { %v5012_v62 = vpop.f32.mrf.mxu0  ;;  %10758 = vmatmul.msk.f32.gmra.mxu1 %vm462_vm1, %v10628_v51  ;;  %v11403_v51 = vld [vmem:[%s11783_s29 + $0x7a] sm:$0xff] }
 0x52c   : > { %v14065_v5 = vadd.f32 %v5009_v25, %v4119_v20  ;;  %11016 = vmatmul.msk.f32.gmra.mxu2 %vm462_vm1, %v10886_v37  ;;  %v11145_v25 = vld [vmem:[%s11783_s29 + $0x79] sm:$0xff] }
 0x52d   : > { %11274 = vmatmul.msk.f32.gmra.mxu3 %vm462_vm1, %v11144_v55  ;;  %v16222_v37 = vld [vmem:[#allocation61_spill] sm:$0xff] }
 0x52e   : > { %16219 = vst [vmem:[#allocation28_spill] sm:$0xff] %v14065_v5  ;;  %11532 = vmatmul.msk.f32.gmra.mxu0 %vm462_vm1, %v11402_v30 }
 0x52f   : > { %v2919_v13 = vpop.f32.mrf.mxu2 }
 0x530   : > { %v3073_v22 = vadd.f32 %v2919_v13, %v2002_v46  ;;  %v3966_v54 = vpop.f32.mrf.mxu3  ;;  %v2004_v3 = vpop.f32.mrf.mxu1 }
 0x531   : > { %v2005_v59 = vadd.f32 %v2004_v3, %v16222_v37  ;;  %v16224_v3 = vld [vmem:[#allocation64_spill] sm:$0xff] }
 0x532   : > { %v4120_v21 = vadd.f32 %v3966_v54, %v3073_v22  ;;  %v10888_v22 = vld [vmem:[%s11783_s29 + $0x80] sm:$0xff] }
 0x533   : > { %v5015_v20 = vpop.f32.mrf.mxu0  ;;  %10759 = vmatmul.msk.f32.gmra.mxu1 %vm462_vm1, %v14023_v33  ;;  %v11404_v33 = vld [vmem:[%s11783_s29 + $0x82] sm:$0xff] }
 0x534   : > { %v14075_v5 = vadd.f32 %v5012_v62, %v4120_v21  ;;  %11017 = vmatmul.msk.f32.gmra.mxu2 %vm462_vm1, %v10887_v44  ;;  %v11146_v21 = vld [vmem:[%s11783_s29 + $0x81] sm:$0xff] }
 0x535   : > { %11275 = vmatmul.msk.f32.gmra.mxu3 %vm462_vm1, %v11145_v25 }
 0x536   : > { %16221 = vst [vmem:[#allocation31_spill] sm:$0xff] %v14075_v5  ;;  %11533 = vmatmul.msk.f32.gmra.mxu0 %vm462_vm1, %v11403_v51 }
 0x537   : > { %v2922_v55 = vpop.f32.mrf.mxu2 }
 0x538   : > { %v3074_v26 = vadd.f32 %v2922_v55, %v2005_v59  ;;  %v3969_v46 = vpop.f32.mrf.mxu3  ;;  %v2007_v13 = vpop.f32.mrf.mxu1 }
 0x539   : > { %v2008_v44 = vadd.f32 %v2007_v13, %v16224_v3  ;;  %v16226_v13 = vld [vmem:[#allocation67_spill] sm:$0xff] }
 0x53a   : > { %v4121_v54 = vadd.f32 %v3969_v46, %v3074_v26  ;;  %v10889_v26 = vld [vmem:[%s11783_s29 + $0x88] sm:$0xff] }
 0x53b   : > { %v5018_v62 = vpop.f32.mrf.mxu0  ;;  %10760 = vmatmul.msk.f32.gmra.mxu1 %vm462_vm1, %v14037_v9  ;;  %v11405_v9 = vld [vmem:[%s11783_s29 + $0x8a] sm:$0xff] }
 0x53c   : > { %v14086_v5 = vadd.f32 %v5015_v20, %v4121_v54  ;;  %11018 = vmatmul.msk.f32.gmra.mxu2 %vm462_vm1, %v10888_v22  ;;  %v11147_v20 = vld [vmem:[%s11783_s29 + $0x89] sm:$0xff] }
 0x53d   : > { %11276 = vmatmul.msk.f32.gmra.mxu3 %vm462_vm1, %v11146_v21 }
 0x53e   : > { %16223 = vst [vmem:[#allocation34_spill] sm:$0xff] %v14086_v5  ;;  %11534 = vmatmul.msk.f32.gmra.mxu0 %vm462_vm1, %v11404_v33 }
 0x53f   : > { %v2925_v25 = vpop.f32.mrf.mxu2 }
 0x540   : > { %v3075_v37 = vadd.f32 %v2925_v25, %v2008_v44  ;;  %v3972_v59 = vpop.f32.mrf.mxu3  ;;  %v2010_v55 = vpop.f32.mrf.mxu1 }
 0x541   : > { %v2011_v22 = vadd.f32 %v2010_v55, %v16226_v13  ;;  %v16228_v55 = vld [vmem:[#allocation70_spill] sm:$0xff] }
 0x542   : > { %v4122_v46 = vadd.f32 %v3972_v59, %v3075_v37  ;;  %v10890_v37 = vld [vmem:[%s11783_s29 + $0x90] sm:$0xff] }
 0x543   : > { %v5021_v54 = vpop.f32.mrf.mxu0  ;;  %10761 = vmatmul.msk.f32.gmra.mxu1 %vm462_vm1, %v14051_v28  ;;  %v11406_v28 = vld [vmem:[%s11783_s29 + $0x92] sm:$0xff] }
 0x544   : > { %v14097_v5 = vadd.f32 %v5018_v62, %v4122_v46  ;;  %11019 = vmatmul.msk.f32.gmra.mxu2 %vm462_vm1, %v10889_v26  ;;  %v11148_v62 = vld [vmem:[%s11783_s29 + $0x91] sm:$0xff] }
 0x545   : > { %11277 = vmatmul.msk.f32.gmra.mxu3 %vm462_vm1, %v11147_v20 }
 0x546   : > { %16225 = vst [vmem:[#allocation37_spill] sm:$0xff] %v14097_v5  ;;  %11535 = vmatmul.msk.f32.gmra.mxu0 %vm462_vm1, %v11405_v9 }
 0x547   : > { %v2928_v21 = vpop.f32.mrf.mxu2 }
 0x548   : > { %v3076_v3 = vadd.f32 %v2928_v21, %v2011_v22  ;;  %v3975_v44 = vpop.f32.mrf.mxu3  ;;  %v2013_v25 = vpop.f32.mrf.mxu1 }
 0x549   : > { %v2014_v26 = vadd.f32 %v2013_v25, %v16228_v55  ;;  %v16230_v25 = vld [vmem:[#allocation73_spill] sm:$0xff] }
 0x54a   : > { %v4123_v59 = vadd.f32 %v3975_v44, %v3076_v3  ;;  %v10891_v3 = vld [vmem:[%s11783_s29 + $0xa0] sm:$0xff] }
 0x54b   : > { %v5024_v46 = vpop.f32.mrf.mxu0  ;;  %10762 = vmatmul.msk.f32.gmra.mxu1 %vm462_vm1, %v11402_v30  ;;  %v11407_v30 = vld [vmem:[%s11783_s29 + $0xa2] sm:$0xff] }
 0x54c   : > { %v14108_v5 = vadd.f32 %v5021_v54, %v4123_v59  ;;  %11020 = vmatmul.msk.f32.gmra.mxu2 %vm462_vm1, %v10890_v37  ;;  %v11149_v54 = vld [vmem:[%s11783_s29 + $0xa1] sm:$0xff] }
 0x54d   : > { %11278 = vmatmul.msk.f32.gmra.mxu3 %vm462_vm1, %v11148_v62 }
 0x54e   : > { %16227 = vst [vmem:[#allocation40_spill] sm:$0xff] %v14108_v5  ;;  %11536 = vmatmul.msk.f32.gmra.mxu0 %vm462_vm1, %v11406_v28 }
 0x54f   : > { %v2931_v20 = vpop.f32.mrf.mxu2 }
 0x550   : > { %v3077_v13 = vadd.f32 %v2931_v20, %v2014_v26  ;;  %v3978_v22 = vpop.f32.mrf.mxu3  ;;  %v2016_v21 = vpop.f32.mrf.mxu1 }
 0x551   : > { %v2017_v37 = vadd.f32 %v2016_v21, %v16230_v25  ;;  %v16232_v21 = vld [vmem:[#allocation76_spill] sm:$0xff] }
 0x552   : > { %v4124_v44 = vadd.f32 %v3978_v22, %v3077_v13  ;;  %v10892_v13 = vld [vmem:[%s11783_s29 + $0xa8] sm:$0xff] }
 0x553   : > { %v5027_v59 = vpop.f32.mrf.mxu0  ;;  %10763 = vmatmul.msk.f32.gmra.mxu1 %vm462_vm1, %v11403_v51  ;;  %v11408_v51 = vld [vmem:[%s11783_s29 + $0xaa] sm:$0xff] }
 0x554   : > { %v14118_v5 = vadd.f32 %v5024_v46, %v4124_v44  ;;  %11021 = vmatmul.msk.f32.gmra.mxu2 %vm462_vm1, %v10891_v3  ;;  %v11150_v46 = vld [vmem:[%s11783_s29 + $0xa9] sm:$0xff] }
 0x555   : > { %11279 = vmatmul.msk.f32.gmra.mxu3 %vm462_vm1, %v11149_v54 }
 0x556   : > { %16229 = vst [vmem:[#allocation43_spill] sm:$0xff] %v14118_v5  ;;  %11537 = vmatmul.msk.f32.gmra.mxu0 %vm462_vm1, %v11407_v30 }
 0x557   : > { %v2934_v62 = vpop.f32.mrf.mxu2 }
 0x558   : > { %v3078_v55 = vadd.f32 %v2934_v62, %v2017_v37  ;;  %v3981_v26 = vpop.f32.mrf.mxu3  ;;  %v2019_v20 = vpop.f32.mrf.mxu1 }
 0x559   : > { %v2020_v3 = vadd.f32 %v2019_v20, %v16232_v21  ;;  %v16234_v20 = vld [vmem:[#allocation79_spill] sm:$0xff] }
 0x55a   : > { %v4125_v22 = vadd.f32 %v3981_v26, %v3078_v55  ;;  %v10893_v55 = vld [vmem:[%s11783_s29 + $0xb0] sm:$0xff] }
 0x55b   : > { %v5030_v44 = vpop.f32.mrf.mxu0  ;;  %10764 = vmatmul.msk.f32.gmra.mxu1 %vm462_vm1, %v11404_v33  ;;  %v11409_v33 = vld [vmem:[%s11783_s29 + $0xb2] sm:$0xff] }
 0x55c   : > { %v14128_v5 = vadd.f32 %v5027_v59, %v4125_v22  ;;  %11022 = vmatmul.msk.f32.gmra.mxu2 %vm462_vm1, %v10892_v13  ;;  %v11151_v59 = vld [vmem:[%s11783_s29 + $0xb1] sm:$0xff] }
 0x55d   : > { %11280 = vmatmul.msk.f32.gmra.mxu3 %vm462_vm1, %v11150_v46 }
 0x55e   : > { %16231 = vst [vmem:[#allocation46_spill] sm:$0xff] %v14128_v5  ;;  %11538 = vmatmul.msk.f32.gmra.mxu0 %vm462_vm1, %v11408_v51 }
 0x55f   : > { %v2937_v54 = vpop.f32.mrf.mxu2 }
 0x560   : > { %v3079_v25 = vadd.f32 %v2937_v54, %v2020_v3  ;;  %v3984_v37 = vpop.f32.mrf.mxu3  ;;  %v2022_v62 = vpop.f32.mrf.mxu1 }
 0x561   : > { %v2023_v13 = vadd.f32 %v2022_v62, %v16234_v20  ;;  %v16236_v62 = vld [vmem:[#allocation82_spill] sm:$0xff] }
 0x562   : > { %v4126_v26 = vadd.f32 %v3984_v37, %v3079_v25  ;;  %v10894_v25 = vld [vmem:[%s11783_s29 + $0xb8] sm:$0xff] }
 0x563   : > { %v5033_v22 = vpop.f32.mrf.mxu0  ;;  %10765 = vmatmul.msk.f32.gmra.mxu1 %vm462_vm1, %v11405_v9  ;;  %v11410_v9 = vld [vmem:[%s11783_s29 + $0xba] sm:$0xff] }
 0x564   : > { %v14138_v5 = vadd.f32 %v5030_v44, %v4126_v26  ;;  %11023 = vmatmul.msk.f32.gmra.mxu2 %vm462_vm1, %v10893_v55  ;;  %v11152_v44 = vld [vmem:[%s11783_s29 + $0xb9] sm:$0xff] }
 0x565   : > { %11281 = vmatmul.msk.f32.gmra.mxu3 %vm462_vm1, %v11151_v59 }
 0x566   : > { %16233 = vst [vmem:[#allocation49_spill] sm:$0xff] %v14138_v5  ;;  %11539 = vmatmul.msk.f32.gmra.mxu0 %vm462_vm1, %v11409_v33 }
 0x567   : > { %v2940_v46 = vpop.f32.mrf.mxu2 }
 0x568   : > { %v3080_v21 = vadd.f32 %v2940_v46, %v2023_v13  ;;  %v3987_v3 = vpop.f32.mrf.mxu3  ;;  %v2025_v54 = vpop.f32.mrf.mxu1 }
 0x569   : > { %v2026_v55 = vadd.f32 %v2025_v54, %v16236_v62  ;;  %v16238_v54 = vld [vmem:[#allocation85_spill] sm:$0xff] }
 0x56a   : > { %v4127_v37 = vadd.f32 %v3987_v3, %v3080_v21  ;;  %v10895_v21 = vld [vmem:[%s11783_s29 + $0xc8] sm:$0xff] }
 0x56b   : > { %v5036_v26 = vpop.f32.mrf.mxu0  ;;  %10766 = vmatmul.msk.f32.gmra.mxu1 %vm462_vm1, %v11406_v28  ;;  %v11411_v28 = vld [vmem:[%s11783_s29 + $0xca] sm:$0xff] }
 0x56c   : > { %v14148_v5 = vadd.f32 %v5033_v22, %v4127_v37  ;;  %11024 = vmatmul.msk.f32.gmra.mxu2 %vm462_vm1, %v10894_v25  ;;  %v11153_v22 = vld [vmem:[%s11783_s29 + $0xc9] sm:$0xff] }
 0x56d   : > { %11282 = vmatmul.msk.f32.gmra.mxu3 %vm462_vm1, %v11152_v44 }
 0x56e   : > { %16235 = vst [vmem:[#allocation52_spill] sm:$0xff] %v14148_v5  ;;  %11540 = vmatmul.msk.f32.gmra.mxu0 %vm462_vm1, %v11410_v9 }
 0x56f   : > { %v2943_v59 = vpop.f32.mrf.mxu2 }
 0x570   : > { %v3081_v20 = vadd.f32 %v2943_v59, %v2026_v55  ;;  %v3990_v13 = vpop.f32.mrf.mxu3  ;;  %v2028_v46 = vpop.f32.mrf.mxu1 }
 0x571   : > { %v2029_v25 = vadd.f32 %v2028_v46, %v16238_v54  ;;  %v16240_v46 = vld [vmem:[#allocation88_spill] sm:$0xff] }
 0x572   : > { %v4128_v3 = vadd.f32 %v3990_v13, %v3081_v20  ;;  %v10896_v20 = vld [vmem:[%s11783_s29 + $0xd0] sm:$0xff] }
 0x573   : > { %v5039_v37 = vpop.f32.mrf.mxu0  ;;  %10767 = vmatmul.msk.f32.gmra.mxu1 %vm462_vm1, %v11407_v30  ;;  %v14168_v30 = vld [vmem:[%s11783_s29 + $0xd2] sm:$0xff] }
 0x574   : > { %v14158_v5 = vadd.f32 %v5036_v26, %v4128_v3  ;;  %11025 = vmatmul.msk.f32.gmra.mxu2 %vm462_vm1, %v10895_v21  ;;  %v11154_v26 = vld [vmem:[%s11783_s29 + $0xd1] sm:$0xff] }
 0x575   : > { %11283 = vmatmul.msk.f32.gmra.mxu3 %vm462_vm1, %v11153_v22 }
 0x576   : > { %16237 = vst [vmem:[#allocation55_spill] sm:$0xff] %v14158_v5  ;;  %11541 = vmatmul.msk.f32.gmra.mxu0 %vm462_vm1, %v11411_v28 }
 0x577   : > { %v2946_v44 = vpop.f32.mrf.mxu2 }
 0x578   : > { %v3082_v62 = vadd.f32 %v2946_v44, %v2029_v25  ;;  %v3993_v55 = vpop.f32.mrf.mxu3  ;;  %v2031_v59 = vpop.f32.mrf.mxu1 }
 0x579   : > { %v2032_v22 = vadd.f32 %v2031_v59, %v16240_v46  ;;  %v16242_v59 = vld [vmem:[#allocation91_spill] sm:$0xff] }
 0x57a   : > { %v4129_v13 = vadd.f32 %v3993_v55, %v3082_v62  ;;  %v10897_v55 = vld [vmem:[%s11783_s29 + $0xd8] sm:$0xff] }
 0x57b   : > { %v5042_v3 = vpop.f32.mrf.mxu0  ;;  %10768 = vmatmul.msk.f32.gmra.mxu1 %vm462_vm1, %v11408_v51  ;;  %v14181_v51 = vld [vmem:[%s11783_s29 + $0xda] sm:$0xff] }
 0x57c   : > { %v14170_v21 = vadd.f32 %v5039_v37, %v4129_v13  ;;  %11026 = vmatmul.msk.f32.gmra.mxu2 %vm462_vm1, %v10896_v20  ;;  %v11155_v37 = vld [vmem:[%s11783_s29 + $0xd9] sm:$0xff] }
 0x57d   : > { %11284 = vmatmul.msk.f32.gmra.mxu3 %vm462_vm1, %v11154_v26 }
 0x57e   : > { %16239 = vst [vmem:[#allocation58_spill] sm:$0xff] %v14170_v21  ;;  %11542 = vmatmul.msk.f32.gmra.mxu0 %vm462_vm1, %v14168_v30 }
 0x57f   : > { %v2949_v54 = vpop.f32.mrf.mxu2 }
 0x580   : > { %v3083_v25 = vadd.f32 %v2949_v54, %v2032_v22  ;;  %v3996_v44 = vpop.f32.mrf.mxu3  ;;  %v2034_v62 = vpop.f32.mrf.mxu1 }
 0x581   : > { %v2035_v26 = vadd.f32 %v2034_v62, %v16242_v59  ;;  %v16243_v62 = vld [vmem:[#allocation94_spill] sm:$0xff] }
 0x582   : > { %v4130_v5 = vadd.f32 %v3996_v44, %v3083_v25  ;;  %v10898_v44 = vld [vmem:[%s11783_s29 + $0xe0] sm:$0xff] }
 0x583   : > { %v5045_v13 = vpop.f32.mrf.mxu0  ;;  %10769 = vmatmul.msk.f32.gmra.mxu1 %vm462_vm1, %v11409_v33  ;;  %v14194_v33 = vld [vmem:[%s11783_s29 + $0xe2] sm:$0xff] }
 0x584   : > { %v14183_v20 = vadd.f32 %v5042_v3, %v4130_v5  ;;  %11027 = vmatmul.msk.f32.gmra.mxu2 %vm462_vm1, %v10897_v55  ;;  %v11156_v5 = vld [vmem:[%s11783_s29 + $0xe1] sm:$0xff] }
 0x585   : > { %11285 = vmatmul.msk.f32.gmra.mxu3 %vm462_vm1, %v11155_v37 }
 0x586   : > { %16241 = vst [vmem:[#allocation61_spill] sm:$0xff] %v14183_v20  ;;  %11543 = vmatmul.msk.f32.gmra.mxu0 %vm462_vm1, %v14181_v51 }
 0x587   : > { %v2952_v46 = vpop.f32.mrf.mxu2 }
 0x588   : > { %v3084_v22 = vadd.f32 %v2952_v46, %v2035_v26  ;;  %v3999_v54 = vpop.f32.mrf.mxu3  ;;  %v2037_v25 = vpop.f32.mrf.mxu1 }
 0x589   : > { %v2038_v37 = vadd.f32 %v2037_v25, %v16243_v62 }
 0x58a   : > { %v4131_v21 = vadd.f32 %v3999_v54, %v3084_v22  ;;  %v10899_v54 = vld [vmem:[%s11783_s29 + $0xf0] sm:$0xff] }
 0x58b   : > { %v5048_v3 = vpop.f32.mrf.mxu0  ;;  %10770 = vmatmul.msk.f32.gmra.mxu1 %vm462_vm1, %v11410_v9  ;;  %v14207_v9 = vld [vmem:[%s11783_s29 + $0xf2] sm:$0xff] }
 0x58c   : > { %v14196_v55 = vadd.f32 %v5045_v13, %v4131_v21  ;;  %11028 = vmatmul.msk.f32.gmra.mxu2 %vm462_vm1, %v10898_v44  ;;  %v11157_v21 = vld [vmem:[%s11783_s29 + $0xf1] sm:$0xff] }
 0x58d   : > { %11286 = vmatmul.msk.f32.gmra.mxu3 %vm462_vm1, %v11156_v5 }
 0x58e   : > { %11544 = vmatmul.msk.f32.gmra.mxu0 %vm462_vm1, %v14194_v33 }
 0x58f   : > { %v2955_v59 = vpop.f32.mrf.mxu2 }
 0x590   : > { %v3085_v26 = vadd.f32 %v2955_v59, %v2038_v37  ;;  %v4002_v46 = vpop.f32.mrf.mxu3  ;;  %v5713_v22 = vpop.f32.mrf.mxu1 }
 0x591   : > { %v6097_v25 = vadd.f32 %v5713_v22, %v12523_v60 }
 0x592   : > { %v4132_v20 = vadd.f32 %v4002_v46, %v3085_v26  ;;  %v10900_v26 = vld [vmem:[%s11783_s29 + $0xf8] sm:$0xff] }
 0x593   : > { %v8852_v13 = vpop.f32.mrf.mxu0  ;;  %10771 = vmatmul.msk.f32.gmra.mxu1 %vm462_vm1, %v11411_v28  ;;  %v14222_v28 = vld [vmem:[%s15974_s2] ss:$0 sm:$0xff] }
 0x594   : > { %v14209_v44 = vadd.f32 %v5048_v3, %v4132_v20  ;;  %11029 = vmatmul.msk.f32.gmra.mxu2 %vm462_vm1, %v10899_v54  ;;  %v11158_v20 = vld [vmem:[%s11783_s29 + $0xf9] sm:$0xff] }
 0x595   : > { %11287 = vmatmul.msk.f32.gmra.mxu3 %vm462_vm1, %v11157_v21  ;;  %v14226_v54 = vld [vmem:[%s11783_s29 + $0xfa] sm:$0xff] }
 0x596   : > { %16244 = vst [vmem:[#allocation64_spill] sm:$0xff] %v14209_v44  ;;  %11545 = vmatmul.msk.f32.gmra.mxu0 %vm462_vm1, %v14207_v9 }
 0x597   : > { %v6760_v5 = vpop.f32.mrf.mxu2 }
 0x598   : > { %v7144_v62 = vadd.f32 %v6760_v5, %v6097_v25  ;;  %v7806_v37 = vpop.f32.mrf.mxu3  ;;  %v5716_v59 = vpop.f32.mrf.mxu1 }
 0x599   : > { %v6098_v60 = vadd.f32 %v5716_v59, %v12533_v0 }
 0x59a   : > { %v8190_v46 = vadd.f32 %v7806_v37, %v7144_v62  ;;  %v10901_v62 = vld [vmem:[%s11783_s29 + $0x100] sm:$0xff] }
 0x59b   : > { %v8855_v3 = vpop.f32.mrf.mxu0  ;;  %10772 = vmatmul.msk.f32.gmra.mxu1 %vm462_vm1, %v14168_v30 }
 0x59c   : > { %v9236_v21 = vadd.f32 %v8852_v13, %v8190_v46  ;;  %11030 = vmatmul.msk.f32.gmra.mxu2 %vm462_vm1, %v10900_v26  ;;  %v11159_v26 = vld [vmem:[%s11783_s29 + $0x101] sm:$0xff] }
 0x59d   : > { %11288 = vmatmul.msk.f32.gmra.mxu3 %vm462_vm1, %v11158_v20  ;;  %v14246_v20 = vld [vmem:[%s11783_s29 + $0x102] sm:$0xff] }
 0x59e   : > { %11546 = vmatmul.msk.f32.gmra.mxu0 %vm462_vm1, %v14226_v54  ;;  %v9368_v22 = vadd.f32 %v14222_v28, %v9236_v21 }
 0x59f   : > { %v6763_v30 = vpop.f32.mrf.mxu2 }
 0x5a0   : > { %9497 = vst.msk [vmem:[%s14234_s12] sm:$0xff] %vm9496_vm2, %v9368_v22  ;;  %v7145_v13 = vadd.f32 %v6763_v30, %v6098_v60  ;;  %v7809_v25 = vpop.f32.mrf.mxu3  ;;  %v5719_v5 = vpop.f32.mrf.mxu1  ;;  %v10902_v30 = vld [vmem:[%s11783_s29 + $0x108] sm:$0xff] }
 0x5a1   : > { %v6099_v0 = vadd.f32 %v5719_v5, %v12543_v4 }
 0x5a2   : > { %v8191_v37 = vadd.f32 %v7809_v25, %v7145_v13  ;;  %v11160_v13 = vld [vmem:[%s11783_s29 + $0x109] sm:$0xff] }
 0x5a3   : > { %v8858_v46 = vpop.f32.mrf.mxu0  ;;  %10773 = vmatmul.msk.f32.gmra.mxu1 %vm462_vm1, %v14181_v51 }
 0x5a4   : > { %v9237_v44 = vadd.f32 %v8855_v3, %v8191_v37  ;;  %11031 = vmatmul.msk.f32.gmra.mxu2 %vm462_vm1, %v10901_v62  ;;  %v14261_v62 = vld [vmem:[%s11783_s29 + $0x10a] sm:$0xff] }
 0x5a5   : > { %11289 = vmatmul.msk.f32.gmra.mxu3 %vm462_vm1, %v11159_v26 }
 0x5a6   : > { %11547 = vmatmul.msk.f32.gmra.mxu0 %vm462_vm1, %v14246_v20  ;;  %v9369_v59 = vadd.f32 %v14222_v28, %v9237_v44 }
 0x5a7   : > { %v6766_v21 = vpop.f32.mrf.mxu2 }
 0x5a8   : > { %9498 = vst.msk [vmem:[%s14234_s12 + $0x8] sm:$0xff] %vm9496_vm2, %v9369_v59  ;;  %v7146_v60 = vadd.f32 %v6766_v21, %v6099_v0  ;;  %v7812_v3 = vpop.f32.mrf.mxu3  ;;  %v5722_v22 = vpop.f32.mrf.mxu1  ;;  %v10903_v59 = vld [vmem:[%s11783_s29 + $0x118] sm:$0xff] }
 0x5a9   : > { %v6100_v4 = vadd.f32 %v5722_v22, %v12553_v10  ;;  %v11161_v21 = vld [vmem:[%s11783_s29 + $0x119] sm:$0xff] }
 0x5aa   : > { %v8192_v51 = vadd.f32 %v7812_v3, %v7146_v60  ;;  %v14276_v3 = vld [vmem:[%s11783_s29 + $0x11a] sm:$0xff] }
 0x5ab   : > { %v8861_v25 = vpop.f32.mrf.mxu0  ;;  %10774 = vmatmul.msk.f32.gmra.mxu1 %vm462_vm1, %v14194_v33 }
 0x5ac   : > { %v9238_v37 = vadd.f32 %v8858_v46, %v8192_v51  ;;  %11032 = vmatmul.msk.f32.gmra.mxu2 %vm462_vm1, %v10902_v30 }
 0x5ad   : > { %11290 = vmatmul.msk.f32.gmra.mxu3 %vm462_vm1, %v11160_v13 }
 0x5ae   : > { %11548 = vmatmul.msk.f32.gmra.mxu0 %vm462_vm1, %v14261_v62  ;;  %v9370_v44 = vadd.f32 %v14222_v28, %v9238_v37 }
 0x5af   : > { %v6769_v5 = vpop.f32.mrf.mxu2 }
 0x5b0   : > { %9499 = vst.msk [vmem:[%s14234_s12 + $0x10] sm:$0xff] %vm9496_vm2, %v9370_v44  ;;  %v7147_v26 = vadd.f32 %v6769_v5, %v6100_v4  ;;  %v7815_v46 = vpop.f32.mrf.mxu3  ;;  %v5725_v0 = vpop.f32.mrf.mxu1  ;;  %v10904_v4 = vld [vmem:[%s11783_s29 + $0x120] sm:$0xff] }
 0x5b1   : > { %v6101_v10 = vadd.f32 %v5725_v0, %v12563_v18  ;;  %v11162_v44 = vld [vmem:[%s11783_s29 + $0x121] sm:$0xff] }
 0x5b2   : > { %v8193_v33 = vadd.f32 %v7815_v46, %v7147_v26  ;;  %v14291_v26 = vld [vmem:[%s11783_s29 + $0x122] sm:$0xff] }
 0x5b3   : > { %v8864_v60 = vpop.f32.mrf.mxu0  ;;  %10775 = vmatmul.msk.f32.gmra.mxu1 %vm462_vm1, %v14207_v9 }
 0x5b4   : > { %v9239_v30 = vadd.f32 %v8861_v25, %v8193_v33  ;;  %11033 = vmatmul.msk.f32.gmra.mxu2 %vm462_vm1, %v10903_v59 }
 0x5b5   : > { %11291 = vmatmul.msk.f32.gmra.mxu3 %vm462_vm1, %v11161_v21 }
 0x5b6   : > { %11549 = vmatmul.msk.f32.gmra.mxu0 %vm462_vm1, %v14276_v3  ;;  %v9371_v22 = vadd.f32 %v14222_v28, %v9239_v30  ;;  %v10905_v30 = vld [vmem:[%s11783_s29 + $0x128] sm:$0xff] }
 0x5b7   : > { %v6772_v51 = vpop.f32.mrf.mxu2 }
 0x5b8   : > { %9500 = vst.msk [vmem:[%s14234_s12 + $0x18] sm:$0xff] %vm9496_vm2, %v9371_v22  ;;  %v7148_v13 = vadd.f32 %v6772_v51, %v6101_v10  ;;  %v7818_v25 = vpop.f32.mrf.mxu3  ;;  %v5728_v37 = vpop.f32.mrf.mxu1  ;;  %v11163_v10 = vld [vmem:[%s11783_s29 + $0x129] sm:$0xff] }
 0x5b9   : > { %v6102_v18 = vadd.f32 %v5728_v37, %v12573_v42  ;;  %v14306_v51 = vld [vmem:[%s11783_s29 + $0x12a] sm:$0xff] }
 0x5ba   : > { %v8194_v9 = vadd.f32 %v7818_v25, %v7148_v13 }
 0x5bb   : > { %v8867_v5 = vpop.f32.mrf.mxu0  ;;  %10776 = vmatmul.msk.f32.gmra.mxu1 %vm462_vm1, %v14226_v54 }
 0x5bc   : > { %v9240_v46 = vadd.f32 %v8864_v60, %v8194_v9  ;;  %11034 = vmatmul.msk.f32.gmra.mxu2 %vm462_vm1, %v10904_v4 }
 0x5bd   : > { %11292 = vmatmul.msk.f32.gmra.mxu3 %vm462_vm1, %v11162_v44 }
 0x5be   : > { %11550 = vmatmul.msk.f32.gmra.mxu0 %vm462_vm1, %v14291_v26  ;;  %v9372_v0 = vadd.f32 %v14222_v28, %v9240_v46  ;;  %v11164_v46 = vld [vmem:[%s11783_s29 + $0x131] sm:$0xff] }
 0x5bf   : > { %v6775_v59 = vpop.f32.mrf.mxu2 }
 0x5c0   : > { %9501 = vst.msk [vmem:[%s14234_s12 + $0x20] sm:$0xff] %vm9496_vm2, %v9372_v0  ;;  %v7149_v33 = vadd.f32 %v6775_v59, %v6102_v18  ;;  %v7821_v21 = vpop.f32.mrf.mxu3  ;;  %v5731_v60 = vpop.f32.mrf.mxu1  ;;  %v14321_v0 = vld [vmem:[%s11783_s29 + $0x132] sm:$0xff] }
 0x5c1   : > { %v6103_v42 = vadd.f32 %v5731_v60, %v12583_v36 }
 0x5c2   : > { %v8195_v54 = vadd.f32 %v7821_v21, %v7149_v33 }
 0x5c3   : > { %v8870_v22 = vpop.f32.mrf.mxu0  ;;  %10777 = vmatmul.msk.f32.gmra.mxu1 %vm462_vm1, %v14246_v20 }
 0x5c4   : > { %v9241_v13 = vadd.f32 %v8867_v5, %v8195_v54  ;;  %11035 = vmatmul.msk.f32.gmra.mxu2 %vm462_vm1, %v10905_v30  ;;  %v10906_v5 = vld [vmem:[%s11783_s29 + $0x130] sm:$0xff] }
 0x5c5   : > { %11293 = vmatmul.msk.f32.gmra.mxu3 %vm462_vm1, %v11163_v10  ;;  %v10907_v10 = vld [vmem:[%s11783_s29 + $0x140] sm:$0xff] }
 0x5c6   : > { %11551 = vmatmul.msk.f32.gmra.mxu0 %vm462_vm1, %v14306_v51  ;;  %v9373_v25 = vadd.f32 %v14222_v28, %v9241_v13 }
 0x5c7   : > { %v6778_v37 = vpop.f32.mrf.mxu2 }
 0x5c8   : > { %9502 = vst.msk [vmem:[%s14234_s12 + $0x28] sm:$0xff] %vm9496_vm2, %v9373_v25  ;;  %v7150_v4 = vadd.f32 %v6778_v37, %v6103_v42  ;;  %v7824_v9 = vpop.f32.mrf.mxu3  ;;  %v5734_v44 = vpop.f32.mrf.mxu1  ;;  %v14336_v42 = vld [vmem:[%s11783_s29 + $0x142] sm:$0xff] }
 0x5c9   : > { %v6104_v36 = vadd.f32 %v5734_v44, %v12593_v49 }
 0x5ca   : > { %v8196_v20 = vadd.f32 %v7824_v9, %v7150_v4 }
 0x5cb   : > { %v8873_v18 = vpop.f32.mrf.mxu0  ;;  %10778 = vmatmul.msk.f32.gmra.mxu1 %vm462_vm1, %v14261_v62 }
 0x5cc   : > { %v9242_v59 = vadd.f32 %v8870_v22, %v8196_v20  ;;  %11036 = vmatmul.msk.f32.gmra.mxu2 %vm462_vm1, %v10906_v5  ;;  %v11165_v22 = vld [vmem:[%s11783_s29 + $0x141] sm:$0xff] }
 0x5cd   : > { %11294 = vmatmul.msk.f32.gmra.mxu3 %vm462_vm1, %v11164_v46  ;;  %v10908_v20 = vld [vmem:[%s11783_s29 + $0x148] sm:$0xff] }
 0x5ce   : > { %11552 = vmatmul.msk.f32.gmra.mxu0 %vm462_vm1, %v14321_v0  ;;  %v9374_v33 = vadd.f32 %v14222_v28, %v9242_v59  ;;  %v11166_v46 = vld [vmem:[%s11783_s29 + $0x149] sm:$0xff] }
 0x5cf   : > { %v6781_v21 = vpop.f32.mrf.mxu2  ;;  %v14351_v59 = vld [vmem:[%s11783_s29 + $0x14a] sm:$0xff] }
 0x5d0   : > { %9503 = vst.msk [vmem:[%s14234_s12 + $0x30] sm:$0xff] %vm9496_vm2, %v9374_v33  ;;  %v7151_v60 = vadd.f32 %v6781_v21, %v6104_v36  ;;  %v7827_v30 = vpop.f32.mrf.mxu3  ;;  %v5737_v54 = vpop.f32.mrf.mxu1 }
 0x5d1   : > { %v6105_v49 = vadd.f32 %v5737_v54, %v12603_v17 }
 0x5d2   : > { %v8197_v62 = vadd.f32 %v7827_v30, %v7151_v60 }
 0x5d3   : > { %v8876_v13 = vpop.f32.mrf.mxu0  ;;  %10779 = vmatmul.msk.f32.gmra.mxu1 %vm462_vm1, %v14276_v3 }
 0x5d4   : > { %v9243_v25 = vadd.f32 %v8873_v18, %v8197_v62  ;;  %11037 = vmatmul.msk.f32.gmra.mxu2 %vm462_vm1, %v10907_v10  ;;  %v10909_v10 = vld [vmem:[%s11783_s29 + $0x150] sm:$0xff] }
 0x5d5   : > { %11295 = vmatmul.msk.f32.gmra.mxu3 %vm462_vm1, %v11165_v22  ;;  %v11167_v62 = vld [vmem:[%s11783_s29 + $0x151] sm:$0xff] }
 0x5d6   : > { %11553 = vmatmul.msk.f32.gmra.mxu0 %vm462_vm1, %v14336_v42  ;;  %v9375_v37 = vadd.f32 %v14222_v28, %v9243_v25 }
 0x5d7   : > { %v6784_v4 = vpop.f32.mrf.mxu2 }
 0x5d8   : > { %9504 = vst.msk [vmem:[%s14234_s12 + $0x38] sm:$0xff] %vm9496_vm2, %v9375_v37  ;;  %v7152_v9 = vadd.f32 %v6784_v4, %v6105_v49  ;;  %v7830_v44 = vpop.f32.mrf.mxu3  ;;  %v5740_v5 = vpop.f32.mrf.mxu1 }
 0x5d9   : > { %v6106_v17 = vadd.f32 %v5740_v5, %v12613_v48  ;;  %v10910_v5 = vld [vmem:[%s11783_s29 + $0x158] sm:$0xff] }
 0x5da   : > { %v8198_v3 = vadd.f32 %v7830_v44, %v7152_v9 }
 0x5db   : > { %v8879_v18 = vpop.f32.mrf.mxu0  ;;  %10780 = vmatmul.msk.f32.gmra.mxu1 %vm462_vm1, %v14291_v26 }
 0x5dc   : > { %v9244_v36 = vadd.f32 %v8876_v13, %v8198_v3  ;;  %11038 = vmatmul.msk.f32.gmra.mxu2 %vm462_vm1, %v10908_v20  ;;  %v14366_v13 = vld [vmem:[%s11783_s29 + $0x152] sm:$0xff] }
 0x5dd   : > { %11296 = vmatmul.msk.f32.gmra.mxu3 %vm462_vm1, %v11166_v46  ;;  %v11168_v20 = vld [vmem:[%s11783_s29 + $0x159] sm:$0xff] }
 0x5de   : > { %11554 = vmatmul.msk.f32.gmra.mxu0 %vm462_vm1, %v14351_v59  ;;  %v9376_v33 = vadd.f32 %v14222_v28, %v9244_v36  ;;  %v14381_v46 = vld [vmem:[%s11783_s29 + $0x15a] sm:$0xff] }
 0x5df   : > { %v6787_v21 = vpop.f32.mrf.mxu2 }
 0x5e0   : > { %9505 = vst.msk [vmem:[%s14234_s12 + $0x40] sm:$0xff] %vm9496_vm2, %v9376_v33  ;;  %v7153_v60 = vadd.f32 %v6787_v21, %v6106_v17  ;;  %v7833_v30 = vpop.f32.mrf.mxu3  ;;  %v5743_v54 = vpop.f32.mrf.mxu1 }
 0x5e1   : > { %v6107_v48 = vadd.f32 %v5743_v54, %v12625_v53  ;;  %v11169_v54 = vld [vmem:[%s11783_s29 + $0x169] sm:$0xff] }
 0x5e2   : > { %v8199_v26 = vadd.f32 %v7833_v30, %v7153_v60  ;;  %v10911_v30 = vld [vmem:[%s11783_s29 + $0x168] sm:$0xff] }
 0x5e3   : > { %v8882_v22 = vpop.f32.mrf.mxu0  ;;  %10781 = vmatmul.msk.f32.gmra.mxu1 %vm462_vm1, %v14306_v51 }
 0x5e4   : > { %v9245_v25 = vadd.f32 %v8879_v18, %v8199_v26  ;;  %11039 = vmatmul.msk.f32.gmra.mxu2 %vm462_vm1, %v10909_v10  ;;  %v14396_v26 = vld [vmem:[%s11783_s29 + $0x16a] sm:$0xff] }
 0x5e5   : > { %11297 = vmatmul.msk.f32.gmra.mxu3 %vm462_vm1, %v11167_v62 }
 0x5e6   : > { %11555 = vmatmul.msk.f32.gmra.mxu0 %vm462_vm1, %v14366_v13  ;;  %v9377_v49 = vadd.f32 %v14222_v28, %v9245_v25 }
 0x5e7   : > { %v6790_v37 = vpop.f32.mrf.mxu2 }
 0x5e8   : > { %9506 = vst.msk [vmem:[%s14234_s12 + $0x48] sm:$0xff] %vm9496_vm2, %v9377_v49  ;;  %v7154_v4 = vadd.f32 %v6790_v37, %v6107_v48  ;;  %v7836_v9 = vpop.f32.mrf.mxu3  ;;  %v5746_v44 = vpop.f32.mrf.mxu1 }
 0x5e9   : > { %v6108_v53 = vadd.f32 %v5746_v44, %v12639_v52 }
 0x5ea   : > { %v8200_v51 = vadd.f32 %v7836_v9, %v7154_v4  ;;  %v10912_v4 = vld [vmem:[%s11783_s29 + $0x170] sm:$0xff] }
 0x5eb   : > { %v8885_v3 = vpop.f32.mrf.mxu0  ;;  %10782 = vmatmul.msk.f32.gmra.mxu1 %vm462_vm1, %v14321_v0  ;;  %v11170_v9 = vld [vmem:[%s11783_s29 + $0x171] sm:$0xff] }
 0x5ec   : > { %v9246_v18 = vadd.f32 %v8882_v22, %v8200_v51  ;;  %11040 = vmatmul.msk.f32.gmra.mxu2 %vm462_vm1, %v10910_v5  ;;  %v14411_v5 = vld [vmem:[%s11783_s29 + $0x172] sm:$0xff] }
 0x5ed   : > { %11298 = vmatmul.msk.f32.gmra.mxu3 %vm462_vm1, %v11168_v20 }
 0x5ee   : > { %11556 = vmatmul.msk.f32.gmra.mxu0 %vm462_vm1, %v14381_v46  ;;  %v9378_v36 = vadd.f32 %v14222_v28, %v9246_v18 }
 0x5ef   : > { %v6793_v17 = vpop.f32.mrf.mxu2 }
 0x5f0   : > { %9507 = vst.msk [vmem:[%s14234_s12 + $0x50] sm:$0xff] %vm9496_vm2, %v9378_v36  ;;  %v7155_v33 = vadd.f32 %v6793_v17, %v6108_v53  ;;  %v7839_v21 = vpop.f32.mrf.mxu3  ;;  %v5749_v60 = vpop.f32.mrf.mxu1  ;;  %v10913_v17 = vld [vmem:[%s11783_s29 + $0x178] sm:$0xff] }
 0x5f1   : > { %v6109_v52 = vadd.f32 %v5749_v60, %v12652_v57  ;;  %v14426_v60 = vld [vmem:[%s11783_s29 + $0x17a] sm:$0xff] }
 0x5f2   : > { %v8201_v0 = vadd.f32 %v7839_v21, %v7155_v33  ;;  %v11171_v33 = vld [vmem:[%s11783_s29 + $0x179] sm:$0xff] }
 0x5f3   : > { %v8888_v10 = vpop.f32.mrf.mxu0  ;;  %10783 = vmatmul.msk.f32.gmra.mxu1 %vm462_vm1, %v14336_v42 }
 0x5f4   : > { %v9247_v62 = vadd.f32 %v8885_v3, %v8201_v0  ;;  %11041 = vmatmul.msk.f32.gmra.mxu2 %vm462_vm1, %v10911_v30 }
 0x5f5   : > { %11299 = vmatmul.msk.f32.gmra.mxu3 %vm462_vm1, %v11169_v54 }
 0x5f6   : > { %11557 = vmatmul.msk.f32.gmra.mxu0 %vm462_vm1, %v14396_v26  ;;  %v9379_v22 = vadd.f32 %v14222_v28, %v9247_v62 }
 0x5f7   : > { %v6796_v25 = vpop.f32.mrf.mxu2 }
 0x5f8   : > { %9508 = vst.msk [vmem:[%s14234_s12 + $0x58] sm:$0xff] %vm9496_vm2, %v9379_v22  ;;  %v7156_v48 = vadd.f32 %v6796_v25, %v6109_v52  ;;  %v7842_v49 = vpop.f32.mrf.mxu3  ;;  %v5752_v37 = vpop.f32.mrf.mxu1  ;;  %v10914_v22 = vld [vmem:[%s11783_s29 + $0x180] sm:$0xff] }
 0x5f9   : > { %v6110_v57 = vadd.f32 %v5752_v37, %v12665_v58  ;;  %v11172_v25 = vld [vmem:[%s11783_s29 + $0x181] sm:$0xff] }
 0x5fa   : > { %v8202_v42 = vadd.f32 %v7842_v49, %v7156_v48  ;;  %v14441_v49 = vld [vmem:[%s11783_s29 + $0x182] sm:$0xff] }
 0x5fb   : > { %v8891_v44 = vpop.f32.mrf.mxu0  ;;  %10784 = vmatmul.msk.f32.gmra.mxu1 %vm462_vm1, %v14351_v59 }
 0x5fc   : > { %v9248_v51 = vadd.f32 %v8888_v10, %v8202_v42  ;;  %11042 = vmatmul.msk.f32.gmra.mxu2 %vm462_vm1, %v10912_v4 }
 0x5fd   : > { %11300 = vmatmul.msk.f32.gmra.mxu3 %vm462_vm1, %v11170_v9 }
 0x5fe   : > { %11558 = vmatmul.msk.f32.gmra.mxu0 %vm462_vm1, %v14411_v5  ;;  %v9380_v20 = vadd.f32 %v14222_v28, %v9248_v51 }
 0x5ff   : > { %v6799_v3 = vpop.f32.mrf.mxu2 }
 0x600   : > { %9509 = vst.msk [vmem:[%s14234_s12 + $0x60] sm:$0xff] %vm9496_vm2, %v9380_v20  ;;  %v7157_v18 = vadd.f32 %v6799_v3, %v6110_v57  ;;  %v7845_v53 = vpop.f32.mrf.mxu3  ;;  %v5755_v36 = vpop.f32.mrf.mxu1  ;;  %v10915_v57 = vld [vmem:[%s11783_s29 + $0x190] sm:$0xff] }
 0x601   : > { %v6111_v58 = vadd.f32 %v5755_v36, %v12678_v31  ;;  %v11173_v20 = vld [vmem:[%s11783_s29 + $0x191] sm:$0xff] }
 0x602   : > { %v8203_v59 = vadd.f32 %v7845_v53, %v7157_v18  ;;  %v14456_v18 = vld [vmem:[%s11783_s29 + $0x192] sm:$0xff] }
 0x603   : > { %v8894_v21 = vpop.f32.mrf.mxu0  ;;  %10785 = vmatmul.msk.f32.gmra.mxu1 %vm462_vm1, %v14366_v13 }
 0x604   : > { %v9249_v30 = vadd.f32 %v8891_v44, %v8203_v59  ;;  %11043 = vmatmul.msk.f32.gmra.mxu2 %vm462_vm1, %v10913_v17 }
 0x605   : > { %11301 = vmatmul.msk.f32.gmra.mxu3 %vm462_vm1, %v11171_v33 }
 0x606   : > { %11559 = vmatmul.msk.f32.gmra.mxu0 %vm462_vm1, %v14426_v60  ;;  %v9381_v0 = vadd.f32 %v14222_v28, %v9249_v30  ;;  %v10916_v30 = vld [vmem:[%s11783_s29 + $0x198] sm:$0xff] }
 0x607   : > { %v6802_v54 = vpop.f32.mrf.mxu2 }
 0x608   : > { %9510 = vst.msk [vmem:[%s14234_s12 + $0x68] sm:$0xff] %vm9496_vm2, %v9381_v0  ;;  %v7158_v10 = vadd.f32 %v6802_v54, %v6111_v58  ;;  %v7848_v62 = vpop.f32.mrf.mxu3  ;;  %v5758_v52 = vpop.f32.mrf.mxu1  ;;  %v11174_v58 = vld [vmem:[%s11783_s29 + $0x199] sm:$0xff] }
 0x609   : > { %v6112_v31 = vadd.f32 %v5758_v52, %v12692_v38  ;;  %v14471_v54 = vld [vmem:[%s11783_s29 + $0x19a] sm:$0xff] }
 0x60a   : > { %v8204_v13 = vadd.f32 %v7848_v62, %v7158_v10 }
 0x60b   : > { %v8897_v48 = vpop.f32.mrf.mxu0  ;;  %10786 = vmatmul.msk.f32.gmra.mxu1 %vm462_vm1, %v14381_v46 }
 0x60c   : > { %v9250_v37 = vadd.f32 %v8894_v21, %v8204_v13  ;;  %11044 = vmatmul.msk.f32.gmra.mxu2 %vm462_vm1, %v10914_v22 }
 0x60d   : > { %11302 = vmatmul.msk.f32.gmra.mxu3 %vm462_vm1, %v11172_v25 }
 0x60e   : > { %11560 = vmatmul.msk.f32.gmra.mxu0 %vm462_vm1, %v14441_v49  ;;  %v9382_v4 = vadd.f32 %v14222_v28, %v9250_v37  ;;  %v11175_v37 = vld [vmem:[%s11783_s29 + $0x1a1] sm:$0xff] }
 0x60f   : > { %v6805_v42 = vpop.f32.mrf.mxu2 }
 0x610   : > { %9511 = vst.msk [vmem:[%s14234_s12 + $0x70] sm:$0xff] %vm9496_vm2, %v9382_v4  ;;  %v7159_v9 = vadd.f32 %v6805_v42, %v6112_v31  ;;  %v7851_v44 = vpop.f32.mrf.mxu3  ;;  %v5761_v51 = vpop.f32.mrf.mxu1  ;;  %v14486_v4 = vld [vmem:[%s11783_s29 + $0x1a2] sm:$0xff] }
 0x611   : > { %v6113_v38 = vadd.f32 %v5761_v51, %v12706_v63 }
 0x612   : > { %v8205_v46 = vadd.f32 %v7851_v44, %v7159_v9 }
 0x613   : > { %v8900_v3 = vpop.f32.mrf.mxu0  ;;  %10787 = vmatmul.msk.f32.gmra.mxu1 %vm462_vm1, %v14396_v26 }
 0x614   : > { %v9251_v53 = vadd.f32 %v8897_v48, %v8205_v46  ;;  %11045 = vmatmul.msk.f32.gmra.mxu2 %vm462_vm1, %v10915_v57  ;;  %v10917_v48 = vld [vmem:[%s11783_s29 + $0x1a0] sm:$0xff] }
 0x615   : > { %11303 = vmatmul.msk.f32.gmra.mxu3 %vm462_vm1, %v11173_v20  ;;  %v10918_v20 = vld [vmem:[%s11783_s29 + $0x1a8] sm:$0xff] }
 0x616   : > { %11561 = vmatmul.msk.f32.gmra.mxu0 %vm462_vm1, %v14456_v18  ;;  %v9383_v36 = vadd.f32 %v14222_v28, %v9251_v53 }
 0x617   : > { %v6808_v17 = vpop.f32.mrf.mxu2 }
 0x618   : > { %9512 = vst.msk [vmem:[%s14234_s12 + $0x78] sm:$0xff] %vm9496_vm2, %v9383_v36  ;;  %v7160_v59 = vadd.f32 %v6808_v17, %v6113_v38  ;;  %v7854_v33 = vpop.f32.mrf.mxu3  ;;  %v5764_v21 = vpop.f32.mrf.mxu1  ;;  %v14501_v38 = vld [vmem:[%s11783_s29 + $0x1aa] sm:$0xff] }
 0x619   : > { %v6114_v63 = vadd.f32 %v5764_v21, %v12720_v47 }
 0x61a   : > { %v8206_v26 = vadd.f32 %v7854_v33, %v7160_v59 }
 0x61b   : > { %v8903_v0 = vpop.f32.mrf.mxu0  ;;  %10788 = vmatmul.msk.f32.gmra.mxu1 %vm462_vm1, %v14411_v5 }
 0x61c   : > { %v9252_v10 = vadd.f32 %v8900_v3, %v8206_v26  ;;  %11046 = vmatmul.msk.f32.gmra.mxu2 %vm462_vm1, %v10916_v30  ;;  %v11176_v3 = vld [vmem:[%s11783_s29 + $0x1a9] sm:$0xff]  ;;  %v10919_v26 = vld [vmem:[%s11783_s29 + $0x1b8] sm:$0xff] }
 0x61d   : > { %11304 = vmatmul.msk.f32.gmra.mxu3 %vm462_vm1, %v11174_v58  ;;  %v11177_v58 = vld [vmem:[%s11783_s29 + $0x1b9] sm:$0xff] }
 0x61e   : > { %11562 = vmatmul.msk.f32.gmra.mxu0 %vm462_vm1, %v14471_v54  ;;  %v9384_v62 = vadd.f32 %v14222_v28, %v9252_v10  ;;  %v14516_v10 = vld [vmem:[%s11783_s29 + $0x1ba] sm:$0xff] }
 0x61f   : > { %v6811_v52 = vpop.f32.mrf.mxu2 }
 0x620   : > { %9513 = vst.msk [vmem:[%s14234_s12 + $0x80] sm:$0xff] %vm9496_vm2, %v9384_v62  ;;  %v7161_v22 = vadd.f32 %v6811_v52, %v6114_v63  ;;  %v7857_v13 = vpop.f32.mrf.mxu3  ;;  %v5767_v25 = vpop.f32.mrf.mxu1 }
 0x621   : > { %v6115_v47 = vadd.f32 %v5767_v25, %v12734_v19 }
 0x622   : > { %v8207_v5 = vadd.f32 %v7857_v13, %v7161_v22 }
 0x623   : > { %v8906_v31 = vpop.f32.mrf.mxu0  ;;  %10789 = vmatmul.msk.f32.gmra.mxu1 %vm462_vm1, %v14426_v60 }
 0x624   : > { %v9253_v42 = vadd.f32 %v8903_v0, %v8207_v5  ;;  %11047 = vmatmul.msk.f32.gmra.mxu2 %vm462_vm1, %v10917_v48  ;;  %v10920_v48 = vld [vmem:[%s11783_s29 + $0x1c0] sm:$0xff] }
 0x625   : > { %11305 = vmatmul.msk.f32.gmra.mxu3 %vm462_vm1, %v11175_v37  ;;  %v11178_v5 = vld [vmem:[%s11783_s29 + $0x1c1] sm:$0xff] }
 0x626   : > { %11563 = vmatmul.msk.f32.gmra.mxu0 %vm462_vm1, %v14486_v4  ;;  %v9385_v9 = vadd.f32 %v14222_v28, %v9253_v42 }
 0x627   : > { %v6814_v44 = vpop.f32.mrf.mxu2 }
 0x628   : > { %9514 = vst.msk [vmem:[%s14234_s12 + $0x88] sm:$0xff] %vm9496_vm2, %v9385_v9  ;;  %v7162_v51 = vadd.f32 %v6814_v44, %v6115_v47  ;;  %v7860_v57 = vpop.f32.mrf.mxu3  ;;  %v5770_v46 = vpop.f32.mrf.mxu1 }
 0x629   : > { %v6116_v19 = vadd.f32 %v5770_v46, %v12748_v12  ;;  %v10921_v46 = vld [vmem:[%s11783_s29 + $0x1c8] sm:$0xff] }
 0x62a   : > { %v8208_v60 = vadd.f32 %v7860_v57, %v7162_v51 }
 0x62b   : > { %v8909_v53 = vpop.f32.mrf.mxu0  ;;  %10790 = vmatmul.msk.f32.gmra.mxu1 %vm462_vm1, %v14441_v49 }
 0x62c   : > { %v9254_v36 = vadd.f32 %v8906_v31, %v8208_v60  ;;  %11048 = vmatmul.msk.f32.gmra.mxu2 %vm462_vm1, %v10918_v20  ;;  %v14531_v31 = vld [vmem:[%s11783_s29 + $0x1c2] sm:$0xff] }
 0x62d   : > { %11306 = vmatmul.msk.f32.gmra.mxu3 %vm462_vm1, %v11176_v3  ;;  %v11179_v20 = vld [vmem:[%s11783_s29 + $0x1c9] sm:$0xff] }
 0x62e   : > { %11564 = vmatmul.msk.f32.gmra.mxu0 %vm462_vm1, %v14501_v38  ;;  %v9386_v17 = vadd.f32 %v14222_v28, %v9254_v36  ;;  %v14546_v3 = vld [vmem:[%s11783_s29 + $0x1ca] sm:$0xff] }
 0x62f   : > { %v6817_v59 = vpop.f32.mrf.mxu2 }
 0x630   : > { %9515 = vst.msk [vmem:[%s14234_s12 + $0x90] sm:$0xff] %vm9496_vm2, %v9386_v17  ;;  %v7163_v33 = vadd.f32 %v6817_v59, %v6116_v19  ;;  %v7863_v21 = vpop.f32.mrf.mxu3  ;;  %v5773_v30 = vpop.f32.mrf.mxu1 }
 0x631   : > { %v6117_v12 = vadd.f32 %v5773_v30, %v12762_v8  ;;  %v11180_v30 = vld [vmem:[%s11783_s29 + $0x1d1] sm:$0xff] }
 0x632   : > { %v8209_v49 = vadd.f32 %v7863_v21, %v7163_v33  ;;  %v10922_v21 = vld [vmem:[%s11783_s29 + $0x1d0] sm:$0xff] }
 0x633   : > { %v8912_v0 = vpop.f32.mrf.mxu0  ;;  %10791 = vmatmul.msk.f32.gmra.mxu1 %vm462_vm1, %v14456_v18 }
 0x634   : > { %v9255_v63 = vadd.f32 %v8909_v53, %v8209_v49  ;;  %11049 = vmatmul.msk.f32.gmra.mxu2 %vm462_vm1, %v10919_v26  ;;  %v14561_v49 = vld [vmem:[%s11783_s29 + $0x1d2] sm:$0xff] }
 0x635   : > { %11307 = vmatmul.msk.f32.gmra.mxu3 %vm462_vm1, %v11177_v58 }
 0x636   : > { %11565 = vmatmul.msk.f32.gmra.mxu0 %vm462_vm1, %v14516_v10  ;;  %v9387_v62 = vadd.f32 %v14222_v28, %v9255_v63 }
 0x637   : > { %v6820_v52 = vpop.f32.mrf.mxu2 }
 0x638   : > { %9516 = vst.msk [vmem:[%s14234_s12 + $0x98] sm:$0xff] %vm9496_vm2, %v9387_v62  ;;  %v7164_v22 = vadd.f32 %v6820_v52, %v6117_v12  ;;  %v7866_v13 = vpop.f32.mrf.mxu3  ;;  %v5776_v25 = vpop.f32.mrf.mxu1 }
 0x639   : > { %v6118_v8 = vadd.f32 %v5776_v25, %v12776_v14 }
 0x63a   : > { %v8210_v18 = vadd.f32 %v7866_v13, %v7164_v22  ;;  %v10923_v22 = vld [vmem:[%s11783_s29 + $0x1e0] sm:$0xff] }
 0x63b   : > { %v8915_v37 = vpop.f32.mrf.mxu0  ;;  %10792 = vmatmul.msk.f32.gmra.mxu1 %vm462_vm1, %v14471_v54  ;;  %v11181_v13 = vld [vmem:[%s11783_s29 + $0x1e1] sm:$0xff] }
 0x63c   : > { %v9256_v42 = vadd.f32 %v8912_v0, %v8210_v18  ;;  %11050 = vmatmul.msk.f32.gmra.mxu2 %vm462_vm1, %v10920_v48  ;;  %v14576_v48 = vld [vmem:[%s11783_s29 + $0x1e2] sm:$0xff] }
 0x63d   : > { %11308 = vmatmul.msk.f32.gmra.mxu3 %vm462_vm1, %v11178_v5 }
 0x63e   : > { %11566 = vmatmul.msk.f32.gmra.mxu0 %vm462_vm1, %v14531_v31  ;;  %v9388_v47 = vadd.f32 %v14222_v28, %v9256_v42 }
 0x63f   : > { %v6823_v9 = vpop.f32.mrf.mxu2 }
 0x640   : > { %9517 = vst.msk [vmem:[%s14234_s12 + $0xa0] sm:$0xff] %vm9496_vm2, %v9388_v47  ;;  %v7165_v44 = vadd.f32 %v6823_v9, %v6118_v8  ;;  %v7869_v51 = vpop.f32.mrf.mxu3  ;;  %v5779_v57 = vpop.f32.mrf.mxu1  ;;  %v10924_v9 = vld [vmem:[%s11783_s29 + $0x1e8] sm:$0xff] }
 0x641   : > { %v6119_v14 = vadd.f32 %v5779_v57, %v12790_v29  ;;  %v14591_v57 = vld [vmem:[%s11783_s29 + $0x1ea] sm:$0xff] }
 0x642   : > { %v8211_v54 = vadd.f32 %v7869_v51, %v7165_v44  ;;  %v11182_v44 = vld [vmem:[%s11783_s29 + $0x1e9] sm:$0xff] }
 0x643   : > { %v8918_v60 = vpop.f32.mrf.mxu0  ;;  %10793 = vmatmul.msk.f32.gmra.mxu1 %vm462_vm1, %v14486_v4 }
 0x644   : > { %v9257_v53 = vadd.f32 %v8915_v37, %v8211_v54  ;;  %11051 = vmatmul.msk.f32.gmra.mxu2 %vm462_vm1, %v10921_v46 }
 0x645   : > { %11309 = vmatmul.msk.f32.gmra.mxu3 %vm462_vm1, %v11179_v20 }
 0x646   : > { %11567 = vmatmul.msk.f32.gmra.mxu0 %vm462_vm1, %v14546_v3  ;;  %v9389_v36 = vadd.f32 %v14222_v28, %v9257_v53 }
 0x647   : > { %v6826_v19 = vpop.f32.mrf.mxu2 }
 0x648   : > { %9518 = vst.msk [vmem:[%s14234_s12 + $0xa8] sm:$0xff] %vm9496_vm2, %v9389_v36  ;;  %v7166_v17 = vadd.f32 %v6826_v19, %v6119_v14  ;;  %v7872_v59 = vpop.f32.mrf.mxu3  ;;  %v5782_v33 = vpop.f32.mrf.mxu1  ;;  %v10925_v36 = vld [vmem:[%s11783_s29 + $0x1f0] sm:$0xff] }
 0x649   : > { %v6120_v29 = vadd.f32 %v5782_v33, %v12804_v61  ;;  %v11183_v19 = vld [vmem:[%s11783_s29 + $0x1f1] sm:$0xff] }
 0x64a   : > { %v8212_v4 = vadd.f32 %v7872_v59, %v7166_v17  ;;  %v14606_v59 = vld [vmem:[%s11783_s29 + $0x1f2] sm:$0xff] }
 0x64b   : > { %v8921_v26 = vpop.f32.mrf.mxu0  ;;  %10794 = vmatmul.msk.f32.gmra.mxu1 %vm462_vm1, %v14501_v38 }
 0x64c   : > { %v9258_v58 = vadd.f32 %v8918_v60, %v8212_v4  ;;  %11052 = vmatmul.msk.f32.gmra.mxu2 %vm462_vm1, %v10922_v21 }
 0x64d   : > { %11310 = vmatmul.msk.f32.gmra.mxu3 %vm462_vm1, %v11180_v30 }
 0x64e   : > { %11568 = vmatmul.msk.f32.gmra.mxu0 %vm462_vm1, %v14561_v49  ;;  %v9390_v0 = vadd.f32 %v14222_v28, %v9258_v58 }
 0x64f   : > { %v6829_v63 = vpop.f32.mrf.mxu2 }
 0x650   : > { %9519 = vst.msk [vmem:[%s14234_s12 + $0xb0] sm:$0xff] %vm9496_vm2, %v9390_v0  ;;  %v7167_v12 = vadd.f32 %v6829_v63, %v6120_v29  ;;  %v7875_v62 = vpop.f32.mrf.mxu3  ;;  %v5785_v52 = vpop.f32.mrf.mxu1  ;;  %v10926_v29 = vld [vmem:[%s11783_s29 + $0x1f8] sm:$0xff] }
 0x651   : > { %v6121_v61 = vadd.f32 %v5785_v52, %v12818_v11  ;;  %v11184_v0 = vld [vmem:[%s11783_s29 + $0x1f9] sm:$0xff] }
 0x652   : > { %v8213_v38 = vadd.f32 %v7875_v62, %v7167_v12  ;;  %v14621_v12 = vld [vmem:[%s11783_s29 + $0x1fa] sm:$0xff] }
 0x653   : > { %v8924_v25 = vpop.f32.mrf.mxu0  ;;  %10795 = vmatmul.msk.f32.gmra.mxu1 %vm462_vm1, %v14516_v10 }
 0x654   : > { %v9259_v18 = vadd.f32 %v8921_v26, %v8213_v38  ;;  %11053 = vmatmul.msk.f32.gmra.mxu2 %vm462_vm1, %v10923_v22 }
 0x655   : > { %11311 = vmatmul.msk.f32.gmra.mxu3 %vm462_vm1, %v11181_v13 }
 0x656   : > { %11569 = vmatmul.msk.f32.gmra.mxu0 %vm462_vm1, %v14576_v48  ;;  %v9391_v5 = vadd.f32 %v14222_v28, %v9259_v18  ;;  %v10927_v18 = vld [vmem:[%s11783_s29 + $0x208] sm:$0xff] }
 0x657   : > { %v6832_v37 = vpop.f32.mrf.mxu2 }
 0x658   : > { %9520 = vst.msk [vmem:[%s14234_s12 + $0xb8] sm:$0xff] %vm9496_vm2, %v9391_v5  ;;  %v7168_v42 = vadd.f32 %v6832_v37, %v6121_v61  ;;  %v7878_v8 = vpop.f32.mrf.mxu3  ;;  %v5788_v47 = vpop.f32.mrf.mxu1  ;;  %v11185_v61 = vld [vmem:[%s11783_s29 + $0x209] sm:$0xff] }
 0x659   : > { %v6122_v11 = vadd.f32 %v5788_v47, %v12832_v2  ;;  %v14636_v37 = vld [vmem:[%s11783_s29 + $0x20a] sm:$0xff] }
 0x65a   : > { %v8214_v10 = vadd.f32 %v7878_v8, %v7168_v42 }
 0x65b   : > { %v8927_v51 = vpop.f32.mrf.mxu0  ;;  %10796 = vmatmul.msk.f32.gmra.mxu1 %vm462_vm1, %v14531_v31 }
 0x65c   : > { %v9260_v46 = vadd.f32 %v8924_v25, %v8214_v10  ;;  %11054 = vmatmul.msk.f32.gmra.mxu2 %vm462_vm1, %v10924_v9 }
 0x65d   : > { %11312 = vmatmul.msk.f32.gmra.mxu3 %vm462_vm1, %v11182_v44 }
 0x65e   : > { %11570 = vmatmul.msk.f32.gmra.mxu0 %vm462_vm1, %v14591_v57  ;;  %v9392_v54 = vadd.f32 %v14222_v28, %v9260_v46  ;;  %v11186_v46 = vld [vmem:[%s11783_s29 + $0x211] sm:$0xff] }
 0x65f   : > { %v6835_v20 = vpop.f32.mrf.mxu2 }
 0x660   : > { %9521 = vst.msk [vmem:[%s14234_s12 + $0xc0] sm:$0xff] %vm9496_vm2, %v9392_v54  ;;  %v7169_v60 = vadd.f32 %v6835_v20, %v6122_v11  ;;  %v7881_v53 = vpop.f32.mrf.mxu3  ;;  %v5791_v14 = vpop.f32.mrf.mxu1  ;;  %v14651_v54 = vld [vmem:[%s11783_s29 + $0x212] sm:$0xff] }
 0x661   : > { %v6123_v2 = vadd.f32 %v5791_v14, %v12846_v39 }
 0x662   : > { %v8215_v31 = vadd.f32 %v7881_v53, %v7169_v60 }
 0x663   : > { %v8930_v17 = vpop.f32.mrf.mxu0  ;;  %10797 = vmatmul.msk.f32.gmra.mxu1 %vm462_vm1, %v14546_v3 }
 0x664   : > { %v9261_v33 = vadd.f32 %v8927_v51, %v8215_v31  ;;  %11055 = vmatmul.msk.f32.gmra.mxu2 %vm462_vm1, %v10925_v36  ;;  %v10928_v51 = vld [vmem:[%s11783_s29 + $0x210] sm:$0xff] }
 0x665   : > { %11313 = vmatmul.msk.f32.gmra.mxu3 %vm462_vm1, %v11183_v19  ;;  %v10929_v19 = vld [vmem:[%s11783_s29 + $0x218] sm:$0xff] }
 0x666   : > { %11571 = vmatmul.msk.f32.gmra.mxu0 %vm462_vm1, %v14606_v59  ;;  %v9393_v21 = vadd.f32 %v14222_v28, %v9261_v33 }
 0x667   : > { %v6838_v4 = vpop.f32.mrf.mxu2 }
 0x668   : > { %9522 = vst.msk [vmem:[%s14234_s12 + $0xc8] sm:$0xff] %vm9496_vm2, %v9393_v21  ;;  %v7170_v30 = vadd.f32 %v6838_v4, %v6123_v2  ;;  %v7884_v26 = vpop.f32.mrf.mxu3  ;;  %v5794_v58 = vpop.f32.mrf.mxu1  ;;  %v14666_v2 = vld [vmem:[%s11783_s29 + $0x21a] sm:$0xff] }
 0x669   : > { %v6124_v39 = vadd.f32 %v5794_v58, %v12860_v15 }
 0x66a   : > { %v8216_v3 = vadd.f32 %v7884_v26, %v7170_v30 }
 0x66b   : > { %v8933_v63 = vpop.f32.mrf.mxu0  ;;  %10798 = vmatmul.msk.f32.gmra.mxu1 %vm462_vm1, %v14561_v49 }
 0x66c   : > { %v9262_v62 = vadd.f32 %v8930_v17, %v8216_v3  ;;  %11056 = vmatmul.msk.f32.gmra.mxu2 %vm462_vm1, %v10926_v29  ;;  %v11187_v17 = vld [vmem:[%s11783_s29 + $0x219] sm:$0xff] }
 0x66d   : > { %11314 = vmatmul.msk.f32.gmra.mxu3 %vm462_vm1, %v11184_v0  ;;  %v10930_v3 = vld [vmem:[%s11783_s29 + $0x220] sm:$0xff] }
 0x66e   : > { %11572 = vmatmul.msk.f32.gmra.mxu0 %vm462_vm1, %v14621_v12  ;;  %v9394_v52 = vadd.f32 %v14222_v28, %v9262_v62  ;;  %v11188_v0 = vld [vmem:[%s11783_s29 + $0x221] sm:$0xff] }
 0x66f   : > { %v6841_v22 = vpop.f32.mrf.mxu2  ;;  %v14681_v62 = vld [vmem:[%s11783_s29 + $0x222] sm:$0xff] }
 0x670   : > { %9523 = vst.msk [vmem:[%s14234_s12 + $0xd0] sm:$0xff] %vm9496_vm2, %v9394_v52  ;;  %v7171_v38 = vadd.f32 %v6841_v22, %v6124_v39  ;;  %v7887_v13 = vpop.f32.mrf.mxu3  ;;  %v5797_v25 = vpop.f32.mrf.mxu1 }
 0x671   : > { %v6125_v15 = vadd.f32 %v5797_v25, %v12874_v23  ;;  %v10931_v25 = vld [vmem:[%s11783_s29 + $0x230] sm:$0xff] }
 0x672   : > { %v8217_v49 = vadd.f32 %v7887_v13, %v7171_v38 }
 0x673   : > { %v8936_v5 = vpop.f32.mrf.mxu0  ;;  %10799 = vmatmul.msk.f32.gmra.mxu1 %vm462_vm1, %v14576_v48 }
 0x674   : > { %v9263_v42 = vadd.f32 %v8933_v63, %v8217_v49  ;;  %11057 = vmatmul.msk.f32.gmra.mxu2 %vm462_vm1, %v10927_v18  ;;  %v11189_v49 = vld [vmem:[%s11783_s29 + $0x231] sm:$0xff] }
 0x675   : > { %11315 = vmatmul.msk.f32.gmra.mxu3 %vm462_vm1, %v11185_v61 }
 0x676   : > { %11573 = vmatmul.msk.f32.gmra.mxu0 %vm462_vm1, %v14636_v37  ;;  %v9395_v8 = vadd.f32 %v14222_v28, %v9263_v42 }
 0x677   : > { %v6844_v47 = vpop.f32.mrf.mxu2 }
 0x678   : > { %9524 = vst.msk [vmem:[%s14234_s12 + $0xd8] sm:$0xff] %vm9496_vm2, %v9395_v8  ;;  %v7172_v9 = vadd.f32 %v6844_v47, %v6125_v15  ;;  %v7890_v10 = vpop.f32.mrf.mxu3  ;;  %v5800_v44 = vpop.f32.mrf.mxu1 }
 0x679   : > { %v6126_v23 = vadd.f32 %v5800_v44, %v12888_v34  ;;  %v10932_v44 = vld [vmem:[%s11783_s29 + $0x238] sm:$0xff] }
 0x67a   : > { %v8218_v48 = vadd.f32 %v7890_v10, %v7172_v9 }
 0x67b   : > { %v8939_v11 = vpop.f32.mrf.mxu0  ;;  %10800 = vmatmul.msk.f32.gmra.mxu1 %vm462_vm1, %v14591_v57 }
 0x67c   : > { %v9264_v20 = vadd.f32 %v8936_v5, %v8218_v48  ;;  %11058 = vmatmul.msk.f32.gmra.mxu2 %vm462_vm1, %v10928_v51  ;;  %v11190_v51 = vld [vmem:[%s11783_s29 + $0x239] sm:$0xff] }
 0x67d   : > { %11316 = vmatmul.msk.f32.gmra.mxu3 %vm462_vm1, %v11186_v46  ;;  %v14716_v46 = vld [vmem:[%s11783_s29 + $0x23a] sm:$0xff] }
 0x67e   : > { %11574 = vmatmul.msk.f32.gmra.mxu0 %vm462_vm1, %v14651_v54  ;;  %v9396_v60 = vadd.f32 %v14222_v28, %v9264_v20 }
 0x67f   : > { %v6847_v53 = vpop.f32.mrf.mxu2 }
 0x680   : > { %9525 = vst.msk [vmem:[%s14234_s12 + $0xe0] sm:$0xff] %vm9496_vm2, %v9396_v60  ;;  %v7173_v14 = vadd.f32 %v6847_v53, %v6126_v23  ;;  %v7893_v36 = vpop.f32.mrf.mxu3  ;;  %v5803_v31 = vpop.f32.mrf.mxu1 }
 0x681   : > { %v6127_v34 = vadd.f32 %v5803_v31, %v12902_v24  ;;  %v11191_v31 = vld [vmem:[%s11783_s29 + $0x241] sm:$0xff] }
 0x682   : > { %v8219_v57 = vadd.f32 %v7893_v36, %v7173_v14  ;;  %v10933_v36 = vld [vmem:[%s11783_s29 + $0x240] sm:$0xff] }
 0x683   : > { %v8942_v33 = vpop.f32.mrf.mxu0  ;;  %10801 = vmatmul.msk.f32.gmra.mxu1 %vm462_vm1, %v14606_v59 }
 0x684   : > { %v9265_v21 = vadd.f32 %v8939_v11, %v8219_v57  ;;  %11059 = vmatmul.msk.f32.gmra.mxu2 %vm462_vm1, %v10929_v19  ;;  %v14731_v57 = vld [vmem:[%s11783_s29 + $0x242] sm:$0xff] }
 0x685   : > { %11317 = vmatmul.msk.f32.gmra.mxu3 %vm462_vm1, %v11187_v17 }
 0x686   : > { %11575 = vmatmul.msk.f32.gmra.mxu0 %vm462_vm1, %v14666_v2  ;;  %v9397_v4 = vadd.f32 %v14222_v28, %v9265_v21  ;;  %v14693_v28 = vld [vmem:[%s15974_s2] ss:$0 sm:$0xff] }
 0x687   : > { %v6850_v30 = vpop.f32.mrf.mxu2 }
 0x688   : > { %9526 = vst.msk [vmem:[%s14234_s12 + $0xe8] sm:$0xff] %vm9496_vm2, %v9397_v4  ;;  %v7174_v26 = vadd.f32 %v6850_v30, %v6127_v34  ;;  %v7896_v58 = vpop.f32.mrf.mxu3  ;;  %v5806_v29 = vpop.f32.mrf.mxu1 }
 0x689   : > { %v6128_v24 = vadd.f32 %v5806_v29, %v12916_v1  ;;  %v14701_v1 = vld [vmem:[%s11783_s29 + $0x232] sm:$0xff] }
 0x68a   : > { %v8220_v59 = vadd.f32 %v7896_v58, %v7174_v26  ;;  %v10934_v26 = vld [vmem:[%s11783_s29 + $0x248] sm:$0xff] }
 0x68b   : > { %v8945_v63 = vpop.f32.mrf.mxu0  ;;  %10802 = vmatmul.msk.f32.gmra.mxu1 %vm462_vm1, %v14621_v12  ;;  %v11192_v58 = vld [vmem:[%s11783_s29 + $0x249] sm:$0xff] }
 0x68c   : > { %v9266_v39 = vadd.f32 %v8942_v33, %v8220_v59  ;;  %11060 = vmatmul.msk.f32.gmra.mxu2 %vm462_vm1, %v10930_v3  ;;  %v14746_v3 = vld [vmem:[%s11783_s29 + $0x24a] sm:$0xff] }
 0x68d   : > { %11318 = vmatmul.msk.f32.gmra.mxu3 %vm462_vm1, %v11188_v0 }
 0x68e   : > { %11576 = vmatmul.msk.f32.gmra.mxu0 %vm462_vm1, %v14681_v62  ;;  %v9398_v52 = vadd.f32 %v14693_v28, %v9266_v39 }
 0x68f   : > { %v6853_v22 = vpop.f32.mrf.mxu2 }
 0x690   : > { %9527 = vst.msk [vmem:[%s14234_s12 + $0xf0] sm:$0xff] %vm9496_vm2, %v9398_v52  ;;  %v7175_v12 = vadd.f32 %v6853_v22, %v6128_v24  ;;  %v7899_v38 = vpop.f32.mrf.mxu3  ;;  %v5809_v13 = vpop.f32.mrf.mxu1  ;;  %v10935_v22 = vld [vmem:[%s11783_s29 + $0x258] sm:$0xff] }
 0x691   : > { %v6129_v42 = vadd.f32 %v5809_v13, %v12930_v50  ;;  %v14761_v13 = vld [vmem:[%s11783_s29 + $0x25a] sm:$0xff] }
 0x692   : > { %v8221_v18 = vadd.f32 %v7899_v38, %v7175_v12  ;;  %v11193_v12 = vld [vmem:[%s11783_s29 + $0x259] sm:$0xff] }
 0x693   : > { %v8948_v61 = vpop.f32.mrf.mxu0  ;;  %10803 = vmatmul.msk.f32.gmra.mxu1 %vm462_vm1, %v14636_v37 }
 0x694   : > { %v9267_v5 = vadd.f32 %v8945_v63, %v8221_v18  ;;  %11061 = vmatmul.msk.f32.gmra.mxu2 %vm462_vm1, %v10931_v25 }
 0x695   : > { %11319 = vmatmul.msk.f32.gmra.mxu3 %vm462_vm1, %v11189_v49 }
 0x696   : > { %11577 = vmatmul.msk.f32.gmra.mxu0 %vm462_vm1, %v14701_v1  ;;  %v9399_v15 = vadd.f32 %v14693_v28, %v9267_v5 }
 0x697   : > { %v6856_v8 = vpop.f32.mrf.mxu2 }
 0x698   : > { %9528 = vst.msk [vmem:[%s14234_s12 + $0xf8] sm:$0xff] %vm9496_vm2, %v9399_v15  ;;  %v7176_v47 = vadd.f32 %v6856_v8, %v6129_v42  ;;  %v7902_v9 = vpop.f32.mrf.mxu3  ;;  %v5812_v10 = vpop.f32.mrf.mxu1  ;;  %v10936_v15 = vld [vmem:[%s11783_s29 + $0x260] sm:$0xff] }
 0x699   : > { %v6130_v50 = vadd.f32 %v5812_v10, %v12944_v16  ;;  %v11194_v8 = vld [vmem:[%s11783_s29 + $0x261] sm:$0xff] }
 0x69a   : > { %v8222_v37 = vadd.f32 %v7902_v9, %v7176_v47  ;;  %v14776_v9 = vld [vmem:[%s11783_s29 + $0x262] sm:$0xff] }
 0x69b   : > { %v8951_v48 = vpop.f32.mrf.mxu0  ;;  %10804 = vmatmul.msk.f32.gmra.mxu1 %vm462_vm1, %v14651_v54 }
 0x69c   : > { %v9268_v11 = vadd.f32 %v8948_v61, %v8222_v37  ;;  %11062 = vmatmul.msk.f32.gmra.mxu2 %vm462_vm1, %v10932_v44 }
 0x69d   : > { %11320 = vmatmul.msk.f32.gmra.mxu3 %vm462_vm1, %v11190_v51 }
 0x69e   : > { %11578 = vmatmul.msk.f32.gmra.mxu0 %vm462_vm1, %v14716_v46  ;;  %v9400_v20 = vadd.f32 %v14693_v28, %v9268_v11 }
 0x69f   : > { %v6859_v23 = vpop.f32.mrf.mxu2 }
 0x6a0   : > { %9529 = vst.msk [vmem:[%s14234_s12 + $0x100] sm:$0xff] %vm9496_vm2, %v9400_v20  ;;  %v7177_v60 = vadd.f32 %v6859_v23, %v6130_v50  ;;  %v7905_v53 = vpop.f32.mrf.mxu3  ;;  %v5815_v14 = vpop.f32.mrf.mxu1  ;;  %v10937_v50 = vld [vmem:[%s11783_s29 + $0x268] sm:$0xff] }
 0x6a1   : > { %v6131_v16 = vadd.f32 %v5815_v14, %v12958_v41  ;;  %v11195_v20 = vld [vmem:[%s11783_s29 + $0x269] sm:$0xff] }
 0x6a2   : > { %v8223_v54 = vadd.f32 %v7905_v53, %v7177_v60  ;;  %v14791_v60 = vld [vmem:[%s11783_s29 + $0x26a] sm:$0xff] }
 0x6a3   : > { %v8954_v19 = vpop.f32.mrf.mxu0  ;;  %10805 = vmatmul.msk.f32.gmra.mxu1 %vm462_vm1, %v14666_v2 }
 0x6a4   : > { %v9269_v17 = vadd.f32 %v8951_v48, %v8223_v54  ;;  %11063 = vmatmul.msk.f32.gmra.mxu2 %vm462_vm1, %v10933_v36 }
 0x6a5   : > { %11321 = vmatmul.msk.f32.gmra.mxu3 %vm462_vm1, %v11191_v31 }
 0x6a6   : > { %11579 = vmatmul.msk.f32.gmra.mxu0 %vm462_vm1, %v14731_v57  ;;  %v9401_v33 = vadd.f32 %v14693_v28, %v9269_v17  ;;  %v10938_v17 = vld [vmem:[%s11783_s29 + $0x270] sm:$0xff] }
 0x6a7   : > { %v6862_v21 = vpop.f32.mrf.mxu2 }
 0x6a8   : > { %9530 = vst.msk [vmem:[%s14234_s12 + $0x108] sm:$0xff] %vm9496_vm2, %v9401_v33  ;;  %v7178_v34 = vadd.f32 %v6862_v21, %v6131_v16  ;;  %v7908_v4 = vpop.f32.mrf.mxu3  ;;  %v5818_v30 = vpop.f32.mrf.mxu1  ;;  %v11196_v16 = vld [vmem:[%s11783_s29 + $0x271] sm:$0xff] }
 0x6a9   : > { %v6132_v41 = vadd.f32 %v5818_v30, %v12972_v45  ;;  %v14806_v21 = vld [vmem:[%s11783_s29 + $0x272] sm:$0xff] }
 0x6aa   : > { %v8224_v2 = vadd.f32 %v7908_v4, %v7178_v34 }
 0x6ab   : > { %v8957_v29 = vpop.f32.mrf.mxu0  ;;  %10806 = vmatmul.msk.f32.gmra.mxu1 %vm462_vm1, %v14681_v62 }
 0x6ac   : > { %v9270_v59 = vadd.f32 %v8954_v19, %v8224_v2  ;;  %11064 = vmatmul.msk.f32.gmra.mxu2 %vm462_vm1, %v10934_v26 }
 0x6ad   : > { %11322 = vmatmul.msk.f32.gmra.mxu3 %vm462_vm1, %v11192_v58 }
 0x6ae   : > { %11580 = vmatmul.msk.f32.gmra.mxu0 %vm462_vm1, %v14746_v3  ;;  %v9402_v0 = vadd.f32 %v14693_v28, %v9270_v59  ;;  %v11197_v59 = vld [vmem:[%s11783_s29 + $0x281] sm:$0xff] }
 0x6af   : > { %v6865_v63 = vpop.f32.mrf.mxu2 }
 0x6b0   : > { %9531 = vst.msk [vmem:[%s14234_s12 + $0x110] sm:$0xff] %vm9496_vm2, %v9402_v0  ;;  %v7179_v39 = vadd.f32 %v6865_v63, %v6132_v41  ;;  %v7911_v24 = vpop.f32.mrf.mxu3  ;;  %v5821_v52 = vpop.f32.mrf.mxu1  ;;  %v14821_v0 = vld [vmem:[%s11783_s29 + $0x282] sm:$0xff] }
 0x6b1   : > { %v6133_v45 = vadd.f32 %v5821_v52, %v12986_v32 }
 0x6b2   : > { %v8225_v62 = vadd.f32 %v7911_v24, %v7179_v39 }
 0x6b3   : > { %v8960_v38 = vpop.f32.mrf.mxu0  ;;  %10807 = vmatmul.msk.f32.gmra.mxu1 %vm462_vm1, %v14701_v1 }
 0x6b4   : > { %v9271_v25 = vadd.f32 %v8957_v29, %v8225_v62  ;;  %11065 = vmatmul.msk.f32.gmra.mxu2 %vm462_vm1, %v10935_v22  ;;  %v10939_v29 = vld [vmem:[%s11783_s29 + $0x280] sm:$0xff] }
 0x6b5   : > { %11323 = vmatmul.msk.f32.gmra.mxu3 %vm462_vm1, %v11193_v12  ;;  %v10940_v12 = vld [vmem:[%s11783_s29 + $0x288] sm:$0xff] }
 0x6b6   : > { %11581 = vmatmul.msk.f32.gmra.mxu0 %vm462_vm1, %v14761_v13  ;;  %v9403_v18 = vadd.f32 %v14693_v28, %v9271_v25 }
 0x6b7   : > { %v6868_v49 = vpop.f32.mrf.mxu2 }
 0x6b8   : > { %9532 = vst.msk [vmem:[%s14234_s12 + $0x118] sm:$0xff] %vm9496_vm2, %v9403_v18  ;;  %v7180_v61 = vadd.f32 %v6868_v49, %v6133_v45  ;;  %v7914_v5 = vpop.f32.mrf.mxu3  ;;  %v5824_v42 = vpop.f32.mrf.mxu1  ;;  %v14836_v45 = vld [vmem:[%s11783_s29 + $0x28a] sm:$0xff] }
 0x6b9   : > { %v6134_v32 = vadd.f32 %v5824_v42, %v13000_v6 }
 0x6ba   : > { %v8226_v1 = vadd.f32 %v7914_v5, %v7180_v61 }
 0x6bb   : > { %v8963_v47 = vpop.f32.mrf.mxu0  ;;  %10808 = vmatmul.msk.f32.gmra.mxu1 %vm462_vm1, %v14716_v46 }
 0x6bc   : > { %v9272_v10 = vadd.f32 %v8960_v38, %v8226_v1  ;;  %11066 = vmatmul.msk.f32.gmra.mxu2 %vm462_vm1, %v10936_v15  ;;  %v10941_v1 = vld [vmem:[%s11783_s29 + $0x290] sm:$0xff] }
 0x6bd   : > { %11324 = vmatmul.msk.f32.gmra.mxu3 %vm462_vm1, %v11194_v8 }
 0x6be   : > { %11582 = vmatmul.msk.f32.gmra.mxu0 %vm462_vm1, %v14776_v9  ;;  %v9404_v44 = vadd.f32 %v14693_v28, %v9272_v10  ;;  %v14851_v10 = vld [vmem:[%s11783_s29 + $0x292] sm:$0xff] }
 0x6bf   : > { %v6871_v37 = vpop.f32.mrf.mxu2 }
 0x6c0   : > { %9533 = vst.msk [vmem:[%s14234_s12 + $0x120] sm:$0xff] %vm9496_vm2, %v9404_v44  ;;  %v7181_v51 = vadd.f32 %v6871_v37, %v6134_v32  ;;  %v7917_v48 = vpop.f32.mrf.mxu3  ;;  %v5827_v11 = vpop.f32.mrf.mxu1 }
 0x6c1   : > { %v6135_v6 = vadd.f32 %v5827_v11, %v13014_v40 }
 0x6c2   : > { %v8227_v46 = vadd.f32 %v7917_v48, %v7181_v51 }
 0x6c3   : > { %v8966_v23 = vpop.f32.mrf.mxu0  ;;  %10809 = vmatmul.msk.f32.gmra.mxu1 %vm462_vm1, %v14731_v57 }
 0x6c4   : > { %v9273_v53 = vadd.f32 %v8963_v47, %v8227_v46  ;;  %11067 = vmatmul.msk.f32.gmra.mxu2 %vm462_vm1, %v10937_v50  ;;  %v11199_v47 = vld [vmem:[%s11783_s29 + $0x291] sm:$0xff] }
 0x6c5   : > { %11325 = vmatmul.msk.f32.gmra.mxu3 %vm462_vm1, %v11195_v20  ;;  %v10942_v50 = vld [vmem:[%s11783_s29 + $0x298] sm:$0xff] }
 0x6c6   : > { %11583 = vmatmul.msk.f32.gmra.mxu0 %vm462_vm1, %v14791_v60  ;;  %v9405_v14 = vadd.f32 %v14693_v28, %v9273_v53  ;;  %v11200_v20 = vld [vmem:[%s11783_s29 + $0x299] sm:$0xff] }
 0x6c7   : > { %v6874_v36 = vpop.f32.mrf.mxu2 }
 0x6c8   : > { %9534 = vst.msk [vmem:[%s14234_s12 + $0x128] sm:$0xff] %vm9496_vm2, %v9405_v14  ;;  %v7182_v54 = vadd.f32 %v6874_v36, %v6135_v6  ;;  %v7920_v31 = vpop.f32.mrf.mxu3  ;;  %v5830_v19 = vpop.f32.mrf.mxu1 }
 0x6c9   : > { %v6136_v40 = vadd.f32 %v5830_v19, %v13028_v35  ;;  %v10943_v19 = vld [vmem:[%s11783_s29 + $0x2a8] sm:$0xff] }
 0x6ca   : > { %v8228_v57 = vadd.f32 %v7920_v31, %v7182_v54 }
 0x6cb   : > { %v8969_v33 = vpop.f32.mrf.mxu0  ;;  %10810 = vmatmul.msk.f32.gmra.mxu1 %vm462_vm1, %v14746_v3 }
 0x6cc   : > { %v9274_v34 = vadd.f32 %v8966_v23, %v8228_v57  ;;  %11068 = vmatmul.msk.f32.gmra.mxu2 %vm462_vm1, %v10938_v17  ;;  %v11201_v57 = vld [vmem:[%s11783_s29 + $0x2a9] sm:$0xff] }
 0x6cd   : > { %11326 = vmatmul.msk.f32.gmra.mxu3 %vm462_vm1, %v11196_v16 }
 0x6ce   : > { %11584 = vmatmul.msk.f32.gmra.mxu0 %vm462_vm1, %v14806_v21  ;;  %v9406_v4 = vadd.f32 %v14693_v28, %v9274_v34 }
 0x6cf   : > { %v6877_v30 = vpop.f32.mrf.mxu2 }
 0x6d0   : > { %9535 = vst.msk [vmem:[%s14234_s12 + $0x130] sm:$0xff] %vm9496_vm2, %v9406_v4  ;;  %v7183_v26 = vadd.f32 %v6877_v30, %v6136_v40  ;;  %v7923_v2 = vpop.f32.mrf.mxu3  ;;  %v5833_v58 = vpop.f32.mrf.mxu1 }
 0x6d1   : > { %v6137_v35 = vadd.f32 %v5833_v58, %v13042_v56  ;;  %v10944_v58 = vld [vmem:[%s11783_s29 + $0x2b0] sm:$0xff] }
 0x6d2   : > { %v8229_v3 = vadd.f32 %v7923_v2, %v7183_v26 }
 0x6d3   : > { %v8972_v41 = vpop.f32.mrf.mxu0  ;;  %10811 = vmatmul.msk.f32.gmra.mxu1 %vm462_vm1, %v14761_v13  ;;  %v11198_v13 = vld [vmem:[%s11783_s29 + $0x289] sm:$0xff] }
 0x6d4   : > { %v9275_v63 = vadd.f32 %v8969_v33, %v8229_v3  ;;  %11069 = vmatmul.msk.f32.gmra.mxu2 %vm462_vm1, %v10939_v29  ;;  %v14881_v33 = vld [vmem:[%s11783_s29 + $0x2aa] sm:$0xff] }
 0x6d5   : > { %11327 = vmatmul.msk.f32.gmra.mxu3 %vm462_vm1, %v11197_v59  ;;  %v11202_v3 = vld [vmem:[%s11783_s29 + $0x2b1] sm:$0xff] }
 0x6d6   : > { %11585 = vmatmul.msk.f32.gmra.mxu0 %vm462_vm1, %v14821_v0  ;;  %v9407_v39 = vadd.f32 %v14693_v28, %v9275_v63  ;;  %v16246_v63 = vld [vmem:[#allocation11_spill] sm:$0xff] }
 0x6d7   : > { %v6880_v24 = vpop.f32.mrf.mxu2 }
 0x6d8   : > { %9536 = vst.msk [vmem:[%s14234_s12 + $0x138] sm:$0xff] %vm9496_vm2, %v9407_v39  ;;  %v7184_v52 = vadd.f32 %v6880_v24, %v6137_v35  ;;  %v7926_v22 = vpop.f32.mrf.mxu3  ;;  %v5836_v62 = vpop.f32.mrf.mxu1 }
 0x6d9   : > { %v6138_v56 = vadd.f32 %v5836_v62, %v13056_v7 }
 0x6da   : > { %v8230_v38 = vadd.f32 %v7926_v22, %v7184_v52 }
 0x6db   : > { %v8975_v25 = vpop.f32.mrf.mxu0  ;;  %10812 = vmatmul.msk.f32.gmra.mxu1 %vm462_vm1, %v14776_v9 }
 0x6dc   : > { %v9276_v18 = vadd.f32 %v8972_v41, %v8230_v38  ;;  %11070 = vmatmul.msk.f32.gmra.mxu2 %vm462_vm1, %v10940_v12  ;;  %v14896_v41 = vld [vmem:[%s11783_s29 + $0x2b2] sm:$0xff] }
 0x6dd   : > { %11328 = vmatmul.msk.f32.gmra.mxu3 %vm462_vm1, %v11198_v13  ;;  %v10945_v12 = vld [vmem:[%s11783_s29 + $0x2b8] sm:$0xff] }
 0x6de   : > { %11586 = vmatmul.msk.f32.gmra.mxu0 %vm462_vm1, %v14836_v45  ;;  %v9408_v49 = vadd.f32 %v14693_v28, %v9276_v18  ;;  %v11203_v13 = vld [vmem:[%s11783_s29 + $0x2b9] sm:$0xff] }
 0x6df   : > { %v6883_v61 = vpop.f32.mrf.mxu2 }
 0x6e0   : > { %9537 = vst.msk [vmem:[%s14234_s12 + $0x140] sm:$0xff] %vm9496_vm2, %v9408_v49  ;;  %v7185_v5 = vadd.f32 %v6883_v61, %v6138_v56  ;;  %v7929_v42 = vpop.f32.mrf.mxu3  ;;  %v5839_v15 = vpop.f32.mrf.mxu1  ;;  %v16247_v56 = vld [vmem:[#allocation14_spill] sm:$0xff] }
 0x6e1   : > { %v6139_v7 = vadd.f32 %v5839_v15, %v13070_v43 }
 0x6e2   : > { %v8231_v8 = vadd.f32 %v7929_v42, %v7185_v5 }
 0x6e3   : > { %v8978_v9 = vpop.f32.mrf.mxu0  ;;  %10813 = vmatmul.msk.f32.gmra.mxu1 %vm462_vm1, %v14791_v60  ;;  %v14866_v60 = vld [vmem:[%s11783_s29 + $0x29a] sm:$0xff] }
 0x6e4   : > { %v9277_v32 = vadd.f32 %v8975_v25, %v8231_v8  ;;  %11071 = vmatmul.msk.f32.gmra.mxu2 %vm462_vm1, %v10941_v1  ;;  %v10946_v8 = vld [vmem:[%s11783_s29 + $0x2c0] sm:$0xff] }
 0x6e5   : > { %11329 = vmatmul.msk.f32.gmra.mxu3 %vm462_vm1, %v11199_v47 }
 0x6e6   : > { %11587 = vmatmul.msk.f32.gmra.mxu0 %vm462_vm1, %v14851_v10  ;;  %v9409_v44 = vadd.f32 %v14693_v28, %v9277_v32  ;;  %v14926_v32 = vld [vmem:[%s11783_s29 + $0x2c2] sm:$0xff] }
 0x6e7   : > { %v6886_v37 = vpop.f32.mrf.mxu2 }
 0x6e8   : > { %9538 = vst.msk [vmem:[%s14234_s12 + $0x148] sm:$0xff] %vm9496_vm2, %v9409_v44  ;;  %v7186_v51 = vadd.f32 %v6886_v37, %v6139_v7  ;;  %v7932_v48 = vpop.f32.mrf.mxu3  ;;  %v5842_v11 = vpop.f32.mrf.mxu1  ;;  %v16248_v44 = vld [vmem:[#allocation17_spill] sm:$0xff] }
 0x6e9   : > { %v6140_v43 = vadd.f32 %v5842_v11, %v13084_v27  ;;  %v16245_v27 = vld [vmem:[#allocation8_spill] sm:$0xff] }
 0x6ea   : > { %v8232_v46 = vadd.f32 %v7932_v48, %v7186_v51 }
 0x6eb   : > { %v8981_v23 = vpop.f32.mrf.mxu0  ;;  %10814 = vmatmul.msk.f32.gmra.mxu1 %vm462_vm1, %v14806_v21 }
 0x6ec   : > { %v9278_v53 = vadd.f32 %v8978_v9, %v8232_v46  ;;  %11072 = vmatmul.msk.f32.gmra.mxu2 %vm462_vm1, %v10942_v50  ;;  %v11204_v9 = vld [vmem:[%s11783_s29 + $0x2c1] sm:$0xff] }
 0x6ed   : > { %11330 = vmatmul.msk.f32.gmra.mxu3 %vm462_vm1, %v11200_v20  ;;  %v10947_v20 = vld [vmem:[%s11783_s29 + $0x2d0] sm:$0xff] }
 0x6ee   : > { %11588 = vmatmul.msk.f32.gmra.mxu0 %vm462_vm1, %v14866_v60  ;;  %v9410_v6 = vadd.f32 %v14693_v28, %v9278_v53 }
 0x6ef   : > { %v6889_v14 = vpop.f32.mrf.mxu2 }
 0x6f0   : > { %9539 = vst.msk [vmem:[%s14234_s12 + $0x150] sm:$0xff] %vm9496_vm2, %v9410_v6  ;;  %v7187_v36 = vadd.f32 %v6889_v14, %v6140_v43  ;;  %v7935_v54 = vpop.f32.mrf.mxu3  ;;  %v5845_v31 = vpop.f32.mrf.mxu1  ;;  %v14941_v43 = vld [vmem:[%s11783_s29 + $0x2d2] sm:$0xff] }
 0x6f1   : > { %v6141_v34 = vadd.f32 %v5845_v31, %v16245_v27  ;;  %v16249_v14 = vld [vmem:[#allocation20_spill] sm:$0xff] }
 0x6f2   : > { %v8233_v17 = vadd.f32 %v7935_v54, %v7187_v36 }
 0x6f3   : > { %v8984_v16 = vpop.f32.mrf.mxu0  ;;  %10815 = vmatmul.msk.f32.gmra.mxu1 %vm462_vm1, %v14821_v0 }
 0x6f4   : > { %v9279_v21 = vadd.f32 %v8981_v23, %v8233_v17  ;;  %11073 = vmatmul.msk.f32.gmra.mxu2 %vm462_vm1, %v10943_v19 }
 0x6f5   : > { %11331 = vmatmul.msk.f32.gmra.mxu3 %vm462_vm1, %v11201_v57 }
 0x6f6   : > { %11589 = vmatmul.msk.f32.gmra.mxu0 %vm462_vm1, %v14881_v33  ;;  %v9411_v40 = vadd.f32 %v14693_v28, %v9279_v21  ;;  %v11206_v21 = vld [vmem:[%s11783_s29 + $0x2d9] sm:$0xff] }
 0x6f7   : > { %v6892_v4 = vpop.f32.mrf.mxu2 }
 0x6f8   : > { %9540 = vst.msk [vmem:[%s14234_s12 + $0x158] sm:$0xff] %vm9496_vm2, %v9411_v40  ;;  %v7188_v30 = vadd.f32 %v6892_v4, %v6141_v34  ;;  %v7938_v26 = vpop.f32.mrf.mxu3  ;;  %v5848_v2 = vpop.f32.mrf.mxu1  ;;  %v14956_v34 = vld [vmem:[%s11783_s29 + $0x2da] sm:$0xff]  ;;  %v16250_v4 = vld [vmem:[#allocation23_spill] sm:$0xff] }
 0x6f9   : > { %v6142_v35 = vadd.f32 %v5848_v2, %v16246_v63 }
 0x6fa   : > { %v8234_v29 = vadd.f32 %v7938_v26, %v7188_v30 }
 0x6fb   : > { %v8987_v59 = vpop.f32.mrf.mxu0  ;;  %10816 = vmatmul.msk.f32.gmra.mxu1 %vm462_vm1, %v14836_v45  ;;  %v14911_v45 = vld [vmem:[%s11783_s29 + $0x2ba] sm:$0xff] }
 0x6fc   : > { %v9280_v0 = vadd.f32 %v8984_v16, %v8234_v29  ;;  %11074 = vmatmul.msk.f32.gmra.mxu2 %vm462_vm1, %v10944_v58  ;;  %v10948_v16 = vld [vmem:[%s11783_s29 + $0x2d8] sm:$0xff] }
 0x6fd   : > { %11332 = vmatmul.msk.f32.gmra.mxu3 %vm462_vm1, %v11202_v3 }
 0x6fe   : > { %11590 = vmatmul.msk.f32.gmra.mxu0 %vm462_vm1, %v14896_v41  ;;  %v9412_v39 = vadd.f32 %v14693_v28, %v9280_v0  ;;  %v11207_v0 = vld [vmem:[%s11783_s29 + $0x2e1] sm:$0xff] }
 0x6ff   : > { %v6895_v24 = vpop.f32.mrf.mxu2 }
 0x700   : > { %9541 = vst.msk [vmem:[%s14234_s12 + $0x160] sm:$0xff] %vm9496_vm2, %v9412_v39  ;;  %v7189_v52 = vadd.f32 %v6895_v24, %v6142_v35  ;;  %v7941_v22 = vpop.f32.mrf.mxu3  ;;  %v5851_v62 = vpop.f32.mrf.mxu1  ;;  %v14971_v35 = vld [vmem:[%s11783_s29 + $0x2e2] sm:$0xff] }
 0x701   : > { %v6143_v49 = vadd.f32 %v5851_v62, %v16247_v56  ;;  %v16251_v24 = vld [vmem:[#allocation26_spill] sm:$0xff] }
 0x702   : > { %v8235_v38 = vadd.f32 %v7941_v22, %v7189_v52 }
 0x703   : > { %v8990_v25 = vpop.f32.mrf.mxu0  ;;  %10817 = vmatmul.msk.f32.gmra.mxu1 %vm462_vm1, %v14851_v10 }
 0x704   : > { %v9281_v18 = vadd.f32 %v8987_v59, %v8235_v38  ;;  %11075 = vmatmul.msk.f32.gmra.mxu2 %vm462_vm1, %v10945_v12  ;;  %v10949_v59 = vld [vmem:[%s11783_s29 + $0x2e0] sm:$0xff] }
 0x705   : > { %11333 = vmatmul.msk.f32.gmra.mxu3 %vm462_vm1, %v11203_v13 }
 0x706   : > { %11591 = vmatmul.msk.f32.gmra.mxu0 %vm462_vm1, %v14911_v45  ;;  %v9413_v61 = vadd.f32 %v14693_v28, %v9281_v18  ;;  %v11208_v18 = vld [vmem:[%s11783_s29 + $0x2e9] sm:$0xff] }
 0x707   : > { %v6898_v5 = vpop.f32.mrf.mxu2 }
 0x708   : > { %9542 = vst.msk [vmem:[%s14234_s12 + $0x168] sm:$0xff] %vm9496_vm2, %v9413_v61  ;;  %v7190_v42 = vadd.f32 %v6898_v5, %v6143_v49  ;;  %v7944_v15 = vpop.f32.mrf.mxu3  ;;  %v5854_v1 = vpop.f32.mrf.mxu1  ;;  %v14986_v49 = vld [vmem:[%s11783_s29 + $0x2ea] sm:$0xff]  ;;  %v16252_v5 = vld [vmem:[#allocation29_spill] sm:$0xff] }
 0x709   : > { %v6144_v37 = vadd.f32 %v5854_v1, %v16248_v44 }
 0x70a   : > { %v8236_v47 = vadd.f32 %v7944_v15, %v7190_v42 }
 0x70b   : > { %v8993_v10 = vpop.f32.mrf.mxu0  ;;  %10818 = vmatmul.msk.f32.gmra.mxu1 %vm462_vm1, %v14866_v60  ;;  %v11205_v60 = vld [vmem:[%s11783_s29 + $0x2d1] sm:$0xff] }
 0x70c   : > { %v9282_v7 = vadd.f32 %v8990_v25, %v8236_v47  ;;  %11076 = vmatmul.msk.f32.gmra.mxu2 %vm462_vm1, %v10946_v8  ;;  %v10950_v25 = vld [vmem:[%s11783_s29 + $0x2e8] sm:$0xff] }
 0x70d   : > { %11334 = vmatmul.msk.f32.gmra.mxu3 %vm462_vm1, %v11204_v9 }
 0x70e   : > { %11592 = vmatmul.msk.f32.gmra.mxu0 %vm462_vm1, %v14926_v32  ;;  %v9414_v51 = vadd.f32 %v14693_v28, %v9282_v7  ;;  %v11209_v7 = vld [vmem:[%s11783_s29 + $0x2f9] sm:$0xff] }
 0x70f   : > { %v6901_v48 = vpop.f32.mrf.mxu2 }
 0x710   : > { %9543 = vst.msk [vmem:[%s14234_s12 + $0x170] sm:$0xff] %vm9496_vm2, %v9414_v51  ;;  %v7191_v11 = vadd.f32 %v6901_v48, %v6144_v37  ;;  %v7947_v50 = vpop.f32.mrf.mxu3  ;;  %v5857_v46 = vpop.f32.mrf.mxu1  ;;  %v15001_v37 = vld [vmem:[%s11783_s29 + $0x2fa] sm:$0xff]  ;;  %v16253_v48 = vld [vmem:[#allocation32_spill] sm:$0xff] }
 0x711   : > { %v6145_v36 = vadd.f32 %v5857_v46, %v16249_v14 }
 0x712   : > { %v8237_v23 = vadd.f32 %v7947_v50, %v7191_v11 }
 0x713   : > { %v8996_v53 = vpop.f32.mrf.mxu0  ;;  %10819 = vmatmul.msk.f32.gmra.mxu1 %vm462_vm1, %v14881_v33 }
 0x714   : > { %v9283_v6 = vadd.f32 %v8993_v10, %v8237_v23  ;;  %11077 = vmatmul.msk.f32.gmra.mxu2 %vm462_vm1, %v10947_v20  ;;  %v10951_v10 = vld [vmem:[%s11783_s29 + $0x2f8] sm:$0xff] }
 0x715   : > { %11335 = vmatmul.msk.f32.gmra.mxu3 %vm462_vm1, %v11205_v60 }
 0x716   : > { %11593 = vmatmul.msk.f32.gmra.mxu0 %vm462_vm1, %v14941_v43  ;;  %v9415_v54 = vadd.f32 %v14693_v28, %v9283_v6  ;;  %v11210_v6 = vld [vmem:[%s11783_s29 + $0x301] sm:$0xff] }
 0x717   : > { %v6904_v31 = vpop.f32.mrf.mxu2 }
 0x718   : > { %9544 = vst.msk [vmem:[%s14234_s12 + $0x178] sm:$0xff] %vm9496_vm2, %v9415_v54  ;;  %v7192_v19 = vadd.f32 %v6904_v31, %v6145_v36  ;;  %v7950_v17 = vpop.f32.mrf.mxu3  ;;  %v5860_v57 = vpop.f32.mrf.mxu1  ;;  %v15016_v36 = vld [vmem:[%s11783_s29 + $0x302] sm:$0xff] }
 0x719   : > { %v6146_v30 = vadd.f32 %v5860_v57, %v16250_v4  ;;  %v16254_v31 = vld [vmem:[#allocation35_spill] sm:$0xff] }
 0x71a   : > { %v8238_v33 = vadd.f32 %v7950_v17, %v7192_v19 }
 0x71b   : > { %v8999_v27 = vpop.f32.mrf.mxu0  ;;  %10820 = vmatmul.msk.f32.gmra.mxu1 %vm462_vm1, %v14896_v41 }
 0x71c   : > { %v9284_v40 = vadd.f32 %v8996_v53, %v8238_v33  ;;  %11078 = vmatmul.msk.f32.gmra.mxu2 %vm462_vm1, %v10948_v16  ;;  %v10952_v53 = vld [vmem:[%s11783_s29 + $0x300] sm:$0xff] }
 0x71d   : > { %11336 = vmatmul.msk.f32.gmra.mxu3 %vm462_vm1, %v11206_v21 }
 0x71e   : > { %11594 = vmatmul.msk.f32.gmra.mxu0 %vm462_vm1, %v14956_v34  ;;  %v9416_v26 = vadd.f32 %v14693_v28, %v9284_v40  ;;  %v11211_v40 = vld [vmem:[%s11783_s29 + $0x309] sm:$0xff] }
 0x71f   : > { %v6907_v2 = vpop.f32.mrf.mxu2 }
 0x720   : > { %9545 = vst.msk [vmem:[%s14234_s12 + $0x180] sm:$0xff] %vm9496_vm2, %v9416_v26  ;;  %v7193_v58 = vadd.f32 %v6907_v2, %v6146_v30  ;;  %v7953_v29 = vpop.f32.mrf.mxu3  ;;  %v5863_v3 = vpop.f32.mrf.mxu1  ;;  %v15031_v30 = vld [vmem:[%s11783_s29 + $0x30a] sm:$0xff]  ;;  %v16255_v2 = vld [vmem:[#allocation38_spill] sm:$0xff] }
 0x721   : > { %v6147_v52 = vadd.f32 %v5863_v3, %v16251_v24 }
 0x722   : > { %v8239_v41 = vadd.f32 %v7953_v29, %v7193_v58 }
 0x723   : > { %v9002_v63 = vpop.f32.mrf.mxu0  ;;  %10821 = vmatmul.msk.f32.gmra.mxu1 %vm462_vm1, %v14911_v45 }
 0x724   : > { %v9285_v39 = vadd.f32 %v8999_v27, %v8239_v41  ;;  %11079 = vmatmul.msk.f32.gmra.mxu2 %vm462_vm1, %v10949_v59  ;;  %v10953_v27 = vld [vmem:[%s11783_s29 + $0x308] sm:$0xff] }
 0x725   : > { %11337 = vmatmul.msk.f32.gmra.mxu3 %vm462_vm1, %v11207_v0 }
 0x726   : > { %11595 = vmatmul.msk.f32.gmra.mxu0 %vm462_vm1, %v14971_v35  ;;  %v9417_v22 = vadd.f32 %v14693_v28, %v9285_v39  ;;  %v11212_v39 = vld [vmem:[%s11783_s29 + $0x311] sm:$0xff] }
 0x727   : > { %v6910_v62 = vpop.f32.mrf.mxu2 }
 0x728   : > { %9546 = vst.msk [vmem:[%s14234_s12 + $0x188] sm:$0xff] %vm9496_vm2, %v9417_v22  ;;  %v7194_v12 = vadd.f32 %v6910_v62, %v6147_v52  ;;  %v7956_v38 = vpop.f32.mrf.mxu3  ;;  %v5866_v13 = vpop.f32.mrf.mxu1  ;;  %v15046_v52 = vld [vmem:[%s11783_s29 + $0x312] sm:$0xff] }
 0x729   : > { %v6148_v42 = vadd.f32 %v5866_v13, %v16252_v5  ;;  %v16256_v62 = vld [vmem:[#allocation41_spill] sm:$0xff] }
 0x72a   : > { %v8240_v45 = vadd.f32 %v7956_v38, %v7194_v12 }
 0x72b   : > { %v9005_v56 = vpop.f32.mrf.mxu0  ;;  %10822 = vmatmul.msk.f32.gmra.mxu1 %vm462_vm1, %v14926_v32 }
 0x72c   : > { %v9286_v61 = vadd.f32 %v9002_v63, %v8240_v45  ;;  %11080 = vmatmul.msk.f32.gmra.mxu2 %vm462_vm1, %v10950_v25  ;;  %v10954_v63 = vld [vmem:[%s11783_s29 + $0x310] sm:$0xff] }
 0x72d   : > { %11338 = vmatmul.msk.f32.gmra.mxu3 %vm462_vm1, %v11208_v18 }
 0x72e   : > { %11596 = vmatmul.msk.f32.gmra.mxu0 %vm462_vm1, %v14986_v49  ;;  %v9418_v15 = vadd.f32 %v14693_v28, %v9286_v61  ;;  %v11213_v61 = vld [vmem:[%s11783_s29 + $0x321] sm:$0xff] }
 0x72f   : > { %v6913_v1 = vpop.f32.mrf.mxu2 }
 0x730   : > { %9547 = vst.msk [vmem:[%s14234_s12 + $0x190] sm:$0xff] %vm9496_vm2, %v9418_v15  ;;  %v7195_v8 = vadd.f32 %v6913_v1, %v6148_v42  ;;  %v7959_v47 = vpop.f32.mrf.mxu3  ;;  %v5869_v9 = vpop.f32.mrf.mxu1  ;;  %v15061_v42 = vld [vmem:[%s11783_s29 + $0x322] sm:$0xff]  ;;  %v16257_v1 = vld [vmem:[#allocation44_spill] sm:$0xff] }
 0x731   : > { %v6149_v11 = vadd.f32 %v5869_v9, %v16253_v48 }
 0x732   : > { %v8241_v32 = vadd.f32 %v7959_v47, %v7195_v8 }
 0x733   : > { %v9008_v44 = vpop.f32.mrf.mxu0  ;;  %10823 = vmatmul.msk.f32.gmra.mxu1 %vm462_vm1, %v14941_v43 }
 0x734   : > { %v9287_v51 = vadd.f32 %v9005_v56, %v8241_v32  ;;  %11081 = vmatmul.msk.f32.gmra.mxu2 %vm462_vm1, %v10951_v10  ;;  %v10955_v56 = vld [vmem:[%s11783_s29 + $0x320] sm:$0xff] }
 0x735   : > { %11339 = vmatmul.msk.f32.gmra.mxu3 %vm462_vm1, %v11209_v7 }
 0x736   : > { %11597 = vmatmul.msk.f32.gmra.mxu0 %vm462_vm1, %v15001_v37  ;;  %v9419_v50 = vadd.f32 %v14693_v28, %v9287_v51  ;;  %v11214_v51 = vld [vmem:[%s11783_s29 + $0x329] sm:$0xff] }
 0x737   : > { %v6916_v46 = vpop.f32.mrf.mxu2 }
 0x738   : > { %9548 = vst.msk [vmem:[%s14234_s12 + $0x198] sm:$0xff] %vm9496_vm2, %v9419_v50  ;;  %v7196_v20 = vadd.f32 %v6916_v46, %v6149_v11  ;;  %v7962_v23 = vpop.f32.mrf.mxu3  ;;  %v5872_v60 = vpop.f32.mrf.mxu1  ;;  %v15076_v11 = vld [vmem:[%s11783_s29 + $0x32a] sm:$0xff] }
 0x739   : > { %v6150_v19 = vadd.f32 %v5872_v60, %v16254_v31  ;;  %v16258_v46 = vld [vmem:[#allocation47_spill] sm:$0xff] }
 0x73a   : > { %v8242_v43 = vadd.f32 %v7962_v23, %v7196_v20 }
 0x73b   : > { %v9011_v14 = vpop.f32.mrf.mxu0  ;;  %10824 = vmatmul.msk.f32.gmra.mxu1 %vm462_vm1, %v14956_v34 }
 0x73c   : > { %v9288_v54 = vadd.f32 %v9008_v44, %v8242_v43  ;;  %11082 = vmatmul.msk.f32.gmra.mxu2 %vm462_vm1, %v10952_v53  ;;  %v10956_v44 = vld [vmem:[%s11783_s29 + $0x328] sm:$0xff] }
 0x73d   : > { %11340 = vmatmul.msk.f32.gmra.mxu3 %vm462_vm1, %v11210_v6 }
 0x73e   : > { %11598 = vmatmul.msk.f32.gmra.mxu0 %vm462_vm1, %v15016_v36  ;;  %v9420_v17 = vadd.f32 %v14693_v28, %v9288_v54  ;;  %v11215_v54 = vld [vmem:[%s11783_s29 + $0x331] sm:$0xff] }
 0x73f   : > { %v6919_v57 = vpop.f32.mrf.mxu2 }
 0x740   : > { %9549 = vst.msk [vmem:[%s14234_s12 + $0x1a0] sm:$0xff] %vm9496_vm2, %v9420_v17  ;;  %v7197_v16 = vadd.f32 %v6919_v57, %v6150_v19  ;;  %v7965_v33 = vpop.f32.mrf.mxu3  ;;  %v5875_v21 = vpop.f32.mrf.mxu1  ;;  %v15091_v19 = vld [vmem:[%s11783_s29 + $0x332] sm:$0xff]  ;;  %v16259_v57 = vld [vmem:[#allocation50_spill] sm:$0xff] }
 0x741   : > { %v6151_v58 = vadd.f32 %v5875_v21, %v16255_v2 }
 0x742   : > { %v8243_v34 = vadd.f32 %v7965_v33, %v7197_v16 }
 0x743   : > { %v9014_v4 = vpop.f32.mrf.mxu0  ;;  %10825 = vmatmul.msk.f32.gmra.mxu1 %vm462_vm1, %v14971_v35 }
 0x744   : > { %v9289_v26 = vadd.f32 %v9011_v14, %v8243_v34  ;;  %11083 = vmatmul.msk.f32.gmra.mxu2 %vm462_vm1, %v10953_v27  ;;  %v10957_v14 = vld [vmem:[%s11783_s29 + $0x330] sm:$0xff] }
 0x745   : > { %11341 = vmatmul.msk.f32.gmra.mxu3 %vm462_vm1, %v11211_v40 }
 0x746   : > { %11599 = vmatmul.msk.f32.gmra.mxu0 %vm462_vm1, %v15031_v30  ;;  %v9421_v29 = vadd.f32 %v14693_v28, %v9289_v26  ;;  %v11216_v26 = vld [vmem:[%s11783_s29 + $0x339] sm:$0xff] }
 0x747   : > { %v6922_v3 = vpop.f32.mrf.mxu2 }
 0x748   : > { %9550 = vst.msk [vmem:[%s14234_s12 + $0x1a8] sm:$0xff] %vm9496_vm2, %v9421_v29  ;;  %v7198_v59 = vadd.f32 %v6922_v3, %v6151_v58  ;;  %v7968_v41 = vpop.f32.mrf.mxu3  ;;  %v5878_v0 = vpop.f32.mrf.mxu1  ;;  %v15106_v58 = vld [vmem:[%s11783_s29 + $0x33a] sm:$0xff] }
 0x749   : > { %v6152_v12 = vadd.f32 %v5878_v0, %v16256_v62  ;;  %v16260_v3 = vld [vmem:[#allocation53_spill] sm:$0xff] }
 0x74a   : > { %v8244_v35 = vadd.f32 %v7968_v41, %v7198_v59 }
 0x74b   : > { %v9017_v24 = vpop.f32.mrf.mxu0  ;;  %10826 = vmatmul.msk.f32.gmra.mxu1 %vm462_vm1, %v14986_v49 }
 0x74c   : > { %v9290_v22 = vadd.f32 %v9014_v4, %v8244_v35  ;;  %11084 = vmatmul.msk.f32.gmra.mxu2 %vm462_vm1, %v10954_v63  ;;  %v10958_v4 = vld [vmem:[%s11783_s29 + $0x338] sm:$0xff] }
 0x74d   : > { %11342 = vmatmul.msk.f32.gmra.mxu3 %vm462_vm1, %v11212_v39 }
 0x74e   : > { %11600 = vmatmul.msk.f32.gmra.mxu0 %vm462_vm1, %v15046_v52  ;;  %v9422_v38 = vadd.f32 %v14693_v28, %v9290_v22  ;;  %v11217_v22 = vld [vmem:[%s11783_s29 + $0x349] sm:$0xff] }
 0x74f   : > { %v6925_v13 = vpop.f32.mrf.mxu2 }
 0x750   : > { %9551 = vst.msk [vmem:[%s14234_s12 + $0x1b0] sm:$0xff] %vm9496_vm2, %v9422_v38  ;;  %v7199_v25 = vadd.f32 %v6925_v13, %v6152_v12  ;;  %v7971_v45 = vpop.f32.mrf.mxu3  ;;  %v5881_v18 = vpop.f32.mrf.mxu1  ;;  %v15121_v12 = vld [vmem:[%s11783_s29 + $0x34a] sm:$0xff] }
 0x751   : > { %v6153_v8 = vadd.f32 %v5881_v18, %v16257_v1  ;;  %v16261_v13 = vld [vmem:[#allocation56_spill] sm:$0xff] }
 0x752   : > { %v8245_v49 = vadd.f32 %v7971_v45, %v7199_v25 }
 0x753   : > { %v9020_v5 = vpop.f32.mrf.mxu0  ;;  %10827 = vmatmul.msk.f32.gmra.mxu1 %vm462_vm1, %v15001_v37 }
 0x754   : > { %v9291_v15 = vadd.f32 %v9017_v24, %v8245_v49  ;;  %11085 = vmatmul.msk.f32.gmra.mxu2 %vm462_vm1, %v10955_v56  ;;  %v10959_v24 = vld [vmem:[%s11783_s29 + $0x348] sm:$0xff] }
 0x755   : > { %11343 = vmatmul.msk.f32.gmra.mxu3 %vm462_vm1, %v11213_v61 }
 0x756   : > { %11601 = vmatmul.msk.f32.gmra.mxu0 %vm462_vm1, %v15061_v42  ;;  %v9423_v47 = vadd.f32 %v14693_v28, %v9291_v15  ;;  %v11218_v15 = vld [vmem:[%s11783_s29 + $0x351] sm:$0xff] }
 0x757   : > { %v6928_v9 = vpop.f32.mrf.mxu2 }
 0x758   : > { %9552 = vst.msk [vmem:[%s14234_s12 + $0x1b8] sm:$0xff] %vm9496_vm2, %v9423_v47  ;;  %v7200_v10 = vadd.f32 %v6928_v9, %v6153_v8  ;;  %v7974_v32 = vpop.f32.mrf.mxu3  ;;  %v5884_v7 = vpop.f32.mrf.mxu1  ;;  %v15136_v8 = vld [vmem:[%s11783_s29 + $0x352] sm:$0xff]  ;;  %v16262_v9 = vld [vmem:[#allocation59_spill] sm:$0xff] }
 0x759   : > { %v6154_v20 = vadd.f32 %v5884_v7, %v16258_v46 }
 0x75a   : > { %v8246_v37 = vadd.f32 %v7974_v32, %v7200_v10 }
 0x75b   : > { %v9023_v48 = vpop.f32.mrf.mxu0  ;;  %10828 = vmatmul.msk.f32.gmra.mxu1 %vm462_vm1, %v15016_v36 }
 0x75c   : > { %v9292_v50 = vadd.f32 %v9020_v5, %v8246_v37  ;;  %11086 = vmatmul.msk.f32.gmra.mxu2 %vm462_vm1, %v10956_v44  ;;  %v10960_v5 = vld [vmem:[%s11783_s29 + $0x350] sm:$0xff] }
 0x75d   : > { %11344 = vmatmul.msk.f32.gmra.mxu3 %vm462_vm1, %v11214_v51 }
 0x75e   : > { %11602 = vmatmul.msk.f32.gmra.mxu0 %vm462_vm1, %v15076_v11  ;;  %v9424_v23 = vadd.f32 %v14693_v28, %v9292_v50  ;;  %v11219_v50 = vld [vmem:[%s11783_s29 + $0x359] sm:$0xff] }
 0x75f   : > { %v6931_v60 = vpop.f32.mrf.mxu2 }
 0x760   : > { %9553 = vst.msk [vmem:[%s14234_s12 + $0x1c0] sm:$0xff] %vm9496_vm2, %v9424_v23  ;;  %v7201_v53 = vadd.f32 %v6931_v60, %v6154_v20  ;;  %v7977_v43 = vpop.f32.mrf.mxu3  ;;  %v5887_v6 = vpop.f32.mrf.mxu1  ;;  %v15151_v20 = vld [vmem:[%s11783_s29 + $0x35a] sm:$0xff] }
 0x761   : > { %v6155_v16 = vadd.f32 %v5887_v6, %v16259_v57 }
 0x762   : > { %v8247_v36 = vadd.f32 %v7977_v43, %v7201_v53  ;;  %v15163_v53 = vld [vmem:[%s15974_s2] ss:$0 sm:$0xff] }
 0x763   : > { %v9026_v31 = vpop.f32.mrf.mxu0  ;;  %10829 = vmatmul.msk.f32.gmra.mxu1 %vm462_vm1, %v15031_v30 }
 0x764   : > { %v9293_v17 = vadd.f32 %v9023_v48, %v8247_v36  ;;  %11087 = vmatmul.msk.f32.gmra.mxu2 %vm462_vm1, %v10957_v14  ;;  %v10961_v48 = vld [vmem:[%s11783_s29 + $0x358] sm:$0xff] }
 0x765   : > { %11345 = vmatmul.msk.f32.gmra.mxu3 %vm462_vm1, %v11215_v54 }
 0x766   : > { %11603 = vmatmul.msk.f32.gmra.mxu0 %vm462_vm1, %v15091_v19  ;;  %v9425_v33 = vadd.f32 %v14693_v28, %v9293_v17  ;;  %v11220_v17 = vld [vmem:[%s11783_s29 + $0x361] sm:$0xff] }
 0x767   : > { %v6934_v21 = vpop.f32.mrf.mxu2 }
 0x768   : > { %9554 = vst.msk [vmem:[%s14234_s12 + $0x1c8] sm:$0xff] %vm9496_vm2, %v9425_v33  ;;  %v7202_v27 = vadd.f32 %v6934_v21, %v6155_v16  ;;  %v7980_v34 = vpop.f32.mrf.mxu3  ;;  %v5890_v40 = vpop.f32.mrf.mxu1  ;;  %v15171_v16 = vld [vmem:[%s11783_s29 + $0x362] sm:$0xff]  ;;  %v16264_v21 = vld [vmem:[#allocation65_spill] sm:$0xff] }
 0x769   : > { %v6156_v59 = vadd.f32 %v5890_v40, %v16260_v3 }
 0x76a   : > { %v8248_v30 = vadd.f32 %v7980_v34, %v7202_v27 }
 0x76b   : > { %v9029_v2 = vpop.f32.mrf.mxu0  ;;  %10830 = vmatmul.msk.f32.gmra.mxu1 %vm462_vm1, %v15046_v52 }
 0x76c   : > { %v9294_v29 = vadd.f32 %v9026_v31, %v8248_v30  ;;  %11088 = vmatmul.msk.f32.gmra.mxu2 %vm462_vm1, %v10958_v4  ;;  %v10962_v31 = vld [vmem:[%s11783_s29 + $0x360] sm:$0xff] }
 0x76d   : > { %11346 = vmatmul.msk.f32.gmra.mxu3 %vm462_vm1, %v11216_v26 }
 0x76e   : > { %11604 = vmatmul.msk.f32.gmra.mxu0 %vm462_vm1, %v15106_v58  ;;  %v9426_v41 = vadd.f32 %v14693_v28, %v9294_v29  ;;  %v11221_v29 = vld [vmem:[%s11783_s29 + $0x371] sm:$0xff] }
 0x76f   : > { %v6937_v0 = vpop.f32.mrf.mxu2 }
 0x770   : > { %9555 = vst.msk [vmem:[%s14234_s12 + $0x1d0] sm:$0xff] %vm9496_vm2, %v9426_v41  ;;  %v7203_v63 = vadd.f32 %v6937_v0, %v6156_v59  ;;  %v7983_v35 = vpop.f32.mrf.mxu3  ;;  %v5893_v39 = vpop.f32.mrf.mxu1  ;;  %v15186_v59 = vld [vmem:[%s11783_s29 + $0x372] sm:$0xff] }
 0x771   : > { %v6157_v25 = vadd.f32 %v5893_v39, %v16261_v13  ;;  %v16265_v0 = vld [vmem:[#allocation68_spill] sm:$0xff] }
 0x772   : > { %v8249_v52 = vadd.f32 %v7983_v35, %v7203_v63 }
 0x773   : > { %v9032_v62 = vpop.f32.mrf.mxu0  ;;  %10831 = vmatmul.msk.f32.gmra.mxu1 %vm462_vm1, %v15061_v42 }
 0x774   : > { %v9295_v38 = vadd.f32 %v9029_v2, %v8249_v52  ;;  %11089 = vmatmul.msk.f32.gmra.mxu2 %vm462_vm1, %v10959_v24  ;;  %v10963_v2 = vld [vmem:[%s11783_s29 + $0x370] sm:$0xff] }
 0x775   : > { %11347 = vmatmul.msk.f32.gmra.mxu3 %vm462_vm1, %v11217_v22 }
 0x776   : > { %11605 = vmatmul.msk.f32.gmra.mxu0 %vm462_vm1, %v15121_v12  ;;  %v9427_v45 = vadd.f32 %v14693_v28, %v9295_v38  ;;  %v11222_v38 = vld [vmem:[%s11783_s29 + $0x379] sm:$0xff] }
 0x777   : > { %v6940_v18 = vpop.f32.mrf.mxu2 }
 0x778   : > { %9556 = vst.msk [vmem:[%s14234_s12 + $0x1d8] sm:$0xff] %vm9496_vm2, %v9427_v45  ;;  %v7204_v56 = vadd.f32 %v6940_v18, %v6157_v25  ;;  %v7986_v49 = vpop.f32.mrf.mxu3  ;;  %v5896_v61 = vpop.f32.mrf.mxu1  ;;  %v15201_v25 = vld [vmem:[%s11783_s29 + $0x37a] sm:$0xff]  ;;  %v16266_v18 = vld [vmem:[#allocation71_spill] sm:$0xff] }
 0x779   : > { %v6158_v10 = vadd.f32 %v5896_v61, %v16262_v9 }
 0x77a   : > { %v8250_v42 = vadd.f32 %v7986_v49, %v7204_v56 }
 0x77b   : > { %v9035_v1 = vpop.f32.mrf.mxu0  ;;  %10832 = vmatmul.msk.f32.gmra.mxu1 %vm462_vm1, %v15076_v11 }
 0x77c   : > { %v9296_v47 = vadd.f32 %v9032_v62, %v8250_v42  ;;  %11090 = vmatmul.msk.f32.gmra.mxu2 %vm462_vm1, %v10960_v5  ;;  %v10964_v62 = vld [vmem:[%s11783_s29 + $0x378] sm:$0xff] }
 0x77d   : > { %11348 = vmatmul.msk.f32.gmra.mxu3 %vm462_vm1, %v11218_v15 }
 0x77e   : > { %11606 = vmatmul.msk.f32.gmra.mxu0 %vm462_vm1, %v15136_v8  ;;  %v9428_v32 = vadd.f32 %v14693_v28, %v9296_v47  ;;  %v16263_v28 = vld [vmem:[#allocation62_spill] sm:$0xff] }
 0x77f   : > { %v6943_v7 = vpop.f32.mrf.mxu2  ;;  %v11223_v47 = vld [vmem:[%s11783_s29 + $0x381] sm:$0xff] }
 0x780   : > { %9557 = vst.msk [vmem:[%s14234_s12 + $0x1e0] sm:$0xff] %vm9496_vm2, %v9428_v32  ;;  %v7205_v44 = vadd.f32 %v6943_v7, %v6158_v10  ;;  %v7989_v37 = vpop.f32.mrf.mxu3  ;;  %v5899_v51 = vpop.f32.mrf.mxu1  ;;  %v15216_v10 = vld [vmem:[%s11783_s29 + $0x382] sm:$0xff] }
 0x781   : > { %v6159_v60 = vadd.f32 %v5899_v51, %v16263_v28  ;;  %v16267_v7 = vld [vmem:[#allocation74_spill] sm:$0xff] }
 0x782   : > { %v8251_v11 = vadd.f32 %v7989_v37, %v7205_v44 }
 0x783   : > { %v9038_v46 = vpop.f32.mrf.mxu0  ;;  %10833 = vmatmul.msk.f32.gmra.mxu1 %vm462_vm1, %v15091_v19 }
 0x784   : > { %v9297_v23 = vadd.f32 %v9035_v1, %v8251_v11  ;;  %11091 = vmatmul.msk.f32.gmra.mxu2 %vm462_vm1, %v10961_v48  ;;  %v10965_v1 = vld [vmem:[%s11783_s29 + $0x380] sm:$0xff] }
 0x785   : > { %11349 = vmatmul.msk.f32.gmra.mxu3 %vm462_vm1, %v11219_v50 }
 0x786   : > { %11607 = vmatmul.msk.f32.gmra.mxu0 %vm462_vm1, %v15151_v20  ;;  %v9429_v43 = vadd.f32 %v15163_v53, %v9297_v23  ;;  %v11224_v23 = vld [vmem:[%s11783_s29 + $0x389] sm:$0xff] }
 0x787   : > { %v6946_v6 = vpop.f32.mrf.mxu2 }
 0x788   : > { %9558 = vst.msk [vmem:[%s14234_s12 + $0x1e8] sm:$0xff] %vm9496_vm2, %v9429_v43  ;;  %v7206_v14 = vadd.f32 %v6946_v6, %v6159_v60  ;;  %v7992_v36 = vpop.f32.mrf.mxu3  ;;  %v5902_v54 = vpop.f32.mrf.mxu1  ;;  %v15231_v60 = vld [vmem:[%s11783_s29 + $0x38a] sm:$0xff]  ;;  %v16268_v6 = vld [vmem:[#allocation77_spill] sm:$0xff] }
 0x789   : > { %v6160_v27 = vadd.f32 %v5902_v54, %v16264_v21 }
 0x78a   : > { %v8252_v19 = vadd.f32 %v7992_v36, %v7206_v14 }
 0x78b   : > { %v9041_v57 = vpop.f32.mrf.mxu0  ;;  %10834 = vmatmul.msk.f32.gmra.mxu1 %vm462_vm1, %v15106_v58 }
 0x78c   : > { %v9298_v33 = vadd.f32 %v9038_v46, %v8252_v19  ;;  %11092 = vmatmul.msk.f32.gmra.mxu2 %vm462_vm1, %v10962_v31  ;;  %v10966_v46 = vld [vmem:[%s11783_s29 + $0x388] sm:$0xff] }
 0x78d   : > { %11350 = vmatmul.msk.f32.gmra.mxu3 %vm462_vm1, %v11220_v17 }
 0x78e   : > { %11608 = vmatmul.msk.f32.gmra.mxu0 %vm462_vm1, %v15171_v16  ;;  %v9430_v34 = vadd.f32 %v15163_v53, %v9298_v33  ;;  %v11225_v33 = vld [vmem:[%s11783_s29 + $0x399] sm:$0xff] }
 0x78f   : > { %v6949_v40 = vpop.f32.mrf.mxu2 }
 0x790   : > { %9559 = vst.msk [vmem:[%s14234_s12 + $0x1f0] sm:$0xff] %vm9496_vm2, %v9430_v34  ;;  %v7207_v4 = vadd.f32 %v6949_v40, %v6160_v27  ;;  %v7995_v30 = vpop.f32.mrf.mxu3  ;;  %v5905_v26 = vpop.f32.mrf.mxu1  ;;  %v15246_v27 = vld [vmem:[%s11783_s29 + $0x39a] sm:$0xff]  ;;  %v16269_v40 = vld [vmem:[#allocation80_spill] sm:$0xff] }
 0x791   : > { %v6161_v63 = vadd.f32 %v5905_v26, %v16265_v0 }
 0x792   : > { %v8253_v58 = vadd.f32 %v7995_v30, %v7207_v4 }
 0x793   : > { %v9044_v3 = vpop.f32.mrf.mxu0  ;;  %10835 = vmatmul.msk.f32.gmra.mxu1 %vm462_vm1, %v15121_v12 }
 0x794   : > { %v9299_v41 = vadd.f32 %v9041_v57, %v8253_v58  ;;  %11093 = vmatmul.msk.f32.gmra.mxu2 %vm462_vm1, %v10963_v2  ;;  %v10967_v57 = vld [vmem:[%s11783_s29 + $0x398] sm:$0xff] }
 0x795   : > { %11351 = vmatmul.msk.f32.gmra.mxu3 %vm462_vm1, %v11221_v29 }
 0x796   : > { %11609 = vmatmul.msk.f32.gmra.mxu0 %vm462_vm1, %v15186_v59  ;;  %v9431_v35 = vadd.f32 %v15163_v53, %v9299_v41  ;;  %v11226_v41 = vld [vmem:[%s11783_s29 + $0x3a1] sm:$0xff] }
 0x797   : > { %v6952_v39 = vpop.f32.mrf.mxu2 }
 0x798   : > { %9560 = vst.msk [vmem:[%s14234_s12 + $0x1f8] sm:$0xff] %vm9496_vm2, %v9431_v35  ;;  %v7208_v24 = vadd.f32 %v6952_v39, %v6161_v63  ;;  %v7998_v52 = vpop.f32.mrf.mxu3  ;;  %v5908_v22 = vpop.f32.mrf.mxu1  ;;  %v15261_v63 = vld [vmem:[%s11783_s29 + $0x3a2] sm:$0xff] }
 0x799   : > { %v6162_v56 = vadd.f32 %v5908_v22, %v16266_v18  ;;  %v16270_v39 = vld [vmem:[#allocation83_spill] sm:$0xff] }
 0x79a   : > { %v8254_v12 = vadd.f32 %v7998_v52, %v7208_v24 }
 0x79b   : > { %v9047_v13 = vpop.f32.mrf.mxu0  ;;  %10836 = vmatmul.msk.f32.gmra.mxu1 %vm462_vm1, %v15136_v8 }
 0x79c   : > { %v9300_v45 = vadd.f32 %v9044_v3, %v8254_v12  ;;  %11094 = vmatmul.msk.f32.gmra.mxu2 %vm462_vm1, %v10964_v62  ;;  %v10968_v3 = vld [vmem:[%s11783_s29 + $0x3a0] sm:$0xff] }
 0x79d   : > { %11352 = vmatmul.msk.f32.gmra.mxu3 %vm462_vm1, %v11222_v38 }
 0x79e   : > { %11610 = vmatmul.msk.f32.gmra.mxu0 %vm462_vm1, %v15201_v25  ;;  %v9432_v49 = vadd.f32 %v15163_v53, %v9300_v45  ;;  %v11227_v45 = vld [vmem:[%s11783_s29 + $0x3a9] sm:$0xff] }
 0x79f   : > { %v6955_v61 = vpop.f32.mrf.mxu2 }
 0x7a0   : > { %9561 = vst.msk [vmem:[%s14234_s12 + $0x200] sm:$0xff] %vm9496_vm2, %v9432_v49  ;;  %v7209_v5 = vadd.f32 %v6955_v61, %v6162_v56  ;;  %v8001_v42 = vpop.f32.mrf.mxu3  ;;  %v5911_v15 = vpop.f32.mrf.mxu1  ;;  %v15276_v56 = vld [vmem:[%s11783_s29 + $0x3aa] sm:$0xff]  ;;  %v16271_v61 = vld [vmem:[#allocation86_spill] sm:$0xff] }
 0x7a1   : > { %v6163_v44 = vadd.f32 %v5911_v15, %v16267_v7 }
 0x7a2   : > { %v8255_v8 = vadd.f32 %v8001_v42, %v7209_v5 }
 0x7a3   : > { %v9050_v9 = vpop.f32.mrf.mxu0  ;;  %10837 = vmatmul.msk.f32.gmra.mxu1 %vm462_vm1, %v15151_v20 }
 0x7a4   : > { %v9301_v32 = vadd.f32 %v9047_v13, %v8255_v8  ;;  %11095 = vmatmul.msk.f32.gmra.mxu2 %vm462_vm1, %v10965_v1  ;;  %v10969_v13 = vld [vmem:[%s11783_s29 + $0x3a8] sm:$0xff] }
 0x7a5   : > { %11353 = vmatmul.msk.f32.gmra.mxu3 %vm462_vm1, %v11223_v47 }
 0x7a6   : > { %11611 = vmatmul.msk.f32.gmra.mxu0 %vm462_vm1, %v15216_v10  ;;  %v9433_v37 = vadd.f32 %v15163_v53, %v9301_v32  ;;  %v11228_v32 = vld [vmem:[%s11783_s29 + $0x3b1] sm:$0xff] }
 0x7a7   : > { %v6958_v51 = vpop.f32.mrf.mxu2 }
 0x7a8   : > { %9562 = vst.msk [vmem:[%s14234_s12 + $0x208] sm:$0xff] %vm9496_vm2, %v9433_v37  ;;  %v7210_v48 = vadd.f32 %v6958_v51, %v6163_v44  ;;  %v8004_v11 = vpop.f32.mrf.mxu3  ;;  %v5914_v50 = vpop.f32.mrf.mxu1  ;;  %v15291_v44 = vld [vmem:[%s11783_s29 + $0x3b2] sm:$0xff] }
 0x7a9   : > { %v6164_v14 = vadd.f32 %v5914_v50, %v16268_v6  ;;  %v16272_v51 = vld [vmem:[#allocation89_spill] sm:$0xff] }
 0x7aa   : > { %v8256_v20 = vadd.f32 %v8004_v11, %v7210_v48 }
 0x7ab   : > { %v9053_v28 = vpop.f32.mrf.mxu0  ;;  %10838 = vmatmul.msk.f32.gmra.mxu1 %vm462_vm1, %v15171_v16 }
 0x7ac   : > { %v9302_v43 = vadd.f32 %v9050_v9, %v8256_v20  ;;  %11096 = vmatmul.msk.f32.gmra.mxu2 %vm462_vm1, %v10966_v46  ;;  %v10970_v9 = vld [vmem:[%s11783_s29 + $0x3b0] sm:$0xff] }
 0x7ad   : > { %11354 = vmatmul.msk.f32.gmra.mxu3 %vm462_vm1, %v11224_v23 }
 0x7ae   : > { %11612 = vmatmul.msk.f32.gmra.mxu0 %vm462_vm1, %v15231_v60  ;;  %v9434_v36 = vadd.f32 %v15163_v53, %v9302_v43  ;;  %v11229_v43 = vld [vmem:[%s11783_s29 + $0x3c1] sm:$0xff] }
 0x7af   : > { %v6961_v54 = vpop.f32.mrf.mxu2 }
 0x7b0   : > { %9563 = vst.msk [vmem:[%s14234_s12 + $0x210] sm:$0xff] %vm9496_vm2, %v9434_v36  ;;  %v7211_v31 = vadd.f32 %v6961_v54, %v6164_v14  ;;  %v8007_v19 = vpop.f32.mrf.mxu3  ;;  %v5917_v17 = vpop.f32.mrf.mxu1  ;;  %v15306_v14 = vld [vmem:[%s11783_s29 + $0x3c2] sm:$0xff]  ;;  %v16273_v54 = vld [vmem:[#allocation92_spill] sm:$0xff] }
 0x7b1   : > { %v6165_v4 = vadd.f32 %v5917_v17, %v16269_v40 }
 0x7b2   : > { %v8257_v16 = vadd.f32 %v8007_v19, %v7211_v31 }
 0x7b3   : > { %v9056_v21 = vpop.f32.mrf.mxu0  ;;  %10839 = vmatmul.msk.f32.gmra.mxu1 %vm462_vm1, %v15186_v59 }
 0x7b4   : > { %v9303_v34 = vadd.f32 %v9053_v28, %v8257_v16  ;;  %11097 = vmatmul.msk.f32.gmra.mxu2 %vm462_vm1, %v10967_v57  ;;  %v10971_v28 = vld [vmem:[%s11783_s29 + $0x3c0] sm:$0xff] }
 0x7b5   : > { %11355 = vmatmul.msk.f32.gmra.mxu3 %vm462_vm1, %v11225_v33 }
 0x7b6   : > { %11613 = vmatmul.msk.f32.gmra.mxu0 %vm462_vm1, %v15246_v27  ;;  %v9435_v30 = vadd.f32 %v15163_v53, %v9303_v34  ;;  %v11230_v34 = vld [vmem:[%s11783_s29 + $0x3c9] sm:$0xff] }
 0x7b7   : > { %v6964_v26 = vpop.f32.mrf.mxu2 }
 0x7b8   : > { %9564 = vst.msk [vmem:[%s14234_s12 + $0x218] sm:$0xff] %vm9496_vm2, %v9435_v30  ;;  %v7212_v2 = vadd.f32 %v6964_v26, %v6165_v4  ;;  %v8010_v58 = vpop.f32.mrf.mxu3  ;;  %v5920_v29 = vpop.f32.mrf.mxu1  ;;  %v15321_v4 = vld [vmem:[%s11783_s29 + $0x3ca] sm:$0xff]  ;;  %v16274_v26 = vld [vmem:[#allocation2_spill] sm:$0xff] }
 0x7b9   : > { %v6166_v24 = vadd.f32 %v5920_v29, %v16270_v39 }
 0x7ba   : > { %v8258_v59 = vadd.f32 %v8010_v58, %v7212_v2 }
 0x7bb   : > { %v9059_v0 = vpop.f32.mrf.mxu0  ;;  %10840 = vmatmul.msk.f32.gmra.mxu1 %vm462_vm1, %v15201_v25 }
 0x7bc   : > { %v9304_v35 = vadd.f32 %v9056_v21, %v8258_v59  ;;  %11098 = vmatmul.msk.f32.gmra.mxu2 %vm462_vm1, %v10968_v3  ;;  %v10972_v21 = vld [vmem:[%s11783_s29 + $0x3c8] sm:$0xff] }
 0x7bd   : > { %11356 = vmatmul.msk.f32.gmra.mxu3 %vm462_vm1, %v11226_v41 }
 0x7be   : > { %11614 = vmatmul.msk.f32.gmra.mxu0 %vm462_vm1, %v15261_v63  ;;  %v9436_v52 = vadd.f32 %v15163_v53, %v9304_v35  ;;  %v11231_v35 = vld [vmem:[%s11783_s29 + $0x3d1] sm:$0xff] }
 0x7bf   : > { %v6967_v22 = vpop.f32.mrf.mxu2 }
 0x7c0   : > { %9565 = vst.msk [vmem:[%s14234_s12 + $0x220] sm:$0xff] %vm9496_vm2, %v9436_v52  ;;  %v7213_v62 = vadd.f32 %v6967_v22, %v6166_v24  ;;  %v8013_v12 = vpop.f32.mrf.mxu3  ;;  %v5923_v38 = vpop.f32.mrf.mxu1  ;;  %v15336_v24 = vld [vmem:[%s11783_s29 + $0x3d2] sm:$0xff] }
 0x7c1   : > { %v6167_v5 = vadd.f32 %v5923_v38, %v16271_v61  ;;  %v16275_v22 = vld [vmem:[#allocation4_spill] sm:$0xff] }
 0x7c2   : > { %v8259_v25 = vadd.f32 %v8013_v12, %v7213_v62 }
 0x7c3   : > { %v9062_v18 = vpop.f32.mrf.mxu0  ;;  %10841 = vmatmul.msk.f32.gmra.mxu1 %vm462_vm1, %v15216_v10 }
 0x7c4   : > { %v9305_v49 = vadd.f32 %v9059_v0, %v8259_v25  ;;  %11099 = vmatmul.msk.f32.gmra.mxu2 %vm462_vm1, %v10969_v13  ;;  %v10973_v0 = vld [vmem:[%s11783_s29 + $0x3d0] sm:$0xff] }
 0x7c5   : > { %11357 = vmatmul.msk.f32.gmra.mxu3 %vm462_vm1, %v11227_v45 }
 0x7c6   : > { %11615 = vmatmul.msk.f32.gmra.mxu0 %vm462_vm1, %v15276_v56  ;;  %v9437_v42 = vadd.f32 %v15163_v53, %v9305_v49  ;;  %v11232_v49 = vld [vmem:[%s11783_s29 + $0x3d9] sm:$0xff] }
 0x7c7   : > { %v6970_v15 = vpop.f32.mrf.mxu2 }
 0x7c8   : > { %9566 = vst.msk [vmem:[%s14234_s12 + $0x228] sm:$0xff] %vm9496_vm2, %v9437_v42  ;;  %v7214_v1 = vadd.f32 %v6970_v15, %v6167_v5  ;;  %v8016_v8 = vpop.f32.mrf.mxu3  ;;  %v5926_v47 = vpop.f32.mrf.mxu1  ;;  %v15351_v5 = vld [vmem:[%s11783_s29 + $0x3da] sm:$0xff] }
 0x7c9   : > { %v6168_v48 = vadd.f32 %v5926_v47, %v16272_v51  ;;  %v16276_v15 = vld [vmem:[#allocation6_spill] sm:$0xff] }
 0x7ca   : > { %v8260_v10 = vadd.f32 %v8016_v8, %v7214_v1 }
 0x7cb   : > { %v9065_v7 = vpop.f32.mrf.mxu0  ;;  %10842 = vmatmul.msk.f32.gmra.mxu1 %vm462_vm1, %v15231_v60 }
 0x7cc   : > { %v9306_v37 = vadd.f32 %v9062_v18, %v8260_v10  ;;  %11100 = vmatmul.msk.f32.gmra.mxu2 %vm462_vm1, %v10970_v9  ;;  %v10974_v18 = vld [vmem:[%s11783_s29 + $0x3d8] sm:$0xff] }
 0x7cd   : > { %11358 = vmatmul.msk.f32.gmra.mxu3 %vm462_vm1, %v11228_v32 }
 0x7ce   : > { %11616 = vmatmul.msk.f32.gmra.mxu0 %vm462_vm1, %v15291_v44  ;;  %v9438_v11 = vadd.f32 %v15163_v53, %v9306_v37  ;;  %v11233_v37 = vld [vmem:[%s11783_s29 + $0x3e9] sm:$0xff] }
 0x7cf   : > { %v6973_v50 = vpop.f32.mrf.mxu2 }
 0x7d0   : > { %9567 = vst.msk [vmem:[%s14234_s12 + $0x230] sm:$0xff] %vm9496_vm2, %v9438_v11  ;;  %v7215_v46 = vadd.f32 %v6973_v50, %v6168_v48  ;;  %v8019_v20 = vpop.f32.mrf.mxu3  ;;  %v5929_v23 = vpop.f32.mrf.mxu1  ;;  %v15366_v48 = vld [vmem:[%s11783_s29 + $0x3ea] sm:$0xff]  ;;  %v16277_v50 = vld [vmem:[#allocation9_spill] sm:$0xff] }
 0x7d1   : > { %v6169_v31 = vadd.f32 %v5929_v23, %v16273_v54 }
 0x7d2   : > { %v8261_v60 = vadd.f32 %v8019_v20, %v7215_v46 }
 0x7d3   : > { %v9068_v6 = vpop.f32.mrf.mxu0  ;;  %10843 = vmatmul.msk.f32.gmra.mxu1 %vm462_vm1, %v15246_v27 }
 0x7d4   : > { %v9307_v36 = vadd.f32 %v9065_v7, %v8261_v60  ;;  %11101 = vmatmul.msk.f32.gmra.mxu2 %vm462_vm1, %v10971_v28  ;;  %v10975_v7 = vld [vmem:[%s11783_s29 + $0x3e8] sm:$0xff] }
 0x7d5   : > { %11359 = vmatmul.msk.f32.gmra.mxu3 %vm462_vm1, %v11229_v43 }
 0x7d6   : > { %11617 = vmatmul.msk.f32.gmra.mxu0 %vm462_vm1, %v15306_v14  ;;  %v9439_v19 = vadd.f32 %v15163_v53, %v9307_v36  ;;  %v11234_v36 = vld [vmem:[%s11783_s29 + $0x3f1] sm:$0xff] }
 0x7d7   : > { %v6976_v17 = vpop.f32.mrf.mxu2 }
 0x7d8   : > { %9568 = vst.msk [vmem:[%s14234_s12 + $0x238] sm:$0xff] %vm9496_vm2, %v9439_v19  ;;  %v7216_v57 = vadd.f32 %v6976_v17, %v6169_v31  ;;  %v8022_v16 = vpop.f32.mrf.mxu3  ;;  %v5932_v33 = vpop.f32.mrf.mxu1  ;;  %v15381_v31 = vld [vmem:[%s11783_s29 + $0x3f2] sm:$0xff] }
 0x7d9   : > { %v6170_v2 = vadd.f32 %v5932_v33, %v16274_v26  ;;  %v16278_v17 = vld [vmem:[#allocation12_spill] sm:$0xff] }
 0x7da   : > { %v8262_v27 = vadd.f32 %v8022_v16, %v7216_v57 }
 0x7db   : > { %v9071_v40 = vpop.f32.mrf.mxu0  ;;  %10844 = vmatmul.msk.f32.gmra.mxu1 %vm462_vm1, %v15261_v63 }
 0x7dc   : > { %v9308_v30 = vadd.f32 %v9068_v6, %v8262_v27  ;;  %11102 = vmatmul.msk.f32.gmra.mxu2 %vm462_vm1, %v10972_v21  ;;  %v10976_v6 = vld [vmem:[%s11783_s29 + $0x3f0] sm:$0xff] }
 0x7dd   : > { %11360 = vmatmul.msk.f32.gmra.mxu3 %vm462_vm1, %v11230_v34 }
 0x7de   : > { %11618 = vmatmul.msk.f32.gmra.mxu0 %vm462_vm1, %v15321_v4  ;;  %v9440_v58 = vadd.f32 %v15163_v53, %v9308_v30  ;;  %v11235_v30 = vld [vmem:[%s11783_s29 + $0x3f9] sm:$0xff] }
 0x7df   : > { %v6979_v29 = vpop.f32.mrf.mxu2 }
 0x7e0   : > { %9569 = vst.msk [vmem:[%s14234_s12 + $0x240] sm:$0xff] %vm9496_vm2, %v9440_v58  ;;  %v7217_v3 = vadd.f32 %v6979_v29, %v6170_v2  ;;  %v8025_v59 = vpop.f32.mrf.mxu3  ;;  %v5935_v41 = vpop.f32.mrf.mxu1  ;;  %v15396_v2 = vld [vmem:[%s11783_s29 + $0x3fa] sm:$0xff]  ;;  %v16279_v29 = vld [vmem:[#allocation15_spill] sm:$0xff] }
 0x7e1   : > { %v6171_v62 = vadd.f32 %v5935_v41, %v16275_v22 }
 0x7e2   : > { %v8263_v63 = vadd.f32 %v8025_v59, %v7217_v3 }
 0x7e3   : > { %v9074_v39 = vpop.f32.mrf.mxu0  ;;  %10845 = vmatmul.msk.f32.gmra.mxu1 %vm462_vm1, %v15276_v56 }
 0x7e4   : > { %v9309_v52 = vadd.f32 %v9071_v40, %v8263_v63  ;;  %11103 = vmatmul.msk.f32.gmra.mxu2 %vm462_vm1, %v10973_v0  ;;  %v10977_v40 = vld [vmem:[%s11783_s29 + $0x3f8] sm:$0xff] }
 0x7e5   : > { %11361 = vmatmul.msk.f32.gmra.mxu3 %vm462_vm1, %v11231_v35 }
 0x7e6   : > { %11619 = vmatmul.msk.f32.gmra.mxu0 %vm462_vm1, %v15336_v24  ;;  %v9441_v12 = vadd.f32 %v15163_v53, %v9309_v52  ;;  %v11236_v52 = vld [vmem:[%s11783_s29 + $0x401] sm:$0xff] }
 0x7e7   : > { %v6982_v38 = vpop.f32.mrf.mxu2 }
 0x7e8   : > { %9570 = vst.msk [vmem:[%s14234_s12 + $0x248] sm:$0xff] %vm9496_vm2, %v9441_v12  ;;  %v7218_v13 = vadd.f32 %v6982_v38, %v6171_v62  ;;  %v8028_v25 = vpop.f32.mrf.mxu3  ;;  %v5938_v45 = vpop.f32.mrf.mxu1  ;;  %v15411_v62 = vld [vmem:[%s11783_s29 + $0x402] sm:$0xff] }
 0x7e9   : > { %v6172_v1 = vadd.f32 %v5938_v45, %v16276_v15  ;;  %v16280_v38 = vld [vmem:[#allocation18_spill] sm:$0xff] }
 0x7ea   : > { %v8264_v56 = vadd.f32 %v8028_v25, %v7218_v13 }
 0x7eb   : > { %v9077_v61 = vpop.f32.mrf.mxu0  ;;  %10846 = vmatmul.msk.f32.gmra.mxu1 %vm462_vm1, %v15291_v44 }
 0x7ec   : > { %v9310_v42 = vadd.f32 %v9074_v39, %v8264_v56  ;;  %11104 = vmatmul.msk.f32.gmra.mxu2 %vm462_vm1, %v10974_v18  ;;  %v10978_v39 = vld [vmem:[%s11783_s29 + $0x400] sm:$0xff] }
 0x7ed   : > { %11362 = vmatmul.msk.f32.gmra.mxu3 %vm462_vm1, %v11232_v49 }
 0x7ee   : > { %11620 = vmatmul.msk.f32.gmra.mxu0 %vm462_vm1, %v15351_v5  ;;  %v9442_v8 = vadd.f32 %v15163_v53, %v9310_v42  ;;  %v11237_v42 = vld [vmem:[%s11783_s29 + $0x411] sm:$0xff] }
 0x7ef   : > { %v6985_v47 = vpop.f32.mrf.mxu2 }
 0x7f0   : > { %9571 = vst.msk [vmem:[%s14234_s12 + $0x250] sm:$0xff] %vm9496_vm2, %v9442_v8  ;;  %v7219_v9 = vadd.f32 %v6985_v47, %v6172_v1  ;;  %v8031_v10 = vpop.f32.mrf.mxu3  ;;  %v5941_v32 = vpop.f32.mrf.mxu1  ;;  %v15426_v1 = vld [vmem:[%s11783_s29 + $0x412] sm:$0xff] }
 0x7f1   : > { %v6173_v46 = vadd.f32 %v5941_v32, %v16277_v50  ;;  %v16281_v47 = vld [vmem:[#allocation21_spill] sm:$0xff] }
 0x7f2   : > { %v8265_v44 = vadd.f32 %v8031_v10, %v7219_v9 }
 0x7f3   : > { %v9080_v51 = vpop.f32.mrf.mxu0  ;;  %10847 = vmatmul.msk.f32.gmra.mxu1 %vm462_vm1, %v15306_v14 }
 0x7f4   : > { %v9311_v11 = vadd.f32 %v9077_v61, %v8265_v44  ;;  %11105 = vmatmul.msk.f32.gmra.mxu2 %vm462_vm1, %v10975_v7  ;;  %v10979_v61 = vld [vmem:[%s11783_s29 + $0x410] sm:$0xff] }
 0x7f5   : > { %11363 = vmatmul.msk.f32.gmra.mxu3 %vm462_vm1, %v11233_v37 }
 0x7f6   : > { %11621 = vmatmul.msk.f32.gmra.mxu0 %vm462_vm1, %v15366_v48  ;;  %v9443_v20 = vadd.f32 %v15163_v53, %v9311_v11  ;;  %v11238_v11 = vld [vmem:[%s11783_s29 + $0x419] sm:$0xff] }
 0x7f7   : > { %v6988_v23 = vpop.f32.mrf.mxu2 }
 0x7f8   : > { %9572 = vst.msk [vmem:[%s14234_s12 + $0x258] sm:$0xff] %vm9496_vm2, %v9443_v20  ;;  %v7220_v28 = vadd.f32 %v6988_v23, %v6173_v46  ;;  %v8034_v60 = vpop.f32.mrf.mxu3  ;;  %v5944_v43 = vpop.f32.mrf.mxu1  ;;  %v15441_v46 = vld [vmem:[%s11783_s29 + $0x41a] sm:$0xff]  ;;  %v16282_v23 = vld [vmem:[#allocation24_spill] sm:$0xff] }
 0x7f9   : > { %v6174_v57 = vadd.f32 %v5944_v43, %v16278_v17 }
 0x7fa   : > { %v8266_v14 = vadd.f32 %v8034_v60, %v7220_v28 }
 0x7fb   : > { %v9083_v54 = vpop.f32.mrf.mxu0  ;;  %10848 = vmatmul.msk.f32.gmra.mxu1 %vm462_vm1, %v15321_v4 }
 0x7fc   : > { %v9312_v19 = vadd.f32 %v9080_v51, %v8266_v14  ;;  %11106 = vmatmul.msk.f32.gmra.mxu2 %vm462_vm1, %v10976_v6  ;;  %v10980_v51 = vld [vmem:[%s11783_s29 + $0x418] sm:$0xff] }
 0x7fd   : > { %11364 = vmatmul.msk.f32.gmra.mxu3 %vm462_vm1, %v11234_v36 }
 0x7fe   : > { %11622 = vmatmul.msk.f32.gmra.mxu0 %vm462_vm1, %v15381_v31  ;;  %v9444_v16 = vadd.f32 %v15163_v53, %v9312_v19  ;;  %v11239_v19 = vld [vmem:[%s11783_s29 + $0x421] sm:$0xff] }
 0x7ff   : > { %v6991_v33 = vpop.f32.mrf.mxu2 }
 0x800   : > { %9573 = vst.msk [vmem:[%s14234_s12 + $0x260] sm:$0xff] %vm9496_vm2, %v9444_v16  ;;  %v7221_v21 = vadd.f32 %v6991_v33, %v6174_v57  ;;  %v8037_v27 = vpop.f32.mrf.mxu3  ;;  %v5947_v34 = vpop.f32.mrf.mxu1  ;;  %v15456_v57 = vld [vmem:[%s11783_s29 + $0x422] sm:$0xff] }
 0x801   : > { %v6175_v3 = vadd.f32 %v5947_v34, %v16279_v29  ;;  %v16283_v33 = vld [vmem:[#allocation27_spill] sm:$0xff] }
 0x802   : > { %v8267_v4 = vadd.f32 %v8037_v27, %v7221_v21 }
 0x803   : > { %v9086_v26 = vpop.f32.mrf.mxu0  ;;  %10849 = vmatmul.msk.f32.gmra.mxu1 %vm462_vm1, %v15336_v24 }
 0x804   : > { %v9313_v58 = vadd.f32 %v9083_v54, %v8267_v4  ;;  %11107 = vmatmul.msk.f32.gmra.mxu2 %vm462_vm1, %v10977_v40  ;;  %v10981_v54 = vld [vmem:[%s11783_s29 + $0x420] sm:$0xff] }
 0x805   : > { %11365 = vmatmul.msk.f32.gmra.mxu3 %vm462_vm1, %v11235_v30 }
 0x806   : > { %11623 = vmatmul.msk.f32.gmra.mxu0 %vm462_vm1, %v15396_v2  ;;  %v9445_v59 = vadd.f32 %v15163_v53, %v9313_v58  ;;  %v11240_v58 = vld [vmem:[%s11783_s29 + $0x429] sm:$0xff] }
 0x807   : > { %v6994_v41 = vpop.f32.mrf.mxu2 }
 0x808   : > { %9574 = vst.msk [vmem:[%s14234_s12 + $0x268] sm:$0xff] %vm9496_vm2, %v9445_v59  ;;  %v7222_v0 = vadd.f32 %v6994_v41, %v6175_v3  ;;  %v8040_v63 = vpop.f32.mrf.mxu3  ;;  %v5950_v35 = vpop.f32.mrf.mxu1  ;;  %v15471_v3 = vld [vmem:[%s11783_s29 + $0x42a] sm:$0xff]  ;;  %v16284_v41 = vld [vmem:[#allocation30_spill] sm:$0xff] }
 0x809   : > { %v6176_v13 = vadd.f32 %v5950_v35, %v16280_v38 }
 0x80a   : > { %v8268_v24 = vadd.f32 %v8040_v63, %v7222_v0 }
 0x80b   : > { %v9089_v22 = vpop.f32.mrf.mxu0  ;;  %10850 = vmatmul.msk.f32.gmra.mxu1 %vm462_vm1, %v15351_v5 }
 0x80c   : > { %v9314_v12 = vadd.f32 %v9086_v26, %v8268_v24  ;;  %11108 = vmatmul.msk.f32.gmra.mxu2 %vm462_vm1, %v10978_v39  ;;  %v10982_v26 = vld [vmem:[%s11783_s29 + $0x428] sm:$0xff] }
 0x80d   : > { %11366 = vmatmul.msk.f32.gmra.mxu3 %vm462_vm1, %v11236_v52 }
 0x80e   : > { %11624 = vmatmul.msk.f32.gmra.mxu0 %vm462_vm1, %v15411_v62  ;;  %v9446_v25 = vadd.f32 %v15163_v53, %v9314_v12  ;;  %v11241_v12 = vld [vmem:[%s11783_s29 + $0x439] sm:$0xff] }
 0x80f   : > { %v6997_v45 = vpop.f32.mrf.mxu2 }
 0x810   : > { %9575 = vst.msk [vmem:[%s14234_s12 + $0x270] sm:$0xff] %vm9496_vm2, %v9446_v25  ;;  %v7223_v18 = vadd.f32 %v6997_v45, %v6176_v13  ;;  %v8043_v56 = vpop.f32.mrf.mxu3  ;;  %v5953_v49 = vpop.f32.mrf.mxu1  ;;  %v15486_v13 = vld [vmem:[%s11783_s29 + $0x43a] sm:$0xff] }
 0x811   : > { %v6177_v9 = vadd.f32 %v5953_v49, %v16281_v47  ;;  %v16285_v45 = vld [vmem:[#allocation33_spill] sm:$0xff] }
 0x812   : > { %v8269_v5 = vadd.f32 %v8043_v56, %v7223_v18 }
 0x813   : > { %v9092_v15 = vpop.f32.mrf.mxu0  ;;  %10851 = vmatmul.msk.f32.gmra.mxu1 %vm462_vm1, %v15366_v48 }
 0x814   : > { %v9315_v8 = vadd.f32 %v9089_v22, %v8269_v5  ;;  %11109 = vmatmul.msk.f32.gmra.mxu2 %vm462_vm1, %v10979_v61  ;;  %v10983_v22 = vld [vmem:[%s11783_s29 + $0x438] sm:$0xff] }
 0x815   : > { %11367 = vmatmul.msk.f32.gmra.mxu3 %vm462_vm1, %v11237_v42 }
 0x816   : > { %11625 = vmatmul.msk.f32.gmra.mxu0 %vm462_vm1, %v15426_v1  ;;  %v9447_v10 = vadd.f32 %v15163_v53, %v9315_v8  ;;  %v11242_v8 = vld [vmem:[%s11783_s29 + $0x441] sm:$0xff] }
 0x817   : > { %v7000_v32 = vpop.f32.mrf.mxu2 }
 0x818   : > { %9576 = vst.msk [vmem:[%s14234_s12 + $0x278] sm:$0xff] %vm9496_vm2, %v9447_v10  ;;  %v7224_v7 = vadd.f32 %v7000_v32, %v6177_v9  ;;  %v8046_v44 = vpop.f32.mrf.mxu3  ;;  %v5956_v37 = vpop.f32.mrf.mxu1  ;;  %v15501_v9 = vld [vmem:[%s11783_s29 + $0x442] sm:$0xff]  ;;  %v16286_v32 = vld [vmem:[#allocation36_spill] sm:$0xff] }
 0x819   : > { %v6178_v28 = vadd.f32 %v5956_v37, %v16282_v23 }
 0x81a   : > { %v8270_v48 = vadd.f32 %v8046_v44, %v7224_v7 }
 0x81b   : > { %v9095_v50 = vpop.f32.mrf.mxu0  ;;  %10852 = vmatmul.msk.f32.gmra.mxu1 %vm462_vm1, %v15381_v31 }
 0x81c   : > { %v9316_v20 = vadd.f32 %v9092_v15, %v8270_v48  ;;  %11110 = vmatmul.msk.f32.gmra.mxu2 %vm462_vm1, %v10980_v51  ;;  %v10984_v15 = vld [vmem:[%s11783_s29 + $0x440] sm:$0xff] }
 0x81d   : > { %11368 = vmatmul.msk.f32.gmra.mxu3 %vm462_vm1, %v11238_v11 }
 0x81e   : > { %11626 = vmatmul.msk.f32.gmra.mxu0 %vm462_vm1, %v15441_v46  ;;  %v9448_v60 = vadd.f32 %v15163_v53, %v9316_v20  ;;  %v11243_v20 = vld [vmem:[%s11783_s29 + $0x449] sm:$0xff] }
 0x81f   : > { %v7003_v43 = vpop.f32.mrf.mxu2 }
 0x820   : > { %9577 = vst.msk [vmem:[%s14234_s12 + $0x280] sm:$0xff] %vm9496_vm2, %v9448_v60  ;;  %v7225_v6 = vadd.f32 %v7003_v43, %v6178_v28  ;;  %v8049_v14 = vpop.f32.mrf.mxu3  ;;  %v5959_v36 = vpop.f32.mrf.mxu1  ;;  %v15516_v28 = vld [vmem:[%s11783_s29 + $0x44a] sm:$0xff] }
 0x821   : > { %v6179_v21 = vadd.f32 %v5959_v36, %v16283_v33  ;;  %v16287_v43 = vld [vmem:[#allocation39_spill] sm:$0xff] }
 0x822   : > { %v8271_v31 = vadd.f32 %v8049_v14, %v7225_v6 }
 0x823   : > { %v9098_v17 = vpop.f32.mrf.mxu0  ;;  %10853 = vmatmul.msk.f32.gmra.mxu1 %vm462_vm1, %v15396_v2 }
 0x824   : > { %v9317_v16 = vadd.f32 %v9095_v50, %v8271_v31  ;;  %11111 = vmatmul.msk.f32.gmra.mxu2 %vm462_vm1, %v10981_v54  ;;  %v10985_v50 = vld [vmem:[%s11783_s29 + $0x448] sm:$0xff] }
 0x825   : > { %11369 = vmatmul.msk.f32.gmra.mxu3 %vm462_vm1, %v11239_v19 }
 0x826   : > { %11627 = vmatmul.msk.f32.gmra.mxu0 %vm462_vm1, %v15456_v57  ;;  %v9449_v27 = vadd.f32 %v15163_v53, %v9317_v16  ;;  %v11244_v16 = vld [vmem:[%s11783_s29 + $0x451] sm:$0xff] }
 0x827   : > { %v7006_v34 = vpop.f32.mrf.mxu2 }
 0x828   : > { %9578 = vst.msk [vmem:[%s14234_s12 + $0x288] sm:$0xff] %vm9496_vm2, %v9449_v27  ;;  %v7226_v40 = vadd.f32 %v7006_v34, %v6179_v21  ;;  %v8052_v4 = vpop.f32.mrf.mxu3  ;;  %v5962_v30 = vpop.f32.mrf.mxu1  ;;  %v15531_v21 = vld [vmem:[%s11783_s29 + $0x452] sm:$0xff]  ;;  %v16288_v34 = vld [vmem:[#allocation42_spill] sm:$0xff] }
 0x829   : > { %v6180_v0 = vadd.f32 %v5962_v30, %v16284_v41 }
 0x82a   : > { %v8272_v2 = vadd.f32 %v8052_v4, %v7226_v40 }
 0x82b   : > { %v9101_v29 = vpop.f32.mrf.mxu0  ;;  %10854 = vmatmul.msk.f32.gmra.mxu1 %vm462_vm1, %v15411_v62 }
 0x82c   : > { %v9318_v59 = vadd.f32 %v9098_v17, %v8272_v2  ;;  %11112 = vmatmul.msk.f32.gmra.mxu2 %vm462_vm1, %v10982_v26  ;;  %v10986_v17 = vld [vmem:[%s11783_s29 + $0x450] sm:$0xff] }
 0x82d   : > { %11370 = vmatmul.msk.f32.gmra.mxu3 %vm462_vm1, %v11240_v58 }
 0x82e   : > { %11628 = vmatmul.msk.f32.gmra.mxu0 %vm462_vm1, %v15471_v3  ;;  %v9450_v63 = vadd.f32 %v15163_v53, %v9318_v59  ;;  %v11245_v59 = vld [vmem:[%s11783_s29 + $0x461] sm:$0xff] }
 0x82f   : > { %v7009_v35 = vpop.f32.mrf.mxu2 }
 0x830   : > { %9579 = vst.msk [vmem:[%s14234_s12 + $0x290] sm:$0xff] %vm9496_vm2, %v9450_v63  ;;  %v7227_v39 = vadd.f32 %v7009_v35, %v6180_v0  ;;  %v8055_v24 = vpop.f32.mrf.mxu3  ;;  %v5965_v52 = vpop.f32.mrf.mxu1  ;;  %v15546_v0 = vld [vmem:[%s11783_s29 + $0x462] sm:$0xff]  ;;  %v16289_v35 = vld [vmem:[#allocation45_spill] sm:$0xff] }
 0x831   : > { %v6181_v18 = vadd.f32 %v5965_v52, %v16285_v45 }
 0x832   : > { %v8273_v62 = vadd.f32 %v8055_v24, %v7227_v39 }
 0x833   : > { %v9104_v38 = vpop.f32.mrf.mxu0  ;;  %10855 = vmatmul.msk.f32.gmra.mxu1 %vm462_vm1, %v15426_v1 }
 0x834   : > { %v9319_v25 = vadd.f32 %v9101_v29, %v8273_v62  ;;  %11113 = vmatmul.msk.f32.gmra.mxu2 %vm462_vm1, %v10983_v22  ;;  %v10987_v29 = vld [vmem:[%s11783_s29 + $0x460] sm:$0xff] }
 0x835   : > { %11371 = vmatmul.msk.f32.gmra.mxu3 %vm462_vm1, %v11241_v12 }
 0x836   : > { %11629 = vmatmul.msk.f32.gmra.mxu0 %vm462_vm1, %v15486_v13  ;;  %v9451_v56 = vadd.f32 %v15163_v53, %v9319_v25  ;;  %v11246_v25 = vld [vmem:[%s11783_s29 + $0x469] sm:$0xff] }
 0x837   : > { %v7012_v49 = vpop.f32.mrf.mxu2 }
 0x838   : > { %9580 = vst.msk [vmem:[%s14234_s12 + $0x298] sm:$0xff] %vm9496_vm2, %v9451_v56  ;;  %v7228_v61 = vadd.f32 %v7012_v49, %v6181_v18  ;;  %v8058_v5 = vpop.f32.mrf.mxu3  ;;  %v5968_v42 = vpop.f32.mrf.mxu1  ;;  %v15561_v18 = vld [vmem:[%s11783_s29 + $0x46a] sm:$0xff] }
 0x839   : > { %v6182_v7 = vadd.f32 %v5968_v42, %v16286_v32  ;;  %v16290_v49 = vld [vmem:[#allocation48_spill] sm:$0xff] }
 0x83a   : > { %v8274_v1 = vadd.f32 %v8058_v5, %v7228_v61 }
 0x83b   : > { %v9107_v47 = vpop.f32.mrf.mxu0  ;;  %10856 = vmatmul.msk.f32.gmra.mxu1 %vm462_vm1, %v15441_v46 }
 0x83c   : > { %v9320_v10 = vadd.f32 %v9104_v38, %v8274_v1  ;;  %11114 = vmatmul.msk.f32.gmra.mxu2 %vm462_vm1, %v10984_v15  ;;  %v10988_v38 = vld [vmem:[%s11783_s29 + $0x468] sm:$0xff] }
 0x83d   : > { %11372 = vmatmul.msk.f32.gmra.mxu3 %vm462_vm1, %v11242_v8 }
 0x83e   : > { %11630 = vmatmul.msk.f32.gmra.mxu0 %vm462_vm1, %v15501_v9  ;;  %v9452_v44 = vadd.f32 %v15163_v53, %v9320_v10  ;;  %v11247_v10 = vld [vmem:[%s11783_s29 + $0x471] sm:$0xff] }
 0x83f   : > { %v7015_v37 = vpop.f32.mrf.mxu2 }
 0x840   : > { %9581 = vst.msk [vmem:[%s14234_s12 + $0x2a0] sm:$0xff] %vm9496_vm2, %v9452_v44  ;;  %v7229_v51 = vadd.f32 %v7015_v37, %v6182_v7  ;;  %v8061_v48 = vpop.f32.mrf.mxu3  ;;  %v5971_v11 = vpop.f32.mrf.mxu1  ;;  %v15576_v7 = vld [vmem:[%s11783_s29 + $0x472] sm:$0xff]  ;;  %v16291_v37 = vld [vmem:[#allocation51_spill] sm:$0xff] }
 0x841   : > { %v6183_v6 = vadd.f32 %v5971_v11, %v16287_v43 }
 0x842   : > { %v8275_v46 = vadd.f32 %v8061_v48, %v7229_v51 }
 0x843   : > { %v9110_v23 = vpop.f32.mrf.mxu0  ;;  %10857 = vmatmul.msk.f32.gmra.mxu1 %vm462_vm1, %v15456_v57 }
 0x844   : > { %v9321_v60 = vadd.f32 %v9107_v47, %v8275_v46  ;;  %11115 = vmatmul.msk.f32.gmra.mxu2 %vm462_vm1, %v10985_v50  ;;  %v10989_v47 = vld [vmem:[%s11783_s29 + $0x470] sm:$0xff] }
 0x845   : > { %11373 = vmatmul.msk.f32.gmra.mxu3 %vm462_vm1, %v11243_v20 }
 0x846   : > { %11631 = vmatmul.msk.f32.gmra.mxu0 %vm462_vm1, %v15516_v28  ;;  %v9453_v14 = vadd.f32 %v15163_v53, %v9321_v60  ;;  %v11248_v60 = vld [vmem:[%s11783_s29 + $0x479] sm:$0xff] }
 0x847   : > { %v7018_v36 = vpop.f32.mrf.mxu2 }
 0x848   : > { %9582 = vst.msk [vmem:[%s14234_s12 + $0x2a8] sm:$0xff] %vm9496_vm2, %v9453_v14  ;;  %v7230_v54 = vadd.f32 %v7018_v36, %v6183_v6  ;;  %v8064_v31 = vpop.f32.mrf.mxu3  ;;  %v5974_v19 = vpop.f32.mrf.mxu1  ;;  %v15591_v6 = vld [vmem:[%s11783_s29 + $0x47a] sm:$0xff] }
 0x849   : > { %v6184_v40 = vadd.f32 %v5974_v19, %v16288_v34  ;;  %v16292_v36 = vld [vmem:[#allocation54_spill] sm:$0xff] }
 0x84a   : > { %v8276_v57 = vadd.f32 %v8064_v31, %v7230_v54 }
 0x84b   : > { %v9113_v33 = vpop.f32.mrf.mxu0  ;;  %10858 = vmatmul.msk.f32.gmra.mxu1 %vm462_vm1, %v15471_v3 }
 0x84c   : > { %v9322_v27 = vadd.f32 %v9110_v23, %v8276_v57  ;;  %11116 = vmatmul.msk.f32.gmra.mxu2 %vm462_vm1, %v10986_v17  ;;  %v10990_v23 = vld [vmem:[%s11783_s29 + $0x478] sm:$0xff] }
 0x84d   : > { %11374 = vmatmul.msk.f32.gmra.mxu3 %vm462_vm1, %v11244_v16 }
 0x84e   : > { %11632 = vmatmul.msk.f32.gmra.mxu0 %vm462_vm1, %v15531_v21  ;;  %v9454_v4 = vadd.f32 %v15163_v53, %v9322_v27  ;;  %v11249_v27 = vld [vmem:[%s11783_s29 + $0x489] sm:$0xff] }
 0x84f   : > { %v7021_v30 = vpop.f32.mrf.mxu2 }
 0x850   : > { %9583 = vst.msk [vmem:[%s14234_s12 + $0x2b0] sm:$0xff] %vm9496_vm2, %v9454_v4  ;;  %v7231_v26 = vadd.f32 %v7021_v30, %v6184_v40  ;;  %v8067_v2 = vpop.f32.mrf.mxu3  ;;  %v5977_v58 = vpop.f32.mrf.mxu1  ;;  %v15606_v40 = vld [vmem:[%s11783_s29 + $0x48a] sm:$0xff]  ;;  %v16293_v30 = vld [vmem:[#allocation57_spill] sm:$0xff] }
 0x851   : > { %v6185_v39 = vadd.f32 %v5977_v58, %v16289_v35 }
 0x852   : > { %v8277_v3 = vadd.f32 %v8067_v2, %v7231_v26 }
 0x853   : > { %v9116_v41 = vpop.f32.mrf.mxu0  ;;  %10859 = vmatmul.msk.f32.gmra.mxu1 %vm462_vm1, %v15486_v13 }
 0x854   : > { %v9323_v63 = vadd.f32 %v9113_v33, %v8277_v3  ;;  %11117 = vmatmul.msk.f32.gmra.mxu2 %vm462_vm1, %v10987_v29  ;;  %v10991_v33 = vld [vmem:[%s11783_s29 + $0x488] sm:$0xff] }
 0x855   : > { %11375 = vmatmul.msk.f32.gmra.mxu3 %vm462_vm1, %v11245_v59 }
 0x856   : > { %11633 = vmatmul.msk.f32.gmra.mxu0 %vm462_vm1, %v15546_v0  ;;  %v9455_v24 = vadd.f32 %v15163_v53, %v9323_v63  ;;  %v11250_v63 = vld [vmem:[%s11783_s29 + $0x491] sm:$0xff] }
 0x857   : > { %v7024_v52 = vpop.f32.mrf.mxu2 }
 0x858   : > { %9584 = vst.msk [vmem:[%s14234_s12 + $0x2b8] sm:$0xff] %vm9496_vm2, %v9455_v24  ;;  %v7232_v22 = vadd.f32 %v7024_v52, %v6185_v39  ;;  %v8070_v62 = vpop.f32.mrf.mxu3  ;;  %v5980_v12 = vpop.f32.mrf.mxu1  ;;  %v15621_v39 = vld [vmem:[%s11783_s29 + $0x492] sm:$0xff] }
 0x859   : > { %v6186_v61 = vadd.f32 %v5980_v12, %v16290_v49 }
 0x85a   : > { %v8278_v13 = vadd.f32 %v8070_v62, %v7232_v22  ;;  %v15633_v22 = vld [vmem:[%s15974_s2] ss:$0 sm:$0xff] }
 0x85b   : > { %v9119_v45 = vpop.f32.mrf.mxu0  ;;  %10860 = vmatmul.msk.f32.gmra.mxu1 %vm462_vm1, %v15501_v9 }
 0x85c   : > { %v9324_v56 = vadd.f32 %v9116_v41, %v8278_v13  ;;  %11118 = vmatmul.msk.f32.gmra.mxu2 %vm462_vm1, %v10988_v38  ;;  %v10992_v41 = vld [vmem:[%s11783_s29 + $0x490] sm:$0xff] }
 0x85d   : > { %11376 = vmatmul.msk.f32.gmra.mxu3 %vm462_vm1, %v11246_v25 }
 0x85e   : > { %11634 = vmatmul.msk.f32.gmra.mxu0 %vm462_vm1, %v15561_v18  ;;  %v9456_v5 = vadd.f32 %v15163_v53, %v9324_v56  ;;  %v11251_v56 = vld [vmem:[%s11783_s29 + $0x499] sm:$0xff] }
 0x85f   : > { %v7027_v42 = vpop.f32.mrf.mxu2 }
 0x860   : > { %9585 = vst.msk [vmem:[%s14234_s12 + $0x2c0] sm:$0xff] %vm9496_vm2, %v9456_v5  ;;  %v7233_v15 = vadd.f32 %v7027_v42, %v6186_v61  ;;  %v8073_v1 = vpop.f32.mrf.mxu3  ;;  %v5983_v8 = vpop.f32.mrf.mxu1  ;;  %v15641_v61 = vld [vmem:[%s11783_s29 + $0x49a] sm:$0xff]  ;;  %v16295_v42 = vld [vmem:[#allocation63_spill] sm:$0xff] }
 0x861   : > { %v6187_v51 = vadd.f32 %v5983_v8, %v16291_v37 }
 0x862   : > { %v8279_v9 = vadd.f32 %v8073_v1, %v7233_v15 }
 0x863   : > { %v9122_v32 = vpop.f32.mrf.mxu0  ;;  %10861 = vmatmul.msk.f32.gmra.mxu1 %vm462_vm1, %v15516_v28 }
 0x864   : > { %v9325_v44 = vadd.f32 %v9119_v45, %v8279_v9  ;;  %11119 = vmatmul.msk.f32.gmra.mxu2 %vm462_vm1, %v10989_v47  ;;  %v10993_v45 = vld [vmem:[%s11783_s29 + $0x498] sm:$0xff] }
 0x865   : > { %11377 = vmatmul.msk.f32.gmra.mxu3 %vm462_vm1, %v11247_v10 }
 0x866   : > { %11635 = vmatmul.msk.f32.gmra.mxu0 %vm462_vm1, %v15576_v7  ;;  %v9457_v48 = vadd.f32 %v15163_v53, %v9325_v44  ;;  %v11252_v44 = vld [vmem:[%s11783_s29 + $0x4a1] sm:$0xff] }
 0x867   : > { %v7030_v11 = vpop.f32.mrf.mxu2 }
 0x868   : > { %9586 = vst.msk [vmem:[%s14234_s12 + $0x2c8] sm:$0xff] %vm9496_vm2, %v9457_v48  ;;  %v7234_v50 = vadd.f32 %v7030_v11, %v6187_v51  ;;  %v8076_v46 = vpop.f32.mrf.mxu3  ;;  %v5986_v20 = vpop.f32.mrf.mxu1  ;;  %v15656_v51 = vld [vmem:[%s11783_s29 + $0x4a2] sm:$0xff] }
 0x869   : > { %v6188_v54 = vadd.f32 %v5986_v20, %v16292_v36  ;;  %v16296_v11 = vld [vmem:[#allocation66_spill] sm:$0xff] }
 0x86a   : > { %v8280_v28 = vadd.f32 %v8076_v46, %v7234_v50 }
 0x86b   : > { %v9125_v43 = vpop.f32.mrf.mxu0  ;;  %10862 = vmatmul.msk.f32.gmra.mxu1 %vm462_vm1, %v15531_v21 }
 0x86c   : > { %v9326_v14 = vadd.f32 %v9122_v32, %v8280_v28  ;;  %11120 = vmatmul.msk.f32.gmra.mxu2 %vm462_vm1, %v10990_v23  ;;  %v10994_v32 = vld [vmem:[%s11783_s29 + $0x4a0] sm:$0xff] }
 0x86d   : > { %11378 = vmatmul.msk.f32.gmra.mxu3 %vm462_vm1, %v11248_v60 }
 0x86e   : > { %11636 = vmatmul.msk.f32.gmra.mxu0 %vm462_vm1, %v15591_v6  ;;  %v9458_v31 = vadd.f32 %v15163_v53, %v9326_v14  ;;  %v11253_v14 = vld [vmem:[%s11783_s29 + $0x4b1] sm:$0xff] }
 0x86f   : > { %v7033_v19 = vpop.f32.mrf.mxu2 }
 0x870   : > { %9587 = vst.msk [vmem:[%s14234_s12 + $0x2d0] sm:$0xff] %vm9496_vm2, %v9458_v31  ;;  %v7235_v17 = vadd.f32 %v7033_v19, %v6188_v54  ;;  %v8079_v57 = vpop.f32.mrf.mxu3  ;;  %v5989_v16 = vpop.f32.mrf.mxu1  ;;  %v15671_v54 = vld [vmem:[%s11783_s29 + $0x4b2] sm:$0xff] }
 0x871   : > { %v6189_v26 = vadd.f32 %v5989_v16, %v16293_v30  ;;  %v16297_v19 = vld [vmem:[#allocation69_spill] sm:$0xff] }
 0x872   : > { %v8281_v21 = vadd.f32 %v8079_v57, %v7235_v17 }
 0x873   : > { %v9128_v34 = vpop.f32.mrf.mxu0  ;;  %10863 = vmatmul.msk.f32.gmra.mxu1 %vm462_vm1, %v15546_v0 }
 0x874   : > { %v9327_v4 = vadd.f32 %v9125_v43, %v8281_v21  ;;  %11121 = vmatmul.msk.f32.gmra.mxu2 %vm462_vm1, %v10991_v33  ;;  %v10995_v43 = vld [vmem:[%s11783_s29 + $0x4b0] sm:$0xff] }
 0x875   : > { %11379 = vmatmul.msk.f32.gmra.mxu3 %vm462_vm1, %v11249_v27 }
 0x876   : > { %11637 = vmatmul.msk.f32.gmra.mxu0 %vm462_vm1, %v15606_v40  ;;  %v9459_v2 = vadd.f32 %v15163_v53, %v9327_v4  ;;  %v16294_v53 = vld [vmem:[#allocation60_spill] sm:$0xff]  ;;  %v11254_v4 = vld [vmem:[%s11783_s29 + $0x4b9] sm:$0xff] }
 0x877   : > { %v7036_v58 = vpop.f32.mrf.mxu2 }
 0x878   : > { %9588 = vst.msk [vmem:[%s14234_s12 + $0x2d8] sm:$0xff] %vm9496_vm2, %v9459_v2  ;;  %v7236_v29 = vadd.f32 %v7036_v58, %v6189_v26  ;;  %v8082_v3 = vpop.f32.mrf.mxu3  ;;  %v5992_v59 = vpop.f32.mrf.mxu1  ;;  %v15686_v26 = vld [vmem:[%s11783_s29 + $0x4ba] sm:$0xff]  ;;  %v16298_v58 = vld [vmem:[#allocation72_spill] sm:$0xff] }
 0x879   : > { %v6190_v52 = vadd.f32 %v5992_v59, %v16294_v53 }
 0x87a   : > { %v8282_v0 = vadd.f32 %v8082_v3, %v7236_v29 }
 0x87b   : > { %v9131_v35 = vpop.f32.mrf.mxu0  ;;  %10864 = vmatmul.msk.f32.gmra.mxu1 %vm462_vm1, %v15561_v18 }
 0x87c   : > { %v9328_v24 = vadd.f32 %v9128_v34, %v8282_v0  ;;  %11122 = vmatmul.msk.f32.gmra.mxu2 %vm462_vm1, %v10992_v41  ;;  %v10996_v34 = vld [vmem:[%s11783_s29 + $0x4b8] sm:$0xff] }
 0x87d   : > { %11380 = vmatmul.msk.f32.gmra.mxu3 %vm462_vm1, %v11250_v63 }
 0x87e   : > { %11638 = vmatmul.msk.f32.gmra.mxu0 %vm462_vm1, %v15621_v39  ;;  %v9460_v62 = vadd.f32 %v15633_v22, %v9328_v24  ;;  %v11255_v24 = vld [vmem:[%s11783_s29 + $0x4c1] sm:$0xff] }
 0x87f   : > { %v7039_v12 = vpop.f32.mrf.mxu2 }
 0x880   : > { %9589 = vst.msk [vmem:[%s14234_s12 + $0x2e0] sm:$0xff] %vm9496_vm2, %v9460_v62  ;;  %v7237_v38 = vadd.f32 %v7039_v12, %v6190_v52  ;;  %v8085_v13 = vpop.f32.mrf.mxu3  ;;  %v5995_v25 = vpop.f32.mrf.mxu1  ;;  %v15701_v52 = vld [vmem:[%s11783_s29 + $0x4c2] sm:$0xff] }
 0x881   : > { %v6191_v15 = vadd.f32 %v5995_v25, %v16295_v42  ;;  %v16299_v12 = vld [vmem:[#allocation75_spill] sm:$0xff] }
 0x882   : > { %v8283_v18 = vadd.f32 %v8085_v13, %v7237_v38 }
 0x883   : > { %v9134_v49 = vpop.f32.mrf.mxu0  ;;  %10865 = vmatmul.msk.f32.gmra.mxu1 %vm462_vm1, %v15576_v7 }
 0x884   : > { %v9329_v5 = vadd.f32 %v9131_v35, %v8283_v18  ;;  %11123 = vmatmul.msk.f32.gmra.mxu2 %vm462_vm1, %v10993_v45  ;;  %v10997_v35 = vld [vmem:[%s11783_s29 + $0x4c0] sm:$0xff] }
 0x885   : > { %11381 = vmatmul.msk.f32.gmra.mxu3 %vm462_vm1, %v11251_v56 }
 0x886   : > { %11639 = vmatmul.msk.f32.gmra.mxu0 %vm462_vm1, %v15641_v61  ;;  %v9461_v1 = vadd.f32 %v15633_v22, %v9329_v5  ;;  %v11256_v5 = vld [vmem:[%s11783_s29 + $0x4c9] sm:$0xff] }
 0x887   : > { %v7042_v8 = vpop.f32.mrf.mxu2 }
 0x888   : > { %9590 = vst.msk [vmem:[%s14234_s12 + $0x2e8] sm:$0xff] %vm9496_vm2, %v9461_v1  ;;  %v7238_v47 = vadd.f32 %v7042_v8, %v6191_v15  ;;  %v8088_v9 = vpop.f32.mrf.mxu3  ;;  %v5998_v10 = vpop.f32.mrf.mxu1  ;;  %v15716_v15 = vld [vmem:[%s11783_s29 + $0x4ca] sm:$0xff]  ;;  %v16300_v8 = vld [vmem:[#allocation78_spill] sm:$0xff] }
 0x889   : > { %v6192_v50 = vadd.f32 %v5998_v10, %v16296_v11 }
 0x88a   : > { %v8284_v7 = vadd.f32 %v8088_v9, %v7238_v47 }
 0x88b   : > { %v9137_v37 = vpop.f32.mrf.mxu0  ;;  %10866 = vmatmul.msk.f32.gmra.mxu1 %vm462_vm1, %v15591_v6 }
 0x88c   : > { %v9330_v48 = vadd.f32 %v9134_v49, %v8284_v7  ;;  %11124 = vmatmul.msk.f32.gmra.mxu2 %vm462_vm1, %v10994_v32  ;;  %v10998_v49 = vld [vmem:[%s11783_s29 + $0x4c8] sm:$0xff] }
 0x88d   : > { %11382 = vmatmul.msk.f32.gmra.mxu3 %vm462_vm1, %v11252_v44 }
 0x88e   : > { %11640 = vmatmul.msk.f32.gmra.mxu0 %vm462_vm1, %v15656_v51  ;;  %v9462_v46 = vadd.f32 %v15633_v22, %v9330_v48  ;;  %v11257_v48 = vld [vmem:[%s11783_s29 + $0x4d9] sm:$0xff] }
 0x88f   : > { %v7045_v20 = vpop.f32.mrf.mxu2 }
 0x890   : > { %9591 = vst.msk [vmem:[%s14234_s12 + $0x2f0] sm:$0xff] %vm9496_vm2, %v9462_v46  ;;  %v7239_v23 = vadd.f32 %v7045_v20, %v6192_v50  ;;  %v8091_v28 = vpop.f32.mrf.mxu3  ;;  %v6001_v60 = vpop.f32.mrf.mxu1  ;;  %v15731_v50 = vld [vmem:[%s11783_s29 + $0x4da] sm:$0xff] }
 0x891   : > { %v6193_v17 = vadd.f32 %v6001_v60, %v16297_v19  ;;  %v16301_v20 = vld [vmem:[#allocation81_spill] sm:$0xff] }
 0x892   : > { %v8285_v6 = vadd.f32 %v8091_v28, %v7239_v23 }
 0x893   : > { %v9140_v36 = vpop.f32.mrf.mxu0  ;;  %10867 = vmatmul.msk.f32.gmra.mxu1 %vm462_vm1, %v15606_v40 }
 0x894   : > { %v9331_v31 = vadd.f32 %v9137_v37, %v8285_v6  ;;  %11125 = vmatmul.msk.f32.gmra.mxu2 %vm462_vm1, %v10995_v43  ;;  %v10999_v37 = vld [vmem:[%s11783_s29 + $0x4d8] sm:$0xff] }
 0x895   : > { %11383 = vmatmul.msk.f32.gmra.mxu3 %vm462_vm1, %v11253_v14 }
 0x896   : > { %11641 = vmatmul.msk.f32.gmra.mxu0 %vm462_vm1, %v15671_v54  ;;  %v9463_v57 = vadd.f32 %v15633_v22, %v9331_v31  ;;  %v11258_v31 = vld [vmem:[%s11783_s29 + $0x4e1] sm:$0xff] }
 0x897   : > { %v7048_v16 = vpop.f32.mrf.mxu2 }
 0x898   : > { %9592 = vst.msk [vmem:[%s14234_s12 + $0x2f8] sm:$0xff] %vm9496_vm2, %v9463_v57  ;;  %v7240_v33 = vadd.f32 %v7048_v16, %v6193_v17  ;;  %v8094_v21 = vpop.f32.mrf.mxu3  ;;  %v6004_v27 = vpop.f32.mrf.mxu1  ;;  %v15746_v17 = vld [vmem:[%s11783_s29 + $0x4e2] sm:$0xff]  ;;  %v16302_v16 = vld [vmem:[#allocation84_spill] sm:$0xff] }
 0x899   : > { %v6194_v29 = vadd.f32 %v6004_v27, %v16298_v58 }
 0x89a   : > { %v8286_v40 = vadd.f32 %v8094_v21, %v7240_v33 }
 0x89b   : > { %v9143_v30 = vpop.f32.mrf.mxu0  ;;  %10868 = vmatmul.msk.f32.gmra.mxu1 %vm462_vm1, %v15621_v39 }
 0x89c   : > { %v9332_v2 = vadd.f32 %v9140_v36, %v8286_v40  ;;  %11126 = vmatmul.msk.f32.gmra.mxu2 %vm462_vm1, %v10996_v34  ;;  %v11000_v36 = vld [vmem:[%s11783_s29 + $0x4e0] sm:$0xff] }
 0x89d   : > { %11384 = vmatmul.msk.f32.gmra.mxu3 %vm462_vm1, %v11254_v4 }
 0x89e   : > { %11642 = vmatmul.msk.f32.gmra.mxu0 %vm462_vm1, %v15686_v26  ;;  %v9464_v3 = vadd.f32 %v15633_v22, %v9332_v2  ;;  %v11259_v2 = vld [vmem:[%s11783_s29 + $0x4e9] sm:$0xff] }
 0x89f   : > { %v7051_v59 = vpop.f32.mrf.mxu2 }
 0x8a0   : > { %9593 = vst.msk [vmem:[%s14234_s12 + $0x300] sm:$0xff] %vm9496_vm2, %v9464_v3  ;;  %v7241_v41 = vadd.f32 %v7051_v59, %v6194_v29  ;;  %v8097_v0 = vpop.f32.mrf.mxu3  ;;  %v6007_v63 = vpop.f32.mrf.mxu1  ;;  %v15761_v29 = vld [vmem:[%s11783_s29 + $0x4ea] sm:$0xff] }
 0x8a1   : > { %v6195_v38 = vadd.f32 %v6007_v63, %v16299_v12  ;;  %v16303_v59 = vld [vmem:[#allocation87_spill] sm:$0xff] }
 0x8a2   : > { %v8287_v39 = vadd.f32 %v8097_v0, %v7241_v41 }
 0x8a3   : > { %v9146_v53 = vpop.f32.mrf.mxu0  ;;  %10869 = vmatmul.msk.f32.gmra.mxu1 %vm462_vm1, %v15641_v61 }
 0x8a4   : > { %v9333_v62 = vadd.f32 %v9143_v30, %v8287_v39  ;;  %11127 = vmatmul.msk.f32.gmra.mxu2 %vm462_vm1, %v10997_v35  ;;  %v11001_v30 = vld [vmem:[%s11783_s29 + $0x4e8] sm:$0xff] }
 0x8a5   : > { %11385 = vmatmul.msk.f32.gmra.mxu3 %vm462_vm1, %v11255_v24 }
 0x8a6   : > { %11643 = vmatmul.msk.f32.gmra.mxu0 %vm462_vm1, %v15701_v52  ;;  %v9465_v13 = vadd.f32 %v15633_v22, %v9333_v62  ;;  %v11260_v62 = vld [vmem:[%s11783_s29 + $0x4f1] sm:$0xff] }
 0x8a7   : > { %v7054_v25 = vpop.f32.mrf.mxu2 }
 0x8a8   : > { %9594 = vst.msk [vmem:[%s14234_s12 + $0x308] sm:$0xff] %vm9496_vm2, %v9465_v13  ;;  %v7242_v45 = vadd.f32 %v7054_v25, %v6195_v38  ;;  %v8100_v18 = vpop.f32.mrf.mxu3  ;;  %v6010_v56 = vpop.f32.mrf.mxu1  ;;  %v15776_v38 = vld [vmem:[%s11783_s29 + $0x4f2] sm:$0xff]  ;;  %v16304_v25 = vld [vmem:[#allocation90_spill] sm:$0xff] }
 0x8a9   : > { %v6196_v47 = vadd.f32 %v6010_v56, %v16300_v8 }
 0x8aa   : > { %v8288_v61 = vadd.f32 %v8100_v18, %v7242_v45 }
 0x8ab   : > { %v9149_v42 = vpop.f32.mrf.mxu0  ;;  %10870 = vmatmul.msk.f32.gmra.mxu1 %vm462_vm1, %v15656_v51 }
 0x8ac   : > { %v9334_v1 = vadd.f32 %v9146_v53, %v8288_v61  ;;  %11128 = vmatmul.msk.f32.gmra.mxu2 %vm462_vm1, %v10998_v49  ;;  %v11002_v53 = vld [vmem:[%s11783_s29 + $0x4f0] sm:$0xff] }
 0x8ad   : > { %11386 = vmatmul.msk.f32.gmra.mxu3 %vm462_vm1, %v11256_v5 }
 0x8ae   : > { %11644 = vmatmul.msk.f32.gmra.mxu0 %vm462_vm1, %v15716_v15  ;;  %v9466_v9 = vadd.f32 %v15633_v22, %v9334_v1  ;;  %v11261_v1 = vld [vmem:[%s11783_s29 + $0x501] sm:$0xff] }
 0x8af   : > { %v7057_v10 = vpop.f32.mrf.mxu2 }
 0x8b0   : > { %9595 = vst.msk [vmem:[%s14234_s12 + $0x310] sm:$0xff] %vm9496_vm2, %v9466_v9  ;;  %v7243_v32 = vadd.f32 %v7057_v10, %v6196_v47  ;;  %v8103_v7 = vpop.f32.mrf.mxu3  ;;  %v6013_v44 = vpop.f32.mrf.mxu1  ;;  %v15791_v47 = vld [vmem:[%s11783_s29 + $0x502] sm:$0xff]  ;;  %v16305_v10 = vld [vmem:[#allocation93_spill] sm:$0xff] }
 0x8b1   : > { %v6197_v23 = vadd.f32 %v6013_v44, %v16301_v20 }
 0x8b2   : > { %v8289_v51 = vadd.f32 %v8103_v7, %v7243_v32 }
 0x8b3   : > { %v9152_v11 = vpop.f32.mrf.mxu0  ;;  %10871 = vmatmul.msk.f32.gmra.mxu1 %vm462_vm1, %v15671_v54 }
 0x8b4   : > { %v9335_v46 = vadd.f32 %v9149_v42, %v8289_v51  ;;  %11129 = vmatmul.msk.f32.gmra.mxu2 %vm462_vm1, %v10999_v37  ;;  %v11003_v42 = vld [vmem:[%s11783_s29 + $0x500] sm:$0xff] }
 0x8b5   : > { %11387 = vmatmul.msk.f32.gmra.mxu3 %vm462_vm1, %v11257_v48 }
 0x8b6   : > { %11645 = vmatmul.msk.f32.gmra.mxu0 %vm462_vm1, %v15731_v50  ;;  %v9467_v28 = vadd.f32 %v15633_v22, %v9335_v46  ;;  %v11262_v46 = vld [vmem:[%s11783_s29 + $0x509] sm:$0xff] }
 0x8b7   : > { %v7060_v60 = vpop.f32.mrf.mxu2 }
 0x8b8   : > { %9596 = vst.msk [vmem:[%s14234_s12 + $0x318] sm:$0xff] %vm9496_vm2, %v9467_v28  ;;  %v7244_v43 = vadd.f32 %v7060_v60, %v6197_v23  ;;  %v8106_v6 = vpop.f32.mrf.mxu3  ;;  %v6016_v14 = vpop.f32.mrf.mxu1  ;;  %v15806_v23 = vld [vmem:[%s11783_s29 + $0x50a] sm:$0xff] }
 0x8b9   : > { %v6198_v33 = vadd.f32 %v6016_v14, %v16302_v16  ;;  %v16306_v60 = vld [vmem:[#allocation3_spill] sm:$0xff] }
 0x8ba   : > { %v8290_v54 = vadd.f32 %v8106_v6, %v7244_v43 }
 0x8bb   : > { %v9155_v19 = vpop.f32.mrf.mxu0  ;;  %10872 = vmatmul.msk.f32.gmra.mxu1 %vm462_vm1, %v15686_v26 }
 0x8bc   : > { %v9336_v57 = vadd.f32 %v9152_v11, %v8290_v54  ;;  %11130 = vmatmul.msk.f32.gmra.mxu2 %vm462_vm1, %v11000_v36  ;;  %v11004_v11 = vld [vmem:[%s11783_s29 + $0x508] sm:$0xff] }
 0x8bd   : > { %11388 = vmatmul.msk.f32.gmra.mxu3 %vm462_vm1, %v11258_v31 }
 0x8be   : > { %11646 = vmatmul.msk.f32.gmra.mxu0 %vm462_vm1, %v15746_v17  ;;  %v9468_v21 = vadd.f32 %v15633_v22, %v9336_v57  ;;  %v11263_v57 = vld [vmem:[%s11783_s29 + $0x511] sm:$0xff] }
 0x8bf   : > { %v7063_v27 = vpop.f32.mrf.mxu2 }
 0x8c0   : > { %9597 = vst.msk [vmem:[%s14234_s12 + $0x320] sm:$0xff] %vm9496_vm2, %v9468_v21  ;;  %v7245_v34 = vadd.f32 %v7063_v27, %v6198_v33  ;;  %v8109_v40 = vpop.f32.mrf.mxu3  ;;  %v6019_v4 = vpop.f32.mrf.mxu1  ;;  %v15821_v33 = vld [vmem:[%s11783_s29 + $0x512] sm:$0xff] }
 0x8c1   : > { %v6199_v41 = vadd.f32 %v6019_v4, %v16303_v59  ;;  %v16307_v27 = vld [vmem:[#allocation5_spill] sm:$0xff] }
 0x8c2   : > { %v8291_v26 = vadd.f32 %v8109_v40, %v7245_v34 }
 0x8c3   : > { %v9158_v58 = vpop.f32.mrf.mxu0  ;;  %10873 = vmatmul.msk.f32.gmra.mxu1 %vm462_vm1, %v15701_v52 }
 0x8c4   : > { %v9337_v3 = vadd.f32 %v9155_v19, %v8291_v26  ;;  %11131 = vmatmul.msk.f32.gmra.mxu2 %vm462_vm1, %v11001_v30  ;;  %v11005_v19 = vld [vmem:[%s11783_s29 + $0x510] sm:$0xff] }
 0x8c5   : > { %11389 = vmatmul.msk.f32.gmra.mxu3 %vm462_vm1, %v11259_v2 }
 0x8c6   : > { %11647 = vmatmul.msk.f32.gmra.mxu0 %vm462_vm1, %v15761_v29  ;;  %v9469_v0 = vadd.f32 %v15633_v22, %v9337_v3  ;;  %v11264_v3 = vld [vmem:[%s11783_s29 + $0x519] sm:$0xff] }
 0x8c7   : > { %v7066_v63 = vpop.f32.mrf.mxu2 }
 0x8c8   : > { %9598 = vst.msk [vmem:[%s14234_s12 + $0x328] sm:$0xff] %vm9496_vm2, %v9469_v0  ;;  %v7246_v35 = vadd.f32 %v7066_v63, %v6199_v41  ;;  %v8112_v39 = vpop.f32.mrf.mxu3  ;;  %v6022_v24 = vpop.f32.mrf.mxu1  ;;  %v15836_v41 = vld [vmem:[%s11783_s29 + $0x51a] sm:$0xff]  ;;  %v16308_v63 = vld [vmem:[#allocation7_spill] sm:$0xff] }
 0x8c9   : > { %v6200_v45 = vadd.f32 %v6022_v24, %v16304_v25 }
 0x8ca   : > { %v8292_v52 = vadd.f32 %v8112_v39, %v7246_v35 }
 0x8cb   : > { %v9161_v12 = vpop.f32.mrf.mxu0  ;;  %10874 = vmatmul.msk.f32.gmra.mxu1 %vm462_vm1, %v15716_v15 }
 0x8cc   : > { %v9338_v13 = vadd.f32 %v9158_v58, %v8292_v52  ;;  %11132 = vmatmul.msk.f32.gmra.mxu2 %vm462_vm1, %v11002_v53  ;;  %v11006_v58 = vld [vmem:[%s11783_s29 + $0x518] sm:$0xff] }
 0x8cd   : > { %11390 = vmatmul.msk.f32.gmra.mxu3 %vm462_vm1, %v11260_v62 }
 0x8ce   : > { %11648 = vmatmul.msk.f32.gmra.mxu0 %vm462_vm1, %v15776_v38  ;;  %v9470_v18 = vadd.f32 %v15633_v22, %v9338_v13  ;;  %v11265_v13 = vld [vmem:[%s11783_s29 + $0x529] sm:$0xff] }
 0x8cf   : > { %v7069_v56 = vpop.f32.mrf.mxu2 }
 0x8d0   : > { %9599 = vst.msk [vmem:[%s14234_s12 + $0x330] sm:$0xff] %vm9496_vm2, %v9470_v18  ;;  %v7247_v49 = vadd.f32 %v7069_v56, %v6200_v45  ;;  %v8115_v61 = vpop.f32.mrf.mxu3  ;;  %v6025_v5 = vpop.f32.mrf.mxu1  ;;  %v11523_v45 = vld [vmem:[%s11783_s29 + $0x52a] sm:$0xff]  ;;  %v16309_v56 = vld [vmem:[#allocation10_spill] sm:$0xff] }
 0x8d1   : > { %v6201_v32 = vadd.f32 %v6025_v5, %v16305_v10 }
 0x8d2   : > { %v8293_v15 = vadd.f32 %v8115_v61, %v7247_v49 }
 0x8d3   : > { %v9164_v8 = vpop.f32.mrf.mxu0  ;;  %10875 = vmatmul.msk.f32.gmra.mxu1 %vm462_vm1, %v15731_v50 }
 0x8d4   : > { %v9339_v9 = vadd.f32 %v9161_v12, %v8293_v15  ;;  %11133 = vmatmul.msk.f32.gmra.mxu2 %vm462_vm1, %v11003_v42  ;;  %v11007_v12 = vld [vmem:[%s11783_s29 + $0x528] sm:$0xff] }
 0x8d5   : > { %11391 = vmatmul.msk.f32.gmra.mxu3 %vm462_vm1, %v11261_v1 }
 0x8d6   : > { %11649 = vmatmul.msk.f32.gmra.mxu0 %vm462_vm1, %v15791_v47  ;;  %v9471_v7 = vadd.f32 %v15633_v22, %v9339_v9 }
 0x8d7   : > { %v7072_v44 = vpop.f32.mrf.mxu2 }
 0x8d8   : > { %9600 = vst.msk [vmem:[%s14234_s12 + $0x338] sm:$0xff] %vm9496_vm2, %v9471_v7  ;;  %v7248_v37 = vadd.f32 %v7072_v44, %v6201_v32  ;;  %v8118_v51 = vpop.f32.mrf.mxu3  ;;  %v6028_v48 = vpop.f32.mrf.mxu1  ;;  %v11524_v32 = vld [vmem:[%s11783_s29 + $0x532] sm:$0xff] }
 0x8d9   : > { %v6202_v43 = vadd.f32 %v6028_v48, %v16306_v60  ;;  %v16310_v44 = vld [vmem:[#allocation13_spill] sm:$0xff] }
 0x8da   : > { %v8294_v50 = vadd.f32 %v8118_v51, %v7248_v37 }
 0x8db   : > { %v9167_v20 = vpop.f32.mrf.mxu0  ;;  %10876 = vmatmul.msk.f32.gmra.mxu1 %vm462_vm1, %v15746_v17 }
 0x8dc   : > { %v9340_v28 = vadd.f32 %v9164_v8, %v8294_v50  ;;  %11134 = vmatmul.msk.f32.gmra.mxu2 %vm462_vm1, %v11004_v11  ;;  %v11008_v8 = vld [vmem:[%s11783_s29 + $0x530] sm:$0xff] }
 0x8dd   : > { %11392 = vmatmul.msk.f32.gmra.mxu3 %vm462_vm1, %v11262_v46 }
 0x8de   : > { %11650 = vmatmul.msk.f32.gmra.mxu0 %vm462_vm1, %v15806_v23  ;;  %v9472_v6 = vadd.f32 %v15633_v22, %v9340_v28 }
 0x8df   : > { %v7075_v14 = vpop.f32.mrf.mxu2 }
 0x8e0   : > { %9601 = vst.msk [vmem:[%s14234_s12 + $0x340] sm:$0xff] %vm9496_vm2, %v9472_v6  ;;  %v7249_v36 = vadd.f32 %v7075_v14, %v6202_v43  ;;  %v8121_v54 = vpop.f32.mrf.mxu3  ;;  %v6031_v31 = vpop.f32.mrf.mxu1  ;;  %v11525_v43 = vld [vmem:[%s11783_s29 + $0x53a] sm:$0xff]  ;;  %v16311_v14 = vld [vmem:[#allocation16_spill] sm:$0xff] }
 0x8e1   : > { %v6203_v34 = vadd.f32 %v6031_v31, %v16307_v27 }
 0x8e2   : > { %v8295_v17 = vadd.f32 %v8121_v54, %v7249_v36 }
 0x8e3   : > { %v9170_v16 = vpop.f32.mrf.mxu0  ;;  %10877 = vmatmul.msk.f32.gmra.mxu1 %vm462_vm1, %v15761_v29 }
 0x8e4   : > { %v9341_v21 = vadd.f32 %v9167_v20, %v8295_v17  ;;  %11135 = vmatmul.msk.f32.gmra.mxu2 %vm462_vm1, %v11005_v19  ;;  %v11009_v20 = vld [vmem:[%s11783_s29 + $0x538] sm:$0xff] }
 0x8e5   : > { %11393 = vmatmul.msk.f32.gmra.mxu3 %vm462_vm1, %v11263_v57 }
 0x8e6   : > { %11651 = vmatmul.msk.f32.gmra.mxu0 %vm462_vm1, %v15821_v33  ;;  %v9473_v40 = vadd.f32 %v15633_v22, %v9341_v21 }
 0x8e7   : > { %v7078_v4 = vpop.f32.mrf.mxu2 }
 0x8e8   : > { %9602 = vst.msk [vmem:[%s14234_s12 + $0x348] sm:$0xff] %vm9496_vm2, %v9473_v40  ;;  %v7250_v30 = vadd.f32 %v7078_v4, %v6203_v34  ;;  %v8124_v26 = vpop.f32.mrf.mxu3  ;;  %v6034_v2 = vpop.f32.mrf.mxu1  ;;  %v11526_v34 = vld [vmem:[%s11783_s29 + $0x542] sm:$0xff] }
 0x8e9   : > { %v6204_v35 = vadd.f32 %v6034_v2, %v16308_v63  ;;  %v16312_v4 = vld [vmem:[#allocation19_spill] sm:$0xff]  ;;  %v16313_v63 = vld [vmem:[#allocation22_spill] sm:$0xff] }
 0x8ea   : > { %v8296_v29 = vadd.f32 %v8124_v26, %v7250_v30 }
 0x8eb   : > { %v9173_v59 = vpop.f32.mrf.mxu0  ;;  %10878 = vmatmul.msk.f32.gmra.mxu1 %vm462_vm1, %v15776_v38 }
 0x8ec   : > { %v9342_v0 = vadd.f32 %v9170_v16, %v8296_v29  ;;  %11136 = vmatmul.msk.f32.gmra.mxu2 %vm462_vm1, %v11006_v58  ;;  %v11010_v16 = vld [vmem:[%s11783_s29 + $0x540] sm:$0xff] }
 0x8ed   : > { %11394 = vmatmul.msk.f32.gmra.mxu3 %vm462_vm1, %v11264_v3 }
 0x8ee   : > { %11652 = vmatmul.msk.f32.gmra.mxu0 %vm462_vm1, %v15836_v41  ;;  %v9474_v39 = vadd.f32 %v15633_v22, %v9342_v0 }
 0x8ef   : > { %v7081_v24 = vpop.f32.mrf.mxu2 }
 0x8f0   : > { %9603 = vst.msk [vmem:[%s14234_s12 + $0x350] sm:$0xff] %vm9496_vm2, %v9474_v39  ;;  %v7251_v53 = vadd.f32 %v7081_v24, %v6204_v35  ;;  %v8127_v52 = vpop.f32.mrf.mxu3  ;;  %v6037_v62 = vpop.f32.mrf.mxu1 }
 0x8f1   : > { %v6205_v49 = vadd.f32 %v6037_v62, %v16309_v56 }
 0x8f2   : > { %v8297_v38 = vadd.f32 %v8127_v52, %v7251_v53 }
 0x8f3   : > { %v9176_v25 = vpop.f32.mrf.mxu0  ;;  %10879 = vmatmul.msk.f32.gmra.mxu1 %vm462_vm1, %v15791_v47  ;;  %v11266_v47 = vld [vmem:[%s11783_s29 + $0x531] sm:$0xff] }
 0x8f4   : > { %v9343_v18 = vadd.f32 %v9173_v59, %v8297_v38  ;;  %11137 = vmatmul.msk.f32.gmra.mxu2 %vm462_vm1, %v11007_v12 }
 0x8f5   : > { %11395 = vmatmul.msk.f32.gmra.mxu3 %vm462_vm1, %v11265_v13 }
 0x8f6   : > { %11653 = vmatmul.msk.f32.gmra.mxu0 %vm462_vm1, %v11523_v45  ;;  %v9475_v61 = vadd.f32 %v15633_v22, %v9343_v18 }
 0x8f7   : > { %v7084_v5 = vpop.f32.mrf.mxu2 }
 0x8f8   : > { %9604 = vst.msk [vmem:[%s14234_s12 + $0x358] sm:$0xff] %vm9496_vm2, %v9475_v61  ;;  %v7252_v42 = vadd.f32 %v7084_v5, %v6205_v49  ;;  %v8130_v15 = vpop.f32.mrf.mxu3  ;;  %v6040_v1 = vpop.f32.mrf.mxu1 }
 0x8f9   : > { %v6206_v37 = vadd.f32 %v6040_v1, %v16310_v44 }
 0x8fa   : > { %v8298_v9 = vadd.f32 %v8130_v15, %v7252_v42 }
 0x8fb   : > { %v9179_v10 = vpop.f32.mrf.mxu0  ;;  %10880 = vmatmul.msk.f32.gmra.mxu1 %vm462_vm1, %v15806_v23  ;;  %v11267_v23 = vld [vmem:[%s11783_s29 + $0x539] sm:$0xff] }
 0x8fc   : > { %v9344_v7 = vadd.f32 %v9176_v25, %v8298_v9  ;;  %11138 = vmatmul.msk.f32.gmra.mxu2 %vm462_vm1, %v11008_v8  ;;  %v16314_v25 = vld [vmem:[#allocation25_spill] sm:$0xff]  ;;  %v16315_v8 = vld [vmem:[#allocation28_spill] sm:$0xff] }
 0x8fd   : > { %11396 = vmatmul.msk.f32.gmra.mxu3 %vm462_vm1, %v11266_v47 }
 0x8fe   : > { %11654 = vmatmul.msk.f32.gmra.mxu0 %vm462_vm1, %v11524_v32  ;;  %v9476_v51 = vadd.f32 %v15633_v22, %v9344_v7 }
 0x8ff   : > { %v7087_v48 = vpop.f32.mrf.mxu2 }
 0x900   : > { %9605 = vst.msk [vmem:[%s14234_s12 + $0x360] sm:$0xff] %vm9496_vm2, %v9476_v51  ;;  %v7253_v11 = vadd.f32 %v7087_v48, %v6206_v37  ;;  %v8133_v50 = vpop.f32.mrf.mxu3  ;;  %v6043_v46 = vpop.f32.mrf.mxu1 }
 0x901   : > { %v6207_v36 = vadd.f32 %v6043_v46, %v16311_v14 }
 0x902   : > { %v8299_v28 = vadd.f32 %v8133_v50, %v7253_v11  ;;  %v16316_v11 = vld [vmem:[#allocation31_spill] sm:$0xff] }
 0x903   : > { %v9182_v60 = vpop.f32.mrf.mxu0  ;;  %10881 = vmatmul.msk.f32.gmra.mxu1 %vm462_vm1, %v15821_v33  ;;  %v11268_v33 = vld [vmem:[%s11783_s29 + $0x541] sm:$0xff] }
 0x904   : > { %v9345_v6 = vadd.f32 %v9179_v10, %v8299_v28  ;;  %11139 = vmatmul.msk.f32.gmra.mxu2 %vm462_vm1, %v11009_v20 }
 0x905   : > { %11397 = vmatmul.msk.f32.gmra.mxu3 %vm462_vm1, %v11267_v23 }
 0x906   : > { %11655 = vmatmul.msk.f32.gmra.mxu0 %vm462_vm1, %v11525_v43  ;;  %v9477_v54 = vadd.f32 %v15633_v22, %v9345_v6 }
 0x907   : > { %v7090_v31 = vpop.f32.mrf.mxu2 }
 0x908   : > { %9606 = vst.msk [vmem:[%s14234_s12 + $0x368] sm:$0xff] %vm9496_vm2, %v9477_v54  ;;  %v7254_v19 = vadd.f32 %v7090_v31, %v6207_v36  ;;  %v8136_v17 = vpop.f32.mrf.mxu3  ;;  %v6046_v57 = vpop.f32.mrf.mxu1  ;;  %v16317_v36 = vld [vmem:[#allocation34_spill] sm:$0xff] }
 0x909   : > { %v6208_v30 = vadd.f32 %v6046_v57, %v16312_v4 }
 0x90a   : > { %v8300_v21 = vadd.f32 %v8136_v17, %v7254_v19 }
 0x90b   : > { %v9185_v27 = vpop.f32.mrf.mxu0  ;;  %10882 = vmatmul.msk.f32.gmra.mxu1 %vm462_vm1, %v15836_v41 }
 0x90c   : > { %v9346_v40 = vadd.f32 %v9182_v60, %v8300_v21  ;;  %11140 = vmatmul.msk.f32.gmra.mxu2 %vm462_vm1, %v11010_v16 }
 0x90d   : > { %11398 = vmatmul.msk.f32.gmra.mxu3 %vm462_vm1, %v11268_v33 }
 0x90e   : > { %11656 = vmatmul.msk.f32.gmra.mxu0 %vm462_vm1, %v11526_v34  ;;  %v9478_v26 = vadd.f32 %v15633_v22, %v9346_v40  ;;  %v16318_v34 = vld [vmem:[#allocation37_spill] sm:$0xff] }
 0x90f   : > { %v7093_v2 = vpop.f32.mrf.mxu2 }
 0x910   : > { %9607 = vst.msk [vmem:[%s14234_s12 + $0x370] sm:$0xff] %vm9496_vm2, %v9478_v26  ;;  %v7255_v58 = vadd.f32 %v7093_v2, %v6208_v30  ;;  %v8139_v29 = vpop.f32.mrf.mxu3  ;;  %v6049_v3 = vpop.f32.mrf.mxu1 }
 0x911   : > { %v6209_v35 = vadd.f32 %v6049_v3, %v16313_v63 }
 0x912   : > { %v8301_v59 = vadd.f32 %v8139_v29, %v7255_v58 }
 0x913   : > { %v9188_v41 = vpop.f32.mrf.mxu0 }
 0x914   : > { %v9347_v0 = vadd.f32 %v9185_v27, %v8301_v59 }
 0x916   : > { %v9479_v39 = vadd.f32 %v15633_v22, %v9347_v0 }
 0x917   : > { %v7096_v24 = vpop.f32.mrf.mxu2 }
 0x918   : > { %9608 = vst.msk [vmem:[%s14234_s12 + $0x378] sm:$0xff] %vm9496_vm2, %v9479_v39  ;;  %v7256_v53 = vadd.f32 %v7096_v24, %v6209_v35  ;;  %v8142_v52 = vpop.f32.mrf.mxu3  ;;  %v6052_v62 = vpop.f32.mrf.mxu1 }
 0x919   : > { %v6210_v45 = vadd.f32 %v6052_v62, %v16314_v25 }
 0x91a   : > { %v8302_v12 = vadd.f32 %v8142_v52, %v7256_v53 }
 0x91b   : > { %v9191_v38 = vpop.f32.mrf.mxu0 }
 0x91c   : > { %v9348_v13 = vadd.f32 %v9188_v41, %v8302_v12  ;;  %v16319_v41 = vld [vmem:[#allocation40_spill] sm:$0xff] }
 0x91e   : > { %v9480_v18 = vadd.f32 %v15633_v22, %v9348_v13 }
 0x91f   : > { %v7099_v56 = vpop.f32.mrf.mxu2 }
 0x920   : > { %9609 = vst.msk [vmem:[%s14234_s12 + $0x380] sm:$0xff] %vm9496_vm2, %v9480_v18  ;;  %v7257_v49 = vadd.f32 %v7099_v56, %v6210_v45  ;;  %v8145_v61 = vpop.f32.mrf.mxu3  ;;  %v6055_v5 = vpop.f32.mrf.mxu1 }
 0x921   : > { %v6211_v9 = vadd.f32 %v6055_v5, %v16315_v8 }
 0x922   : > { %v8303_v42 = vadd.f32 %v8145_v61, %v7257_v49 }
 0x923   : > { %v9194_v15 = vpop.f32.mrf.mxu0 }
 0x924   : > { %v9349_v1 = vadd.f32 %v9191_v38, %v8303_v42  ;;  %v16320_v38 = vld [vmem:[#allocation43_spill] sm:$0xff] }
 0x926   : > { %v9481_v47 = vadd.f32 %v15633_v22, %v9349_v1 }
 0x927   : > { %v7102_v10 = vpop.f32.mrf.mxu2 }
 0x928   : > { %9610 = vst.msk [vmem:[%s14234_s12 + $0x388] sm:$0xff] %vm9496_vm2, %v9481_v47  ;;  %v7258_v32 = vadd.f32 %v7102_v10, %v6211_v9  ;;  %v8148_v7 = vpop.f32.mrf.mxu3  ;;  %v6058_v44 = vpop.f32.mrf.mxu1 }
 0x929   : > { %v6212_v50 = vadd.f32 %v6058_v44, %v16316_v11 }
 0x92a   : > { %v8304_v37 = vadd.f32 %v8148_v7, %v7258_v32 }
 0x92b   : > { %v9197_v51 = vpop.f32.mrf.mxu0 }
 0x92c   : > { %v9350_v48 = vadd.f32 %v9194_v15, %v8304_v37  ;;  %v16321_v15 = vld [vmem:[#allocation46_spill] sm:$0xff] }
 0x92e   : > { %v9482_v46 = vadd.f32 %v15633_v22, %v9350_v48 }
 0x92f   : > { %v7105_v20 = vpop.f32.mrf.mxu2 }
 0x930   : > { %9611 = vst.msk [vmem:[%s14234_s12 + $0x390] sm:$0xff] %vm9496_vm2, %v9482_v46  ;;  %v7259_v28 = vadd.f32 %v7105_v20, %v6212_v50  ;;  %v8151_v23 = vpop.f32.mrf.mxu3  ;;  %v6061_v60 = vpop.f32.mrf.mxu1 }
 0x931   : > { %v6213_v54 = vadd.f32 %v6061_v60, %v16317_v36 }
 0x932   : > { %v8305_v43 = vadd.f32 %v8151_v23, %v7259_v28 }
 0x933   : > { %v9200_v6 = vpop.f32.mrf.mxu0 }
 0x934   : > { %v9351_v14 = vadd.f32 %v9197_v51, %v8305_v43  ;;  %v16322_v51 = vld [vmem:[#allocation49_spill] sm:$0xff] }
 0x936   : > { %v9483_v31 = vadd.f32 %v15633_v22, %v9351_v14 }
 0x937   : > { %v7108_v19 = vpop.f32.mrf.mxu2 }
 0x938   : > { %9612 = vst.msk [vmem:[%s14234_s12 + $0x398] sm:$0xff] %vm9496_vm2, %v9483_v31  ;;  %v7260_v17 = vadd.f32 %v7108_v19, %v6213_v54  ;;  %v8154_v57 = vpop.f32.mrf.mxu3  ;;  %v6064_v16 = vpop.f32.mrf.mxu1 }
 0x939   : > { %v6214_v40 = vadd.f32 %v6064_v16, %v16318_v34 }
 0x93a   : > { %v8306_v21 = vadd.f32 %v8154_v57, %v7260_v17 }
 0x93b   : > { %v9203_v33 = vpop.f32.mrf.mxu0 }
 0x93c   : > { %v9352_v27 = vadd.f32 %v9200_v6, %v8306_v21  ;;  %v16323_v6 = vld [vmem:[#allocation52_spill] sm:$0xff] }
 0x93e   : > { %v9484_v4 = vadd.f32 %v15633_v22, %v9352_v27 }
 0x93f   : > { %v7111_v30 = vpop.f32.mrf.mxu2 }
 0x940   : > { %9613 = vst.msk [vmem:[%s14234_s12 + $0x3a0] sm:$0xff] %vm9496_vm2, %v9484_v4  ;;  %v7261_v26 = vadd.f32 %v7111_v30, %v6214_v40  ;;  %v8157_v2 = vpop.f32.mrf.mxu3  ;;  %v6067_v58 = vpop.f32.mrf.mxu1 }
 0x941   : > { %v6215_v0 = vadd.f32 %v6067_v58, %v16319_v41 }
 0x942   : > { %v8307_v29 = vadd.f32 %v8157_v2, %v7261_v26 }
 0x943   : > { %v9206_v3 = vpop.f32.mrf.mxu0 }
 0x944   : > { %v9353_v59 = vadd.f32 %v9203_v33, %v8307_v29  ;;  %v16324_v33 = vld [vmem:[#allocation55_spill] sm:$0xff] }
 0x946   : > { %v9485_v63 = vadd.f32 %v15633_v22, %v9353_v59 }
 0x947   : > { %v7114_v35 = vpop.f32.mrf.mxu2 }
 0x948   : > { %9614 = vst.msk [vmem:[%s14234_s12 + $0x3a8] sm:$0xff] %vm9496_vm2, %v9485_v63  ;;  %v7262_v39 = vadd.f32 %v7114_v35, %v6215_v0  ;;  %v8160_v24 = vpop.f32.mrf.mxu3  ;;  %v6070_v53 = vpop.f32.mrf.mxu1 }
 0x949   : > { %v6216_v13 = vadd.f32 %v6070_v53, %v16320_v38 }
 0x94a   : > { %v8308_v52 = vadd.f32 %v8160_v24, %v7262_v39 }
 0x94b   : > { %v9209_v62 = vpop.f32.mrf.mxu0 }
 0x94c   : > { %v9354_v12 = vadd.f32 %v9206_v3, %v8308_v52  ;;  %v16325_v3 = vld [vmem:[#allocation58_spill] sm:$0xff] }
 0x94e   : > { %v9486_v25 = vadd.f32 %v15633_v22, %v9354_v12 }
 0x94f   : > { %v7117_v45 = vpop.f32.mrf.mxu2 }
 0x950   : > { %9615 = vst.msk [vmem:[%s14234_s12 + $0x3b0] sm:$0xff] %vm9496_vm2, %v9486_v25  ;;  %v7263_v18 = vadd.f32 %v7117_v45, %v6216_v13  ;;  %v8163_v56 = vpop.f32.mrf.mxu3  ;;  %v6073_v49 = vpop.f32.mrf.mxu1 }
 0x951   : > { %v6217_v1 = vadd.f32 %v6073_v49, %v16321_v15 }
 0x952   : > { %v8309_v61 = vadd.f32 %v8163_v56, %v7263_v18 }
 0x953   : > { %v9212_v5 = vpop.f32.mrf.mxu0 }
 0x954   : > { %v9355_v42 = vadd.f32 %v9209_v62, %v8309_v61  ;;  %v16326_v62 = vld [vmem:[#allocation61_spill] sm:$0xff] }
 0x956   : > { %v9487_v8 = vadd.f32 %v15633_v22, %v9355_v42 }
 0x957   : > { %v7120_v9 = vpop.f32.mrf.mxu2 }
 0x958   : > { %9616 = vst.msk [vmem:[%s14234_s12 + $0x3b8] sm:$0xff] %vm9496_vm2, %v9487_v8  ;;  %v7264_v47 = vadd.f32 %v7120_v9, %v6217_v1  ;;  %v8166_v10 = vpop.f32.mrf.mxu3  ;;  %v6076_v32 = vpop.f32.mrf.mxu1 }
 0x959   : > { %v6218_v48 = vadd.f32 %v6076_v32, %v16322_v51  ;;  %v16327_v32 = vld [vmem:[#allocation64_spill] sm:$0xff] }
 0x95a   : > { %v8310_v7 = vadd.f32 %v8166_v10, %v7264_v47 }
 0x95b   : > { %v9215_v44 = vpop.f32.mrf.mxu0 }
 0x95c   : > { %v9356_v37 = vadd.f32 %v9212_v5, %v8310_v7 }
 0x95e   : > { %v9488_v11 = vadd.f32 %v15633_v22, %v9356_v37 }
 0x95f   : > { %v7123_v50 = vpop.f32.mrf.mxu2 }
 0x960   : > { %9617 = vst.msk [vmem:[%s14234_s12 + $0x3c0] sm:$0xff] %vm9496_vm2, %v9488_v11  ;;  %v7265_v46 = vadd.f32 %v7123_v50, %v6218_v48  ;;  %v8169_v20 = vpop.f32.mrf.mxu3  ;;  %v6079_v28 = vpop.f32.mrf.mxu1 }
 0x961   : > { %v6219_v14 = vadd.f32 %v6079_v28, %v16323_v6 }
 0x962   : > { %v8311_v23 = vadd.f32 %v8169_v20, %v7265_v46 }
 0x963   : > { %v9218_v60 = vpop.f32.mrf.mxu0 }
 0x964   : > { %v9357_v43 = vadd.f32 %v9215_v44, %v8311_v23 }
 0x966   : > { %v9489_v36 = vadd.f32 %v15633_v22, %v9357_v43 }
 0x967   : > { %v7126_v54 = vpop.f32.mrf.mxu2 }
 0x968   : > { %9618 = vst.msk [vmem:[%s14234_s12 + $0x3c8] sm:$0xff] %vm9496_vm2, %v9489_v36  ;;  %v7266_v31 = vadd.f32 %v7126_v54, %v6219_v14  ;;  %v8172_v19 = vpop.f32.mrf.mxu3  ;;  %v6082_v17 = vpop.f32.mrf.mxu1 }
 0x969   : > { %v6220_v27 = vadd.f32 %v6082_v17, %v16324_v33 }
 0x96a   : > { %v8312_v57 = vadd.f32 %v8172_v19, %v7266_v31 }
 0x96b   : > { %v9221_v16 = vpop.f32.mrf.mxu0 }
 0x96c   : > { %v9358_v21 = vadd.f32 %v9218_v60, %v8312_v57 }
 0x96e   : > { %v9490_v34 = vadd.f32 %v15633_v22, %v9358_v21 }
 0x96f   : > { %v7129_v40 = vpop.f32.mrf.mxu2 }
 0x970   : > { %9619 = vst.msk [vmem:[%s14234_s12 + $0x3d0] sm:$0xff] %vm9496_vm2, %v9490_v34  ;;  %v7267_v4 = vadd.f32 %v7129_v40, %v6220_v27  ;;  %v8175_v30 = vpop.f32.mrf.mxu3  ;;  %v6085_v26 = vpop.f32.mrf.mxu1 }
 0x971   : > { %v6221_v59 = vadd.f32 %v6085_v26, %v16325_v3 }
 0x972   : > { %v8313_v2 = vadd.f32 %v8175_v30, %v7267_v4 }
 0x973   : > { %v9224_v58 = vpop.f32.mrf.mxu0 }
 0x974   : > { %v9359_v29 = vadd.f32 %v9221_v16, %v8313_v2 }
 0x976   : > { %v9491_v41 = vadd.f32 %v15633_v22, %v9359_v29 }
 0x977   : > { %v7132_v0 = vpop.f32.mrf.mxu2 }
 0x978   : > { %9620 = vst.msk [vmem:[%s14234_s12 + $0x3d8] sm:$0xff] %vm9496_vm2, %v9491_v41  ;;  %v7268_v63 = vadd.f32 %v7132_v0, %v6221_v59  ;;  %v8178_v35 = vpop.f32.mrf.mxu3  ;;  %v6088_v39 = vpop.f32.mrf.mxu1 }
 0x979   : > { %v6222_v12 = vadd.f32 %v6088_v39, %v16326_v62 }
 0x97a   : > { %v8314_v24 = vadd.f32 %v8178_v35, %v7268_v63 }
 0x97b   : > { %v9227_v52 = vpop.f32.mrf.mxu0 }
 0x97c   : > { %v9360_v53 = vadd.f32 %v9224_v58, %v8314_v24 }
 0x97e   : > { %v9492_v38 = vadd.f32 %v15633_v22, %v9360_v53 }
 0x97f   : > { %v7135_v13 = vpop.f32.mrf.mxu2 }
 0x980   : > { %9621 = vst.msk [vmem:[%s14234_s12 + $0x3e0] sm:$0xff] %vm9496_vm2, %v9492_v38  ;;  %v7269_v25 = vadd.f32 %v7135_v13, %v6222_v12  ;;  %v8181_v45 = vpop.f32.mrf.mxu3  ;;  %v6091_v18 = vpop.f32.mrf.mxu1 }
 0x981   : > { %v6223_v61 = vadd.f32 %v6091_v18, %v14196_v55 }
 0x982   : > { %v8315_v56 = vadd.f32 %v8181_v45, %v7269_v25 }
 0x983   : > { %v9230_v15 = vpop.f32.mrf.mxu0 }
 0x984   : > { %v9361_v49 = vadd.f32 %v9227_v52, %v8315_v56 }
 0x986   : > { %v9493_v5 = vadd.f32 %v15633_v22, %v9361_v49 }
 0x987   : > { %v7138_v42 = vpop.f32.mrf.mxu2 }
 0x988   : > { %9622 = vst.msk [vmem:[%s14234_s12 + $0x3e8] sm:$0xff] %vm9496_vm2, %v9493_v5  ;;  %v7270_v1 = vadd.f32 %v7138_v42, %v6223_v61  ;;  %v8184_v8 = vpop.f32.mrf.mxu3  ;;  %v6094_v47 = vpop.f32.mrf.mxu1 }
 0x989   : > { %v6224_v7 = vadd.f32 %v6094_v47, %v16327_v32 }
 0x98a   : > { %v8316_v9 = vadd.f32 %v8184_v8, %v7270_v1 }
 0x98b   : > { %v9233_v48 = vpop.f32.mrf.mxu0 }
 0x98c   : > { %v9362_v10 = vadd.f32 %v9230_v15, %v8316_v9 }
 0x98e   : > { %v9494_v44 = vadd.f32 %v15633_v22, %v9362_v10 }
 0x98f   : > { %v7141_v37 = vpop.f32.mrf.mxu2 }
 0x990   : > { %9623 = vst.msk [vmem:[%s14234_s12 + $0x3f0] sm:$0xff] %vm9496_vm2, %v9494_v44  ;;  %v7271_v55 = vadd.f32 %v7141_v37, %v6224_v7  ;;  %v8187_v51 = vpop.f32.mrf.mxu3 }
 0x992   : > { %v8317_v11 = vadd.f32 %v8187_v51, %v7271_v55 }
 0x994   : > { %v9363_v50 = vadd.f32 %v9233_v48, %v8317_v11 }
 0x996   : > { %v9495_v46 = vadd.f32 %v15633_v22, %v9363_v50 }
 0x998   : > { %9624 = vst.msk [vmem:[%s14234_s12 + $0x3f8] sm:$0xff] %vm9496_vm2, %v9495_v46 }
 0x999 PF: > { %s13_s14 = sadd.s32 1, %s11714_s14   ;;  %s16328_s12 = smov %s11710_s13 }
 0x99a   : > { %p10_p5 = scmp.ge.s32.totalorder %s13_s14, 4   ;;  %s16329_s13 = smov %s16331_s15 }
 0x99c   :  { %12 = sbr.rel (!%p10_p5) target bundleno = 2 (0x2), region = 72 }

</bundles_post_ra>
